<compile_context>
chip_gen: v6e
topology: v6e:2x2x1
jax: 0.10.0
libtpu: 0.0.40
codegen_flags: <defaults>
</compile_context>

<pallas_src>
import functools

import jax
import jax.numpy as jnp
from jax import lax
from jax.experimental import pallas as pl
from jax.experimental.pallas import tpu as pltpu


def _round_up(x: int, m: int) -> int:
    return ((x + m - 1) // m) * m


def _fused_kernel(p_ref, u_ref, v_ref, wu_ref, wv_ref,   # inputs
                  hu_ref, hv_ref,                        # outputs
                  acc_v_ref, deg_v_ref,                  # scratch
                  *, n_u: int, ragged: bool):
    """One user-row tile: emit hidden_u tile, accumulate item side, finalize at the end."""
    i = pl.program_id(0)
    last = pl.num_programs(0) - 1
    tm = p_ref.shape[0]

    @pl.when(i == 0)
    def _init():
        acc_v_ref[...] = jnp.zeros_like(acc_v_ref)
        deg_v_ref[...] = jnp.zeros_like(deg_v_ref)

    # bf16 (or f32) rating tile -> f32; upcast hides under the tile DMA.
    p = p_ref[...].astype(jnp.float32)
    u = u_ref[...]
    if ragged:
        # Ragged last tile: rows past n_u hold undefined DMA padding.  Zero them so they
        # cannot pollute the item-side accumulation (jnp.where is NaN-safe, unlike *mask).
        row = lax.broadcasted_iota(jnp.int32, (tm, 1), 0) + i * tm
        valid = row < n_u
        p = jnp.where(valid, p, 0.0)
        u = jnp.where(valid, u, 0.0)

    nz = (p > 0).astype(jnp.float32)

    # ---------------- user side (independent per row tile) ----------------
    agg_u = jnp.dot(p, v_ref[...], preferred_element_type=jnp.float32)   # (tm, F_v)  MXU
    deg_u = jnp.sum(nz, axis=1, keepdims=True)                           # (tm, 1)    XLU
    scale_u = jnp.where(deg_u > 0, pl.reciprocal(deg_u, approx=False), 0.0)
    hu = jnp.dot(scale_u * agg_u, wu_ref[...], preferred_element_type=jnp.float32)
    hu_ref[...] = jnp.maximum(hu, 0.0)                                   # lane-dense store

    # ---------------- item side: accumulate the P^T contraction -----------
    dn = (((0,), (0,)), ((), ()))   # contract dim 0 of both -> P^T never materialized
    acc_v_ref[...] += lax.dot_general(p, u, dimension_numbers=dn,
                                      preferred_element_type=jnp.float32)   # (n_v, F_u)
    # Column nnz counts produced directly as (n_v, 1) via a 1-wide MXU dot (avoids a
    # lane->sublane relayout of a (1, n_v) strip; cost only matters if MXU-bound).
    ones_col = jnp.ones((tm, 1), jnp.float32)
    deg_v_ref[...] += lax.dot_general(nz, ones_col, dimension_numbers=dn,
                                      preferred_element_type=jnp.float32)   # (n_v, 1)

    @pl.when(i == last)
    def _finalize():
        deg_v = deg_v_ref[...]
        scale_v = jnp.where(deg_v > 0, pl.reciprocal(deg_v, approx=False), 0.0)
        hv = jnp.dot(scale_v * acc_v_ref[...], wv_ref[...],
                     preferred_element_type=jnp.float32)
        hv_ref[...] = jnp.maximum(hv, 0.0)   # resident output, written back once


def bipartite_graph_convolution(perchase, u_feature, v_feature, weight_u, weight_v):
    n_u, n_v = perchase.shape
    f_u = u_feature.shape[1]
    f_v = v_feature.shape[1]
    o_u = weight_u.shape[1]
    o_v = weight_v.shape[1]

    f_u_p = _round_up(f_u, 128)
    f_v_p = _round_up(f_v, 128)
    o_u_p = _round_up(o_u, 128)
    o_v_p = _round_up(o_v, 128)

    # Only the small operands are padded (lane-dense MXU K and output widths); P is fed
    # exactly as given — bf16 upstream halves its HBM bytes, f32 also works.
    u_p = jnp.pad(u_feature.astype(jnp.float32), ((0, 0), (0, f_u_p - f_u)))
    v_p = jnp.pad(v_feature.astype(jnp.float32), ((0, 0), (0, f_v_p - f_v)))
    w_u_p = jnp.pad(weight_u.astype(jnp.float32), ((0, f_v_p - f_v), (0, o_u_p - o_u)))
    w_v_p = jnp.pad(weight_v.astype(jnp.float32), ((0, f_u_p - f_u), (0, o_v_p - o_v)))

    p_item = jnp.dtype(perchase.dtype).itemsize

    # ---------------- VMEM budget & row-tile selection ----------------
    try:
        vmem_capacity = int(pltpu.get_tpu_info().vmem_capacity_bytes)
    except Exception:
        vmem_capacity = 64 << 20            # conservative (v7x-sized) fallback

    def vmem_need(tm):
        dbl = 2                              # default double-buffering of pipelined blocks
        fixed = (dbl * n_v * f_v_p * 4                        # v_feature (grid-invariant)
                 + dbl * (f_v_p * o_u_p + f_u_p * o_v_p) * 4  # weights (grid-invariant)
                 + dbl * n_v * o_v_p * 4                      # resident hidden_v output
                 + n_v * f_u_p * 4                            # acc_v scratch
                 + _round_up(n_v, 8) * 512                    # deg_v scratch (lane-padded)
                 + n_v * f_u_p * 4)                           # dot_general temp before +=
        per_tm = (dbl * tm * n_v * p_item                     # P row tile
                  + dbl * tm * f_u_p * 4                      # u_feature row tile
                  + dbl * tm * o_u_p * 4                      # hidden_u output tile
                  + int(2.5 * tm * n_v * 4)                   # f32 upcast / nz / mask temps
                  + tm * f_v_p * 4)                           # agg_u temp
        return fixed + per_tm

    budget = max(vmem_capacity - (10 << 20), 16 << 20)

    # Padding-aware tile cap: balance the tiles so a near-empty ragged tile is avoided.
    tm_hi = min(512, _round_up(n_u, 8))
    min_steps = pl.cdiv(n_u, tm_hi)
    tm_hi = min(tm_hi, _round_up(pl.cdiv(n_u, min_steps), 8))

    tm = 8
    for cand in range(tm_hi, 7, -8):
        if vmem_need(cand) <= budget:
            tm = cand
            break
    # TODO(synk): if even tm=8 overflows the budget (huge n_v) a 2-D K-tiled grid that
    #             also tiles v_feature / acc_v would be required.

    need = vmem_need(tm)
    vmem_limit = int(min(max(need + (4 << 20), 16 << 20), vmem_capacity - (8 << 20)))

    grid = (pl.cdiv(n_u, tm),)
    ragged = (n_u % tm) != 0
    kernel = functools.partial(_fused_kernel, n_u=n_u, ragged=ragged)

    flops = (2 * n_u * n_v * (f_v_p + f_u_p + 1)
             + 2 * n_u * f_v_p * o_u_p + 2 * n_v * f_u_p * o_v_p)
    bytes_accessed = (n_u * n_v * p_item
                      + 4 * (n_u * f_u_p + n_v * f_v_p
                             + f_v_p * o_u_p + f_u_p * o_v_p
                             + n_u * o_u_p + n_v * o_v_p))

    hidden_u, hidden_v = pl.pallas_call(
        kernel,
        out_shape=(jax.ShapeDtypeStruct((n_u, o_u_p), jnp.float32),
                   jax.ShapeDtypeStruct((n_v, o_v_p), jnp.float32)),
        grid=grid,
        in_specs=[
            pl.BlockSpec((tm, n_v), lambda i: (i, 0)),        # P row tile, full width
            pl.BlockSpec((tm, f_u_p), lambda i: (i, 0)),      # u_feature row tile
            pl.BlockSpec((n_v, f_v_p), lambda i: (0, 0)),     # v_feature, VMEM-resident
            pl.BlockSpec((f_v_p, o_u_p), lambda i: (0, 0)),   # W_u, VMEM-resident
            pl.BlockSpec((f_u_p, o_v_p), lambda i: (0, 0)),   # W_v, VMEM-resident
        ],
        out_specs=(
            pl.BlockSpec((tm, o_u_p), lambda i: (i, 0)),      # hidden_u, per row tile
            pl.BlockSpec((n_v, o_v_p), lambda i: (0, 0)),     # hidden_v, resident + finalized
        ),
        scratch_shapes=[
            pltpu.VMEM((n_v, f_u_p), jnp.float32),            # acc_v  (P^T @ u accumulation)
            pltpu.VMEM((n_v, 1), jnp.float32),                # deg_v  (column nnz counts)
        ],
        compiler_params=pltpu.CompilerParams(
            # The single grid axis carries the item-side accumulation -> must be arbitrary.
            dimension_semantics=("arbitrary",),
            vmem_limit_bytes=vmem_limit,
        ),
        cost_estimate=pl.CostEstimate(flops=int(flops), transcendentals=0,
                                      bytes_accessed=int(bytes_accessed)),
    )(perchase, u_p, v_p, w_u_p, w_v_p)

    return hidden_u[:, :o_u], hidden_v[:, :o_v]


def _reference(perchase, u_feature, v_feature, weight_u, weight_v):
    """Pure-JAX reference mirroring the PyTorch forward (f32)."""
    deg_u = jnp.sum(perchase > 0, axis=1).astype(jnp.float32)
    deg_v = jnp.sum(perchase > 0, axis=0).astype(jnp.float32)
    inv_u = jnp.where(deg_u > 0, 1.0 / deg_u, 0.0)
    inv_v = jnp.where(deg_v > 0, 1.0 / deg_v, 0.0)
    hu = (inv_u[:, None] * (perchase @ v_feature)) @ weight_u
    hv = (inv_v[:, None] * (perchase.T @ u_feature)) @ weight_v
    return jax.nn.relu(hu), jax.nn.relu(hv)


if __name__ == "__main__":
    # Shapes chosen to exercise the full path: multiple grid steps, a ragged last row
    # tile (520 % tile != 0), an un-aligned item count (300, no padding of P needed),
    # and feature/output widths below 128 (padded in the wrapper only).
    N_U, N_V = 520, 300          # users, items
    IN_U, IN_V = 64, 96          # u_feature / v_feature widths
    OUT_U, OUT_V = 32, 48        # output widths
    RATING = 5                   # module attribute (unused in forward)

    key = jax.random.PRNGKey(0)
    k_mask, k_rate, k_uf, k_vf, k_wu, k_wv = jax.random.split(key, 6)

    # Sparse-ish rating matrix: ~30% nonzero, ratings in {1..RATING}.
    mask = (jax.random.uniform(k_mask, (N_U, N_V)) < 0.3).astype(jnp.float32)
    ratings = jax.random.randint(k_rate, (N_U, N_V), 1, RATING + 1).astype(jnp.float32)
    perchase_f32 = mask * ratings
    # Feed P as bf16 (exact for the integer ratings) -> half the dominant HBM stream.
    perchase = perchase_f32.astype(jnp.bfloat16)

    u_feature = jax.random.normal(k_uf, (N_U, IN_U), dtype=jnp.float32)
    v_feature = jax.random.normal(k_vf, (N_V, IN_V), dtype=jnp.float32)

    # Deterministic parameter init, matching nn.Parameter(...).normal_(0, 0.02).
    weight_u = 0.02 * jax.random.normal(k_wu, (IN_V, OUT_U), dtype=jnp.float32)
    weight_v = 0.02 * jax.random.normal(k_wv, (IN_U, OUT_V), dtype=jnp.float32)

    fwd = jax.jit(bipartite_graph_convolution)
    hu, hv = fwd(perchase, u_feature, v_feature, weight_u, weight_v)
    jax.block_until_ready((hu, hv))

    ref_hu, ref_hv = _reference(perchase_f32, u_feature, v_feature, weight_u, weight_v)
    assert hu.shape == (N_U, OUT_U) and hv.shape == (N_V, OUT_V)
    assert jnp.allclose(hu, ref_hu, atol=1e-4, rtol=1e-4)
    assert jnp.allclose(hv, ref_hv, atol=1e-4, rtol=1e-4)

    print("KERNEL_OK")
</pallas_src>

<mosaic_0001>
module attributes {stable_mosaic.version = 11 : i64} {
  func.func @_fused_kernel(%arg0: i32, %arg1: memref<264x300xbf16, #tpu.memory_space<vmem>>, %arg2: memref<264x128xf32, #tpu.memory_space<vmem>>, %arg3: memref<300x128xf32, #tpu.memory_space<vmem>>, %arg4: memref<128x128xf32, #tpu.memory_space<vmem>>, %arg5: memref<128x128xf32, #tpu.memory_space<vmem>>, %arg6: memref<264x128xf32, #tpu.memory_space<vmem>>, %arg7: memref<300x128xf32, #tpu.memory_space<vmem>>, %arg8: memref<300x128xf32, #tpu.memory_space<vmem>>, %arg9: memref<300x1xf32, #tpu.memory_space<vmem>>) attributes {dimension_semantics = [#tpu.dimension_semantics<arbitrary>], iteration_bounds = array<i64: 2>, scalar_prefetch = 0 : i64, scratch_operands = 2 : i64, tpu.core_type = #tpu.core_type<tc>, window_params = [{transform_indices = @transform_0, window_bounds = array<i64: 264, 300>}, {transform_indices = @transform_1, window_bounds = array<i64: 264, 128>}, {pipeline_mode = #tpu.pipeline_mode<synchronous>, transform_indices = @transform_2, window_bounds = array<i64: 300, 128>}, {pipeline_mode = #tpu.pipeline_mode<synchronous>, transform_indices = @transform_3, window_bounds = array<i64: 128, 128>}, {pipeline_mode = #tpu.pipeline_mode<synchronous>, transform_indices = @transform_4, window_bounds = array<i64: 128, 128>}, {transform_indices = @transform_5, window_bounds = array<i64: 264, 128>}, {pipeline_mode = #tpu.pipeline_mode<synchronous>, transform_indices = @transform_6, window_bounds = array<i64: 300, 128>}]} {
    %c0_i32 = arith.constant 0 : i32
    %0 = arith.cmpi eq, %arg0, %c0_i32 : i32
    %1 = arith.extui %0 : i1 to i32
    %c0_i32_0 = arith.constant 0 : i32
    %2 = arith.cmpi ne, %1, %c0_i32_0 : i32
    scf.if %2 {
      %cst_30 = arith.constant 0.000000e+00 : f32
      %52 = vector.broadcast %cst_30 : f32 to vector<300x128xf32>
      %c0_31 = arith.constant 0 : index
      %c0_32 = arith.constant 0 : index
      %53 = vector.load %arg8[%c0_31, %c0_32] : memref<300x128xf32, #tpu.memory_space<vmem>>, vector<300x128xf32>
      tpu.vector_store %arg8[%c0_31, %c0_32], %52 {strides = array<i32>} : memref<300x128xf32, #tpu.memory_space<vmem>>, vector<300x128xf32>,
      %cst_33 = arith.constant 0.000000e+00 : f32
      %54 = vector.broadcast %cst_33 : f32 to vector<300x1xf32>
      %c0_34 = arith.constant 0 : index
      %c0_35 = arith.constant 0 : index
      %55 = vector.load %arg9[%c0_34, %c0_35] : memref<300x1xf32, #tpu.memory_space<vmem>>, vector<300x1xf32>
      tpu.vector_store %arg9[%c0_34, %c0_35], %54 {strides = array<i32>} : memref<300x1xf32, #tpu.memory_space<vmem>>, vector<300x1xf32>,
    } else {
    }
    %c0 = arith.constant 0 : index
    %c0_1 = arith.constant 0 : index
    %3 = vector.load %arg1[%c0, %c0_1] : memref<264x300xbf16, #tpu.memory_space<vmem>>, vector<264x300xbf16>
    %4 = arith.extf %3 : vector<264x300xbf16> to vector<264x300xf32>
    %c0_2 = arith.constant 0 : index
    %c0_3 = arith.constant 0 : index
    %5 = vector.load %arg2[%c0_2, %c0_3] : memref<264x128xf32, #tpu.memory_space<vmem>>, vector<264x128xf32>
    %6 = tpu.iota {dimensions = array<i32: 0>} : vector<264x1xi32>
    %c264_i32 = arith.constant 264 : i32
    %7 = arith.muli %arg0, %c264_i32 : i32
    %8 = vector.broadcast %7 : i32 to vector<264x1xi32>
    %9 = arith.addi %6, %8 : vector<264x1xi32>
    %c520_i32 = arith.constant 520 : i32
    %10 = vector.broadcast %c520_i32 : i32 to vector<264x1xi32>
    %11 = arith.cmpi slt, %9, %10 : vector<264x1xi32>
    %cst = arith.constant 0.000000e+00 : f32
    %12 = vector.shape_cast %11 : vector<264x1xi1> to vector<264x1xi1>
    %13 = vector.broadcast %12 : vector<264x1xi1> to vector<264x300xi1>
    %14 = vector.broadcast %cst : f32 to vector<264x300xf32>
    %15 = arith.select %13, %4, %14 : vector<264x300xi1>, vector<264x300xf32>
    %cst_4 = arith.constant 0.000000e+00 : f32
    %16 = vector.shape_cast %11 : vector<264x1xi1> to vector<264x1xi1>
    %17 = vector.broadcast %16 : vector<264x1xi1> to vector<264x128xi1>
    %18 = vector.broadcast %cst_4 : f32 to vector<264x128xf32>
    %19 = arith.select %17, %5, %18 : vector<264x128xi1>, vector<264x128xf32>
    %cst_5 = arith.constant 0.000000e+00 : f32
    %20 = vector.broadcast %cst_5 : f32 to vector<264x300xf32>
    %21 = arith.cmpf ogt, %15, %20 : vector<264x300xf32>
    %22 = arith.extui %21 : vector<264x300xi1> to vector<264x300xi32>
    %23 = arith.sitofp %22 : vector<264x300xi32> to vector<264x300xf32>
    %c0_6 = arith.constant 0 : index
    %c0_7 = arith.constant 0 : index
    %24 = vector.load %arg3[%c0_6, %c0_7] : memref<300x128xf32, #tpu.memory_space<vmem>>, vector<300x128xf32>
    %cst_8 = arith.constant dense<0.000000e+00> : vector<264x128xf32>
    %25 = tpu.matmul %15, %24, %cst_8 {dimension_numbers = #tpu.dot_dimension_numbers<[1], [0], [0], [1], [0, 0, 1, 1], [], []>} : vector<264x300xf32>, vector<300x128xf32>, vector<264x128xf32> -> vector<264x128xf32>
    %cst_9 = arith.constant dense<0.000000e+00> : vector<264xf32>
    %26 = vector.multi_reduction <add>, %23, %cst_9 [1] : vector<264x300xf32> to vector<264xf32>
    %27 = vector.shape_cast %26 : vector<264xf32> to vector<264x1xf32>
    %cst_10 = arith.constant 0.000000e+00 : f32
    %28 = vector.broadcast %cst_10 : f32 to vector<264x1xf32>
    %29 = arith.cmpf ogt, %27, %28 : vector<264x1xf32>
    %30 = tpu.reciprocal %27 : vector<264x1xf32> -> vector<264x1xf32>
    %cst_11 = arith.constant 0.000000e+00 : f32
    %31 = vector.broadcast %cst_11 : f32 to vector<264x1xf32>
    %32 = arith.select %29, %30, %31 : vector<264x1xi1>, vector<264x1xf32>
    %33 = vector.broadcast %32 : vector<264x1xf32> to vector<264x128xf32>
    %34 = arith.mulf %33, %25 : vector<264x128xf32>
    %c0_12 = arith.constant 0 : index
    %c0_13 = arith.constant 0 : index
    %35 = vector.load %arg4[%c0_12, %c0_13] : memref<128x128xf32, #tpu.memory_space<vmem>>, vector<128x128xf32>
    %cst_14 = arith.constant dense<0.000000e+00> : vector<264x128xf32>
    %36 = tpu.matmul %34, %35, %cst_14 {dimension_numbers = #tpu.dot_dimension_numbers<[1], [0], [0], [1], [0, 0, 1, 1], [], []>} : vector<264x128xf32>, vector<128x128xf32>, vector<264x128xf32> -> vector<264x128xf32>
    %cst_15 = arith.constant 0.000000e+00 : f32
    %37 = vector.broadcast %cst_15 : f32 to vector<264x128xf32>
    %38 = arith.maximumf %36, %37 : vector<264x128xf32>
    %c0_16 = arith.constant 0 : index
    %c0_17 = arith.constant 0 : index
    %39 = vector.load %arg6[%c0_16, %c0_17] : memref<264x128xf32, #tpu.memory_space<vmem>>, vector<264x128xf32>
    tpu.vector_store %arg6[%c0_16, %c0_17], %38 {strides = array<i32>} : memref<264x128xf32, #tpu.memory_space<vmem>>, vector<264x128xf32>,
    %c0_18 = arith.constant 0 : index
    %c0_19 = arith.constant 0 : index
    %40 = vector.load %arg8[%c0_18, %c0_19] : memref<300x128xf32, #tpu.memory_space<vmem>>, vector<300x128xf32>
    %cst_20 = arith.constant dense<0.000000e+00> : vector<300x128xf32>
    %41 = tpu.matmul %15, %19, %cst_20 {dimension_numbers = #tpu.dot_dimension_numbers<[0], [0], [1], [1], [0, 1, 1, 1], [], []>} : vector<264x300xf32>, vector<264x128xf32>, vector<300x128xf32> -> vector<300x128xf32>
    %42 = arith.addf %40, %41 : vector<300x128xf32>
    %c0_21 = arith.constant 0 : index
    %c0_22 = arith.constant 0 : index
    %43 = vector.load %arg8[%c0_21, %c0_22] : memref<300x128xf32, #tpu.memory_space<vmem>>, vector<300x128xf32>
    tpu.vector_store %arg8[%c0_21, %c0_22], %42 {strides = array<i32>} : memref<300x128xf32, #tpu.memory_space<vmem>>, vector<300x128xf32>,
    %cst_23 = arith.constant 1.000000e+00 : f32
    %44 = vector.broadcast %cst_23 : f32 to vector<264x1xf32>
    %c0_24 = arith.constant 0 : index
    %c0_25 = arith.constant 0 : index
    %45 = vector.load %arg9[%c0_24, %c0_25] : memref<300x1xf32, #tpu.memory_space<vmem>>, vector<300x1xf32>
    %cst_26 = arith.constant dense<0.000000e+00> : vector<300x1xf32>
    %46 = tpu.matmul %23, %44, %cst_26 {dimension_numbers = #tpu.dot_dimension_numbers<[0], [0], [1], [1], [0, 1, 1, 1], [], []>} : vector<264x300xf32>, vector<264x1xf32>, vector<300x1xf32> -> vector<300x1xf32>
    %47 = arith.addf %45, %46 : vector<300x1xf32>
    %c0_27 = arith.constant 0 : index
    %c0_28 = arith.constant 0 : index
    %48 = vector.load %arg9[%c0_27, %c0_28] : memref<300x1xf32, #tpu.memory_space<vmem>>, vector<300x1xf32>
    tpu.vector_store %arg9[%c0_27, %c0_28], %47 {strides = array<i32>} : memref<300x1xf32, #tpu.memory_space<vmem>>, vector<300x1xf32>,
    %c1_i32 = arith.constant 1 : i32
    %49 = arith.cmpi eq, %arg0, %c1_i32 : i32
    %50 = arith.extui %49 : i1 to i32
    %c0_i32_29 = arith.constant 0 : i32
    %51 = arith.cmpi ne, %50, %c0_i32_29 : i32
    scf.if %51 {
      %c0_30 = arith.constant 0 : index
      %c0_31 = arith.constant 0 : index
      %52 = vector.load %arg9[%c0_30, %c0_31] : memref<300x1xf32, #tpu.memory_space<vmem>>, vector<300x1xf32>
      %cst_32 = arith.constant 0.000000e+00 : f32
      %53 = vector.broadcast %cst_32 : f32 to vector<300x1xf32>
      %54 = arith.cmpf ogt, %52, %53 : vector<300x1xf32>
      %55 = tpu.reciprocal %52 : vector<300x1xf32> -> vector<300x1xf32>
      %cst_33 = arith.constant 0.000000e+00 : f32
      %56 = vector.broadcast %cst_33 : f32 to vector<300x1xf32>
      %57 = arith.select %54, %55, %56 : vector<300x1xi1>, vector<300x1xf32>
      %c0_34 = arith.constant 0 : index
      %c0_35 = arith.constant 0 : index
      %58 = vector.load %arg8[%c0_34, %c0_35] : memref<300x128xf32, #tpu.memory_space<vmem>>, vector<300x128xf32>
      %59 = vector.broadcast %57 : vector<300x1xf32> to vector<300x128xf32>
      %60 = arith.mulf %59, %58 : vector<300x128xf32>
      %c0_36 = arith.constant 0 : index
      %c0_37 = arith.constant 0 : index
      %61 = vector.load %arg5[%c0_36, %c0_37] : memref<128x128xf32, #tpu.memory_space<vmem>>, vector<128x128xf32>
      %cst_38 = arith.constant dense<0.000000e+00> : vector<300x128xf32>
      %62 = tpu.matmul %60, %61, %cst_38 {dimension_numbers = #tpu.dot_dimension_numbers<[1], [0], [0], [1], [0, 0, 1, 1], [], []>} : vector<300x128xf32>, vector<128x128xf32>, vector<300x128xf32> -> vector<300x128xf32>
      %cst_39 = arith.constant 0.000000e+00 : f32
      %63 = vector.broadcast %cst_39 : f32 to vector<300x128xf32>
      %64 = arith.maximumf %62, %63 : vector<300x128xf32>
      %c0_40 = arith.constant 0 : index
      %c0_41 = arith.constant 0 : index
      %65 = vector.load %arg7[%c0_40, %c0_41] : memref<300x128xf32, #tpu.memory_space<vmem>>, vector<300x128xf32>
      tpu.vector_store %arg7[%c0_40, %c0_41], %64 {strides = array<i32>} : memref<300x128xf32, #tpu.memory_space<vmem>>, vector<300x128xf32>,
    } else {
    }
    return
  }
  func.func @transform_0(%arg0: i32) -> (i32, i32) {
    %c0_i32 = arith.constant 0 : i32
    %c0_i32_0 = arith.constant 0 : i32
    return %arg0, %c0_i32 : i32, i32
  }
  func.func @transform_1(%arg0: i32) -> (i32, i32) {
    %c0_i32 = arith.constant 0 : i32
    %c0_i32_0 = arith.constant 0 : i32
    return %arg0, %c0_i32 : i32, i32
  }
  func.func @transform_2(%arg0: i32) -> (i32, i32) {
    %c0_i32 = arith.constant 0 : i32
    %c0_i32_0 = arith.constant 0 : i32
    %c0_i32_1 = arith.constant 0 : i32
    return %c0_i32, %c0_i32_0 : i32, i32
  }
  func.func @transform_3(%arg0: i32) -> (i32, i32) {
    %c0_i32 = arith.constant 0 : i32
    %c0_i32_0 = arith.constant 0 : i32
    %c0_i32_1 = arith.constant 0 : i32
    return %c0_i32, %c0_i32_0 : i32, i32
  }
  func.func @transform_4(%arg0: i32) -> (i32, i32) {
    %c0_i32 = arith.constant 0 : i32
    %c0_i32_0 = arith.constant 0 : i32
    %c0_i32_1 = arith.constant 0 : i32
    return %c0_i32, %c0_i32_0 : i32, i32
  }
  func.func @transform_5(%arg0: i32) -> (i32, i32) {
    %c0_i32 = arith.constant 0 : i32
    %c0_i32_0 = arith.constant 0 : i32
    return %arg0, %c0_i32 : i32, i32
  }
  func.func @transform_6(%arg0: i32) -> (i32, i32) {
    %c0_i32 = arith.constant 0 : i32
    %c0_i32_0 = arith.constant 0 : i32
    %c0_i32_1 = arith.constant 0 : i32
    return %c0_i32, %c0_i32_0 : i32, i32
  }
}

</mosaic_0001>

<bundles_post_ra>
// kernel: bipartite_graph_convolution.1
= control target key start
LH: loop header
LB: loop body
LE: loop exit
PB: predicated region body
PF: predicated region fallthrough
CT: control target
= control target key end

     0   :  { %s7817_s21 = smov 0   ;;  %s7819_s22 = smov 0   ;;  %s11830_s0 = inlined_call_operand.vmem [shape: bf16[520,300], index: 0, kind: input, shape index: {}]   ;;  %s11831_s1 = inlined_call_operand.vmem [shape: f32[520,128], index: 1, kind: input, shape index: {}]   ;;  %s11832_s2 = inlined_call_operand.vmem [shape: f32[300,128], index: 2, kind: input, shape index: {}]   ;;  %s11833_s3 = inlined_call_operand.vmem [shape: f32[128,128], index: 3, kind: input, shape index: {}]   ;;  %s11834_s4 = inlined_call_operand.vmem [shape: f32[128,128], index: 4, kind: input, shape index: {}]   ;;  %s11835_s5 = inlined_call_operand.vmem [shape: f32[520,128], index: 5, kind: output, shape index: {0}]   ;;  %s11836_s6 = inlined_call_operand.vmem [shape: f32[300,128], index: 6, kind: output, shape index: {1}]  }
   0x1   :  { %s7821_s23 = smov 0  }
   0x2 LB: > { %s7828_s24 = sadd.s32 4294967295, %s7743_s23   ;;  %s7830_s25 = sadd.s32 1, %s7743_s23   ;;  %s7743_s23 = sphi %s7821_s23, %s12711_s23   ;;  %s7739_s22 = sphi %s7819_s22, %s12710_s22   ;;  %s7735_s21 = sphi %s7817_s21, %s12709_s21  }
   0x3   : > { %s136_s26 = ssub.s32 %s7743_s23, %s7830_s25  ;;  %s139_s27 = sadd.s32 1, %s7739_s22 }
   0x4   : > { %p137_p0 = scmp.eq.s32.totalorder %s136_s26, 0  ;;  %p149_p1 = scmp.ne.s32.totalorder %s7739_s22, %s7735_s21 }
   0x5   : > { %p150_p2 = scmp.eq.s32.totalorder %s7828_s24, 1  ;;  %p5600_p3 = scmp.ge.s32.totalorder %s7743_s23, 1 }
   0x6   : > { %s7837_s28 = scalar_select %p137_p0, %s7739_s22, %s139_s27  }
   0x7   : > { %p7839_p4 = por %p150_p2, %p149_p1  ;;  %p241_p5 = scmp.lt.s32.totalorder %s7743_s23, 3 }
   0x9   : > { %p242_p6 = pnand %p5600_p3, %p241_p5 }
   0xb   : > { %245 = sbr.rel (%p242_p6) target bundleno = 1348 (0x544), region = 40 }
  0x10   : > { %s280_s30 = sand.u32 1, %s7735_s21   ;;  %s7844_s7 = smul.u32 33, %s7828_s24 }
  0x11   : > { %s6691_s8 = smul.u32 264, %s280_s30  ;;  %p5603_p8 = scmp.ne.s32.totalorder %s7828_s24, 0 }
  0x12   : > { %p291_p7 = scmp.lt.s32.totalorder %s7844_s7, 64 }
  0x13   : > { %s7858_s18 = scalar_lea.vmem [#allocation4], %s6691_s8  }
  0x14   : > { %s292_s9 = scalar_select %p291_p7, %s7844_s7, 64 }
  0x15   : > { %324 = sbr.rel (%p5603_p8) target bundleno = 66 (0x42), region = 44 }
  0x16   : > { %s6692_s10 = smul.u32 12, %s292_s9  ;;  %s5602_s11 = sshll.u32 %s292_s9, 3 }
  0x17   : > { %s7851_s14 = scalar_lea.vmem %s11831_s1, %s5602_s11 }
  0x18   : > { %s7856_s17 = scalar_lea.vmem %s11830_s0, %s6692_s10 }
  0x1a   : > { %vm363_vm0 = vcmask 7168   ;;  %vm401_vm1 = vcmask 3072   ;;  %v7777_v0 = vmov 0.0  }
  0x1b   : > { %325 = vst [vmem:[#allocation2 + $0xb0] sm:$0xff] %v7777_v0  ;;  %326 = vst [vmem:[#allocation2 + $0xd0] sm:$0xff] %v7777_v0 }
  0x1c   : > { %327 = vst [vmem:[#allocation2 + $0x10] sm:$0xff] %v7777_v0  ;;  %328 = vst [vmem:[#allocation2 + $0x48] sm:$0xff] %v7777_v0 }
  0x1d   : > { %329 = vst [vmem:[#allocation2 + $0x120] sm:$0xff] %v7777_v0  ;;  %330 = vst [vmem:[#allocation2 + $0x38] sm:$0xff] %v7777_v0 }
  0x1e   : > { %331 = vst [vmem:[#allocation2 + $0x70] sm:$0xff] %v7777_v0  ;;  %332 = vst [vmem:[#allocation2 + $0x100] sm:$0xff] %v7777_v0 }
  0x1f   : > { %333 = vst [vmem:[#allocation2 + $0x108] sm:$0xff] %v7777_v0  ;;  %334 = vst [vmem:[#allocation2 + $0x88] sm:$0xff] %v7777_v0 }
  0x20   : > { %335 = vst [vmem:[#allocation2 + $0x110] sm:$0xff] %v7777_v0  ;;  %336 = vst [vmem:[#allocation2 + $0xf0] sm:$0xff] %v7777_v0 }
  0x21   : > { %337 = vst [vmem:[#allocation2 + $0x40] sm:$0xff] %v7777_v0  ;;  %338 = vst [vmem:[#allocation2 + $0xc8] sm:$0xff] %v7777_v0 }
  0x22   : > { %339 = vst [vmem:[#allocation2 + $0x30] sm:$0xff] %v7777_v0  ;;  %340 = vst [vmem:[#allocation2 + $0x20] sm:$0xff] %v7777_v0 }
  0x23   : > { %341 = vst [vmem:[#allocation2 + $0x128] sm:$0xff] %v7777_v0  ;;  %342 = vst [vmem:[#allocation2 + $0x50] sm:$0xff] %v7777_v0 }
  0x24   : > { %343 = vst [vmem:[#allocation2 + $0x8] sm:$0xff] %v7777_v0  ;;  %344 = vst [vmem:[#allocation2 + $0x98] sm:$0xff] %v7777_v0 }
  0x25   : > { %345 = vst [vmem:[#allocation2 + $0xa8] sm:$0xff] %v7777_v0  ;;  %346 = vst [vmem:[#allocation2 + $0x90] sm:$0xff] %v7777_v0 }
  0x26   : > { %347 = vst [vmem:[#allocation2 + $0xe0] sm:$0xff] %v7777_v0  ;;  %348 = vst [vmem:[#allocation2 + $0xf8] sm:$0xff] %v7777_v0 }
  0x27   : > { %349 = vst [vmem:[#allocation2 + $0xa0] sm:$0xff] %v7777_v0  ;;  %350 = vst [vmem:[#allocation2 + $0x78] sm:$0xff] %v7777_v0 }
  0x28   : > { %351 = vst [vmem:[#allocation2 + $0xc0] sm:$0xff] %v7777_v0  ;;  %352 = vst [vmem:[#allocation2 + $0x80] sm:$0xff] %v7777_v0 }
  0x29   : > { %353 = vst [vmem:[#allocation2 + $0xe8] sm:$0xff] %v7777_v0  ;;  %354 = vst [vmem:[#allocation2] sm:$0xff] %v7777_v0 }
  0x2a   : > { %355 = vst [vmem:[#allocation2 + $0xd8] sm:$0xff] %v7777_v0  ;;  %356 = vst [vmem:[#allocation2 + $0x28] sm:$0xff] %v7777_v0 }
  0x2b   : > { %357 = vst [vmem:[#allocation2 + $0x60] sm:$0xff] %v7777_v0  ;;  %358 = vst [vmem:[#allocation2 + $0x68] sm:$0xff] %v7777_v0 }
  0x2c   : > { %359 = vst [vmem:[#allocation2 + $0x18] sm:$0xff] %v7777_v0  ;;  %360 = vst [vmem:[#allocation2 + $0x58] sm:$0xff] %v7777_v0 }
  0x2d   : > { %361 = vst [vmem:[#allocation2 + $0x118] sm:$0xff] %v7777_v0  ;;  %362 = vst [vmem:[#allocation2 + $0xb8] sm:$0xf] %v7777_v0 }
  0x2e   : > { %364 = vst.msk [vmem:[#allocation3] sm:$0xff] %vm363_vm0, %v7777_v0  ;;  %365 = vst.msk [vmem:[#allocation3 + $0x8] sm:$0xff] %vm363_vm0, %v7777_v0 }
  0x2f   : > { %366 = vst.msk [vmem:[#allocation3 + $0x10] sm:$0xff] %vm363_vm0, %v7777_v0  ;;  %367 = vst.msk [vmem:[#allocation3 + $0x18] sm:$0xff] %vm363_vm0, %v7777_v0 }
  0x30   : > { %368 = vst.msk [vmem:[#allocation3 + $0x20] sm:$0xff] %vm363_vm0, %v7777_v0  ;;  %369 = vst.msk [vmem:[#allocation3 + $0x28] sm:$0xff] %vm363_vm0, %v7777_v0 }
  0x31   : > { %370 = vst.msk [vmem:[#allocation3 + $0x30] sm:$0xff] %vm363_vm0, %v7777_v0  ;;  %371 = vst.msk [vmem:[#allocation3 + $0x38] sm:$0xff] %vm363_vm0, %v7777_v0 }
  0x32   : > { %372 = vst.msk [vmem:[#allocation3 + $0x40] sm:$0xff] %vm363_vm0, %v7777_v0  ;;  %373 = vst.msk [vmem:[#allocation3 + $0x48] sm:$0xff] %vm363_vm0, %v7777_v0 }
  0x33   : > { %374 = vst.msk [vmem:[#allocation3 + $0x50] sm:$0xff] %vm363_vm0, %v7777_v0  ;;  %375 = vst.msk [vmem:[#allocation3 + $0x58] sm:$0xff] %vm363_vm0, %v7777_v0 }
  0x34   : > { %376 = vst.msk [vmem:[#allocation3 + $0x60] sm:$0xff] %vm363_vm0, %v7777_v0  ;;  %377 = vst.msk [vmem:[#allocation3 + $0x68] sm:$0xff] %vm363_vm0, %v7777_v0 }
  0x35   : > { %378 = vst.msk [vmem:[#allocation3 + $0x70] sm:$0xff] %vm363_vm0, %v7777_v0  ;;  %379 = vst.msk [vmem:[#allocation3 + $0x78] sm:$0xff] %vm363_vm0, %v7777_v0 }
  0x36   : > { %380 = vst.msk [vmem:[#allocation3 + $0x80] sm:$0xff] %vm363_vm0, %v7777_v0  ;;  %381 = vst.msk [vmem:[#allocation3 + $0x88] sm:$0xff] %vm363_vm0, %v7777_v0 }
  0x37   : > { %382 = vst.msk [vmem:[#allocation3 + $0x90] sm:$0xff] %vm363_vm0, %v7777_v0  ;;  %383 = vst.msk [vmem:[#allocation3 + $0x98] sm:$0xff] %vm363_vm0, %v7777_v0 }
  0x38   : > { %384 = vst.msk [vmem:[#allocation3 + $0xa0] sm:$0xff] %vm363_vm0, %v7777_v0  ;;  %385 = vst.msk [vmem:[#allocation3 + $0xa8] sm:$0xff] %vm363_vm0, %v7777_v0 }
  0x39   : > { %386 = vst.msk [vmem:[#allocation3 + $0xb0] sm:$0xff] %vm363_vm0, %v7777_v0  ;;  %387 = vst.msk [vmem:[#allocation3 + $0xb8] sm:$0xff] %vm363_vm0, %v7777_v0 }
  0x3a   : > { %388 = vst.msk [vmem:[#allocation3 + $0xc0] sm:$0xff] %vm363_vm0, %v7777_v0  ;;  %389 = vst.msk [vmem:[#allocation3 + $0xc8] sm:$0xff] %vm363_vm0, %v7777_v0 }
  0x3b   : > { %390 = vst.msk [vmem:[#allocation3 + $0xd0] sm:$0xff] %vm363_vm0, %v7777_v0  ;;  %391 = vst.msk [vmem:[#allocation3 + $0xd8] sm:$0xff] %vm363_vm0, %v7777_v0 }
  0x3c   : > { %392 = vst.msk [vmem:[#allocation3 + $0xe0] sm:$0xff] %vm363_vm0, %v7777_v0  ;;  %393 = vst.msk [vmem:[#allocation3 + $0xe8] sm:$0xff] %vm363_vm0, %v7777_v0 }
  0x3d   : > { %394 = vst.msk [vmem:[#allocation3 + $0xf0] sm:$0xff] %vm363_vm0, %v7777_v0  ;;  %395 = vst.msk [vmem:[#allocation3 + $0xf8] sm:$0xff] %vm363_vm0, %v7777_v0 }
  0x3e   : > { %396 = vst.msk [vmem:[#allocation3 + $0x100] sm:$0xff] %vm363_vm0, %v7777_v0  ;;  %397 = vst.msk [vmem:[#allocation3 + $0x108] sm:$0xff] %vm363_vm0, %v7777_v0 }
  0x3f   : > { %398 = vst.msk [vmem:[#allocation3 + $0x110] sm:$0xff] %vm363_vm0, %v7777_v0  ;;  %399 = vst.msk [vmem:[#allocation3 + $0x118] sm:$0xff] %vm363_vm0, %v7777_v0 }
  0x40   : > { %400 = vst.msk [vmem:[#allocation3 + $0x120] sm:$0xff] %vm363_vm0, %v7777_v0 }
  0x41   : > { %402 = vst.msk [vmem:[#allocation3 + $0x128] sm:$0xf] %vm401_vm1, %v7777_v0 }
  0x42 PF: > { %v1213_v1 = vld [vmem:[%s11832_s2 + $0x78] sm:$0xff]  ;;  %v601_v2 = vlaneseq  ;;  %s635_s21 = smul.u32 264, %s7828_s24  ;;  %v11855_v3 = vmov 0.0   ;;  %v1212_v4 = vld [vmem:[%s11832_s2 + $0x70] sm:$0xff]  ;;  %vm7779_vm2 = vmmov 0   ;;  %v1211_v6 = vld [vmem:[%s11832_s2 + $0x68] sm:$0xff] }
  0x43   : > { %1340 = vmatprep.subr.mxu0 %v11855_v3  ;;  %6146 = vmatprep.subr.mxu1 %v11855_v3  ;;  %v1210_v11 = vld [vmem:[%s11832_s2 + $0x60] sm:$0xff]  ;;  %vm1236_vm3 = vcmask 359424   ;;  %v8005_v13 = vld [vmem:[%s7856_s17 + $0x18] sm:$0xff]  ;;  %vm1336_vm4 = vcmask 1043456   ;;  %v1208_v26 = vld [vmem:[%s11832_s2 + $0x50] sm:$0xff]  ;;  %p5912_p9 = scmp.ne.s32.totalorder %s7828_s24, 1 }
  0x44   : > { %1341 = vmatpush1.msra.mxu0 %v1213_v1  ;;  %v7984_v5 = vshrl.u32 %v601_v2, 7  ;;  %6158 = vmatprep.mubr.msk.f32.mxu1 %vm7779_vm2, %v11855_v3  ;;  %v7994_v7 = vstv %s635_s21  ;;  %v408_v12 = vld [vmem:[%s7856_s17 + $0x20] ss:$12 sps:$4 sm:$0xff]   ;;  %v8017_v18 = vld [vmem:[%s7856_s17 + $0x24] sm:$0xff]  ;;  %v1209_v19 = vld [vmem:[%s11832_s2 + $0x58] sm:$0xff]  ;;  %v11845_v21 = vunpack.c.l.bf16 %v8005_v13  ;;  %v11847_v22 = vunpack.c.h.bf16 %v8005_v13 }
  0x45   : > { %1342 = vmatprep.subr.mxu0 %v11855_v3  ;;  %v8008_v14 = vld [vmem:[%s7856_s17 + $0x44] ss:$156 sps:$4 sm:$0xff]   ;;  %v477_v15 = vunpack.c.l.bf16 %v408_v12  ;;  %v11843_v23 = vunpack.c.l.bf16 %v8017_v18  ;;  %v11844_v24 = vunpack.c.h.bf16 %v8017_v18  ;;  %v480_v30 = vunpack.c.h.bf16 %v408_v12  ;;  %v1207_v33 = vld [vmem:[%s11832_s2 + $0x48] sm:$0xff]  ;;  %v8108_v46 = vld [vmem:[%s7856_s17 + $0x54] sm:$0xff] }
  0x46   : > { %1343 = vmatpush1.msra.mxu0 %v1212_v4  ;;  %v604_v8 = vadd.s32 16, %v7984_v5  ;;  %v620_v9 = vadd.s32 144, %v7984_v5  ;;  %v605_v10 = vadd.s32 24, %v7984_v5  ;;  %v525_v20 = vunpack.c.h.bf16 %v8008_v14  ;;  %v8057_v31 = vld [vmem:[%s7856_s17 + $0x3c] sm:$0xff]  ;;  %v1235_v47 = vld [vmem:[%s11832_s2 + $0x128] sm:$0xf] }
  0x47   : > { %1344 = vmatprep.subr.mxu0 %v11855_v3  ;;  %v8061_v32 = vadd.s32 %v7994_v7, %v7984_v5  ;;  %v607_v37 = vadd.s32 40, %v7984_v5  ;;  %v1206_v38 = vld [vmem:[%s11832_s2 + $0x40] sm:$0xff]  ;;  %v11839_v45 = vunpack.c.l.bf16 %v8057_v31  ;;  %v8117_v49 = vld [vmem:[%s7856_s17 + $0x5c] ss:$24 sps:$4 sm:$0xff]   ;;  %6147 = vmatpush3.msk.msra.mxu1 %vm1336_vm4, %v1235_v47  ;;  %v11840_v55 = vunpack.c.h.bf16 %v8057_v31  ;;  %v8138_v56 = vld [vmem:[%s7856_s17 + $0x6c] sm:$0xff] }
  0x48   : > { %1345 = vmatpush1.msra.mxu0 %v1211_v6  ;;  %v8011_v16 = vadd.s32 %v7994_v7, %v604_v8  ;;  %v8014_v17 = vadd.s32 %v7994_v7, %v620_v9  ;;  %v8031_v25 = vadd.s32 %v7994_v7, %v605_v10  ;;  %v1234_v50 = vld [vmem:[%s11832_s2 + $0x120] sm:$0xff]  ;;  %v1205_v51 = vld [vmem:[%s11832_s2 + $0x38] sm:$0xff]  ;;  %6148 = vmatprep.subr.mxu1 %v11855_v3  ;;  %v486_v59 = vunpack.c.l.bf16 %v8008_v14  ;;  %v1204_v62 = vld [vmem:[%s11832_s2 + $0x30] sm:$0xff] }
  0x49   : > { %1346 = vmatprep.subr.mxu0 %v11855_v3  ;;  %12113 = vst [vmem:[#allocation10_spill] sm:$0xff] %v8061_v32  ;;  %v8147_v60 = vadd.s32 %v7994_v7, %v607_v37  ;;  %v1233_v61 = vld [vmem:[%s11832_s2 + $0x118] sm:$0xff]  ;;  %v11837_v63 = vunpack.c.l.bf16 %v8108_v46  ;;  %v11838_v0 = vunpack.c.h.bf16 %v8108_v46  ;;  %v492_v1 = vunpack.c.l.bf16 %v8117_v49  ;;  %6149 = vmatpush3.msra.mxu1 %v1234_v50  ;;  %v1203_v9 = vld [vmem:[%s11832_s2 + $0x28] sm:$0xff] }
  0x4a   : > { %12108 = vst [vmem:[#allocation5_spill] sm:$0xff] %v8011_v16  ;;  %12109 = vst [vmem:[#allocation6_spill] sm:$0xff] %v8014_v17  ;;  %1347 = vmatpush1.msra.mxu0 %v1210_v11  ;;  %vm11938_vm5 = vcmp.lt.s32.totalorder %v8011_v16, 520  ;;  %vm11893_vm6 = vcmp.lt.s32.totalorder %v8014_v17, 520  ;;  %vm11946_vm10 = vcmp.lt.s32.totalorder %v8031_v25, 520  ;;  %v609_v2 = vadd.s32 56, %v7984_v5  ;;  %6150 = vmatprep.subr.mxu1 %v11855_v3 }
  0x4b   : > { %1348 = vmatprep.subr.mxu0 %v11855_v3  ;;  %v8039_v27 = vsel %vm11938_vm5, %v477_v15, 0.0  ;;  %v8045_v28 = vsel %vm11938_vm5, %v11845_v21, 0.0  ;;  %v8051_v29 = vsel %vm11938_vm5, %v11847_v22, 0.0  ;;  %v8082_v39 = vsel %vm11893_vm6, %v525_v20, 0.0  ;;  %12124 = vst [vmem:[#allocation21_spill] sm:$0xff] %v8147_v60  ;;  %6151 = vmatpush3.msra.mxu1 %v1233_v61  ;;  %v1232_v15 = vld [vmem:[%s11832_s2 + $0x110] sm:$0xff] }
  0x4c   : > { %12110 = vst [vmem:[#allocation7_spill] sm:$0xff] %v8039_v27  ;;  %12111 = vst [vmem:[#allocation8_spill] sm:$0xff] %v8045_v28  ;;  %1349 = vmatpush1.msra.mxu0 %v1209_v19  ;;  %vm909_vm7 = vcmp.gt.f32.partialorder %v8039_v27, 0.0  ;;  %vm907_vm8 = vcmp.gt.f32.partialorder %v8045_v28, 0.0  ;;  %vm908_vm9 = vcmp.gt.f32.partialorder %v8051_v29, 0.0  ;;  %v8094_v42 = vsel %vm11946_vm10, %v11843_v23, 0.0  ;;  %6152 = vmatprep.subr.mxu1 %v11855_v3 }
  0x4d   : > { %12112 = vst [vmem:[#allocation9_spill] sm:$0xff] %v8051_v29  ;;  %1350 = vmatprep.subr.mxu0 %v11855_v3  ;;  %v8068_v34 = vsel %vm909_vm7, 1.0, %v11855_v3  ;;  %v8071_v35 = vsel %vm907_vm8, 1.0, %v11855_v3  ;;  %v8074_v36 = vsel %vm908_vm9, 1.0, %v11855_v3  ;;  %12117 = vst [vmem:[#allocation14_spill] sm:$0xff] %v8082_v39  ;;  %v8100_v43 = vsel %vm11946_vm10, %v11844_v24, 0.0  ;;  %6153 = vmatpush3.msra.mxu1 %v1232_v15 }
  0x4e   : > { %12114 = vst [vmem:[#allocation11_spill] sm:$0xff] %v8068_v34  ;;  %12115 = vst [vmem:[#allocation12_spill] sm:$0xff] %v8071_v35  ;;  %1351 = vmatpush1.msra.mxu0 %v1208_v26  ;;  %v1810_v40 = vadd.f32 %v8074_v36, %v8071_v35  ;;  %v1811_v41 = vsel %vm1236_vm3, %v8068_v34, 0.0  ;;  %v8104_v44 = vsel %vm11946_vm10, %v480_v30, 0.0  ;;  %vm910_vm11 = vcmp.gt.f32.partialorder %v8094_v42, 0.0  ;;  %v1202_v20 = vld [vmem:[%s11832_s2 + $0x20] sm:$0xff]  ;;  %6154 = vmatprep.subr.mxu1 %v11855_v3 }
  0x4f   : > { %12116 = vst [vmem:[#allocation13_spill] sm:$0xff] %v8074_v36  ;;  %1352 = vmatprep.subr.mxu0 %v11855_v3  ;;  %12118 = vst [vmem:[#allocation15_spill] sm:$0xff] %v8094_v42  ;;  %vm911_vm12 = vcmp.gt.f32.partialorder %v8100_v43, 0.0  ;;  %vm912_vm13 = vcmp.gt.f32.partialorder %v8104_v44, 0.0  ;;  %v8128_v52 = vsel %vm910_vm11, 1.0, %v11855_v3  ;;  %vm11999_vm14 = vcmp.lt.s32.totalorder %v8147_v60, 520 }
  0x50   : > { %12119 = vst [vmem:[#allocation16_spill] sm:$0xff] %v8100_v43  ;;  %12120 = vst [vmem:[#allocation17_spill] sm:$0xff] %v8104_v44  ;;  %1353 = vmatpush1.msra.mxu0 %v1207_v33  ;;  %v1812_v48 = vadd.f32 %v1811_v41, %v1810_v40  ;;  %v8131_v53 = vsel %vm911_vm12, 1.0, %v11855_v3  ;;  %v8134_v54 = vsel %vm912_vm13, 1.0, %v11855_v3  ;;  %v11841_v6 = vunpack.c.l.bf16 %v8138_v56  ;;  %v1231_v37 = vld [vmem:[%s11832_s2 + $0x108] sm:$0xff]  ;;  %v8344_v24 = vld [vmem:[%s7856_s17 + $0xb4] sm:$0xff] }
  0x51   : > { %1354 = vmatprep.subr.mxu0 %v11855_v3  ;;  %12121 = vst [vmem:[#allocation18_spill] sm:$0xff] %v8128_v52  ;;  %12122 = vst [vmem:[#allocation19_spill] sm:$0xff] %v8131_v53  ;;  %v1815_v57 = vadd.f32 %v8131_v53, %v8128_v52  ;;  %v1816_v58 = vsel %vm1236_vm3, %v8134_v54, 0.0  ;;  %v11842_v8 = vunpack.c.h.bf16 %v8138_v56  ;;  %v8172_v10 = vsel %vm11999_vm14, %v11839_v45, 0.0  ;;  %6155 = vmatpush3.msra.mxu1 %v1231_v37  ;;  %v8354_v22 = vld [vmem:[%s7856_s17 + $0xbc] ss:$24 sps:$4 sm:$0xff]  }
  0x52   : > { %12123 = vst [vmem:[#allocation20_spill] sm:$0xff] %v8134_v54  ;;  %1355 = vmatpush1.msra.mxu0 %v1206_v38  ;;  %1813 = vadd.xlane.f32.xlu1 %v1812_v48  ;;  %12125 = vst [vmem:[#allocation22_spill] sm:$0xff] %v8172_v10  ;;  %v8178_v11 = vsel %vm11999_vm14, %v11840_v55, 0.0  ;;  %v8182_v12 = vsel %vm11999_vm14, %v486_v59, 0.0  ;;  %v8185_v14 = vadd.s32 %v7994_v7, %v609_v2  ;;  %vm916_vm15 = vcmp.gt.f32.partialorder %v8172_v10, 0.0  ;;  %v1201_v38 = vld [vmem:[%s11832_s2 + $0x18] sm:$0xff] }
  0x53   : > { %1356 = vmatprep.subr.mxu0 %v11855_v3  ;;  %v1817_v4 = vadd.f32 %v1816_v58, %v1815_v57  ;;  %12126 = vst [vmem:[#allocation23_spill] sm:$0xff] %v8178_v11  ;;  %12127 = vst [vmem:[#allocation24_spill] sm:$0xff] %v8182_v12  ;;  %vm917_vm0 = vcmp.gt.f32.partialorder %v8178_v11, 0.0  ;;  %vm918_vm1 = vcmp.gt.f32.partialorder %v8182_v12, 0.0  ;;  %v498_v19 = vunpack.c.h.bf16 %v8117_v49  ;;  %v8232_v49 = vld [vmem:[%s7856_s17 + $0x84] sm:$0xff]  ;;  %v1200_v2 = vld [vmem:[%s11832_s2 + $0x10] sm:$0xff]  ;;  %6156 = vmatprep.subr.mxu1 %v11855_v3 }
  0x54   : > { %1357 = vmatpush1.msra.mxu0 %v1205_v51  ;;  %12128 = vst [vmem:[#allocation25_spill] sm:$0xff] %v8185_v14  ;;  %v8199_v26 = vsel %vm916_vm15, 1.0, %v11855_v3  ;;  %v8202_v30 = vsel %vm917_vm0, 1.0, %v11855_v3  ;;  %v8205_v33 = vsel %vm918_vm1, 1.0, %v11855_v3  ;;  %vm12078_vm4 = vcmp.lt.s32.totalorder %v8185_v14, 520  ;;  %v2112_v52 = vld [vmem:[%s11833_s3 + $0x78] sm:$0xff] }
  0x55   : > { %1358 = vmatprep.subr.mxu0 %v11855_v3  ;;  %12129 = vst [vmem:[#allocation26_spill] sm:$0xff] %v8199_v26  ;;  %12130 = vst [vmem:[#allocation27_spill] sm:$0xff] %v8202_v30  ;;  %v1825_v40 = vadd.f32 %v8202_v30, %v8199_v26  ;;  %v1826_v41 = vsel %vm1236_vm3, %v8205_v33, 0.0  ;;  %v8223_v47 = vsel %vm12078_vm4, %v11837_v63, 0.0  ;;  %v8229_v48 = vsel %vm12078_vm4, %v11838_v0, 0.0  ;;  %v8570_v11 = vld [vmem:[%s7856_s17 + $0x114] sm:$0xff] }
  0x56   : > { %1359 = vmatpush1.msra.mxu0 %v1204_v62  ;;  %1818 = vadd.xlane.f32.xlu1 %v1817_v4  ;;  %12131 = vst [vmem:[#allocation28_spill] sm:$0xff] %v8205_v33  ;;  %12132 = vst [vmem:[#allocation29_spill] sm:$0xff] %v8223_v47  ;;  %v8237_v50 = vsel %vm12078_vm4, %v492_v1, 0.0  ;;  %vm922_vm7 = vcmp.gt.f32.partialorder %v8223_v47, 0.0  ;;  %vm923_vm8 = vcmp.gt.f32.partialorder %v8229_v48, 0.0  ;;  %v611_v51 = vadd.s32 72, %v7984_v5 }
  0x57   : > { %1360 = vmatprep.subr.mxu0 %v11855_v3  ;;  %12133 = vst [vmem:[#allocation30_spill] sm:$0xff] %v8229_v48  ;;  %12134 = vst [vmem:[#allocation31_spill] sm:$0xff] %v8237_v50  ;;  %v8243_v57 = vld [vmem:[%s7856_s17 + $0x8c] ss:$24 sps:$4 sm:$0xff]   ;;  %v1827_v58 = vadd.f32 %v1826_v41, %v1825_v40  ;;  %vm924_vm9 = vcmp.gt.f32.partialorder %v8237_v50, 0.0  ;;  %v8248_v59 = vsel %vm922_vm7, 1.0, %v11855_v3  ;;  %v11848_v40 = vunpack.c.h.bf16 %v8232_v49 }
  0x58   : > { %1361 = vmatpush1.msra.mxu0 %v1203_v9  ;;  %12135 = vst [vmem:[#allocation32_spill] sm:$0xff] %v8248_v59  ;;  %v8251_v61 = vsel %vm923_vm8, 1.0, %v11855_v3  ;;  %v8254_v62 = vld [vmem:[%s7856_s17 + $0x9c] sm:$0xff]  ;;  %v8264_v4 = vsel %vm924_vm9, 1.0, %v11855_v3  ;;  %v8269_v15 = vadd.s32 %v7994_v7, %v611_v51  ;;  %v504_v41 = vunpack.c.l.bf16 %v8243_v57  ;;  %v1199_v51 = vld [vmem:[%s11832_s2 + $0x8] sm:$0xff]  ;;  %12181 = vst [vmem:[#allocation71_spill] sm:$0xff] %v8570_v11 }
  0x59   : > { %1362 = vmatprep.subr.mxu0 %v11855_v3  ;;  %12136 = vst [vmem:[#allocation33_spill] sm:$0xff] %v8251_v61  ;;  %v1230_v1 = vld [vmem:[%s11832_s2 + $0x100] sm:$0xff]  ;;  %12137 = vst [vmem:[#allocation34_spill] sm:$0xff] %v8264_v4  ;;  %v1835_v9 = vadd.f32 %v8251_v61, %v8248_v59  ;;  %v1836_v37 = vsel %vm1236_vm3, %v8264_v4, 0.0  ;;  %v613_v63 = vadd.s32 88, %v7984_v5  ;;  %v516_v34 = vunpack.c.l.bf16 %v8354_v22  ;;  %v2111_v43 = vld [vmem:[%s11833_s3 + $0x70] sm:$0xff] }
  0x5a   : > { %1363 = vmatpush1.msra.mxu0 %v1202_v20  ;;  %12138 = vst [vmem:[#allocation35_spill] sm:$0xff] %v8269_v15  ;;  %v11846_v20 = vunpack.c.l.bf16 %v8232_v49  ;;  %1828 = vadd.xlane.f32.xlu1 %v1827_v58  ;;  %vm12064_vm11 = vcmp.lt.s32.totalorder %v8269_v15, 520  ;;  %v12154_v54 = vunpack.c.l.bf16 %v8254_v62  ;;  %v12165_v30 = vunpack.c.h.bf16 %v8344_v24  ;;  %v2105_v16 = vld [vmem:[%s11833_s3 + $0x40] sm:$0xff]  ;;  %v9884_v14 = vld [vmem:[%s7851_s14 + $0x30] sm:$0xff] }
  0x5b   : > { %1364 = vmatprep.subr.mxu0 %v11855_v3  ;;  %v1837_v0 = vadd.f32 %v1836_v37, %v1835_v9  ;;  %6157 = vmatpush3.msra.mxu1 %v1230_v1  ;;  %v8289_v45 = vsel %vm12064_vm11, %v11841_v6, 0.0  ;;  %v8295_v55 = vsel %vm12064_vm11, %v11842_v8, 0.0  ;;  %v8299_v9 = vsel %vm12064_vm11, %v498_v19, 0.0  ;;  %v1198_v1 = vld [vmem:[%s11832_s2] sm:$0xff] }
  0x5c   : > { %1365 = vmatpush1.msra.mxu0 %v1201_v38  ;;  %12139 = vst [vmem:[#allocation36_spill] sm:$0xff] %v8289_v45  ;;  %12140 = vst [vmem:[#allocation37_spill] sm:$0xff] %v8295_v55  ;;  %v8302_v37 = vadd.s32 %v7994_v7, %v613_v63  ;;  %6257 = vmatprep.subr.mxu1 %v11855_v3  ;;  %vm928_vm12 = vcmp.gt.f32.partialorder %v8289_v45, 0.0  ;;  %vm929_vm13 = vcmp.gt.f32.partialorder %v8295_v55, 0.0  ;;  %vm930_vm15 = vcmp.gt.f32.partialorder %v8299_v9, 0.0  ;;  %v8368_v38 = vld [vmem:[%s7856_s17 + $0xcc] sm:$0xff] }
  0x5d   : > { %1366 = vmatprep.subr.mxu0 %v11855_v3  ;;  %12141 = vst [vmem:[#allocation38_spill] sm:$0xff] %v8299_v9  ;;  %v510_v19 = vunpack.c.h.bf16 %v8243_v57  ;;  %v8314_v63 = vsel %vm928_vm12, 1.0, %v11855_v3  ;;  %v8320_v6 = vsel %vm930_vm15, 1.0, %v11855_v3  ;;  %v1229_v57 = vld [vmem:[%s11832_s2 + $0xf8] sm:$0xff]  ;;  %v621_v48 = vadd.s32 152, %v7984_v5 }
  0x5e   : > { %1367 = vmatpush1.msra.mxu0 %v1200_v2  ;;  %12142 = vst [vmem:[#allocation39_spill] sm:$0xff] %v8302_v37  ;;  %1838 = vadd.xlane.f32.xlu1 %v1837_v0  ;;  %12143 = vst [vmem:[#allocation40_spill] sm:$0xff] %v8314_v63  ;;  %v8317_v2 = vsel %vm929_vm13, 1.0, %v11855_v3  ;;  %vm12044_vm0 = vcmp.lt.s32.totalorder %v8302_v37, 520  ;;  %v603_v29 = vadd.s32 8, %v7984_v5  ;;  %v627_v28 = vadd.s32 200, %v7984_v5 }
  0x5f   : > { %1368 = vmatprep.subr.mxu0 %v11855_v3  ;;  %12144 = vst [vmem:[#allocation41_spill] sm:$0xff] %v8317_v2  ;;  %12145 = vst [vmem:[#allocation42_spill] sm:$0xff] %v8320_v6  ;;  %v1845_v0 = vadd.f32 %v8317_v2, %v8314_v63  ;;  %v8335_v8 = vsel %vm12044_vm0, %v11846_v20, 0.0  ;;  %v8341_v23 = vsel %vm12044_vm0, %v11848_v40, 0.0  ;;  %v8348_v21 = vsel %vm12044_vm0, %v504_v41, 0.0  ;;  %v1228_v40 = vld [vmem:[%s11832_s2 + $0xf0] sm:$0xff] }
  0x60   : > { %1369 = vmatpush1.msra.mxu0 %v1199_v51  ;;  %v1846_v51 = vsel %vm1236_vm3, %v8320_v6, 0.0  ;;  %12146 = vst [vmem:[#allocation43_spill] sm:$0xff] %v8335_v8  ;;  %12147 = vst [vmem:[#allocation44_spill] sm:$0xff] %v8341_v23  ;;  %vm934_vm1 = vcmp.gt.f32.partialorder %v8335_v8, 0.0  ;;  %vm935_vm7 = vcmp.gt.f32.partialorder %v8341_v23, 0.0  ;;  %v615_v20 = vadd.s32 104, %v7984_v5 }
  0x61   : > { %1370 = vmatprep.subr.mxu0 %v11855_v3  ;;  %12148 = vst [vmem:[#allocation45_spill] sm:$0xff] %v8348_v21  ;;  %v1847_v58 = vadd.f32 %v1846_v51, %v1845_v0  ;;  %vm936_vm8 = vcmp.gt.f32.partialorder %v8348_v21, 0.0  ;;  %v8362_v41 = vsel %vm934_vm1, 1.0, %v11855_v3  ;;  %v1227_v51 = vld [vmem:[%s11832_s2 + $0xe8] sm:$0xff]  ;;  %v12153_v2 = vmov 0.0   ;;  %v9638_v37 = vld [vmem:[%s7851_s14 + $0x50] sm:$0xff] }
  0x62   : > { %1371 = vmatpush1.msra.mxu0 %v1198_v1  ;;  %12149 = vst [vmem:[#allocation46_spill] sm:$0xff] %v8362_v41  ;;  %v8365_v1 = vsel %vm935_vm7, 1.0, %v11855_v3  ;;  %v8371_v6 = vsel %vm936_vm8, 1.0, %v11855_v3  ;;  %v8376_v33 = vadd.s32 %v7994_v7, %v615_v20  ;;  %v1223_v63 = vld [vmem:[%s11832_s2 + $0xc8] sm:$0xff]  ;;  %v8590_v8 = vadd.s32 %v7994_v7, %v621_v48  ;;  %v1218_v48 = vld [vmem:[%s11832_s2 + $0xa0] sm:$0xff]  ;;  %12357 = vst [vmem:[#allocation187_spill] sm:$0xff] %v9638_v37 }
  0x63   : > { %1372 = vmatprep.subr.mxu0 %v11855_v3  ;;  %12150 = vst [vmem:[#allocation47_spill] sm:$0xff] %v8365_v1  ;;  %12151 = vst [vmem:[#allocation48_spill] sm:$0xff] %v8371_v6  ;;  %v1855_v4 = vadd.f32 %v8365_v1, %v8362_v41  ;;  %1848 = vadd.xlane.f32.xlu1 %v1847_v58  ;;  %v617_v1 = vadd.s32 120, %v7984_v5  ;;  %v1226_v58 = vld [vmem:[%s11832_s2 + $0xe0] sm:$0xff] }
  0x64   : > { %1373 = vmatpush2.msra.mxu0 %v1229_v57  ;;  %12152 = vst [vmem:[#allocation49_spill] sm:$0xff] %v8376_v33  ;;  %v1856_v57 = vsel %vm1236_vm3, %v8371_v6, 0.0  ;;  %vm11903_vm9 = vcmp.lt.s32.totalorder %v8376_v33, 520  ;;  %12183 = vst [vmem:[#allocation73_spill] sm:$0xff] %v8590_v8 }
  0x65   : > { %1374 = vmatprep.subr.mxu0 %v11855_v3  ;;  %v1857_v20 = vadd.f32 %v1856_v57, %v1855_v4  ;;  %v8399_v6 = vsel %vm11903_vm9, %v12154_v54, 0.0  ;;  %v12156_v4 = vunpack.c.h.bf16 %v8254_v62  ;;  %v8409_v57 = vsel %vm11903_vm9, %v510_v19, 0.0  ;;  %v1225_v19 = vld [vmem:[%s11832_s2 + $0xd8] sm:$0xff] }
  0x66   : > { %1375 = vmatpush2.msra.mxu0 %v1228_v40  ;;  %12155 = vst [vmem:[#allocation50_spill] sm:$0xff] %v8399_v6  ;;  %12158 = vst [vmem:[#allocation52_spill] sm:$0xff] %v8409_v57  ;;  %v8412_v3 = vadd.s32 %v7994_v7, %v617_v1  ;;  %vm940_vm12 = vcmp.gt.f32.partialorder %v8399_v6, 0.0  ;;  %vm942_vm15 = vcmp.gt.f32.partialorder %v8409_v57, 0.0  ;;  %v522_v54 = vunpack.c.h.bf16 %v8354_v22  ;;  %v1219_v6 = vld [vmem:[%s11832_s2 + $0xa8] sm:$0xff] }
  0x67   : > { %1376 = vmatprep.subr.mxu0 %v12153_v2  ;;  %v8405_v40 = vsel %vm11903_vm9, %v12156_v4, 0.0  ;;  %1858 = vadd.xlane.f32.xlu1 %v1857_v20  ;;  %v8423_v1 = vsel %vm940_vm12, 1.0, %v12153_v2  ;;  %v8429_v4 = vsel %vm942_vm15, 1.0, %v12153_v2  ;;  %v12163_v20 = vunpack.c.l.bf16 %v8344_v24 }
  0x68   : > { %12157 = vst [vmem:[#allocation51_spill] sm:$0xff] %v8405_v40  ;;  %12159 = vst [vmem:[#allocation53_spill] sm:$0xff] %v8412_v3  ;;  %1377 = vmatpush2.msra.mxu0 %v1227_v51  ;;  %vm941_vm13 = vcmp.gt.f32.partialorder %v8405_v40, 0.0  ;;  %vm685_vm1 = vcmp.lt.s32.totalorder %v8412_v3, 520  ;;  %v1866_v0 = vsel %vm1236_vm3, %v8429_v4, 0.0 }
  0x69   : > { %1378 = vmatprep.subr.mxu0 %v12153_v2  ;;  %12160 = vst [vmem:[#allocation54_spill] sm:$0xff] %v8423_v1  ;;  %v8426_v51 = vsel %vm941_vm13, 1.0, %v12153_v2  ;;  %12162 = vst [vmem:[#allocation56_spill] sm:$0xff] %v8429_v4  ;;  %v8440_v61 = vsel %vm685_vm1, %v12163_v20, 0.0  ;;  %v8446_v53 = vsel %vm685_vm1, %v12165_v30, 0.0  ;;  %v1224_v4 = vld [vmem:[%s11832_s2 + $0xd0] sm:$0xff] }
  0x6a   : > { %12161 = vst [vmem:[#allocation55_spill] sm:$0xff] %v8426_v51  ;;  %1379 = vmatpush2.msra.mxu0 %v1226_v58  ;;  %v1865_v22 = vadd.f32 %v8426_v51, %v8423_v1  ;;  %12164 = vst [vmem:[#allocation57_spill] sm:$0xff] %v8440_v61  ;;  %v8449_v58 = vld [vmem:[%s7856_s17 + $0x8] ss:$228 sps:$4 sm:$0xff]   ;;  %v8457_v51 = vsel %vm685_vm1, %v516_v34, 0.0  ;;  %vm946_vm7 = vcmp.gt.f32.partialorder %v8440_v61, 0.0 }
  0x6b   : > { %12166 = vst [vmem:[#allocation58_spill] sm:$0xff] %v8446_v53  ;;  %1380 = vmatprep.subr.mxu0 %v12153_v2  ;;  %12167 = vst [vmem:[#allocation59_spill] sm:$0xff] %v8457_v51  ;;  %vm947_vm8 = vcmp.gt.f32.partialorder %v8446_v53, 0.0  ;;  %v619_v20 = vadd.s32 136, %v7984_v5  ;;  %v8463_v30 = vld [vmem:[%s7856_s17] sm:$0xff]  ;;  %vm948_vm12 = vcmp.gt.f32.partialorder %v8457_v51, 0.0  ;;  %v12174_v53 = vunpack.c.h.bf16 %v8368_v38 }
  0x6c   : > { %1381 = vmatpush2.msra.mxu0 %v1225_v19  ;;  %v1867_v36 = vadd.f32 %v1866_v0, %v1865_v22  ;;  %v8467_v1 = vsel %vm946_vm7, 1.0, %v12153_v2  ;;  %v8470_v41 = vsel %vm947_vm8, 1.0, %v12153_v2  ;;  %v8473_v34 = vld [vmem:[%s7856_s17 + $0xe4] sm:$0xff]  ;;  %v8480_v59 = vsel %vm948_vm12, 1.0, %v12153_v2  ;;  %v8583_v61 = vld [vmem:[%s7856_s17 + $0x12c] sm:$0xff] }
  0x6d   : > { %12168 = vst [vmem:[#allocation60_spill] sm:$0xff] %v8467_v1  ;;  %12169 = vst [vmem:[#allocation61_spill] sm:$0xff] %v8470_v41  ;;  %1382 = vmatprep.subr.mxu0 %v12153_v2  ;;  %v1875_v0 = vadd.f32 %v8470_v41, %v8467_v1  ;;  %v8485_v19 = vadd.s32 %v7994_v7, %v619_v20  ;;  %v471_v22 = vunpack.c.l.bf16 %v8449_v58  ;;  %v1876_v26 = vsel %vm1236_vm3, %v8480_v59, 0.0  ;;  %v1222_v20 = vld [vmem:[%s11832_s2 + $0xc0] sm:$0xff] }
  0x6e   : > { %12170 = vst [vmem:[#allocation62_spill] sm:$0xff] %v8480_v59  ;;  %1383 = vmatpush2.msra.mxu0 %v1224_v4  ;;  %1868 = vadd.xlane.f32.xlu1 %v1867_v36  ;;  %vm11964_vm13 = vcmp.lt.s32.totalorder %v8061_v32, 520  ;;  %v470_v35 = vunpack.c.h.bf16 %v8463_v30  ;;  %v1221_v36 = vld [vmem:[%s11832_s2 + $0xb8] sm:$0xff]  ;;  %v12173_v41 = vunpack.c.l.bf16 %v8368_v38  ;;  %12182 = vst [vmem:[#allocation72_spill] sm:$0xff] %v8583_v61 }
  0x6f   : > { %12171 = vst [vmem:[#allocation63_spill] sm:$0xff] %v8485_v19  ;;  %1384 = vmatprep.subr.mxu0 %v12153_v2  ;;  %v1877_v4 = vadd.f32 %v1876_v26, %v1875_v0  ;;  %vm11892_vm15 = vcmp.lt.s32.totalorder %v8485_v19, 520  ;;  %v8503_v59 = vsel %vm11964_vm13, %v471_v22, 0.0  ;;  %v8529_v22 = vld [vmem:[%s7856_s17 + $0x14] ss:$240 sps:$4 sm:$0xff]  }
  0x70   : > { %12172 = vst [vmem:[#allocation64_spill] sm:$0xff] %v8503_v59  ;;  %1385 = vmatpush2.msra.mxu0 %v1223_v63  ;;  %v8510_v1 = vsel %vm11892_vm15, %v12173_v41, 0.0  ;;  %v8516_v26 = vsel %vm11892_vm15, %v12174_v53, 0.0  ;;  %v8520_v0 = vsel %vm11892_vm15, %v522_v54, 0.0  ;;  %6159 = vmatmul.mubr.msk.f32.vlgmr.msra.gmra.mxu1 %vm1236_vm3, %v8503_v59  ;;  %v8526_v63 = vsel %vm11964_vm13, %v470_v35, 0.0  ;;  %v8539_v41 = vld [vmem:[%s7856_s17 + $0xc] sm:$0xff] }
  0x71   : > { %12175 = vst [vmem:[#allocation65_spill] sm:$0xff] %v8516_v26  ;;  %12176 = vst [vmem:[#allocation66_spill] sm:$0xff] %v8520_v0  ;;  %1386 = vmatprep.subr.mxu0 %v12153_v2  ;;  %vm952_vm7 = vcmp.gt.f32.partialorder %v8510_v1, 0.0  ;;  %vm953_vm8 = vcmp.gt.f32.partialorder %v8516_v26, 0.0  ;;  %vm954_vm12 = vcmp.gt.f32.partialorder %v8520_v0, 0.0  ;;  %5703 = vmatprep.mubr.msk.f32.mxu0 %vm11964_vm13, %v470_v35  ;;  %v8542_v54 = vld [vmem:[%s7856_s17 + $0xfc] sm:$0xff]  ;;  %v528_v53 = vunpack.c.h.bf16 %v8449_v58 }
  0x72   : > { %12177 = vst [vmem:[#allocation67_spill] sm:$0xff] %v8526_v63  ;;  %1387 = vmatpush2.msra.mxu0 %v1222_v20  ;;  %1878 = vadd.xlane.f32.xlu1 %v1877_v4  ;;  %v8548_v40 = vsel %vm952_vm7, 1.0, %v12153_v2  ;;  %v8551_v23 = vsel %vm953_vm8, 1.0, %v12153_v2  ;;  %v8554_v35 = vsel %vm954_vm12, 1.0, %v12153_v2  ;;  %v1220_v20 = vld [vmem:[%s11832_s2 + $0xb0] sm:$0xff]  ;;  %v474_v58 = vunpack.c.l.bf16 %v8529_v22 }
  0x73   : > { %12178 = vst [vmem:[#allocation68_spill] sm:$0xff] %v8548_v40  ;;  %12179 = vst [vmem:[#allocation69_spill] sm:$0xff] %v8551_v23  ;;  %1388 = vmatprep.subr.mxu0 %v12153_v2  ;;  %v1885_v4 = vadd.f32 %v8551_v23, %v8548_v40  ;;  %v1886_v55 = vsel %vm1236_vm3, %v8554_v35, 0.0  ;;  %6161 = vmatprep.mubr.msk.f32.mxu1 %vm7779_vm2, %v12153_v2  ;;  %v8580_v26 = vld [vmem:[%s7856_s17 + $0x11c] ss:$24 sps:$4 sm:$0xff]   ;;  %v8596_v40 = vadd.s32 %v7994_v7, %v603_v29 }
  0x74   : > { %12180 = vst [vmem:[#allocation70_spill] sm:$0xff] %v8554_v35  ;;  %1389 = vmatpush2.msra.mxu0 %v1221_v36  ;;  %6258 = vmatpush3.msra.mxu1 %v2112_v52  ;;  %v534_v35 = vunpack.c.h.bf16 %v8529_v22  ;;  %v623_v52 = vadd.s32 168, %v7984_v5  ;;  %vm11902_vm7 = vcmp.lt.s32.totalorder %v8590_v8, 520  ;;  %v540_v29 = vunpack.c.l.bf16 %v8580_v26  ;;  %v9474_v32 = vld [vmem:[%s7856_s17 + $0xf8] ss:$24 sps:$4 sm:$0xff]  }
  0x75   : > { %1390 = vmatprep.subr.mxu0 %v12153_v2  ;;  %v1887_v36 = vadd.f32 %v1886_v55, %v1885_v4  ;;  %6259 = vmatprep.subr.mxu1 %v12153_v2  ;;  %12184 = vst [vmem:[#allocation74_spill] sm:$0xff] %v8596_v40  ;;  %v2110_v55 = vld [vmem:[%s11833_s3 + $0x68] sm:$0xff]  ;;  %v625_v22 = vadd.s32 184, %v7984_v5  ;;  %v12185_v4 = vunpack.c.l.bf16 %v8473_v34  ;;  %vm11986_vm8 = vcmp.lt.s32.totalorder %v8596_v40, 520 }
  0x76   : > { %1391 = vmatpush2.msra.mxu0 %v1220_v20  ;;  %6260 = vmatpush3.msra.mxu1 %v2111_v43  ;;  %v1217_v20 = vld [vmem:[%s11832_s2 + $0x98] sm:$0xff]  ;;  %v8629_v43 = vsel %vm11902_vm7, %v528_v53, 0.0  ;;  %v546_v42 = vunpack.c.h.bf16 %v8580_v26  ;;  %v12198_v26 = vunpack.c.h.bf16 %v8542_v54 }
  0x77   : > { %1392 = vmatprep.subr.mxu0 %v12153_v2  ;;  %1888 = vadd.xlane.f32.xlu1 %v1887_v36  ;;  %v8619_v47 = vsel %vm11902_vm7, %v12185_v4, 0.0  ;;  %v12187_v36 = vunpack.c.h.bf16 %v8473_v34  ;;  %12189 = vst [vmem:[#allocation77_spill] sm:$0xff] %v8629_v43  ;;  %vm960_vm6 = vcmp.gt.f32.partialorder %v8629_v43, 0.0  ;;  %v8642_v4 = vld [vmem:[%s7856_s17 + $0x38] ss:$276 sps:$4 sm:$0xff]  }
  0x78   : > { %1393 = vmatpush2.msra.mxu0 %v1219_v6  ;;  %12186 = vst [vmem:[#allocation75_spill] sm:$0xff] %v8619_v47  ;;  %6261 = vmatprep.subr.mxu1 %v12153_v2  ;;  %vm958_vm12 = vcmp.gt.f32.partialorder %v8619_v47, 0.0  ;;  %v8639_v6 = vsel %vm11986_vm8, %v474_v58, 0.0  ;;  %v8651_v23 = vsel %vm960_vm6, 1.0, %v12153_v2  ;;  %v2109_v58 = vld [vmem:[%s11833_s3 + $0x60] sm:$0xff]  ;;  %v12196_v47 = vunpack.c.l.bf16 %v8542_v54 }
  0x79   : > { %v8625_v45 = vsel %vm11902_vm7, %v12187_v36, 0.0  ;;  %1394 = vmatprep.subr.mxu0 %v12153_v2  ;;  %12190 = vst [vmem:[#allocation78_spill] sm:$0xff] %v8639_v6  ;;  %6262 = vmatpush3.msra.mxu1 %v2110_v55  ;;  %v8645_v53 = vsel %vm958_vm12, 1.0, %v12153_v2  ;;  %12193 = vst [vmem:[#allocation81_spill] sm:$0xff] %v8651_v23  ;;  %v1216_v55 = vld [vmem:[%s11832_s2 + $0x90] sm:$0xff]  ;;  %v1896_v10 = vsel %vm1236_vm3, %v8651_v23, 0.0 }
  0x7a   : > { %12188 = vst [vmem:[#allocation76_spill] sm:$0xff] %v8625_v45  ;;  %vm959_vm15 = vcmp.gt.f32.partialorder %v8625_v45, 0.0  ;;  %1395 = vmatpush2.msra.mxu0 %v1218_v48  ;;  %12191 = vst [vmem:[#allocation79_spill] sm:$0xff] %v8645_v53  ;;  %6162 = vmatmul.mubr.msk.f32.gmra.mxu1 %vm1236_vm3, %v8639_v6  ;;  %v8656_v45 = vadd.s32 %v7994_v7, %v623_v52  ;;  %v8672_v52 = vadd.s32 %v7994_v7, %v625_v22  ;;  %v1215_v22 = vld [vmem:[%s11832_s2 + $0x88] sm:$0xff] }
  0x7b   : > { %v8648_v36 = vsel %vm959_vm15, 1.0, %v12153_v2  ;;  %1396 = vmatprep.subr.mxu0 %v12153_v2  ;;  %6164 = vmatprep.mubr.msk.f32.mxu1 %vm7779_vm2, %v12153_v2 }
  0x7c   : > { %12192 = vst [vmem:[#allocation80_spill] sm:$0xff] %v8648_v36  ;;  %12194 = vst [vmem:[#allocation82_spill] sm:$0xff] %v8656_v45  ;;  %v1895_v48 = vadd.f32 %v8648_v36, %v8645_v53  ;;  %1397 = vmatpush2.msra.mxu0 %v1217_v20  ;;  %vm691_vm6 = vcmp.lt.s32.totalorder %v8656_v45, 520  ;;  %6263 = vmatprep.subr.mxu1 %v12153_v2  ;;  %vm11918_vm9 = vcmp.lt.s32.totalorder %v8672_v52, 520  ;;  %v12231_v45 = vunpack.c.h.bf16 %v8017_v18 }
  0x7d   : > { %12195 = vst [vmem:[#allocation83_spill] sm:$0xff] %v8672_v52  ;;  %1398 = vmatprep.subr.mxu0 %v12153_v2  ;;  %v8688_v20 = vsel %vm691_vm6, %v12196_v47, 0.0  ;;  %v8694_v36 = vsel %vm691_vm6, %v12198_v26, 0.0  ;;  %v8698_v53 = vsel %vm691_vm6, %v534_v35, 0.0  ;;  %6264 = vmatpush3.msra.mxu1 %v2109_v58 }
  0x7e   : > { %v1897_v23 = vadd.f32 %v1896_v10, %v1895_v48  ;;  %12197 = vst [vmem:[#allocation84_spill] sm:$0xff] %v8688_v20  ;;  %12199 = vst [vmem:[#allocation85_spill] sm:$0xff] %v8694_v36  ;;  %1399 = vmatpush2.msra.mxu0 %v1216_v55  ;;  %vm964_vm15 = vcmp.gt.f32.partialorder %v8688_v20, 0.0  ;;  %vm965_vm12 = vcmp.gt.f32.partialorder %v8694_v36, 0.0  ;;  %vm966_vm7 = vcmp.gt.f32.partialorder %v8698_v53, 0.0  ;;  %6165 = vmatmul.mubr.msk.f32.gmra.mxu1 %vm1236_vm3, %v8039_v27  ;;  %v1214_v10 = vld [vmem:[%s11832_s2 + $0x80] sm:$0xff] }
  0x7f   : > { %12200 = vst [vmem:[#allocation86_spill] sm:$0xff] %v8698_v53  ;;  %1400 = vmatprep.subr.mxu0 %v12153_v2  ;;  %v8711_v47 = vsel %vm964_vm15, 1.0, %v12153_v2  ;;  %v8714_v35 = vsel %vm965_vm12, 1.0, %v12153_v2  ;;  %v8717_v58 = vsel %vm966_vm7, 1.0, %v12153_v2  ;;  %v12204_v55 = vunpack.c.l.bf16 %v8570_v11  ;;  %6167 = vmatprep.mubr.msk.f32.mxu1 %vm7779_vm2, %v12153_v2 }
  0x80   : > { %1898 = vadd.xlane.f32.xlu1 %v1897_v23  ;;  %12201 = vst [vmem:[#allocation87_spill] sm:$0xff] %v8711_v47  ;;  %12202 = vst [vmem:[#allocation88_spill] sm:$0xff] %v8714_v35  ;;  %1401 = vmatpush2.msra.mxu0 %v1215_v22  ;;  %v1905_v23 = vadd.f32 %v8714_v35, %v8711_v47  ;;  %v1906_v26 = vsel %vm1236_vm3, %v8717_v58, 0.0  ;;  %v12206_v27 = vunpack.c.h.bf16 %v8570_v11 }
  0x81   : > { %12203 = vst [vmem:[#allocation89_spill] sm:$0xff] %v8717_v58  ;;  %v8723_v48 = vsel %vm11918_vm9, %v12204_v55, 0.0  ;;  %v8739_v55 = vsel %vm11918_vm9, %v540_v29, 0.0  ;;  %1402 = vmatprep.subr.mxu0 %v12153_v2  ;;  %v8746_v22 = vadd.s32 %v7994_v7, %v627_v28  ;;  %v8749_v58 = vld [vmem:[%s7856_s17 + $0x30] sm:$0xff]  ;;  %6265 = vmatprep.subr.mxu1 %v12153_v2  ;;  %v2108_v28 = vld [vmem:[%s11833_s3 + $0x58] sm:$0xff] }
  0x82   : > { %12205 = vst [vmem:[#allocation90_spill] sm:$0xff] %v8723_v48  ;;  %v8735_v36 = vsel %vm11918_vm9, %v12206_v27, 0.0  ;;  %12208 = vst [vmem:[#allocation92_spill] sm:$0xff] %v8739_v55  ;;  %vm970_vm7 = vcmp.gt.f32.partialorder %v8723_v48, 0.0  ;;  %vm972_vm12 = vcmp.gt.f32.partialorder %v8739_v55, 0.0  ;;  %1403 = vmatpush2.msra.mxu0 %v1214_v10  ;;  %v1907_v27 = vadd.f32 %v1906_v26, %v1905_v23  ;;  %6168 = vmatmul.mubr.msk.f32.gmra.mxu1 %vm1236_vm3, %v8104_v44 }
  0x83   : > { %12207 = vst [vmem:[#allocation91_spill] sm:$0xff] %v8735_v36  ;;  %vm971_vm15 = vcmp.gt.f32.partialorder %v8735_v36, 0.0  ;;  %12209 = vst [vmem:[#allocation93_spill] sm:$0xff] %v8746_v22  ;;  %v8753_v29 = vsel %vm970_vm7, 1.0, %v12153_v2  ;;  %v8759_v47 = vsel %vm972_vm12, 1.0, %v12153_v2  ;;  %v12213_v10 = vunpack.c.l.bf16 %v8463_v30  ;;  %6170 = vmatprep.mubr.msk.f32.mxu1 %vm7779_vm2, %v12153_v2  ;;  %v583_v36 = vld [vmem:[%s7851_s14 + $0x78] sm:$0xff]  ;;  %6266 = vmatpush3.msra.mxu1 %v2108_v28 }
  0x84   : > { %12210 = vst [vmem:[#allocation94_spill] sm:$0xff] %v8753_v29  ;;  %v8756_v35 = vsel %vm971_vm15, 1.0, %v12153_v2  ;;  %12212 = vst [vmem:[#allocation96_spill] sm:$0xff] %v8759_v47  ;;  %v1916_v26 = vsel %vm1236_vm3, %v8759_v47, 0.0  ;;  %vm11939_vm7 = vcmp.lt.s32.totalorder %v8746_v22, 520  ;;  %v606_v44 = vadd.s32 32, %v7984_v5  ;;  %1908 = vadd.xlane.f32.xlu1 %v1907_v27  ;;  %2850 = vmatprep.subr.mxu0 %v12153_v2 }
  0x85   : > { %12211 = vst [vmem:[#allocation95_spill] sm:$0xff] %v8756_v35  ;;  %5704 = vmatmul.mubr.msk.f32.vlgmr.msra.gmra.mxu0 %vm11964_vm13, %v12213_v10  ;;  %v1915_v23 = vadd.f32 %v8756_v35, %v8753_v29  ;;  %v12214_v48 = vunpack.c.h.bf16 %v8539_v41  ;;  %v12215_v10 = vunpack.c.l.bf16 %v8583_v61  ;;  %v12217_v47 = vunpack.c.h.bf16 %v8583_v61  ;;  %v8801_v27 = vld [vmem:[%s7856_s17 + $0x144] sm:$0xff]  ;;  %6267 = vmatprep.subr.mxu1 %v12153_v2  ;;  %v8853_v22 = vld [vmem:[%s7856_s17 + $0x174] sm:$0xff] }
  0x86   : > { %v8797_v20 = vsel %vm11939_vm7, %v546_v42, 0.0  ;;  %5803 = vmatpush1.msk.msra.mxu0 %vm685_vm1, %v583_v36  ;;  %v12224_v28 = vunpack.c.l.bf16 %v8539_v41  ;;  %v8839_v61 = vld [vmem:[%s7856_s17 + $0x50] ss:$276 sps:$4 sm:$0xff]   ;;  %v12225_v36 = vunpack.c.h.bf16 %v8005_v13  ;;  %12226 = vst [vmem:[#allocation104_spill] sm:$0xff] %v8853_v22  ;;  %v12233_v11 = vunpack.c.l.bf16 %v8801_v27 }
  0x87   : > { %5705 = vmatprep.mubr.msk.f32.mxu0 %vm11986_vm8, %v12214_v48  ;;  %v8787_v35 = vsel %vm11939_vm7, %v12215_v10, 0.0  ;;  %v8793_v29 = vsel %vm11939_vm7, %v12217_v47, 0.0  ;;  %12219 = vst [vmem:[#allocation99_spill] sm:$0xff] %v8797_v20  ;;  %v2107_v10 = vld [vmem:[%s11833_s3 + $0x50] sm:$0xff]  ;;  %v1917_v52 = vadd.f32 %v1916_v26, %v1915_v23  ;;  %vm978_vm9 = vcmp.gt.f32.partialorder %v8797_v20, 0.0  ;;  %v8823_v26 = vld [vmem:[%s7856_s17 + $0x15c] sm:$0xff]  ;;  %2852 = vmatprep.subr.mxu0 %v12153_v2 }
  0x88   : > { %12216 = vst [vmem:[#allocation97_spill] sm:$0xff] %v8787_v35  ;;  %12218 = vst [vmem:[#allocation98_spill] sm:$0xff] %v8793_v29  ;;  %vm976_vm15 = vcmp.gt.f32.partialorder %v8787_v35, 0.0  ;;  %vm977_vm12 = vcmp.gt.f32.partialorder %v8793_v29, 0.0  ;;  %v8817_v48 = vsel %vm978_vm9, 1.0, %v12153_v2  ;;  %v8820_v23 = vadd.s32 %v7994_v7, %v606_v44  ;;  %6268 = vmatpush3.msra.mxu1 %v2107_v10 }
  0x89   : > { %v8811_v42 = vsel %vm976_vm15, 1.0, %v12153_v2  ;;  %v8814_v47 = vsel %vm977_vm12, 1.0, %v12153_v2  ;;  %12222 = vst [vmem:[#allocation102_spill] sm:$0xff] %v8817_v48  ;;  %12223 = vst [vmem:[#allocation103_spill] sm:$0xff] %v8823_v26  ;;  %5706 = vmatmul.mubr.msk.f32.gmra.mxu0 %vm11986_vm8, %v12224_v28  ;;  %v1926_v44 = vsel %vm1236_vm3, %v8817_v48, 0.0  ;;  %1918 = vadd.xlane.f32.xlu1 %v1917_v52  ;;  %v552_v48 = vunpack.c.h.bf16 %v8642_v4 }
  0x8a   : > { %12220 = vst [vmem:[#allocation100_spill] sm:$0xff] %v8811_v42  ;;  %12221 = vst [vmem:[#allocation101_spill] sm:$0xff] %v8814_v47  ;;  %v1925_v29 = vadd.f32 %v8814_v47, %v8811_v42  ;;  %5707 = vmatprep.mubr.msk.f32.mxu0 %vm11938_vm5, %v12225_v36  ;;  %vm11990_vm9 = vcmp.lt.s32.totalorder %v8820_v23, 520  ;;  %v629_v35 = vadd.s32 216, %v7984_v5  ;;  %v8850_v47 = vld [vmem:[%s7856_s17 + $0x48] sm:$0xff]  ;;  %v12227_v10 = vunpack.c.l.bf16 %v8642_v4  ;;  %6269 = vmatprep.subr.mxu1 %v12153_v2 }
  0x8b   : > { %v8864_v28 = vld [vmem:[%s7856_s17 + $0xc8] ss:$180 sps:$4 sm:$0xff]   ;;  %v558_v4 = vunpack.c.h.bf16 %v8839_v61  ;;  %v12230_v52 = vunpack.c.l.bf16 %v8005_v13 }
  0x8c   : > { %v1927_v42 = vadd.f32 %v1926_v44, %v1925_v29  ;;  %v8859_v20 = vsel %vm11990_vm9, %v12227_v10, 0.0  ;;  %v8871_v29 = vadd.s32 %v7994_v7, %v629_v35  ;;  %v631_v44 = vadd.s32 232, %v7984_v5  ;;  %v2106_v36 = vld [vmem:[%s11833_s3 + $0x48] sm:$0xff] }
  0x8d   : > { %12228 = vst [vmem:[#allocation105_spill] sm:$0xff] %v8859_v20  ;;  %6171 = vmatmul.mubr.msk.f32.gmra.mxu1 %vm1236_vm3, %v8859_v20  ;;  %v489_v10 = vunpack.c.l.bf16 %v8839_v61  ;;  %5708 = vmatmul.mubr.msk.f32.gmra.mxu0 %vm11938_vm5, %v12230_v52  ;;  %v608_v35 = vadd.s32 48, %v7984_v5  ;;  %v12235_v61 = vunpack.c.h.bf16 %v8801_v27  ;;  %v12243_v52 = vunpack.c.h.bf16 %v8749_v58 }
  0x8e   : > { %12229 = vst [vmem:[#allocation106_spill] sm:$0xff] %v8871_v29  ;;  %6173 = vmatprep.mubr.msk.f32.mxu1 %vm7779_vm2, %v12153_v2  ;;  %5709 = vmatprep.mubr.msk.f32.mxu0 %vm11946_vm10, %v12231_v45  ;;  %vm11940_vm15 = vcmp.lt.s32.totalorder %v8871_v29, 520  ;;  %v8895_v13 = vadd.s32 %v7994_v7, %v631_v44 }
  0x8f   : > { %1928 = vadd.xlane.f32.xlu1 %v1927_v42  ;;  %v8903_v55 = vsel %vm11940_vm15, %v12233_v11, 0.0  ;;  %v8909_v45 = vsel %vm11940_vm15, %v12235_v61, 0.0  ;;  %v8913_v42 = vsel %vm11940_vm15, %v552_v48, 0.0  ;;  %v8916_v44 = vadd.s32 %v7994_v7, %v608_v35  ;;  %6270 = vmatpush3.msra.mxu1 %v2106_v36 }
  0x90   : > { %12232 = vst [vmem:[#allocation107_spill] sm:$0xff] %v8895_v13  ;;  %12234 = vst [vmem:[#allocation108_spill] sm:$0xff] %v8903_v55  ;;  %vm982_vm12 = vcmp.gt.f32.partialorder %v8903_v55, 0.0  ;;  %vm983_vm5 = vcmp.gt.f32.partialorder %v8909_v45, 0.0  ;;  %vm984_vm7 = vcmp.gt.f32.partialorder %v8913_v42, 0.0  ;;  %vm11963_vm15 = vcmp.lt.s32.totalorder %v8895_v13, 520  ;;  %6271 = vmatprep.subr.mxu1 %v12153_v2 }
  0x91   : > { %12236 = vst [vmem:[#allocation109_spill] sm:$0xff] %v8909_v45  ;;  %6174 = vmatmul.mubr.msk.f32.gmra.mxu1 %vm1236_vm3, %v8182_v12  ;;  %v12237_v11 = vunpack.c.l.bf16 %v8017_v18  ;;  %v8933_v48 = vsel %vm982_vm12, 1.0, %v12153_v2  ;;  %v8936_v36 = vsel %vm983_vm5, 1.0, %v12153_v2  ;;  %v8939_v35 = vsel %vm984_vm7, 1.0, %v12153_v2 }
  0x92   : > { %12238 = vst [vmem:[#allocation110_spill] sm:$0xff] %v8933_v48  ;;  %12239 = vst [vmem:[#allocation111_spill] sm:$0xff] %v8936_v36  ;;  %6176 = vmatprep.mubr.msk.f32.mxu1 %vm7779_vm2, %v12153_v2  ;;  %v12241_v61 = vunpack.c.l.bf16 %v8823_v26  ;;  %v1935_v12 = vadd.f32 %v8936_v36, %v8933_v48  ;;  %v1936_v45 = vsel %vm1236_vm3, %v8939_v35, 0.0  ;;  %v12244_v55 = vunpack.c.h.bf16 %v8823_v26  ;;  %6272 = vmatpush3.msra.mxu1 %v2105_v16 }
  0x93   : > { %5710 = vmatmul.mubr.msk.f32.gmra.mxu0 %vm11946_vm10, %v12237_v11  ;;  %12240 = vst [vmem:[#allocation112_spill] sm:$0xff] %v8939_v35  ;;  %v2104_v11 = vld [vmem:[%s11833_s3 + $0x38] sm:$0xff]  ;;  %v8968_v29 = vsel %vm11963_vm15, %v558_v4, 0.0  ;;  %vm12012_vm10 = vcmp.lt.s32.totalorder %v8916_v44, 520  ;;  %6273 = vmatprep.subr.mxu1 %v12153_v2  ;;  %v12250_v4 = vunpack.c.l.bf16 %v8749_v58  ;;  %v633_v48 = vadd.s32 248, %v7984_v5 }
  0x94   : > { %v8947_v18 = vsel %vm11963_vm15, %v12241_v61, 0.0  ;;  %5711 = vmatprep.mubr.msk.f32.mxu0 %vm11990_vm9, %v12243_v52  ;;  %v8964_v61 = vsel %vm11963_vm15, %v12244_v55, 0.0  ;;  %12246 = vst [vmem:[#allocation115_spill] sm:$0xff] %v8968_v29  ;;  %vm990_vm12 = vcmp.gt.f32.partialorder %v8968_v29, 0.0  ;;  %v1937_v52 = vadd.f32 %v1936_v45, %v1935_v12  ;;  %6274 = vmatpush3.msra.mxu1 %v2104_v11 }
  0x95   : > { %12242 = vst [vmem:[#allocation113_spill] sm:$0xff] %v8947_v18  ;;  %12245 = vst [vmem:[#allocation114_spill] sm:$0xff] %v8964_v61  ;;  %vm988_vm5 = vcmp.gt.f32.partialorder %v8947_v18, 0.0  ;;  %vm989_vm7 = vcmp.gt.f32.partialorder %v8964_v61, 0.0  ;;  %v8982_v16 = vsel %vm990_vm12, 1.0, %v12153_v2  ;;  %v8994_v45 = vsel %vm12012_vm10, %v489_v10, 0.0  ;;  %6275 = vmatprep.subr.mxu1 %v12153_v2 }
  0x96   : > { %v8976_v35 = vsel %vm988_vm5, 1.0, %v12153_v2  ;;  %v8979_v55 = vsel %vm989_vm7, 1.0, %v12153_v2  ;;  %12249 = vst [vmem:[#allocation118_spill] sm:$0xff] %v8982_v16  ;;  %v1946_v12 = vsel %vm1236_vm3, %v8982_v16, 0.0  ;;  %12251 = vst [vmem:[#allocation119_spill] sm:$0xff] %v8994_v45  ;;  %1938 = vadd.xlane.f32.xlu1 %v1937_v52  ;;  %v12252_v11 = vunpack.c.h.bf16 %v8057_v31  ;;  %6177 = vmatmul.mubr.msk.f32.gmra.mxu1 %vm1236_vm3, %v8994_v45 }
  0x97   : > { %12247 = vst [vmem:[#allocation116_spill] sm:$0xff] %v8976_v35  ;;  %12248 = vst [vmem:[#allocation117_spill] sm:$0xff] %v8979_v55  ;;  %5712 = vmatmul.mubr.msk.f32.gmra.mxu0 %vm11990_vm9, %v12250_v4  ;;  %v1945_v36 = vadd.f32 %v8979_v55, %v8976_v35  ;;  %v519_v4 = vunpack.c.l.bf16 %v8864_v28  ;;  %v618_v55 = vadd.s32 128, %v7984_v5  ;;  %vm903_vm5 = vcmp.gt.f32.partialorder %v8503_v59, 0.0  ;;  %v9012_v35 = vld [vmem:[%s7856_s17 + $0x68] ss:$24 sps:$4 sm:$0xff]   ;;  %6179 = vmatprep.mubr.msk.f32.mxu1 %vm7779_vm2, %v12153_v2 }
  0x98   : > { %5713 = vmatprep.mubr.msk.f32.mxu0 %vm11999_vm14, %v12252_v11  ;;  %v12253_v16 = vunpack.c.l.bf16 %v8463_v30  ;;  %v9017_v11 = vadd.s32 %v7994_v7, %v633_v48  ;;  %v9020_v61 = vsel %vm903_vm5, 1.0, %v12153_v2  ;;  %vm902_vm12 = vcmp.gt.f32.partialorder %v8526_v63, 0.0  ;;  %v2103_v63 = vld [vmem:[%s11833_s3 + $0x30] sm:$0xff] }
  0x99   : > { %v1947_v52 = vadd.f32 %v1946_v12, %v1945_v36  ;;  %12255 = vst [vmem:[#allocation121_spill] sm:$0xff] %v9020_v61  ;;  %v9026_v30 = vadd.s32 %v7994_v7, %v618_v55  ;;  %v1801_v48 = vsel %vm1236_vm3, %v9020_v61, 0.0  ;;  %v9040_v12 = vsel %vm902_vm12, 1.0, %v12153_v2  ;;  %6276 = vmatpush3.msra.mxu1 %v2103_v63 }
  0x9a   : > { %v9009_v10 = vsel %vm11964_vm13, %v12253_v16, 0.0  ;;  %12254 = vst [vmem:[#allocation120_spill] sm:$0xff] %v9017_v11  ;;  %v12258_v16 = vunpack.c.l.bf16 %v8057_v31  ;;  %vm11965_vm5 = vcmp.lt.s32.totalorder %v9017_v11, 520  ;;  %12259 = vst [vmem:[#allocation124_spill] sm:$0xff] %v9040_v12  ;;  %v495_v55 = vunpack.c.l.bf16 %v9012_v35  ;;  %6180 = vmatmul.mubr.msk.f32.gmra.mxu1 %vm1236_vm3, %v8237_v50  ;;  %6277 = vmatprep.subr.mxu1 %v12153_v2 }
  0x9b   : > { %vm901_vm7 = vcmp.gt.f32.partialorder %v9009_v10, 0.0  ;;  %12256 = vst [vmem:[#allocation122_spill] sm:$0xff] %v9026_v30  ;;  %v610_v59 = vadd.s32 64, %v7984_v5  ;;  %1948 = vadd.xlane.f32.xlu1 %v1947_v52  ;;  %v12260_v31 = vunpack.c.h.bf16 %v8850_v47  ;;  %v12263_v13 = vunpack.c.h.bf16 %v8853_v22  ;;  %6182 = vmatprep.mubr.msk.f32.mxu1 %vm7779_vm2, %v12153_v2 }
  0x9c   : > { %v9030_v36 = vsel %vm901_vm7, 1.0, %v12153_v2  ;;  %5714 = vmatmul.mubr.msk.f32.gmra.mxu0 %vm11999_vm14, %v12258_v16  ;;  %v12261_v16 = vunpack.c.l.bf16 %v8853_v22  ;;  %v12265_v29 = vunpack.c.h.bf16 %v8864_v28  ;;  %vm686_vm7 = vcmp.lt.s32.totalorder %v9026_v30, 520  ;;  %v9080_v28 = vld [vmem:[%s7856_s17 + $0x60] sm:$0xff] }
  0x9d   : > { %12257 = vst [vmem:[#allocation123_spill] sm:$0xff] %v9030_v36  ;;  %5715 = vmatprep.mubr.msk.f32.mxu0 %vm12012_vm10, %v12260_v31  ;;  %v9061_v26 = vsel %vm11965_vm5, %v12263_v13, 0.0  ;;  %v9077_v13 = vsel %vm686_vm7, %v519_v4, 0.0  ;;  %v12271_v4 = vunpack.c.l.bf16 %v8850_v47  ;;  %v1800_v22 = vadd.f32 %v9040_v12, %v9030_v36 }
  0x9e   : > { %v9055_v18 = vsel %vm11965_vm5, %v12261_v16, 0.0  ;;  %12264 = vst [vmem:[#allocation126_spill] sm:$0xff] %v9061_v26  ;;  %v9067_v52 = vsel %vm11965_vm5, %v12265_v29, 0.0  ;;  %vm995_vm15 = vcmp.gt.f32.partialorder %v9061_v26, 0.0  ;;  %12267 = vst [vmem:[#allocation128_spill] sm:$0xff] %v9077_v13  ;;  %vm951_vm5 = vcmp.gt.f32.partialorder %v9077_v13, 0.0 }
  0x9f   : > { %12262 = vst [vmem:[#allocation125_spill] sm:$0xff] %v9055_v18  ;;  %12266 = vst [vmem:[#allocation127_spill] sm:$0xff] %v9067_v52  ;;  %vm994_vm12 = vcmp.gt.f32.partialorder %v9055_v18, 0.0  ;;  %vm996_vm13 = vcmp.gt.f32.partialorder %v9067_v52, 0.0  ;;  %v9086_v31 = vsel %vm995_vm15, 1.0, %v12153_v2  ;;  %v9103_v18 = vsel %vm951_vm5, 1.0, %v12153_v2 }
  0xa0   : > { %v9083_v29 = vsel %vm994_vm12, 1.0, %v12153_v2  ;;  %12269 = vst [vmem:[#allocation130_spill] sm:$0xff] %v9086_v31  ;;  %v9089_v16 = vsel %vm996_vm13, 1.0, %v12153_v2  ;;  %5716 = vmatmul.mubr.msk.f32.gmra.mxu0 %vm12012_vm10, %v12271_v4  ;;  %12272 = vst [vmem:[#allocation132_spill] sm:$0xff] %v9103_v18  ;;  %v12273_v63 = vunpack.c.h.bf16 %v8108_v46  ;;  %v1802_v52 = vadd.f32 %v1801_v48, %v1800_v22 }
  0xa1   : > { %12268 = vst [vmem:[#allocation129_spill] sm:$0xff] %v9083_v29  ;;  %12270 = vst [vmem:[#allocation131_spill] sm:$0xff] %v9089_v16  ;;  %v1955_v50 = vadd.f32 %v9086_v31, %v9083_v29  ;;  %v1956_v26 = vsel %vm1236_vm3, %v9089_v16, 0.0  ;;  %v9115_v31 = vadd.s32 %v7994_v7, %v610_v59  ;;  %v494_v16 = vunpack.c.h.bf16 %v9080_v28 }
  0xa2   : > { %5717 = vmatprep.mubr.msk.f32.mxu0 %vm12078_vm4, %v12273_v63  ;;  %v12275_v29 = vunpack.c.l.bf16 %v8539_v41  ;;  %v12276_v11 = vunpack.c.h.bf16 %v8539_v41  ;;  %vm906_vm12 = vcmp.gt.f32.partialorder %v8639_v6, 0.0  ;;  %1803 = vadd.xlane.f32.xlu0 %v1802_v52 }
  0xa3   : > { %12274 = vst [vmem:[#allocation133_spill] sm:$0xff] %v9115_v31  ;;  %v1957_v36 = vadd.f32 %v1956_v26, %v1955_v50  ;;  %vm12081_vm15 = vcmp.lt.s32.totalorder %v9115_v31, 520  ;;  %v9145_v22 = vsel %vm906_vm12, 1.0, %v12153_v2  ;;  %v493_v26 = vunpack.c.l.bf16 %v9080_v28 }
  0xa4   : > { %v9122_v12 = vsel %vm11986_vm8, %v12275_v29, 0.0  ;;  %v9128_v63 = vsel %vm11986_vm8, %v12276_v11, 0.0  ;;  %v9139_v50 = vsel %vm12081_vm15, %v495_v55, 0.0  ;;  %12281 = vst [vmem:[#allocation138_spill] sm:$0xff] %v9145_v22  ;;  %v12282_v11 = vunpack.c.l.bf16 %v8108_v46  ;;  %v9171_v29 = vld [vmem:[%s7856_s17 + $0x78] sm:$0xff] }
  0xa5   : > { %12277 = vst [vmem:[#allocation134_spill] sm:$0xff] %v9128_v63  ;;  %vm904_vm13 = vcmp.gt.f32.partialorder %v9122_v12, 0.0  ;;  %vm905_vm5 = vcmp.gt.f32.partialorder %v9128_v63, 0.0  ;;  %1958 = vadd.xlane.f32.xlu1 %v1957_v36  ;;  %12279 = vst [vmem:[#allocation136_spill] sm:$0xff] %v9139_v50  ;;  %6183 = vmatmul.mubr.msk.f32.gmra.mxu1 %vm1236_vm3, %v9139_v50  ;;  %v1806_v48 = vsel %vm1236_vm3, %v9145_v22, 0.0  ;;  %v12283_v55 = vunpack.c.l.bf16 %v8749_v58 }
  0xa6   : > { %v9135_v59 = vsel %vm904_vm13, 1.0, %v12153_v2  ;;  %v9142_v41 = vsel %vm905_vm5, 1.0, %v12153_v2  ;;  %5718 = vmatmul.mubr.msk.f32.gmra.mxu0 %vm12078_vm4, %v12282_v11  ;;  %v12284_v46 = vunpack.c.h.bf16 %v8749_v58  ;;  %v2102_v11 = vld [vmem:[%s11833_s3 + $0x28] sm:$0xff]  ;;  %6185 = vmatprep.mubr.msk.f32.mxu1 %vm7779_vm2, %v12153_v2  ;;  %vm915_vm12 = vcmp.gt.f32.partialorder %v8859_v20, 0.0 }
  0xa7   : > { %12278 = vst [vmem:[#allocation135_spill] sm:$0xff] %v9135_v59  ;;  %12280 = vst [vmem:[#allocation137_spill] sm:$0xff] %v9142_v41  ;;  %v1805_v36 = vadd.f32 %v9142_v41, %v9135_v59  ;;  %v9162_v52 = vsel %vm11990_vm9, %v12283_v55, 0.0  ;;  %5719 = vmatprep.mubr.msk.f32.mxu0 %vm12081_vm15, %v494_v16  ;;  %v501_v58 = vunpack.c.h.bf16 %v9012_v35  ;;  %v9191_v22 = vsel %vm915_vm12, 1.0, %v12153_v2  ;;  %6278 = vmatpush3.msra.mxu1 %v2102_v11 }
  0xa8   : > { %v9168_v28 = vsel %vm11990_vm9, %v12284_v46, 0.0  ;;  %vm913_vm13 = vcmp.gt.f32.partialorder %v9162_v52, 0.0  ;;  %12288 = vst [vmem:[#allocation142_spill] sm:$0xff] %v9191_v22  ;;  %v1821_v41 = vsel %vm1236_vm3, %v9191_v22, 0.0  ;;  %v612_v20 = vadd.s32 80, %v7984_v5  ;;  %6279 = vmatprep.subr.mxu1 %v12153_v2 }
  0xa9   : > { %12285 = vst [vmem:[#allocation139_spill] sm:$0xff] %v9168_v28  ;;  %vm914_vm5 = vcmp.gt.f32.partialorder %v9168_v28, 0.0  ;;  %v1807_v55 = vadd.f32 %v1806_v48, %v1805_v36  ;;  %v9185_v46 = vsel %vm913_vm13, 1.0, %v12153_v2  ;;  %v500_v35 = vunpack.c.h.bf16 %v9171_v29  ;;  %6186 = vmatmul.mubr.msk.f32.gmra.mxu1 %vm1236_vm3, %v8299_v9 }
  0xaa   : > { %12286 = vst [vmem:[#allocation140_spill] sm:$0xff] %v9185_v46  ;;  %v9188_v4 = vsel %vm914_vm5, 1.0, %v12153_v2  ;;  %5720 = vmatmul.mubr.msk.f32.gmra.mxu0 %vm12081_vm15, %v493_v26  ;;  %v12289_v36 = vunpack.c.l.bf16 %v8850_v47  ;;  %v12290_v11 = vunpack.c.h.bf16 %v8850_v47  ;;  %vm921_vm13 = vcmp.gt.f32.partialorder %v8994_v45, 0.0  ;;  %6188 = vmatprep.mubr.msk.f32.mxu1 %vm7779_vm2, %v12153_v2  ;;  %v9252_v45 = vld [vmem:[%s7856_s17 + $0x98] ss:$24 sps:$4 sm:$0xff]  }
  0xab   : > { %12287 = vst [vmem:[#allocation141_spill] sm:$0xff] %v9188_v4  ;;  %v1820_v61 = vadd.f32 %v9188_v4, %v9185_v46  ;;  %1808 = vadd.xlane.f32.xlu0 %v1807_v55  ;;  %v499_v4 = vunpack.c.l.bf16 %v9171_v29  ;;  %v12291_v55 = vunpack.c.h.bf16 %v8138_v56  ;;  %v9223_v47 = vadd.s32 %v7994_v7, %v612_v20 }
  0xac   : > { %v9206_v48 = vsel %vm12012_vm10, %v12289_v36, 0.0  ;;  %v9212_v22 = vsel %vm12012_vm10, %v12290_v11, 0.0  ;;  %v9240_v20 = vsel %vm12081_vm15, %v493_v26, 0.0  ;;  %v9249_v9 = vsel %vm12081_vm15, %v494_v16, 0.0  ;;  %v9267_v16 = vld [vmem:[%s7856_s17 + $0x90] sm:$0xff] }
  0xad   : > { %5721 = vmatprep.mubr.msk.f32.mxu0 %vm12064_vm11, %v12291_v55  ;;  %v1822_v36 = vadd.f32 %v1821_v41, %v1820_v61  ;;  %12292 = vst [vmem:[#allocation143_spill] sm:$0xff] %v9223_v47  ;;  %vm919_vm5 = vcmp.gt.f32.partialorder %v9206_v48, 0.0  ;;  %vm920_vm12 = vcmp.gt.f32.partialorder %v9212_v22, 0.0  ;;  %v9236_v55 = vsel %vm921_vm13, 1.0, %v12153_v2  ;;  %12296 = vst [vmem:[#allocation147_spill] sm:$0xff] %v9240_v20 }
  0xae   : > { %v9230_v29 = vsel %vm919_vm5, 1.0, %v12153_v2  ;;  %v9233_v11 = vsel %vm920_vm12, 1.0, %v12153_v2  ;;  %12295 = vst [vmem:[#allocation146_spill] sm:$0xff] %v9236_v55  ;;  %vm12065_vm8 = vcmp.lt.s32.totalorder %v9223_v47, 520  ;;  %v1831_v41 = vsel %vm1236_vm3, %v9236_v55, 0.0  ;;  %v9710_v47 = vld [vmem:[%s7856_s17 + $0x150] sm:$0xff] }
  0xaf   : > { %12293 = vst [vmem:[#allocation144_spill] sm:$0xff] %v9230_v29  ;;  %12294 = vst [vmem:[#allocation145_spill] sm:$0xff] %v9233_v11  ;;  %v1830_v61 = vadd.f32 %v9233_v11, %v9230_v29  ;;  %vm957_vm13 = vcmp.gt.f32.partialorder %v8082_v39, 0.0  ;;  %1823 = vadd.xlane.f32.xlu0 %v1822_v36  ;;  %v12297_v26 = vunpack.c.l.bf16 %v8138_v56  ;;  %v9261_v11 = vsel %vm12065_vm8, %v501_v58, 0.0 }
  0xb0   : > { %12298 = vst [vmem:[#allocation148_spill] sm:$0xff] %v9261_v11  ;;  %vm925_vm5 = vcmp.gt.f32.partialorder %v9240_v20, 0.0  ;;  %vm926_vm12 = vcmp.gt.f32.partialorder %v9249_v9, 0.0  ;;  %vm927_vm9 = vcmp.gt.f32.partialorder %v9139_v50, 0.0  ;;  %6189 = vmatmul.mubr.msk.f32.gmra.mxu1 %vm1236_vm3, %v9261_v11  ;;  %v506_v29 = vunpack.c.h.bf16 %v9267_v16  ;;  %v9490_v20 = vld [vmem:[%s7856_s17 + $0x108] sm:$0xff] }
  0xb1   : > { %5722 = vmatmul.mubr.msk.f32.gmra.mxu0 %vm12064_vm11, %v12297_v26  ;;  %v1832_v56 = vadd.f32 %v1831_v41, %v1830_v61  ;;  %v9274_v36 = vsel %vm925_vm5, 1.0, %v12153_v2  ;;  %v9277_v58 = vsel %vm926_vm12, 1.0, %v12153_v2  ;;  %v9280_v26 = vsel %vm927_vm9, 1.0, %v12153_v2  ;;  %6191 = vmatprep.mubr.msk.f32.mxu1 %vm7779_vm2, %v12153_v2 }
  0xb2   : > { %5723 = vmatprep.mubr.msk.f32.mxu0 %vm12065_vm8, %v500_v35  ;;  %12299 = vst [vmem:[#allocation149_spill] sm:$0xff] %v9274_v36  ;;  %12300 = vst [vmem:[#allocation150_spill] sm:$0xff] %v9277_v58  ;;  %v1840_v55 = vadd.f32 %v9277_v58, %v9274_v36  ;;  %v1841_v50 = vsel %vm1236_vm3, %v9280_v26, 0.0  ;;  %v507_v61 = vunpack.c.l.bf16 %v9252_v45  ;;  %v614_v41 = vadd.s32 96, %v7984_v5  ;;  %v2101_v36 = vld [vmem:[%s11833_s3 + $0x20] sm:$0xff] }
  0xb3   : > { %12301 = vst [vmem:[#allocation151_spill] sm:$0xff] %v9280_v26  ;;  %v9293_v46 = vsel %vm12065_vm8, %v499_v4, 0.0  ;;  %v9297_v59 = vsel %vm12065_vm8, %v500_v35, 0.0  ;;  %vm933_vm9 = vcmp.gt.f32.partialorder %v9261_v11, 0.0  ;;  %1833 = vadd.xlane.f32.xlu0 %v1832_v56  ;;  %v12304_v35 = vunpack.c.h.bf16 %v8232_v49  ;;  %6280 = vmatpush3.msra.mxu1 %v2101_v36 }
  0xb4   : > { %12302 = vst [vmem:[#allocation152_spill] sm:$0xff] %v9293_v46  ;;  %v1842_v26 = vadd.f32 %v1841_v50, %v1840_v55  ;;  %v9303_v58 = vadd.s32 %v7994_v7, %v614_v41  ;;  %vm931_vm5 = vcmp.gt.f32.partialorder %v9293_v46, 0.0  ;;  %vm932_vm12 = vcmp.gt.f32.partialorder %v9297_v59, 0.0  ;;  %6192 = vmatmul.mubr.msk.f32.gmra.mxu1 %vm1236_vm3, %v8348_v21  ;;  %6281 = vmatprep.subr.mxu1 %v12153_v2  ;;  %v9455_v46 = vld [vmem:[%s7856_s17 + $0xf0] sm:$0xff] }
  0xb5   : > { %5724 = vmatmul.mubr.msk.f32.gmra.mxu0 %vm12065_vm8, %v499_v4  ;;  %v9317_v4 = vsel %vm931_vm5, 1.0, %v12153_v2  ;;  %v9320_v50 = vsel %vm932_vm12, 1.0, %v12153_v2  ;;  %v9323_v55 = vsel %vm933_vm9, 1.0, %v12153_v2  ;;  %v505_v56 = vunpack.c.l.bf16 %v9267_v16  ;;  %6194 = vmatprep.mubr.msk.f32.mxu1 %vm7779_vm2, %v12153_v2 }
  0xb6   : > { %12303 = vst [vmem:[#allocation153_spill] sm:$0xff] %v9303_v58  ;;  %5725 = vmatprep.mubr.msk.f32.mxu0 %vm12044_vm0, %v12304_v35  ;;  %12305 = vst [vmem:[#allocation154_spill] sm:$0xff] %v9317_v4  ;;  %vm12036_vm14 = vcmp.lt.s32.totalorder %v9303_v58, 520  ;;  %v1850_v41 = vadd.f32 %v9320_v50, %v9317_v4  ;;  %v1851_v35 = vsel %vm1236_vm3, %v9323_v55, 0.0  ;;  %v513_v21 = vunpack.c.h.bf16 %v9252_v45  ;;  %v9348_v4 = vld [vmem:[%s7856_s17 + $0xa8] sm:$0xff] }
  0xb7   : > { %12306 = vst [vmem:[#allocation155_spill] sm:$0xff] %v9320_v50  ;;  %12307 = vst [vmem:[#allocation156_spill] sm:$0xff] %v9323_v55  ;;  %v9336_v11 = vsel %vm12036_vm14, %v507_v61, 0.0  ;;  %v9340_v16 = vsel %vm12036_vm14, %v505_v56, 0.0  ;;  %v9344_v6 = vsel %vm12036_vm14, %v506_v29, 0.0  ;;  %v616_v50 = vadd.s32 112, %v7984_v5  ;;  %1843 = vadd.xlane.f32.xlu0 %v1842_v26 }
  0xb8   : > { %12308 = vst [vmem:[#allocation157_spill] sm:$0xff] %v9336_v11  ;;  %12309 = vst [vmem:[#allocation158_spill] sm:$0xff] %v9340_v16  ;;  %v12310_v45 = vunpack.c.l.bf16 %v8232_v49  ;;  %v1852_v36 = vadd.f32 %v1851_v35, %v1850_v41  ;;  %vm937_vm9 = vcmp.gt.f32.partialorder %v9340_v16, 0.0  ;;  %vm938_vm5 = vcmp.gt.f32.partialorder %v9344_v6, 0.0  ;;  %v9359_v61 = vld [vmem:[%s7856_s17 + $0xc0] sm:$0xff]  ;;  %6195 = vmatmul.mubr.msk.f32.gmra.mxu1 %vm1236_vm3, %v9336_v11 }
  0xb9   : > { %vm939_vm12 = vcmp.gt.f32.partialorder %v9336_v11, 0.0  ;;  %v9366_v49 = vsel %vm937_vm9, 1.0, %v12153_v2  ;;  %v9369_v26 = vsel %vm938_vm5, 1.0, %v12153_v2  ;;  %v9375_v35 = vadd.s32 %v7994_v7, %v616_v50  ;;  %6197 = vmatprep.mubr.msk.f32.mxu1 %vm7779_vm2, %v12153_v2 }
  0xba   : > { %5726 = vmatmul.mubr.msk.f32.gmra.mxu0 %vm12044_vm0, %v12310_v45  ;;  %12311 = vst [vmem:[#allocation159_spill] sm:$0xff] %v9366_v49  ;;  %12312 = vst [vmem:[#allocation160_spill] sm:$0xff] %v9369_v26  ;;  %v9372_v41 = vsel %vm939_vm12, 1.0, %v12153_v2  ;;  %v1860_v45 = vadd.f32 %v9369_v26, %v9366_v49  ;;  %v512_v55 = vunpack.c.h.bf16 %v9348_v4  ;;  %v511_v11 = vunpack.c.l.bf16 %v9348_v4  ;;  %v9394_v26 = vld [vmem:[%s7851_s14 + $0x70] sm:$0xff] }
  0xbb   : > { %5727 = vmatprep.mubr.msk.f32.mxu0 %vm12036_vm14, %v506_v29  ;;  %12313 = vst [vmem:[#allocation161_spill] sm:$0xff] %v9372_v41  ;;  %12314 = vst [vmem:[#allocation162_spill] sm:$0xff] %v9375_v35  ;;  %v1861_v29 = vsel %vm1236_vm3, %v9372_v41, 0.0  ;;  %v9388_v28 = vsel %vm957_vm13, 1.0, %v12153_v2  ;;  %vm12045_vm9 = vcmp.lt.s32.totalorder %v9375_v35, 520  ;;  %1853 = vadd.xlane.f32.xlu0 %v1852_v36  ;;  %v12319_v36 = vunpack.c.h.bf16 %v8254_v62 }
  0xbc   : > { %12315 = vst [vmem:[#allocation163_spill] sm:$0xff] %v9388_v28  ;;  %12316 = vst [vmem:[#allocation164_spill] sm:$0xff] %v9394_v26  ;;  %v1862_v41 = vadd.f32 %v1861_v29, %v1860_v45  ;;  %v9400_v4 = vsel %vm12045_vm9, %v513_v21, 0.0  ;;  %v9404_v49 = vsel %vm12045_vm9, %v511_v11, 0.0  ;;  %v9408_v50 = vsel %vm12045_vm9, %v512_v55, 0.0  ;;  %6198 = vmatmul.mubr.msk.f32.gmra.mxu1 %vm1236_vm3, %v8409_v57  ;;  %v9426_v45 = vld [vmem:[%s7856_s17 + $0xd8] sm:$0xff]  ;;  %5804 = vmatpush1.msk.msra.mxu0 %vm12045_vm9, %v9394_v26 }
  0xbd   : > { %12317 = vst [vmem:[#allocation165_spill] sm:$0xff] %v9400_v4  ;;  %12318 = vst [vmem:[#allocation166_spill] sm:$0xff] %v9404_v49  ;;  %vm12320_vm13 = vcmp.lt.s32.totalorder %v8376_v33, 520  ;;  %vm943_vm5 = vcmp.gt.f32.partialorder %v9404_v49, 0.0  ;;  %vm944_vm12 = vcmp.gt.f32.partialorder %v9408_v50, 0.0  ;;  %vm945_vm10 = vcmp.gt.f32.partialorder %v9400_v4, 0.0  ;;  %6200 = vmatprep.mubr.msk.f32.mxu1 %vm7779_vm2, %v12153_v2  ;;  %2854 = vmatprep.subr.mxu0 %v12153_v2 }
  0xbe   : > { %5728 = vmatmul.mubr.msk.f32.gmra.mxu0 %vm12036_vm14, %v505_v56  ;;  %v12321_v21 = vunpack.c.l.bf16 %v9359_v61  ;;  %v9431_v29 = vsel %vm943_vm5, 1.0, %v12153_v2  ;;  %v9437_v63 = vsel %vm945_vm10, 1.0, %v12153_v2  ;;  %v12325_v57 = vunpack.c.h.bf16 %v9359_v61 }
  0xbf   : > { %5729 = vmatprep.mubr.msk.f32.mxu0 %vm12320_vm13, %v12319_v36  ;;  %12322 = vst [vmem:[#allocation167_spill] sm:$0xff] %v9431_v29  ;;  %v9434_v36 = vsel %vm944_vm12, 1.0, %v12153_v2  ;;  %12324 = vst [vmem:[#allocation169_spill] sm:$0xff] %v9437_v63  ;;  %v1871_v16 = vsel %vm1236_vm3, %v9437_v63, 0.0  ;;  %1863 = vadd.xlane.f32.xlu0 %v1862_v41  ;;  %v12328_v26 = vunpack.c.l.bf16 %v8254_v62  ;;  %vm12329_vm5 = vcmp.lt.s32.totalorder %v8376_v33, 520  ;;  %v2100_v41 = vld [vmem:[%s11833_s3 + $0x18] sm:$0xff] }
  0xc0   : > { %v9423_v56 = vsel %vm686_vm7, %v12321_v21, 0.0  ;;  %12323 = vst [vmem:[#allocation168_spill] sm:$0xff] %v9434_v36  ;;  %v9443_v21 = vsel %vm686_vm7, %v12325_v57, 0.0  ;;  %v1870_v49 = vadd.f32 %v9434_v36, %v9431_v29  ;;  %v9459_v57 = vld [vmem:[%s7851_s14 + $0x68] sm:$0xff]  ;;  %6201 = vmatmul.mubr.msk.f32.gmra.mxu1 %vm1236_vm3, %v9400_v4  ;;  %v1891_v29 = vsel %vm1236_vm3, %v9388_v28, 0.0 }
  0xc1   : > { %12326 = vst [vmem:[#allocation170_spill] sm:$0xff] %v9443_v21  ;;  %vm949_vm10 = vcmp.gt.f32.partialorder %v9423_v56, 0.0  ;;  %vm950_vm13 = vcmp.gt.f32.partialorder %v9443_v21, 0.0  ;;  %12327 = vst [vmem:[#allocation171_spill] sm:$0xff] %v9459_v57  ;;  %v1881_v21 = vsel %vm1236_vm3, %v9103_v18, 0.0  ;;  %6203 = vmatprep.mubr.msk.f32.mxu1 %vm7779_vm2, %v12153_v2  ;;  %v12332_v4 = vunpack.c.l.bf16 %v9426_v45  ;;  %6282 = vmatpush3.msra.mxu1 %v2100_v41 }
  0xc2   : > { %5730 = vmatmul.mubr.msk.f32.gmra.mxu0 %vm12329_vm5, %v12328_v26  ;;  %v9466_v36 = vsel %vm949_vm10, 1.0, %v12153_v2  ;;  %v9469_v63 = vsel %vm950_vm13, 1.0, %v12153_v2  ;;  %v1872_v62 = vadd.f32 %v1871_v16, %v1870_v49  ;;  %vm12333_vm12 = vcmp.lt.s32.totalorder %v8014_v17, 520  ;;  %vm12337_vm13 = vmmov %vm12329_vm5  ;;  %6283 = vmatprep.subr.mxu1 %v12153_v2 }
  0xc3   : > { %12330 = vst [vmem:[#allocation172_spill] sm:$0xff] %v9466_v36  ;;  %12331 = vst [vmem:[#allocation173_spill] sm:$0xff] %v9469_v63  ;;  %5731 = vmatprep.mubr.msk.f32.mxu0 %vm12045_vm9, %v512_v55  ;;  %v1880_v26 = vadd.f32 %v9469_v63, %v9466_v36  ;;  %v9498_v55 = vsel %vm12333_vm12, %v12332_v4, 0.0  ;;  %v12334_v16 = vunpack.c.h.bf16 %v9426_v45  ;;  %5805 = vmatpush1.msk.msra.mxu0 %vm12337_vm13, %v9459_v57  ;;  %v531_v4 = vunpack.c.l.bf16 %v9474_v32  ;;  %v9516_v36 = vld [vmem:[%s7856_s17 + $0x120] sm:$0xff] }
  0xc4   : > { %vm12335_vm10 = vmmov %vm12333_vm12  ;;  %vm955_vm5 = vcmp.gt.f32.partialorder %v9498_v55, 0.0  ;;  %v622_v63 = vadd.s32 160, %v7984_v5  ;;  %2856 = vmatprep.subr.mxu0 %v12153_v2  ;;  %1873 = vadd.xlane.f32.xlu0 %v1872_v62  ;;  %v12341_v41 = vunpack.c.h.bf16 %v8344_v24  ;;  %v537_v57 = vunpack.c.h.bf16 %v9474_v32  ;;  %v9563_v32 = vld [vmem:[%s7851_s14 + $0x58] sm:$0xff] }
  0xc5   : > { %v9504_v49 = vsel %vm12335_vm10, %v12334_v16, 0.0  ;;  %v9520_v16 = vld [vmem:[%s7851_s14 + $0x60] sm:$0xff]  ;;  %v1882_v28 = vadd.f32 %v1881_v21, %v1880_v26  ;;  %v9525_v18 = vsel %vm955_vm5, 1.0, %v12153_v2  ;;  %6204 = vmatmul.mubr.msk.f32.gmra.mxu1 %vm1236_vm3, %v8457_v51  ;;  %v624_v26 = vadd.s32 176, %v7984_v5  ;;  %12344 = vst [vmem:[#allocation180_spill] sm:$0xff] %v9563_v32 }
  0xc6   : > { %12336 = vst [vmem:[#allocation174_spill] sm:$0xff] %v9504_v49  ;;  %vm956_vm12 = vcmp.gt.f32.partialorder %v9504_v49, 0.0  ;;  %12338 = vst [vmem:[#allocation175_spill] sm:$0xff] %v9520_v16  ;;  %5732 = vmatmul.mubr.msk.f32.gmra.mxu0 %vm12045_vm9, %v511_v11  ;;  %v9532_v49 = vld [vmem:[%s7856_s17 + $0x128] ss:$24 sps:$4 sm:$0xff]   ;;  %v9543_v21 = vadd.s32 %v7994_v7, %v622_v63  ;;  %6206 = vmatprep.mubr.msk.f32.mxu1 %vm7779_vm2, %v12153_v2  ;;  %v626_v35 = vadd.s32 192, %v7984_v5 }
  0xc7   : > { %12339 = vst [vmem:[#allocation176_spill] sm:$0xff] %v9525_v18  ;;  %v9528_v33 = vsel %vm956_vm12, 1.0, %v12153_v2  ;;  %5733 = vmatprep.mubr.msk.f32.mxu0 %vm685_vm1, %v12341_v41  ;;  %5806 = vmatpush1.msk.msra.mxu0 %vm12036_vm14, %v9520_v16  ;;  %v9558_v62 = vadd.s32 %v7994_v7, %v624_v26  ;;  %v12345_v41 = vunpack.c.l.bf16 %v8344_v24  ;;  %v12347_v26 = vunpack.c.h.bf16 %v9455_v46 }
  0xc8   : > { %12340 = vst [vmem:[#allocation177_spill] sm:$0xff] %v9528_v33  ;;  %v1890_v11 = vadd.f32 %v9528_v33, %v9525_v18  ;;  %12342 = vst [vmem:[#allocation178_spill] sm:$0xff] %v9543_v21  ;;  %vm690_vm10 = vcmp.lt.s32.totalorder %v9543_v21, 520  ;;  %v543_v33 = vunpack.c.l.bf16 %v9532_v49  ;;  %2858 = vmatprep.subr.mxu0 %v12153_v2  ;;  %1883 = vadd.xlane.f32.xlu0 %v1882_v28  ;;  %vm12360_vm9 = vcmp.lt.s32.totalorder %v8485_v19, 520 }
  0xc9   : > { %12343 = vst [vmem:[#allocation179_spill] sm:$0xff] %v9558_v62  ;;  %v9580_v51 = vsel %vm690_vm10, %v12347_v26, 0.0  ;;  %v9584_v28 = vsel %vm690_vm10, %v531_v4, 0.0  ;;  %v9587_v24 = vadd.s32 %v7994_v7, %v626_v35  ;;  %6207 = vmatmul.mubr.msk.f32.gmra.mxu1 %vm1236_vm3, %v9077_v13  ;;  %vm692_vm14 = vcmp.lt.s32.totalorder %v9558_v62, 520  ;;  %5807 = vmatpush1.msk.msra.mxu0 %vm12044_vm0, %v9563_v32  ;;  %v9682_v32 = vld [vmem:[%s7856_s17 + $0x138] sm:$0xff] }
  0xca   : > { %v1892_v63 = vadd.f32 %v1891_v29, %v1890_v11  ;;  %5734 = vmatmul.mubr.msk.f32.gmra.mxu0 %vm685_vm1, %v12345_v41  ;;  %v12346_v29 = vunpack.c.l.bf16 %v9455_v46  ;;  %12348 = vst [vmem:[#allocation181_spill] sm:$0xff] %v9580_v51  ;;  %12349 = vst [vmem:[#allocation182_spill] sm:$0xff] %v9584_v28  ;;  %v2099_v41 = vld [vmem:[%s11833_s3 + $0x10] sm:$0xff]  ;;  %vm962_vm5 = vcmp.gt.f32.partialorder %v9580_v51, 0.0  ;;  %vm963_vm12 = vcmp.gt.f32.partialorder %v9584_v28, 0.0  ;;  %6209 = vmatprep.mubr.msk.f32.mxu1 %vm7779_vm2, %v12153_v2  ;;  %v9732_v51 = vld [vmem:[%s7856_s17 + $0x168] sm:$0xff] }
  0xcb   : > { %12350 = vst [vmem:[#allocation183_spill] sm:$0xff] %v9587_v24  ;;  %v9608_v4 = vsel %vm962_vm5, 1.0, %v12153_v2  ;;  %v9611_v26 = vsel %vm963_vm12, 1.0, %v12153_v2  ;;  %v12356_v13 = vunpack.c.h.bf16 %v9490_v20  ;;  %2860 = vmatprep.subr.mxu0 %v12153_v2  ;;  %6284 = vmatpush3.msra.mxu1 %v2099_v41  ;;  %vm694_vm0 = vcmp.lt.s32.totalorder %v9587_v24, 520 }
  0xcc   : > { %v9574_v11 = vsel %vm690_vm10, %v12346_v29, 0.0  ;;  %v12351_v29 = vunpack.c.h.bf16 %v9359_v61  ;;  %12353 = vst [vmem:[#allocation185_spill] sm:$0xff] %v9608_v4  ;;  %12354 = vst [vmem:[#allocation186_spill] sm:$0xff] %v9611_v26  ;;  %v1901_v16 = vsel %vm1236_vm3, %v9611_v26, 0.0  ;;  %1893 = vadd.xlane.f32.xlu0 %v1892_v63  ;;  %v12365_v26 = vunpack.c.h.bf16 %v9516_v36  ;;  %5808 = vmatpush1.msk.msra.mxu0 %vm12065_vm8, %v9638_v37 }
  0xcd   : > { %vm961_vm13 = vcmp.gt.f32.partialorder %v9574_v11, 0.0  ;;  %v9630_v3 = vsel %vm692_vm14, %v12356_v13, 0.0  ;;  %6210 = vmatmul.mubr.msk.f32.gmra.mxu1 %vm1236_vm3, %v8520_v0  ;;  %v12359_v13 = vunpack.c.h.bf16 %v8368_v38  ;;  %2862 = vmatprep.subr.mxu0 %v12153_v2  ;;  %v628_v37 = vadd.s32 208, %v7984_v5  ;;  %v9729_v0 = vld [vmem:[%s7856_s17 + $0x158] ss:$24 sps:$4 sm:$0xff]  }
  0xce   : > { %5735 = vmatprep.mubr.msk.f32.mxu0 %vm686_vm7, %v12351_v29  ;;  %v9605_v35 = vsel %vm961_vm13, 1.0, %v12153_v2  ;;  %v12355_v29 = vunpack.c.l.bf16 %v9490_v20  ;;  %vm968_vm5 = vcmp.gt.f32.partialorder %v9630_v3, 0.0  ;;  %6212 = vmatprep.mubr.msk.f32.mxu1 %vm7779_vm2, %v12153_v2  ;;  %v549_v30 = vunpack.c.h.bf16 %v9532_v49 }
  0xcf   : > { %12352 = vst [vmem:[#allocation184_spill] sm:$0xff] %v9605_v35  ;;  %v1900_v58 = vadd.f32 %v9608_v4, %v9605_v35  ;;  %v12358_v4 = vunpack.c.l.bf16 %v9359_v61  ;;  %v9658_v63 = vsel %vm968_vm5, 1.0, %v12153_v2  ;;  %v9679_v35 = vsel %vm694_vm0, %v12365_v26, 0.0  ;;  %6285 = vmatprep.subr.mxu1 %v12153_v2 }
  0xd0   : > { %v9617_v18 = vsel %vm692_vm14, %v12355_v29, 0.0  ;;  %v9634_v29 = vsel %vm692_vm14, %v537_v57, 0.0  ;;  %12362 = vst [vmem:[#allocation189_spill] sm:$0xff] %v9658_v63  ;;  %v12366_v26 = vunpack.c.l.bf16 %v8368_v38  ;;  %vm12367_vm5 = vcmp.lt.s32.totalorder %v8485_v19, 520 }
  0xd1   : > { %5736 = vmatmul.mubr.msk.f32.gmra.mxu0 %vm686_vm7, %v12358_v4  ;;  %vm967_vm13 = vcmp.gt.f32.partialorder %v9617_v18, 0.0  ;;  %vm969_vm12 = vcmp.gt.f32.partialorder %v9634_v29, 0.0  ;;  %v1902_v61 = vadd.f32 %v1901_v16, %v1900_v58  ;;  %v12364_v58 = vunpack.c.l.bf16 %v9516_v36  ;;  %6213 = vmatmul.mubr.msk.f32.gmra.mxu1 %vm1236_vm3, %v8082_v39  ;;  %v9753_v39 = vld [vmem:[%s7851_s14 + $0x40] sm:$0xff] }
  0xd2   : > { %5737 = vmatprep.mubr.msk.f32.mxu0 %vm12360_vm9, %v12359_v13  ;;  %v9655_v57 = vsel %vm967_vm13, 1.0, %v12153_v2  ;;  %v9661_v41 = vsel %vm969_vm12, 1.0, %v12153_v2  ;;  %vm974_vm13 = vcmp.gt.f32.partialorder %v9679_v35, 0.0  ;;  %v12370_v38 = vunpack.c.h.bf16 %v9426_v45  ;;  %6215 = vmatprep.mubr.msk.f32.mxu1 %vm7779_vm2, %v12153_v2  ;;  %12374 = vst [vmem:[#allocation195_spill] sm:$0xff] %v9753_v39 }
  0xd3   : > { %12361 = vst [vmem:[#allocation188_spill] sm:$0xff] %v9655_v57  ;;  %12363 = vst [vmem:[#allocation190_spill] sm:$0xff] %v9661_v41  ;;  %v1910_v4 = vadd.f32 %v9658_v63, %v9655_v57  ;;  %v1911_v13 = vsel %vm1236_vm3, %v9661_v41, 0.0  ;;  %v9673_v16 = vsel %vm694_vm0, %v12364_v58, 0.0  ;;  %v9689_v41 = vsel %vm694_vm0, %v543_v33, 0.0  ;;  %v9695_v58 = vld [vmem:[%s7851_s14 + $0x48] sm:$0xff]  ;;  %1903 = vadd.xlane.f32.xlu0 %v1902_v61 }
  0xd4   : > { %vm973_vm9 = vcmp.gt.f32.partialorder %v9673_v16, 0.0  ;;  %vm975_vm12 = vcmp.gt.f32.partialorder %v9689_v41, 0.0  ;;  %v9707_v57 = vsel %vm974_vm13, 1.0, %v12153_v2  ;;  %v2098_v61 = vld [vmem:[%s11833_s3 + $0x8] sm:$0xff]  ;;  %5809 = vmatpush1.msk.msra.mxu0 %vm12064_vm11, %v9695_v58  ;;  %vm12378_vm13 = vcmp.lt.s32.totalorder %v8590_v8, 520 }
  0xd5   : > { %5738 = vmatmul.mubr.msk.f32.gmra.mxu0 %vm12367_vm5, %v12366_v26  ;;  %v1912_v33 = vadd.f32 %v1911_v13, %v1910_v4  ;;  %v9704_v63 = vsel %vm973_vm9, 1.0, %v12153_v2  ;;  %12369 = vst [vmem:[#allocation192_spill] sm:$0xff] %v9707_v57  ;;  %vm12371_vm5 = vcmp.lt.s32.totalorder %v8014_v17, 520  ;;  %v9722_v4 = vsel %vm975_vm12, 1.0, %v12153_v2  ;;  %2864 = vmatprep.subr.mxu0 %v12153_v2 }
  0xd6   : > { %12368 = vst [vmem:[#allocation191_spill] sm:$0xff] %v9704_v63  ;;  %5739 = vmatprep.mubr.msk.f32.mxu0 %vm12371_vm5, %v12370_v38  ;;  %12372 = vst [vmem:[#allocation193_spill] sm:$0xff] %v9722_v4  ;;  %v1920_v13 = vadd.f32 %v9707_v57, %v9704_v63  ;;  %v1921_v38 = vsel %vm1236_vm3, %v9722_v4, 0.0  ;;  %v6787_v57 = vpack.i.bf16 %v9423_v56, %v9009_v10  ;;  %v630_v4 = vadd.s32 224, %v7984_v5 }
  0xd7   : > { %v9746_v26 = vadd.s32 %v7994_v7, %v628_v37  ;;  %6286 = vmatpush3.msra.mxu1 %v2098_v61  ;;  %1913 = vadd.xlane.f32.xlu0 %v1912_v33  ;;  %v12375_v10 = vunpack.c.l.bf16 %v9426_v45  ;;  %vm12376_vm9 = vmmov %vm12371_vm5  ;;  %v555_v37 = vunpack.c.l.bf16 %v9729_v0  ;;  %v12377_v63 = vunpack.c.h.bf16 %v8473_v34 }
  0xd8   : > { %v1922_v56 = vadd.f32 %v1921_v38, %v1920_v13  ;;  %6216 = vmatmul.mubr.msk.f32.gmra.mxu1 %vm1236_vm3, %v8629_v43  ;;  %v9771_v45 = vadd.s32 %v7994_v7, %v630_v4  ;;  %v561_v61 = vunpack.c.h.bf16 %v9729_v0  ;;  %v12379_v13 = vunpack.c.l.bf16 %v9682_v32  ;;  %5810 = vmatpush1.msk.msra.mxu0 %vm12081_vm15, %v9753_v39 }
  0xd9   : > { %12373 = vst [vmem:[#allocation194_spill] sm:$0xff] %v9746_v26  ;;  %5740 = vmatmul.mubr.msk.f32.gmra.mxu0 %vm12376_vm9, %v12375_v10  ;;  %vm696_vm12 = vcmp.lt.s32.totalorder %v9746_v26, 520  ;;  %6218 = vmatprep.mubr.msk.f32.mxu1 %vm7779_vm2, %v12153_v2  ;;  %v632_v0 = vadd.s32 240, %v7984_v5  ;;  %vm12382_vm8 = vcmp.lt.s32.totalorder %v8590_v8, 520  ;;  %v12386_v33 = vunpack.c.l.bf16 %v9710_v47 }
  0xda   : > { %5741 = vmatprep.mubr.msk.f32.mxu0 %vm12378_vm13, %v12377_v63  ;;  %v9781_v38 = vsel %vm696_vm12, %v12379_v13, 0.0  ;;  %v12380_v63 = vunpack.c.h.bf16 %v9682_v32  ;;  %v9791_v4 = vsel %vm696_vm12, %v549_v30, 0.0  ;;  %vm698_vm11 = vcmp.lt.s32.totalorder %v9771_v45, 520  ;;  %2866 = vmatprep.subr.mxu0 %v12153_v2 }
  0xdb   : > { %vm979_vm5 = vcmp.gt.f32.partialorder %v9781_v38, 0.0  ;;  %vm981_vm13 = vcmp.gt.f32.partialorder %v9791_v4, 0.0  ;;  %6287 = vmatprep.subr.mxu1 %v12153_v2  ;;  %1923 = vadd.xlane.f32.xlu0 %v1922_v56  ;;  %v12381_v30 = vunpack.c.l.bf16 %v8473_v34  ;;  %v9820_v56 = vsel %vm698_vm11, %v12386_v33, 0.0  ;;  %v9823_v34 = vld [vmem:[%s7851_s14 + $0x38] sm:$0xff] }
  0xdc   : > { %v9787_v10 = vsel %vm696_vm12, %v12380_v63, 0.0  ;;  %v9808_v13 = vsel %vm979_vm5, 1.0, %v12153_v2  ;;  %v9814_v49 = vsel %vm981_vm13, 1.0, %v12153_v2  ;;  %6219 = vmatmul.mubr.msk.f32.gmra.mxu1 %vm1236_vm3, %v9584_v28  ;;  %v12387_v19 = vunpack.c.h.bf16 %v9455_v46  ;;  %6788 = vxpose.xlu1.b32.start [1/16] %v6787_v57, 128 }
  0xdd   : > { %vm980_vm9 = vcmp.gt.f32.partialorder %v9787_v10, 0.0  ;;  %5742 = vmatmul.mubr.msk.f32.gmra.mxu0 %vm12382_vm8, %v12381_v30  ;;  %12383 = vst [vmem:[#allocation196_spill] sm:$0xff] %v9808_v13  ;;  %12385 = vst [vmem:[#allocation198_spill] sm:$0xff] %v9814_v49  ;;  %v2097_v30 = vld [vmem:[%s11833_s3] sm:$0xff]  ;;  %v1931_v33 = vsel %vm1236_vm3, %v9814_v49, 0.0  ;;  %v12388_v39 = vunpack.c.h.bf16 %v9710_v47  ;;  %v9846_v28 = vsel %vm698_vm11, %v555_v37, 0.0  ;;  %6221 = vmatprep.mubr.msk.f32.mxu1 %vm7779_vm2, %v12153_v2 }
  0xde   : > { %v9811_v63 = vsel %vm980_vm9, 1.0, %v12153_v2  ;;  %5743 = vmatprep.mubr.msk.f32.mxu0 %vm690_vm10, %v12387_v19  ;;  %12389 = vst [vmem:[#allocation199_spill] sm:$0xff] %v9846_v28  ;;  %vm985_vm8 = vcmp.gt.f32.partialorder %v9820_v56, 0.0  ;;  %vm987_vm9 = vcmp.gt.f32.partialorder %v9846_v28, 0.0  ;;  %v9854_v19 = vadd.s32 %v7994_v7, %v632_v0  ;;  %5811 = vmatpush1.msk.msra.mxu0 %vm12078_vm4, %v9823_v34 }
  0xdf   : > { %12384 = vst [vmem:[#allocation197_spill] sm:$0xff] %v9811_v63  ;;  %v1930_v31 = vadd.f32 %v9811_v63, %v9808_v13  ;;  %v9842_v43 = vsel %vm698_vm11, %v12388_v39, 0.0  ;;  %v9857_v39 = vld [vmem:[%s7856_s17 + $0x180] sm:$0xff]  ;;  %v9860_v37 = vsel %vm985_vm8, 1.0, %v12153_v2  ;;  %v9866_v57 = vsel %vm987_vm9, 1.0, %v12153_v2  ;;  %6288 = vmatpush3.msra.mxu1 %v2097_v30  ;;  %v12394_v13 = vld [vmem:[#allocation8_spill] sm:$0xff]  ;;  %2868 = vmatprep.subr.mxu0 %v12153_v2 }
  0xe0   : > { %vm986_vm5 = vcmp.gt.f32.partialorder %v9842_v43, 0.0  ;;  %12390 = vst [vmem:[#allocation200_spill] sm:$0xff] %v9860_v37  ;;  %12392 = vst [vmem:[#allocation202_spill] sm:$0xff] %v9866_v57  ;;  %v12393_v0 = vunpack.c.l.bf16 %v9455_v46  ;;  %vm700_vm13 = vcmp.lt.s32.totalorder %v9854_v19, 520  ;;  %v6791_v15 = vpack.i.bf16 %v9498_v55, %v12394_v13  ;;  %6222 = vmatmul.mubr.msk.f32.gmra.mxu1 %vm1236_vm3, %v8698_v53  ;;  %6595 = vmatprep.subr.mxu1 %v12153_v2 }
  0xe1   : > { %v1932_v49 = vadd.f32 %v1931_v33, %v1930_v31  ;;  %v9863_v63 = vsel %vm986_vm5, 1.0, %v12153_v2  ;;  %v1941_v33 = vsel %vm1236_vm3, %v9866_v57, 0.0  ;;  %v12395_v46 = vunpack.c.l.bf16 %v9732_v51  ;;  %6224 = vmatprep.mubr.msk.f32.mxu1 %vm7779_vm2, %v12153_v2 }
  0xe2   : > { %12391 = vst [vmem:[#allocation201_spill] sm:$0xff] %v9863_v63  ;;  %5744 = vmatmul.mubr.msk.f32.gmra.mxu0 %vm690_vm10, %v12393_v0  ;;  %v1940_v31 = vadd.f32 %v9863_v63, %v9860_v37  ;;  %v12396_v0 = vunpack.c.h.bf16 %v9732_v51  ;;  %v9902_v55 = vsel %vm700_vm13, %v561_v61, 0.0  ;;  %v12398_v63 = vunpack.c.h.bf16 %v8542_v54 }
  0xe3   : > { %1933 = vadd.xlane.f32.xlu0 %v1932_v49  ;;  %v9892_v30 = vsel %vm700_vm13, %v12395_v46, 0.0  ;;  %12397 = vst [vmem:[#allocation8_spill] sm:$0xff] %v9902_v55  ;;  %v468_v49 = vld [vmem:[%s7856_s17 + $0x188] sm:$0xf]  ;;  %vm993_vm9 = vcmp.gt.f32.partialorder %v9902_v55, 0.0  ;;  %v12400_v61 = vpack.i.bf16 %v8510_v1, %v9122_v12  ;;  %vm12404_vm4 = vcmp.lt.s32.totalorder %v8916_v44, 520 }
  0xe4   : > { %v9898_v57 = vsel %vm700_vm13, %v12396_v0, 0.0  ;;  %5745 = vmatprep.mubr.msk.f32.mxu0 %vm691_vm6, %v12398_v63  ;;  %v1942_v46 = vadd.f32 %v1941_v33, %v1940_v31  ;;  %vm991_vm8 = vcmp.gt.f32.partialorder %v9892_v30, 0.0  ;;  %v9925_v31 = vsel %vm993_vm9, 1.0, %v12153_v2  ;;  %5812 = vmatpush1.msk.msra.mxu0 %vm12404_vm4, %v9884_v14 }
  0xe5   : > { %vm992_vm5 = vcmp.gt.f32.partialorder %v9898_v57, 0.0  ;;  %6790 = vxpose.xlu1.b32.cont [2/16] %v12400_v61, 128  ;;  %v9919_v0 = vsel %vm991_vm8, 1.0, %v12153_v2  ;;  %12403 = vst [vmem:[#allocation205_spill] sm:$0xff] %v9925_v31  ;;  %v634_v33 = vadd.s32 256, %v7984_v5  ;;  %v12405_v13 = vunpack.c.l.bf16 %v8542_v54  ;;  %2870 = vmatprep.subr.mxu0 %v12153_v2  ;;  %v9942_v5 = vld [vmem:[%s7851_s14 + $0x28] sm:$0xff] }
  0xe6   : > { %12401 = vst [vmem:[#allocation203_spill] sm:$0xff] %v9919_v0  ;;  %v9922_v63 = vsel %vm992_vm5, 1.0, %v12153_v2  ;;  %v1951_v12 = vsel %vm1236_vm3, %v9925_v31, 0.0  ;;  %v567_v53 = vunpack.c.l.bf16 %v468_v49  ;;  %12406 = vst [vmem:[#allocation206_spill] sm:$0xff] %v9942_v5  ;;  %6225 = vmatmul.mubr.msk.f32.gmra.mxu1 %vm1236_vm3, %v9634_v29  ;;  %v12409_v49 = vld [vmem:[#allocation15_spill] sm:$0xff]  ;;  %vm12411_vm8 = vcmp.lt.s32.totalorder %v8147_v60, 520 }
  0xe7   : > { %12402 = vst [vmem:[#allocation204_spill] sm:$0xff] %v9922_v63  ;;  %5746 = vmatmul.mubr.msk.f32.gmra.mxu0 %vm691_vm6, %v12405_v13  ;;  %v1950_v1 = vadd.f32 %v9922_v63, %v9919_v0  ;;  %1943 = vadd.xlane.f32.xlu0 %v1942_v46  ;;  %v9947_v54 = vadd.s32 %v7994_v7, %v634_v33  ;;  %v12408_v13 = vunpack.c.h.bf16 %v9490_v20  ;;  %v12410_v46 = vld [vmem:[#allocation75_spill] sm:$0xff]  ;;  %v12412_v7 = vunpack.c.l.bf16 %v9490_v20 }
  0xe8   : > { %6227 = vmatprep.mubr.msk.f32.mxu1 %vm7779_vm2, %v12153_v2  ;;  %v6793_v61 = vpack.i.bf16 %v12410_v46, %v12409_v49  ;;  %5813 = vmatpush1.msk.msra.mxu0 %vm12411_vm8, %v9942_v5  ;;  %v12413_v33 = vunpack.c.l.bf16 %v9857_v39  ;;  %v9983_v20 = vld [vmem:[%s7851_s14 + $0x20] sm:$0xff]  ;;  %v12415_v49 = vld [vmem:[#allocation92_spill] sm:$0xff] }
  0xe9   : > { %12407 = vst [vmem:[#allocation207_spill] sm:$0xff] %v9947_v54  ;;  %5747 = vmatprep.mubr.msk.f32.mxu0 %vm692_vm14, %v12408_v13  ;;  %v1952_v31 = vadd.f32 %v1951_v12, %v1950_v1  ;;  %6792 = vxpose.xlu1.b32.cont [3/16] %v6791_v15, 128  ;;  %vm702_vm4 = vcmp.lt.s32.totalorder %v9947_v54, 520  ;;  %v12414_v15 = vunpack.c.h.bf16 %v9857_v39  ;;  %v12416_v46 = vld [vmem:[#allocation71_spill] sm:$0xff]  ;;  %v590_v54 = vld [vmem:[%s7851_s14 + $0xb0] sm:$0xff] }
  0xea   : > { %v9969_v1 = vsel %vm702_vm4, %v12413_v33, 0.0  ;;  %v9979_v13 = vsel %vm702_vm4, %v567_v53, 0.0  ;;  %2872 = vmatprep.subr.mxu0 %v12153_v2  ;;  %6228 = vmatmul.mubr.msk.f32.gmra.mxu1 %vm1236_vm3, %v12415_v49  ;;  %v12418_v33 = vld [vmem:[#allocation83_spill] sm:$0xff]  ;;  %v12424_v60 = vunpack.c.l.bf16 %v12416_v46 }
  0xeb   : > { %5748 = vmatmul.mubr.msk.f32.gmra.mxu0 %vm692_vm14, %v12412_v7  ;;  %v9975_v12 = vsel %vm702_vm4, %v12414_v15, 0.0  ;;  %1953 = vadd.xlane.f32.xlu0 %v1952_v31  ;;  %vm997_vm5 = vcmp.gt.f32.partialorder %v9969_v1, 0.0  ;;  %vm999_vm8 = vcmp.gt.f32.partialorder %v9979_v13, 0.0  ;;  %v12417_v7 = vunpack.c.h.bf16 %v12416_v46  ;;  %v10030_v46 = vld [vmem:[%s7851_s14 + $0x18] sm:$0xff] }
  0xec   : > { %vm998_vm9 = vcmp.gt.f32.partialorder %v9975_v12, 0.0  ;;  %vm12419_vm15 = vcmp.lt.s32.totalorder %v12418_v33, 520  ;;  %v9995_v53 = vsel %vm997_vm5, 1.0, %v12153_v2  ;;  %v10001_v31 = vsel %vm999_vm8, 1.0, %v12153_v2  ;;  %6230 = vmatprep.mubr.msk.f32.mxu1 %vm7779_vm2, %v12153_v2 }
  0xed   : > { %5749 = vmatprep.mubr.msk.f32.mxu0 %vm12419_vm15, %v12417_v7  ;;  %12420 = vst [vmem:[#allocation15_spill] sm:$0xff] %v9995_v53  ;;  %v9998_v15 = vsel %vm998_vm9, 1.0, %v12153_v2  ;;  %12422 = vst [vmem:[#allocation92_spill] sm:$0xff] %v10001_v31  ;;  %v1961_v0 = vsel %vm1236_vm3, %v10001_v31, 0.0  ;;  %6794 = vxpose.xlu1.b32.cont [4/16] %v6793_v61, 128  ;;  %v6795_v7 = vpack.i.bf16 %v9574_v11, %v9162_v52  ;;  %vm12423_vm15 = vcmp.lt.s32.totalorder %v8820_v23, 520  ;;  %v12427_v52 = vld [vmem:[#allocation22_spill] sm:$0xff] }
  0xee   : > { %12421 = vst [vmem:[#allocation75_spill] sm:$0xff] %v9998_v15  ;;  %v1960_v63 = vadd.f32 %v9998_v15, %v9995_v53  ;;  %5814 = vmatpush1.msk.msra.mxu0 %vm12423_vm15, %v9983_v20  ;;  %vm12425_vm5 = vcmp.lt.s32.totalorder %v12418_v33, 520  ;;  %6231 = vmatmul.mubr.msk.f32.gmra.mxu1 %vm1236_vm3, %v9689_v41  ;;  %v12426_v61 = vunpack.c.h.bf16 %v9516_v36  ;;  %v12428_v11 = vld [vmem:[#allocation84_spill] sm:$0xff]  ;;  %v12429_v31 = vunpack.c.l.bf16 %v9516_v36  ;;  %v12458_v53 = vld [vmem:[#allocation103_spill] sm:$0xff] }
  0xef   : > { %5750 = vmatmul.mubr.msk.f32.gmra.mxu0 %vm12425_vm5, %v12424_v60  ;;  %2874 = vmatprep.subr.mxu0 %v12153_v2  ;;  %v6797_v60 = vpack.i.bf16 %v12428_v11, %v12427_v52  ;;  %v12431_v52 = vld [vmem:[#allocation72_spill] sm:$0xff]  ;;  %vm12435_vm8 = vcmp.lt.s32.totalorder %v8031_v25, 520  ;;  %v12438_v36 = vunpack.c.h.bf16 %v9682_v32  ;;  %v12456_v15 = vunpack.c.l.bf16 %v9710_v47 }
  0xf0   : > { %v1962_v5 = vadd.f32 %v1961_v0, %v1960_v63  ;;  %5751 = vmatprep.mubr.msk.f32.mxu0 %vm694_vm0, %v12426_v61  ;;  %6233 = vmatprep.mubr.msk.f32.mxu1 %vm7779_vm2, %v12153_v2  ;;  %v12430_v61 = vld [vmem:[#allocation99_spill] sm:$0xff]  ;;  %v12432_v11 = vunpack.c.h.bf16 %v12431_v52  ;;  %v12433_v0 = vld [vmem:[#allocation93_spill] sm:$0xff]  ;;  %v12445_v63 = vld [vmem:[#allocation106_spill] sm:$0xff] }
  0xf1   : > { %6796 = vxpose.xlu1.b32.cont [5/16] %v6795_v7, 128  ;;  %vm12434_vm9 = vcmp.lt.s32.totalorder %v12433_v0, 520  ;;  %5815 = vmatpush1.msk.msra.mxu0 %vm12435_vm8, %v10030_v46  ;;  %v10061_v7 = vld [vmem:[%s7851_s14 + $0x10] sm:$0xff]  ;;  %vm12447_vm8 = vcmp.lt.s32.totalorder %v8596_v40, 520  ;;  %v12460_v40 = vld [vmem:[#allocation107_spill] sm:$0xff] }
  0xf2   : > { %1963 = vadd.xlane.f32.xlu0 %v1962_v5  ;;  %6234 = vmatmul.mubr.msk.f32.gmra.mxu1 %vm1236_vm3, %v12430_v61  ;;  %vm12437_vm15 = vmmov %vm12434_vm9  ;;  %v12443_v5 = vunpack.c.l.bf16 %v9682_v32  ;;  %v12448_v32 = vld [vmem:[#allocation147_spill] sm:$0xff] }
  0xf3   : > { %5752 = vmatmul.mubr.msk.f32.gmra.mxu0 %vm694_vm0, %v12429_v31  ;;  %6236 = vmatprep.mubr.msk.f32.mxu1 %vm7779_vm2, %v12153_v2  ;;  %v6799_v31 = vpack.i.bf16 %v9617_v18, %v9206_v48  ;;  %v12439_v18 = vld [vmem:[#allocation5_spill] sm:$0xff] }
  0xf4   : > { %5753 = vmatprep.mubr.msk.f32.mxu0 %vm12434_vm9, %v12432_v11  ;;  %2876 = vmatprep.subr.mxu0 %v12153_v2  ;;  %v12436_v11 = vunpack.c.l.bf16 %v12431_v52  ;;  %vm12440_vm5 = vcmp.lt.s32.totalorder %v12439_v18, 520  ;;  %v12441_v48 = vld [vmem:[#allocation29_spill] sm:$0xff]  ;;  %vm12446_vm9 = vcmp.lt.s32.totalorder %v12445_v63, 520 }
  0xf5   : > { %6798 = vxpose.xlu1.b32.cont [6/16] %v6797_v60, 128  ;;  %5816 = vmatpush1.msk.msra.mxu0 %vm12440_vm5, %v10061_v7  ;;  %v12442_v60 = vld [vmem:[#allocation90_spill] sm:$0xff] }
  0xf6   : > { %6237 = vmatmul.mubr.msk.f32.gmra.mxu1 %vm1236_vm3, %v9791_v4  ;;  %v6801_v52 = vpack.i.bf16 %v12442_v60, %v12441_v48  ;;  %2878 = vmatprep.subr.mxu0 %v12153_v2  ;;  %v12449_v48 = vunpack.c.l.bf16 %v8801_v27  ;;  %v10108_v60 = vpop.xlane.xlu1 %1813 }
  0xf7   : > { %5754 = vmatmul.mubr.msk.f32.gmra.mxu0 %vm12437_vm15, %v12436_v11  ;;  %6239 = vmatprep.mubr.msk.f32.mxu1 %vm7779_vm2, %v12153_v2  ;;  %v10083_v11 = vld [vmem:[%s7851_s14 + $0x8] sm:$0xff]  ;;  %vm12450_vm15 = vmmov %vm12446_vm9 }
  0xf8   : > { %5755 = vmatprep.mubr.msk.f32.mxu0 %vm696_vm12, %v12438_v36  ;;  %v12444_v36 = vunpack.c.h.bf16 %v8801_v27  ;;  %5817 = vmatpush1.msk.msra.mxu0 %vm12447_vm8, %v10083_v11  ;;  %v12454_v27 = vld [vmem:[#allocation36_spill] sm:$0xff] }
  0xf9   : > { %6800 = vxpose.xlu1.b32.cont [7/16] %v6799_v31, 128  ;;  %2880 = vmatprep.subr.mxu0 %v12153_v2  ;;  %v568_v31 = vld [vmem:[%s7851_s14] sm:$0xff] }
  0xfa   : > { %6240 = vmatmul.mubr.msk.f32.gmra.mxu1 %vm1236_vm3, %v8913_v42 }
  0xfb   : > { %5756 = vmatmul.mubr.msk.f32.gmra.mxu0 %vm696_vm12, %v12443_v5  ;;  %6242 = vmatprep.mubr.msk.f32.mxu1 %vm7779_vm2, %v12153_v2  ;;  %v6803_v5 = vpack.i.bf16 %v9673_v16, %v12448_v32  ;;  %v12452_v16 = vld [vmem:[#allocation10_spill] sm:$0xff] }
  0xfc   : > { %5757 = vmatprep.mubr.msk.f32.mxu0 %vm12446_vm9, %v12444_v36  ;;  %v12451_v36 = vunpack.c.h.bf16 %v9710_v47  ;;  %vm12453_vm5 = vcmp.lt.s32.totalorder %v12452_v16, 520  ;;  %vm12461_vm9 = vcmp.lt.s32.totalorder %v12460_v40, 520  ;;  %v12464_v47 = vld [vmem:[#allocation152_spill] sm:$0xff] }
  0xfd   : > { %6802 = vxpose.xlu1.b32.cont [8/16] %v6801_v52, 128  ;;  %5818 = vmatpush1.msk.msra.mxu0 %vm12453_vm5, %v568_v31  ;;  %v12455_v52 = vld [vmem:[#allocation97_spill] sm:$0xff]  ;;  %v10138_v31 = vpop.xlane.xlu1 %1818 }
  0xfe   : > { %6243 = vmatmul.mubr.msk.f32.gmra.mxu1 %vm1236_vm3, %v9846_v28  ;;  %v6805_v32 = vpack.i.bf16 %v12455_v52, %v12454_v27  ;;  %2882 = vmatprep.subr.mxu0 %v12153_v2  ;;  %v12459_v28 = vunpack.c.h.bf16 %v12458_v53  ;;  %v598_v27 = vld [vmem:[%s7851_s14 + $0xf0] sm:$0xff]  ;;  %v12465_v52 = vunpack.c.l.bf16 %v12458_v53  ;;  %v12469_v53 = vld [vmem:[#allocation108_spill] sm:$0xff] }
  0xff   : > { %5758 = vmatmul.mubr.msk.f32.gmra.mxu0 %vm12450_vm15, %v12449_v48  ;;  %6245 = vmatprep.mubr.msk.f32.mxu1 %vm7779_vm2, %v12153_v2  ;;  %v599_v48 = vld [vmem:[%s7851_s14 + $0xf8] sm:$0xff]  ;;  %vm12466_vm15 = vmmov %vm12461_vm9 }
 0x100   : > { %5759 = vmatprep.mubr.msk.f32.mxu0 %vm698_vm11, %v12451_v36  ;;  %v12457_v36 = vld [vmem:[#allocation115_spill] sm:$0xff] }
 0x101   : > { %6804 = vxpose.xlu1.b32.cont [9/16] %v6803_v5, 128  ;;  %v12462_v5 = vld [vmem:[#allocation120_spill] sm:$0xff] }
 0x102   : > { %6246 = vmatmul.mubr.msk.f32.gmra.mxu1 %vm1236_vm3, %v12457_v36  ;;  %vm12463_vm8 = vcmp.lt.s32.totalorder %v12462_v5, 520 }
 0x103   : > { %5760 = vmatmul.mubr.msk.f32.gmra.mxu0 %vm698_vm11, %v12456_v15  ;;  %6248 = vmatprep.mubr.msk.f32.mxu1 %vm7779_vm2, %v12153_v2  ;;  %v6807_v15 = vpack.i.bf16 %v9781_v38, %v12464_v47  ;;  %v12468_v38 = vld [vmem:[#allocation43_spill] sm:$0xff]  ;;  %v12470_v47 = vunpack.c.l.bf16 %v9732_v51  ;;  %vm12474_vm5 = vmmov %vm12463_vm8 }
 0x104   : > { %5761 = vmatprep.mubr.msk.f32.mxu0 %vm12461_vm9, %v12459_v28  ;;  %5819 = vmatpush2.msk.msra.mxu0 %vm12463_vm8, %v599_v48  ;;  %v12467_v28 = vunpack.c.h.bf16 %v9732_v51  ;;  %v597_v48 = vld [vmem:[%s7851_s14 + $0xe8] sm:$0xff]  ;;  %v12475_v51 = vld [vmem:[#allocation158_spill] sm:$0xff]  ;;  %vm12477_vm8 = vmmov %vm12474_vm5 }
 0x105   : > { %6806 = vxpose.xlu1.b32.cont [10/16] %v6805_v32, 128  ;;  %2884 = vmatprep.subr.mxu0 %v12153_v2  ;;  %v6809_v32 = vpack.i.bf16 %v12469_v53, %v12468_v38  ;;  %v596_v38 = vld [vmem:[%s7851_s14 + $0xe0] sm:$0xff] }
 0x106   : > { %6249 = vmatmul.mubr.msk.f32.gmra.mxu1 %vm1236_vm3, %v9902_v55  ;;  %5820 = vmatpush2.msk.msra.mxu0 %vm700_vm13, %v598_v27  ;;  %v12472_v55 = vld [vmem:[#allocation104_spill] sm:$0xff] }
 0x107   : > { %5762 = vmatmul.mubr.msk.f32.gmra.mxu0 %vm12466_vm15, %v12465_v52  ;;  %6251 = vmatprep.mubr.msk.f32.mxu1 %vm7779_vm2, %v12153_v2  ;;  %v10166_v52 = vpop.xlane.xlu1 %1828  ;;  %v12473_v27 = vunpack.c.h.bf16 %v12472_v55  ;;  %v12476_v53 = vunpack.c.l.bf16 %v12472_v55  ;;  %vm12484_vm15 = vcmp.lt.s32.totalorder %v12433_v0, 520 }
 0x108   : > { %5763 = vmatprep.mubr.msk.f32.mxu0 %vm700_vm13, %v12467_v28  ;;  %2886 = vmatprep.subr.mxu0 %v12153_v2  ;;  %v12471_v28 = vld [vmem:[#allocation127_spill] sm:$0xff] }
 0x109   : > { %6808 = vxpose.xlu1.b32.cont [11/16] %v6807_v15, 128  ;;  %5821 = vmatpush2.msk.msra.mxu0 %vm12461_vm9, %v597_v48  ;;  %v6811_v15 = vpack.i.bf16 %v9820_v56, %v12475_v51  ;;  %v595_v56 = vld [vmem:[%s7851_s14 + $0xd8] sm:$0xff]  ;;  %v12480_v48 = vld [vmem:[#allocation113_spill] sm:$0xff]  ;;  %v12481_v51 = vunpack.c.l.bf16 %v9857_v39  ;;  %vm12494_vm9 = vcmp.lt.s32.totalorder %v8590_v8, 520 }
 0x10a   : > { %6252 = vmatmul.mubr.msk.f32.gmra.mxu1 %vm1236_vm3, %v12471_v28  ;;  %2888 = vmatprep.subr.mxu0 %v12153_v2 }
 0x10b   : > { %5764 = vmatmul.mubr.msk.f32.gmra.mxu0 %vm700_vm13, %v12470_v47  ;;  %6254 = vmatprep.mubr.msk.f32.mxu1 %vm7779_vm2, %v12153_v2  ;;  %v12478_v47 = vunpack.c.h.bf16 %v9857_v39  ;;  %v10197_v55 = vpop.xlane.xlu1 %1838  ;;  %v592_v39 = vld [vmem:[%s7851_s14 + $0xc0] sm:$0xff] }
 0x10c   : > { %5765 = vmatprep.mubr.msk.f32.mxu0 %vm12474_vm5, %v12473_v27  ;;  %5822 = vmatpush2.msk.msra.mxu0 %vm698_vm11, %v596_v38  ;;  %v594_v38 = vld [vmem:[%s7851_s14 + $0xd0] sm:$0xff]  ;;  %vm12489_vm5 = vcmp.lt.s32.totalorder %v12418_v33, 520 }
 0x10d   : > { %6810 = vxpose.xlu1.b32.cont [12/16] %v6809_v32, 128  ;;  %v12479_v32 = vld [vmem:[#allocation50_spill] sm:$0xff]  ;;  %2890 = vmatprep.subr.mxu0 %v12153_v2 }
 0x10e   : > { %6255 = vmatmul.mubr.msk.f32.gmra.mxu1 %vm1236_vm3, %v9979_v13  ;;  %v6813_v27 = vpack.i.bf16 %v12480_v48, %v12479_v32  ;;  %vm12482_vm3 = vcmp.lt.s32.totalorder %v12445_v63, 520  ;;  %v12485_v48 = vld [vmem:[#allocation57_spill] sm:$0xff] }
 0x10f   : > { %5766 = vmatmul.mubr.msk.f32.gmra.mxu0 %vm12477_vm8, %v12476_v53  ;;  %6289 = vmatprep.mubr.msk.f32.mxu1 %vm7779_vm2, %v12153_v2  ;;  %v593_v53 = vld [vmem:[%s7851_s14 + $0xc8] sm:$0xff]  ;;  %v10217_v32 = vpop.xlane.xlu1 %1848  ;;  %vm12495_vm8 = vcmp.lt.s32.totalorder %v8014_v17, 520 }
 0x110   : > { %5767 = vmatprep.mubr.msk.f32.mxu0 %vm702_vm4, %v12478_v47  ;;  %5823 = vmatpush2.msk.msra.mxu0 %vm12482_vm3, %v595_v56  ;;  %v591_v56 = vld [vmem:[%s7851_s14 + $0xb8] sm:$0xff] }
 0x111   : > { %6812 = vxpose.xlu1.b32.cont [13/16] %v6811_v15, 128  ;;  %2892 = vmatprep.subr.mxu0 %v12153_v2  ;;  %v12483_v15 = vld [vmem:[#allocation166_spill] sm:$0xff] }
 0x112   : > { %v6815_v47 = vpack.i.bf16 %v9892_v30, %v12483_v15  ;;  %5824 = vmatpush2.msk.msra.mxu0 %vm696_vm12, %v594_v38  ;;  %v12488_v38 = vld [vmem:[#allocation170_spill] sm:$0xff] }
 0x113   : > { %5768 = vmatmul.mubr.msk.f32.gmra.mxu0 %vm702_vm4, %v12481_v51  ;;  %2894 = vmatprep.subr.mxu0 %v12153_v2  ;;  %v12487_v51 = vld [vmem:[#allocation67_spill] sm:$0xff] }
 0x114   : > { %5825 = vmatpush2.msk.msra.mxu0 %vm12484_vm15, %v593_v53  ;;  %v6899_v15 = vpack.i.bf16 %v12488_v38, %v12487_v51  ;;  %v589_v53 = vld [vmem:[%s7851_s14 + $0xa8] sm:$0xff]  ;;  %v586_v38 = vld [vmem:[%s7851_s14 + $0x90] sm:$0xff] }
 0x115   : > { %6814 = vxpose.xlu1.b32.cont [14/16] %v6813_v27, 128  ;;  %2896 = vmatprep.subr.mxu0 %v12153_v2  ;;  %v12486_v27 = vld [vmem:[#allocation125_spill] sm:$0xff] }
 0x116   : > { %v6817_v30 = vpack.i.bf16 %v12486_v27, %v12485_v48  ;;  %5826 = vmatpush2.msk.msra.mxu0 %vm694_vm0, %v592_v39  ;;  %v7073_v39 = vpack.i.bf16 %v9975_v12, %v9969_v1  ;;  %v12490_v48 = vld [vmem:[#allocation134_spill] sm:$0xff]  ;;  %v12491_v27 = vld [vmem:[#allocation65_spill] sm:$0xff] }
 0x117   : > { %2898 = vmatprep.subr.mxu0 %v12153_v2  ;;  %v6901_v51 = vpack.i.bf16 %v12491_v27, %v12490_v48  ;;  %v12493_v1 = vld [vmem:[#allocation174_spill] sm:$0xff]  ;;  %v12497_v48 = vld [vmem:[#allocation76_spill] sm:$0xff] }
 0x118   : > { %5827 = vmatpush2.msk.msra.mxu0 %vm12489_vm5, %v591_v56  ;;  %v588_v56 = vld [vmem:[%s7851_s14 + $0xa0] sm:$0xff] }
 0x119   : > { %6816 = vxpose.xlu1.b32.cont [15/16] %v6815_v47, 128  ;;  %2900 = vmatprep.subr.mxu0 %v12153_v2  ;;  %v10235_v47 = vpop.xlane.xlu1 %1858 }
 0x11a   : > { %5828 = vmatpush2.msk.msra.mxu0 %vm692_vm14, %v590_v54  ;;  %v12492_v54 = vld [vmem:[#allocation9_spill] sm:$0xff] }
 0x11b   : > { %2902 = vmatprep.subr.mxu0 %v12153_v2  ;;  %v6903_v12 = vpack.i.bf16 %v12493_v1, %v12492_v54  ;;  %v12501_v1 = vld [vmem:[#allocation139_spill] sm:$0xff] }
 0x11c   : > { %5829 = vmatpush2.msk.msra.mxu0 %vm691_vm6, %v589_v53  ;;  %v585_v53 = vld [vmem:[%s7851_s14 + $0x88] sm:$0xff] }
 0x11d   : > { %6818 = vxpose.xlu1.b32.end [16/16] %v6817_v30, 128  ;;  %2904 = vmatprep.subr.mxu0 %v12153_v2  ;;  %v587_v30 = vld [vmem:[%s7851_s14 + $0x98] sm:$0xff] }
 0x11e   : > { %5830 = vmatpush2.msk.msra.mxu0 %vm690_vm10, %v588_v56  ;;  %v12498_v56 = vld [vmem:[#allocation63_spill] sm:$0xff] }
 0x11f   : > { %6900 = vxpose.xlu0.b32.start [1/16] %v6899_v15, 128  ;;  %2906 = vmatprep.subr.mxu0 %v12153_v2  ;;  %v10255_v15 = vpop.xlane.xlu1 %1868  ;;  %vm12499_vm3 = vcmp.lt.s32.totalorder %v12498_v56, 520 }
 0x120   : > { %5831 = vmatpush2.msk.msra.mxu0 %vm12494_vm9, %v587_v30  ;;  %v12505_v30 = vpack.i.bf16 %v9630_v3, %v9212_v22  ;;  %v12511_v22 = vpack.i.bf16 %v9787_v10, %v9297_v59  ;;  %v12515_v59 = vpack.i.bf16 %v9842_v43, %v9344_v6  ;;  %v12516_v10 = vld [vmem:[#allocation51_spill] sm:$0xff]  ;;  %vm1967_vm9 = vcmp.gt.f32.partialorder %v10108_v60, 0.0 }
 0x121   : > { %7074 = vxpose.xlu1.b32.start.end [1/1] (short) %v7073_v39, 128  ;;  %2908 = vmatprep.subr.mxu0 %v12153_v2  ;;  %v12496_v39 = vld [vmem:[#allocation16_spill] sm:$0xff] }
 0x122   : > { %5832 = vmatpush2.msk.msra.mxu0 %vm12495_vm8, %v586_v38  ;;  %v6905_v27 = vpack.i.bf16 %v12497_v48, %v12496_v39  ;;  %v12502_v38 = vld [vmem:[#allocation181_spill] sm:$0xff]  ;;  %v12503_v39 = vld [vmem:[#allocation23_spill] sm:$0xff]  ;;  %vm1968_vm8 = vcmp.gt.f32.partialorder %v10138_v31, 0.0 }
 0x123   : > { %6902 = vxpose.xlu0.b32.cont [2/16] %v6901_v51, 128  ;;  %2910 = vmatprep.subr.mxu0 %v12153_v2  ;;  %v584_v51 = vld [vmem:[%s7851_s14 + $0x80] sm:$0xff]  ;;  %v10270_v54 = vpop.xlane.xlu1 %1878  ;;  %v12504_v48 = vld [vmem:[#allocation85_spill] sm:$0xff] }
 0x124   : > { %5833 = vmatpush2.msk.msra.mxu0 %vm12499_vm3, %v585_v53  ;;  %v6909_v17 = vpack.i.bf16 %v12504_v48, %v12503_v39  ;;  %v12509_v39 = vld [vmem:[#allocation37_spill] sm:$0xff] }
 0x125   : > { %2912 = vmatprep.subr.mxu0 %v12153_v2 }
 0x126   : > { %5834 = vmatpush2.msk.msra.mxu0 %vm686_vm7, %v584_v51  ;;  %v12507_v51 = vld [vmem:[#allocation91_spill] sm:$0xff] }
 0x127   : > { %6904 = vxpose.xlu0.b32.cont [3/16] %v6903_v12, 128  ;;  %v6907_v12 = vpack.i.bf16 %v12502_v38, %v12501_v1  ;;  %3876 = vmatprep.subr.mxu0 %v12153_v2  ;;  %v10279_v8 = vpop.xlane.xlu1 %1888 }
 0x12b   : > { %6906 = vxpose.xlu0.b32.cont [4/16] %v6905_v27, 128  ;;  %v10281_v53 = vpop.xlane.xlu1 %1898  ;;  %v1804_v56 = vpop.xlane.xlu0 %1803  ;;  %v12506_v27 = vld [vmem:[#allocation30_spill] sm:$0xff] }
 0x12c   : > { %v6913_v21 = vpack.i.bf16 %v12507_v51, %v12506_v27  ;;  %7523 = vrcp.f32 %v1804_v56  ;;  %vm1965_vm15 = vcmp.gt.f32.partialorder %v1804_v56, 0.0  ;;  %v7589_v56 = vld [vmem:[%s7851_s14 + $0x78] sm:$0xff] }
 0x12f   : > { %6908 = vxpose.xlu0.b32.cont [5/16] %v6907_v12, 128  ;;  %v10288_v1 = vpop.xlane.xlu1 %1908  ;;  %v12508_v12 = vpack.i.bf16 %v9679_v35, %v9249_v9 }
 0x130   : > { %v1636_v37 = vpop.f32.mrf.mxu1 }
 0x132   : > { %v6160_v62 = vpop.f32.mrf.mxu1 }
 0x133   : > { %6910 = vxpose.xlu0.b32.cont [6/16] %v6909_v17, 128  ;;  %v12510_v17 = vld [vmem:[#allocation98_spill] sm:$0xff]  ;;  %v10295_v33 = vpop.xlane.xlu1 %1918 }
 0x134   : > { %v1809_v38 = vpop.xlane.xlu0 %1808  ;;  %v6917_v48 = vpack.i.bf16 %v12510_v17, %v12509_v39 }
 0x135   : > { %7525 = vrcp.f32 %v1809_v38  ;;  %vm1966_vm5 = vcmp.gt.f32.partialorder %v1809_v38, 0.0  ;;  %v12521_v38 = vld [vmem:[#allocation58_spill] sm:$0xff] }
 0x136   : > { %7527 = vrcp.f32 %v10108_v60  ;;  %v12528_v60 = vld [vmem:[#allocation123_spill] sm:$0xff] }
 0x137   : > { %6912 = vxpose.xlu0.b32.cont [7/16] %v12505_v30, 128  ;;  %v12513_v30 = vld [vmem:[#allocation109_spill] sm:$0xff]  ;;  %v10304_v9 = vpop.xlane.xlu1 %1928  ;;  %7529 = vrcp.f32 %v10138_v31 }
 0x138   : > { %v10297_v3 = vpop.xlane.xlu0 %1823 }
 0x139   : > { %7531 = vrcp.f32 %v10297_v3 }
 0x13a   : > { %v1641_v51 = vpop.f32.mrf.mxu1  ;;  %7533 = vrcp.f32 %v10166_v52 }
 0x13b   : > { %6914 = vxpose.xlu0.b32.cont [8/16] %v6913_v21, 128  ;;  %v12512_v21 = vld [vmem:[#allocation44_spill] sm:$0xff]  ;;  %v10309_v39 = vpop.xlane.xlu1 %1938 }
 0x13c   : > { %v6921_v27 = vpack.i.bf16 %v12513_v30, %v12512_v21  ;;  %v10306_v35 = vpop.xlane.xlu0 %1833  ;;  %v6163_v62 = vpop.f32.mrf.mxu1  ;;  %12514 = vst [vmem:[#allocation71_spill] sm:$0xff] %v10309_v39 }
 0x13d   : > { %v7524_v30 = vpop.eup %7523  ;;  %7535 = vrcp.f32 %v10306_v35 }
 0x13e   : > { %v2031_v39 = vsel %vm1965_vm15, %v7524_v30, 0.0  ;;  %7537 = vrcp.f32 %v10197_v55 }
 0x13f   : > { %6916 = vxpose.xlu0.b32.cont [9/16] %v12508_v12, 128  ;;  %v1646_v12 = vpop.f32.mrf.mxu1  ;;  %v10319_v26 = vpop.xlane.xlu1 %1948 }
 0x140   : > { %v10311_v17 = vpop.xlane.xlu0 %1843  ;;  %12518 = vst [vmem:[#allocation22_spill] sm:$0xff] %v10319_v26 }
 0x141   : > { %v6166_v21 = vpop.f32.mrf.mxu1  ;;  %7539 = vrcp.f32 %v10311_v17 }
 0x142   : > { %v7526_v6 = vpop.eup %7525  ;;  %7541 = vrcp.f32 %v10217_v32 }
 0x143   : > { %6918 = vxpose.xlu0.b32.cont [10/16] %v6917_v48, 128  ;;  %v12517_v48 = vld [vmem:[#allocation114_spill] sm:$0xff] }
 0x145   : > { %v1406_v62 = vpop.f32.mrf.mxu0 }
 0x146   : > { %v1637_v24 = vadd.f32 %v1636_v37, %v1406_v62  ;;  %v12519_v37 = vpack.i.bf16 %v9898_v57, %v9408_v50  ;;  %v10337_v57 = vpop.xlane.xlu1 %1958 }
 0x147   : > { %6920 = vxpose.xlu0.b32.cont [11/16] %v12511_v22, 128  ;;  %v6925_v22 = vpack.i.bf16 %v12517_v48, %v12516_v10  ;;  %v1408_v43 = vpop.f32.mrf.mxu0  ;;  %12523 = vst [vmem:[#allocation84_spill] sm:$0xff] %v10337_v57 }
 0x148   : > { %v2064_v10 = vmul.f32 %v2031_v39, %v1637_v24  ;;  %v12522_v24 = vld [vmem:[#allocation126_spill] sm:$0xff] }
 0x149   : > { %v1411_v48 = vpop.f32.mrf.mxu0  ;;  %v6929_v39 = vpack.i.bf16 %v12522_v24, %v12521_v38 }
 0x14a   : > { %v1642_v21 = vadd.f32 %v1641_v51, %v1411_v48  ;;  %6290 = vmatmul.mubr.f32.vlgmr.msra.gmra.mxu1 %v2064_v10  ;;  %v7528_v51 = vpop.eup %7527  ;;  %v12525_v10 = vld [vmem:[#allocation162_spill] sm:$0xff] }
 0x14b   : > { %6922 = vxpose.xlu0.b32.cont [12/16] %v6921_v27, 128  ;;  %v1651_v27 = vpop.f32.mrf.mxu1  ;;  %6627 = vmatpush1.msk.msra.mxu1 %vm685_vm1, %v7589_v56  ;;  %v1413_v30 = vpop.f32.mrf.mxu0  ;;  %vm12526_vm1 = vcmp.lt.s32.totalorder %v12525_v10, 520  ;;  %v12533_v10 = vld [vmem:[#allocation64_spill] sm:$0xff] }
 0x14c   : > { %6292 = vmatprep.mubr.msk.f32.mxu1 %vm7779_vm2, %v12153_v2  ;;  %6596 = vmatprep.subr.mxu1 %v12153_v2  ;;  %v7530_v38 = vpop.eup %7529 }
 0x14d   : > { %v6169_v0 = vpop.f32.mrf.mxu1  ;;  %v1416_v43 = vpop.f32.mrf.mxu0 }
 0x14e   : > { %v2032_v0 = vsel %vm1966_vm5, %v7526_v6, 0.0  ;;  %v12524_v6 = vld [vmem:[#allocation164_spill] sm:$0xff]  ;;  %vm1969_vm5 = vcmp.gt.f32.partialorder %v10297_v3, 0.0 }
 0x14f   : > { %6924 = vxpose.xlu0.b32.cont [13/16] %v12515_v59, 128  ;;  %v10322_v59 = vpop.xlane.xlu0 %1853  ;;  %v2065_v62 = vmul.f32 %v2032_v0, %v1642_v21  ;;  %v1656_v50 = vpop.f32.mrf.mxu1  ;;  %6628 = vmatpush1.msk.msra.mxu1 %vm12526_vm1, %v12524_v6  ;;  %v2033_v0 = vsel %vm1967_vm9, %v7528_v51, 0.0  ;;  %v12532_v6 = vld [vmem:[#allocation128_spill] sm:$0xff]  ;;  %vm1970_vm1 = vcmp.gt.f32.partialorder %v10166_v52, 0.0  ;;  %v12553_v52 = vld [vmem:[#allocation77_spill] sm:$0xff] }
 0x150   : > { %6597 = vmatprep.subr.mxu1 %v12153_v2  ;;  %v1418_v30 = vpop.f32.mrf.mxu0  ;;  %7543 = vrcp.f32 %v10322_v59 }
 0x151   : > { %6293 = vmatmul.mubr.f32.gmra.mxu1 %v2065_v62  ;;  %v6172_v56 = vpop.f32.mrf.mxu1  ;;  %v12530_v62 = vld [vmem:[#allocation49_spill] sm:$0xff]  ;;  %7545 = vrcp.f32 %v10235_v47 }
 0x152   : > { %6295 = vmatprep.mubr.msk.f32.mxu1 %vm7779_vm2, %v12153_v2  ;;  %vm12531_vm3 = vcmp.lt.s32.totalorder %v12530_v62, 520  ;;  %v7011_v56 = vpack.i.bf16 %v12533_v10, %v12532_v6  ;;  %v7532_v62 = vpop.eup %7531 }
 0x153   : > { %6926 = vxpose.xlu0.b32.cont [14/16] %v6925_v22, 128  ;;  %v10342_v48 = vpop.xlane.xlu0 %1863  ;;  %v12527_v22 = vld [vmem:[#allocation172_spill] sm:$0xff]  ;;  %v1421_v51 = vpop.f32.mrf.mxu0 }
 0x154   : > { %v7155_v21 = vpack.i.bf16 %v12528_v60, %v12527_v22  ;;  %v1652_v60 = vadd.f32 %v1651_v27, %v1421_v51  ;;  %v12539_v51 = vld [vmem:[#allocation180_spill] sm:$0xff]  ;;  %7547 = vrcp.f32 %v10342_v48 }
 0x155   : > { %v1423_v57 = vpop.f32.mrf.mxu0  ;;  %7549 = vrcp.f32 %v10255_v15 }
 0x156   : > { %v12537_v57 = vld [vmem:[#allocation66_spill] sm:$0xff] }
 0x157   : > { %6928 = vxpose.xlu0.b32.cont [15/16] %v12519_v37, 128  ;;  %v1647_v37 = vadd.f32 %v1646_v12, %v1416_v43  ;;  %v12529_v12 = vld [vmem:[#allocation171_spill] sm:$0xff]  ;;  %v1661_v43 = vpop.f32.mrf.mxu1  ;;  %v10364_v27 = vpop.xlane.xlu0 %1873 }
 0x158   : > { %6629 = vmatpush1.msk.msra.mxu1 %vm12531_vm3, %v12529_v12  ;;  %v12535_v12 = vld [vmem:[#allocation153_spill] sm:$0xff]  ;;  %v1426_v6 = vpop.f32.mrf.mxu0  ;;  %vm1971_vm3 = vcmp.gt.f32.partialorder %v10306_v35, 0.0  ;;  %7551 = vrcp.f32 %v10364_v27 }
 0x159   : > { %v2066_v24 = vmul.f32 %v2033_v0, %v1647_v37  ;;  %6598 = vmatprep.subr.mxu1 %v12153_v2  ;;  %v6175_v30 = vpop.f32.mrf.mxu1  ;;  %v12534_v0 = vld [vmem:[#allocation175_spill] sm:$0xff]  ;;  %vm12536_vm15 = vcmp.lt.s32.totalorder %v12535_v12, 520  ;;  %v1657_v3 = vadd.f32 %v1656_v50, %v1426_v6  ;;  %7553 = vrcp.f32 %v10270_v54 }
 0x15a   : > { %6630 = vmatpush1.msk.msra.mxu1 %vm12536_vm15, %v12534_v0  ;;  %v12542_v30 = vld [vmem:[#allocation68_spill] sm:$0xff]  ;;  %v12543_v0 = vld [vmem:[#allocation135_spill] sm:$0xff] }
 0x15b   : > { %6930 = vxpose.xlu0.b32.end [16/16] %v6929_v39, 128  ;;  %6296 = vmatmul.mubr.f32.gmra.mxu1 %v2066_v24  ;;  %v2034_v39 = vsel %vm1968_vm8, %v7530_v38, 0.0  ;;  %v7157_v12 = vpack.i.bf16 %v12543_v0, %v12542_v30  ;;  %v12544_v50 = vld [vmem:[#allocation187_spill] sm:$0xff]  ;;  %v12549_v30 = vld [vmem:[#allocation176_spill] sm:$0xff]  ;;  %v10386_v26 = vpop.xlane.xlu0 %1883 }
 0x15c   : > { %6298 = vmatprep.mubr.msk.f32.mxu1 %vm7779_vm2, %v12153_v2  ;;  %v2067_v24 = vmul.f32 %v2034_v39, %v1652_v60  ;;  %6599 = vmatprep.subr.mxu1 %v12153_v2  ;;  %v2035_v60 = vsel %vm1969_vm5, %v7532_v62, 0.0  ;;  %v12548_v62 = vld [vmem:[#allocation7_spill] sm:$0xff]  ;;  %v12550_v0 = vld [vmem:[#allocation12_spill] sm:$0xff]  ;;  %7555 = vrcp.f32 %v10386_v26 }
 0x15d   : > { %v6819_v22 = vpop.trf.xlu1  ;;  %7557 = vrcp.f32 %v10279_v8 }
 0x15e   : > { %7156 = vxpose.xlu1.b32.start [1/16] %v7155_v21, 128  ;;  %v6820_v31 = vunpack.i.l.bf16 %v6819_v22  ;;  %v6823_v37 = vunpack.i.h.bf16 %v6819_v22  ;;  %v12538_v21 = vld [vmem:[#allocation78_spill] sm:$0xff]  ;;  %v12540_v22 = vld [vmem:[#allocation39_spill] sm:$0xff] }
 0x15f   : > { %7012 = vxpose.xlu0.b32.start [1/16] (narrow) %v7011_v56, 48  ;;  %v7013_v38 = vpack.i.bf16 %v12538_v21, %v12537_v57  ;;  %vm12541_vm9 = vcmp.lt.s32.totalorder %v12540_v22, 520  ;;  %6299 = vmatmul.mubr.f32.gmra.mxu1 %v2067_v24  ;;  %v1428_v56 = vpop.f32.mrf.mxu0  ;;  %v2068_v21 = vmul.f32 %v2035_v60, %v1657_v3  ;;  %v12545_v24 = vld [vmem:[#allocation143_spill] sm:$0xff] }
 0x160   : > { %2914 = vmatprep.mubr.f32.mxu0 %v6823_v37  ;;  %6631 = vmatpush1.msk.msra.mxu1 %vm12541_vm9, %v12539_v51  ;;  %v7534_v37 = vpop.eup %7533  ;;  %v1666_v51 = vpop.f32.mrf.mxu1  ;;  %vm12546_vm8 = vcmp.lt.s32.totalorder %v12545_v24, 520  ;;  %v7159_v56 = vpack.i.bf16 %v12550_v0, %v12549_v30  ;;  %vm1972_vm9 = vcmp.gt.f32.partialorder %v10197_v55, 0.0 }
 0x161   : > { %v6824_v10 = vpop.trf.xlu1  ;;  %2915 = vmatmul.mubr.f32.vlgmr.msra.gmra.mxu0 %v6820_v31  ;;  %6301 = vmatprep.mubr.msk.f32.mxu1 %vm7779_vm2, %v12153_v2  ;;  %v12547_v31 = vld [vmem:[#allocation14_spill] sm:$0xff]  ;;  %v1431_v22 = vpop.f32.mrf.mxu0  ;;  %v2036_v3 = vsel %vm1970_vm1, %v7534_v37, 0.0  ;;  %v12554_v37 = vld [vmem:[#allocation17_spill] sm:$0xff]  ;;  %vm1973_vm1 = vcmp.gt.f32.partialorder %v10311_v17, 0.0  ;;  %v12571_v17 = vld [vmem:[#allocation188_spill] sm:$0xff] }
 0x162   : > { %v6828_v39 = vunpack.i.h.bf16 %v6824_v10  ;;  %v6825_v57 = vunpack.i.l.bf16 %v6824_v10  ;;  %6600 = vmatprep.subr.mxu1 %v12153_v2  ;;  %v7015_v6 = vpack.i.bf16 %v12548_v62, %v12547_v31  ;;  %7158 = vxpose.xlu1.b32.cont [2/16] %v7157_v12, 128  ;;  %v1662_v63 = vadd.f32 %v1661_v43, %v1431_v22  ;;  %v7536_v12 = vpop.eup %7535  ;;  %v12555_v22 = vld [vmem:[#allocation79_spill] sm:$0xff] }
 0x163   : > { %7014 = vxpose.xlu0.b32.cont [2/16] (narrow) %v7013_v38, 48  ;;  %6632 = vmatpush1.msk.msra.mxu1 %vm12546_vm8, %v12544_v50  ;;  %v6178_v38 = vpop.f32.mrf.mxu1  ;;  %v1433_v60 = vpop.f32.mrf.mxu0  ;;  %v7017_v24 = vpack.i.bf16 %v12554_v37, %v12553_v52  ;;  %v2037_v35 = vsel %vm1971_vm3, %v7536_v12, 0.0  ;;  %v12562_v52 = vld [vmem:[#allocation184_spill] sm:$0xff]  ;;  %vm1974_vm3 = vcmp.gt.f32.partialorder %v10217_v32, 0.0  ;;  %v12574_v32 = vld [vmem:[#allocation31_spill] sm:$0xff] }
 0x164   : > { %2919 = vmatprep.mubr.f32.mxu0 %v6828_v39  ;;  %6302 = vmatmul.mubr.f32.gmra.mxu1 %v2068_v21  ;;  %v2069_v43 = vmul.f32 %v2036_v3, %v1662_v63  ;;  %v10406_v3 = vpop.xlane.xlu0 %1893  ;;  %v12557_v60 = vld [vmem:[#allocation195_spill] sm:$0xff]  ;;  %v12563_v37 = vld [vmem:[#allocation140_spill] sm:$0xff] }
 0x165   : > { %v6829_v10 = vpop.trf.xlu1  ;;  %2920 = vmatmul.mubr.f32.gmra.mxu0 %v6825_v57  ;;  %6304 = vmatprep.mubr.msk.f32.mxu1 %vm7779_vm2, %v12153_v2  ;;  %v1671_v21 = vpop.f32.mrf.mxu1  ;;  %v12551_v57 = vld [vmem:[#allocation35_spill] sm:$0xff]  ;;  %7559 = vrcp.f32 %v10406_v3 }
 0x166   : > { %v6833_v50 = vunpack.i.h.bf16 %v6829_v10  ;;  %v6830_v39 = vunpack.i.l.bf16 %v6829_v10  ;;  %6601 = vmatprep.subr.mxu1 %v12153_v2  ;;  %vm12552_vm15 = vcmp.lt.s32.totalorder %v12551_v57, 520  ;;  %v1436_v31 = vpop.f32.mrf.mxu0  ;;  %7160 = vxpose.xlu1.b32.cont [3/16] %v7159_v56, 128  ;;  %v12556_v10 = vld [vmem:[#allocation18_spill] sm:$0xff]  ;;  %7561 = vrcp.f32 %v10281_v53 }
 0x167   : > { %7016 = vxpose.xlu0.b32.cont [3/16] (narrow) %v7015_v6, 48  ;;  %6633 = vmatpush1.msk.msra.mxu1 %vm12552_vm15, %v9695_v58  ;;  %v7161_v30 = vpack.i.bf16 %v12556_v10, %v12555_v22  ;;  %v1667_v0 = vadd.f32 %v1666_v51, %v1436_v31  ;;  %v6181_v63 = vpop.f32.mrf.mxu1  ;;  %v12558_v51 = vld [vmem:[#allocation133_spill] sm:$0xff]  ;;  %v7163_v31 = vpack.i.bf16 %v12563_v37, %v12562_v52  ;;  %vm12573_vm15 = vcmp.lt.s32.totalorder %v8916_v44, 520 }
 0x168   : > { %2924 = vmatprep.mubr.f32.mxu0 %v6833_v50  ;;  %6305 = vmatmul.mubr.f32.gmra.mxu1 %v2069_v43  ;;  %v1438_v6 = vpop.f32.mrf.mxu0  ;;  %vm12559_vm5 = vcmp.lt.s32.totalorder %v12558_v51, 520  ;;  %v12560_v50 = vld [vmem:[#allocation182_spill] sm:$0xff]  ;;  %v7538_v43 = vpop.eup %7537  ;;  %v12568_v51 = vld [vmem:[#allocation87_spill] sm:$0xff] }
 0x169   : > { %v6834_v62 = vpop.trf.xlu1  ;;  %2925 = vmatmul.mubr.f32.gmra.mxu0 %v6830_v39  ;;  %6307 = vmatprep.mubr.msk.f32.mxu1 %vm7779_vm2, %v12153_v2  ;;  %v2070_v56 = vmul.f32 %v2037_v35, %v1667_v0  ;;  %v12561_v39 = vld [vmem:[#allocation105_spill] sm:$0xff]  ;;  %v1676_v22 = vpop.f32.mrf.mxu1  ;;  %v2038_v63 = vsel %vm1972_vm9, %v7538_v43, 0.0 }
 0x16a   : > { %v6838_v58 = vunpack.i.h.bf16 %v6834_v62  ;;  %v6835_v38 = vunpack.i.l.bf16 %v6834_v62  ;;  %6602 = vmatprep.subr.mxu1 %v12153_v2  ;;  %v7019_v12 = vpack.i.bf16 %v12561_v39, %v12560_v50  ;;  %7162 = vxpose.xlu1.b32.cont [4/16] %v7161_v30, 128  ;;  %v1441_v62 = vpop.f32.mrf.mxu0  ;;  %v7540_v30 = vpop.eup %7539  ;;  %v12569_v50 = vld [vmem:[#allocation26_spill] sm:$0xff] }
 0x16b   : > { %7018 = vxpose.xlu0.b32.cont [4/16] (narrow) %v7017_v24, 48  ;;  %6634 = vmatpush1.msk.msra.mxu1 %vm12559_vm5, %v12557_v60  ;;  %v1672_v10 = vadd.f32 %v1671_v21, %v1441_v62  ;;  %v6184_v6 = vpop.f32.mrf.mxu1  ;;  %v12564_v21 = vld [vmem:[#allocation25_spill] sm:$0xff]  ;;  %v7165_v39 = vpack.i.bf16 %v12569_v50, %v12568_v51  ;;  %v10428_v43 = vpop.xlane.xlu0 %1903  ;;  %vm1975_vm5 = vcmp.gt.f32.partialorder %v10322_v59, 0.0  ;;  %v12581_v59 = vld [vmem:[#allocation191_spill] sm:$0xff] }
 0x16c   : > { %2929 = vmatprep.mubr.f32.mxu0 %v6838_v58  ;;  %6308 = vmatmul.mubr.f32.gmra.mxu1 %v2070_v56  ;;  %v1443_v55 = vpop.f32.mrf.mxu0  ;;  %vm12565_vm8 = vcmp.lt.s32.totalorder %v12564_v21, 520  ;;  %v12567_v56 = vld [vmem:[#allocation24_spill] sm:$0xff]  ;;  %7563 = vrcp.f32 %v10428_v43 }
 0x16d   : > { %v6839_v57 = vpop.trf.xlu1  ;;  %2930 = vmatmul.mubr.f32.gmra.mxu0 %v6835_v38  ;;  %6310 = vmatprep.mubr.msk.f32.mxu1 %vm7779_vm2, %v12153_v2  ;;  %v2071_v35 = vmul.f32 %v2038_v63, %v1672_v10  ;;  %v12566_v38 = vld [vmem:[#allocation86_spill] sm:$0xff]  ;;  %v1681_v62 = vpop.f32.mrf.mxu1  ;;  %v12570_v55 = vld [vmem:[#allocation119_spill] sm:$0xff]  ;;  %7565 = vrcp.f32 %v10288_v1 }
 0x16e   : > { %v6843_v24 = vunpack.i.h.bf16 %v6839_v57  ;;  %v6840_v0 = vunpack.i.l.bf16 %v6839_v57  ;;  %6603 = vmatprep.subr.mxu1 %v12153_v2  ;;  %7164 = vxpose.xlu1.b32.cont [5/16] %v7163_v31, 128  ;;  %v7021_v60 = vpack.i.bf16 %v12567_v56, %v12566_v38  ;;  %v7542_v10 = vpop.eup %7541 }
 0x16f   : > { %7020 = vxpose.xlu0.b32.cont [5/16] (narrow) %v7019_v12, 48  ;;  %6635 = vmatpush1.msk.msra.mxu1 %vm12565_vm8, %v9823_v34  ;;  %v1446_v12 = vpop.f32.mrf.mxu0  ;;  %v2039_v34 = vsel %vm1973_vm1, %v7540_v30, 0.0  ;;  %v12572_v30 = vld [vmem:[#allocation144_spill] sm:$0xff]  ;;  %v7544_v44 = vpop.eup %7543  ;;  %vm1976_vm1 = vcmp.gt.f32.partialorder %v10235_v47, 0.0  ;;  %vm12583_vm8 = vcmp.lt.s32.totalorder %v8820_v23, 520 }
 0x170   : > { %2934 = vmatprep.mubr.f32.mxu0 %v6843_v24  ;;  %6604 = vmatprep.subr.mxu1 %v12153_v2  ;;  %v1677_v37 = vadd.f32 %v1676_v22, %v1446_v12  ;;  %v7780_v24 = vmov 1.0   ;;  %v6187_v22 = vpop.f32.mrf.mxu1  ;;  %v7167_v6 = vpack.i.bf16 %v12572_v30, %v12571_v17  ;;  %v7546_v17 = vpop.eup %7545  ;;  %v12585_v47 = vld [vmem:[#allocation100_spill] sm:$0xff] }
 0x171   : > { %v6844_v58 = vpop.trf.xlu1  ;;  %2935 = vmatmul.mubr.f32.gmra.mxu0 %v6840_v0  ;;  %6311 = vmatmul.mubr.f32.gmra.mxu1 %v2071_v35  ;;  %v1448_v31 = vpop.f32.mrf.mxu0  ;;  %v7023_v35 = vpack.i.bf16 %v12570_v55, %v9634_v29  ;;  %v12578_v22 = vld [vmem:[#allocation21_spill] sm:$0xff] }
 0x172   : > { %v6848_v57 = vunpack.i.h.bf16 %v6844_v58  ;;  %v6845_v52 = vunpack.i.l.bf16 %v6844_v58  ;;  %3877 = vmatpush1.msra.mxu0 %v7780_v24  ;;  %6313 = vmatprep.mubr.msk.f32.mxu1 %vm7779_vm2, %v12153_v2  ;;  %v2072_v0 = vmul.f32 %v2039_v34, %v1677_v37  ;;  %v1686_v56 = vpop.f32.mrf.mxu1  ;;  %v10449_v29 = vpop.xlane.xlu0 %1913  ;;  %v12576_v37 = vld [vmem:[#allocation32_spill] sm:$0xff]  ;;  %vm12579_vm9 = vcmp.lt.s32.totalorder %v12578_v22, 520 }
 0x173   : > { %7022 = vxpose.xlu0.b32.cont [6/16] (narrow) %v7021_v60, 48  ;;  %7166 = vxpose.xlu1.b32.cont [6/16] %v7165_v39, 128  ;;  %v1451_v58 = vpop.f32.mrf.mxu0  ;;  %v2040_v60 = vsel %vm1974_vm3, %v7542_v10, 0.0  ;;  %vm1977_vm3 = vcmp.gt.f32.partialorder %v10342_v48, 0.0  ;;  %v12588_v48 = vld [vmem:[#allocation148_spill] sm:$0xff]  ;;  %7567 = vrcp.f32 %v10449_v29 }
 0x174   : > { %2939 = vmatprep.mubr.f32.mxu0 %v6848_v57  ;;  %6636 = vmatpush1.msk.msra.mxu1 %vm12573_vm15, %v9884_v14  ;;  %v1682_v38 = vadd.f32 %v1681_v62, %v1451_v58  ;;  %v6190_v39 = vpop.f32.mrf.mxu1  ;;  %v7025_v57 = vpack.i.bf16 %v12574_v32, %v12415_v49  ;;  %vm12587_vm15 = vcmp.lt.s32.totalorder %v8031_v25, 520  ;;  %7569 = vrcp.f32 %v10295_v33 }
 0x175   : > { %v6849_v63 = vpop.trf.xlu1  ;;  %2940 = vmatmul.mubr.f32.gmra.mxu0 %v6845_v52  ;;  %6314 = vmatmul.mubr.f32.gmra.mxu1 %v2072_v0  ;;  %v1453_v50 = vpop.f32.mrf.mxu0  ;;  %v12575_v52 = vld [vmem:[#allocation94_spill] sm:$0xff] }
 0x176   : > { %v6853_v21 = vunpack.i.h.bf16 %v6849_v63  ;;  %v6850_v51 = vunpack.i.l.bf16 %v6849_v63  ;;  %6605 = vmatprep.subr.mxu1 %v12153_v2  ;;  %6316 = vmatprep.mubr.msk.f32.mxu1 %vm7779_vm2, %v12153_v2  ;;  %v2073_v14 = vmul.f32 %v2040_v60, %v1682_v38  ;;  %v7169_v62 = vpack.i.bf16 %v12576_v37, %v12575_v52  ;;  %v12577_v0 = vld [vmem:[#allocation206_spill] sm:$0xff]  ;;  %v1691_v55 = vpop.f32.mrf.mxu1  ;;  %v10472_v60 = vpop.xlane.xlu0 %1923 }
 0x177   : > { %7024 = vxpose.xlu0.b32.cont [7/16] (narrow) %v7023_v35, 48  ;;  %7168 = vxpose.xlu1.b32.cont [7/16] %v7167_v6, 128  ;;  %v1456_v34 = vpop.f32.mrf.mxu0  ;;  %v2041_v35 = vsel %vm1975_vm5, %v7544_v44, 0.0  ;;  %v12584_v37 = vld [vmem:[#allocation38_spill] sm:$0xff]  ;;  %vm1978_vm5 = vcmp.gt.f32.partialorder %v10255_v15, 0.0  ;;  %7571 = vrcp.f32 %v10472_v60 }
 0x178   : > { %2944 = vmatprep.mubr.f32.mxu0 %v6853_v21  ;;  %6637 = vmatpush1.msk.msra.mxu1 %vm12579_vm9, %v12577_v0  ;;  %v1687_v63 = vadd.f32 %v1686_v56, %v1456_v34  ;;  %v6193_v6 = vpop.f32.mrf.mxu1  ;;  %v12580_v21 = vld [vmem:[#allocation136_spill] sm:$0xff]  ;;  %v12582_v56 = vld [vmem:[#allocation149_spill] sm:$0xff]  ;;  %vm12591_vm9 = vcmp.lt.s32.totalorder %v12439_v18, 520  ;;  %7573 = vrcp.f32 %v10304_v9 }
 0x179   : > { %v6854_v12 = vpop.trf.xlu1  ;;  %2945 = vmatmul.mubr.f32.gmra.mxu0 %v6850_v51  ;;  %6317 = vmatmul.mubr.f32.gmra.mxu1 %v2073_v14  ;;  %v1458_v49 = vpop.f32.mrf.mxu0  ;;  %v7027_v38 = vpack.i.bf16 %v12580_v21, %v9689_v41  ;;  %v7171_v51 = vpack.i.bf16 %v12582_v56, %v12581_v59  ;;  %v2042_v41 = vsel %vm1976_vm1, %v7546_v17, 0.0  ;;  %v12586_v34 = vld [vmem:[#allocation40_spill] sm:$0xff]  ;;  %v7031_v6 = vpack.i.bf16 %v12588_v48, %v9791_v4  ;;  %v12590_v21 = vld [vmem:[#allocation154_spill] sm:$0xff] }
 0x17a   : > { %v6858_v31 = vunpack.i.h.bf16 %v6854_v12  ;;  %v6855_v10 = vunpack.i.l.bf16 %v6854_v12  ;;  %6606 = vmatprep.subr.mxu1 %v12153_v2  ;;  %6319 = vmatprep.mubr.msk.f32.mxu1 %vm7779_vm2, %v12153_v2  ;;  %v2074_v30 = vmul.f32 %v2041_v35, %v1687_v63  ;;  %v1696_v12 = vpop.f32.mrf.mxu1  ;;  %vm1979_vm1 = vcmp.gt.f32.partialorder %v10364_v27, 0.0  ;;  %v12595_v27 = vld [vmem:[#allocation110_spill] sm:$0xff] }
 0x17b   : > { %7026 = vxpose.xlu0.b32.cont [8/16] (narrow) %v7025_v57, 48  ;;  %7170 = vxpose.xlu1.b32.cont [8/16] %v7169_v62, 128  ;;  %v1461_v50 = vpop.f32.mrf.mxu0  ;;  %v7548_v57 = vpop.eup %7547  ;;  %v7029_v62 = vpack.i.bf16 %v12584_v37, %v12430_v61 }
 0x17c   : > { %2949 = vmatprep.mubr.f32.mxu0 %v6858_v31  ;;  %6638 = vmatpush1.msk.msra.mxu1 %vm12583_vm8, %v9983_v20  ;;  %v1692_v39 = vadd.f32 %v1691_v55, %v1461_v50  ;;  %v6196_v20 = vpop.f32.mrf.mxu1  ;;  %v7173_v31 = vpack.i.bf16 %v12586_v34, %v12585_v47  ;;  %v2043_v35 = vsel %vm1977_vm3, %v7548_v57, 0.0  ;;  %v10495_v61 = vpop.xlane.xlu0 %1933  ;;  %vm1980_vm8 = vcmp.gt.f32.partialorder %v10270_v54, 0.0  ;;  %v12599_v54 = vld [vmem:[#allocation200_spill] sm:$0xff] }
 0x17d   : > { %v6859_v58 = vpop.trf.xlu1  ;;  %2950 = vmatmul.mubr.f32.gmra.mxu0 %v6855_v10  ;;  %6320 = vmatmul.mubr.f32.gmra.mxu1 %v2074_v30  ;;  %v1463_v32 = vpop.f32.mrf.mxu0  ;;  %7575 = vrcp.f32 %v10495_v61 }
 0x17e   : > { %v6863_v44 = vunpack.i.h.bf16 %v6859_v58  ;;  %v6860_v14 = vunpack.i.l.bf16 %v6859_v58  ;;  %6607 = vmatprep.subr.mxu1 %v12153_v2  ;;  %6322 = vmatprep.mubr.msk.f32.mxu1 %vm7779_vm2, %v12153_v2  ;;  %v2075_v23 = vmul.f32 %v2042_v41, %v1692_v39  ;;  %v1701_v55 = vpop.f32.mrf.mxu1  ;;  %v7550_v17 = vpop.eup %7549  ;;  %v12589_v58 = vld [vmem:[#allocation196_spill] sm:$0xff]  ;;  %v12592_v41 = vld [vmem:[#allocation45_spill] sm:$0xff] }
 0x17f   : > { %7028 = vxpose.xlu0.b32.cont [9/16] (narrow) %v7027_v38, 48  ;;  %7172 = vxpose.xlu1.b32.cont [9/16] %v7171_v51, 128  ;;  %v1466_v10 = vpop.f32.mrf.mxu0  ;;  %v7175_v38 = vpack.i.bf16 %v12590_v21, %v12589_v58  ;;  %v7552_v39 = vpop.eup %7551  ;;  %v7033_v15 = vpack.i.bf16 %v12592_v41, %v8913_v42 }
 0x180   : > { %2954 = vmatprep.mubr.f32.mxu0 %v6863_v44  ;;  %6639 = vmatpush1.msk.msra.mxu1 %vm12587_vm15, %v10030_v46  ;;  %v1697_v63 = vadd.f32 %v1696_v12, %v1466_v10  ;;  %v6199_v46 = vpop.f32.mrf.mxu1  ;;  %v10517_v32 = vpop.xlane.xlu0 %1943  ;;  %vm1981_vm15 = vcmp.gt.f32.partialorder %v10386_v26, 0.0 }
 0x181   : > { %v6864_v52 = vpop.trf.xlu1  ;;  %2955 = vmatmul.mubr.f32.gmra.mxu0 %v6860_v14  ;;  %6323 = vmatmul.mubr.f32.gmra.mxu1 %v2075_v23  ;;  %v1468_v49 = vpop.f32.mrf.mxu0  ;;  %v2044_v14 = vsel %vm1978_vm5, %v7550_v17, 0.0  ;;  %v12597_v46 = vld [vmem:[#allocation199_spill] sm:$0xff]  ;;  %vm12601_vm5 = vcmp.lt.s32.totalorder %v12452_v16, 520 }
 0x182   : > { %v6868_v0 = vunpack.i.h.bf16 %v6864_v52  ;;  %v6865_v22 = vunpack.i.l.bf16 %v6864_v52  ;;  %6608 = vmatprep.subr.mxu1 %v12153_v2  ;;  %6325 = vmatprep.mubr.msk.f32.mxu1 %vm7779_vm2, %v12153_v2  ;;  %v2076_v25 = vmul.f32 %v2043_v35, %v1697_v63  ;;  %v1706_v44 = vpop.f32.mrf.mxu1  ;;  %v7554_v42 = vpop.eup %7553 }
 0x183   : > { %7030 = vxpose.xlu0.b32.cont [10/16] (narrow) %v7029_v62, 48  ;;  %7174 = vxpose.xlu1.b32.cont [10/16] %v7173_v31, 128  ;;  %v1471_v59 = vpop.f32.mrf.mxu0  ;;  %v2045_v62 = vsel %vm1979_vm1, %v7552_v39, 0.0  ;;  %v7556_v21 = vpop.eup %7555  ;;  %vm12603_vm1 = vcmp.lt.s32.totalorder %v12462_v5, 520 }
 0x184   : > { %2959 = vmatprep.mubr.f32.mxu0 %v6868_v0  ;;  %6640 = vmatpush1.msk.msra.mxu1 %vm12591_vm9, %v10061_v7  ;;  %v1702_v50 = vadd.f32 %v1701_v55, %v1471_v59  ;;  %v6202_v7 = vpop.f32.mrf.mxu1  ;;  %v12593_v0 = vld [vmem:[#allocation74_spill] sm:$0xff]  ;;  %vm1982_vm9 = vcmp.gt.f32.partialorder %v10279_v8, 0.0 }
 0x185   : > { %v6869_v30 = vpop.trf.xlu1  ;;  %2960 = vmatmul.mubr.f32.gmra.mxu0 %v6865_v22  ;;  %6326 = vmatmul.mubr.f32.gmra.mxu1 %v2076_v25  ;;  %v1473_v4 = vpop.f32.mrf.mxu0  ;;  %vm12594_vm3 = vcmp.lt.s32.totalorder %v12593_v0, 520  ;;  %v12596_v22 = vld [vmem:[#allocation46_spill] sm:$0xff]  ;;  %v12604_v0 = vld [vmem:[#allocation116_spill] sm:$0xff] }
 0x186   : > { %v6873_v56 = vunpack.i.h.bf16 %v6869_v30  ;;  %v6870_v51 = vunpack.i.l.bf16 %v6869_v30  ;;  %6609 = vmatprep.subr.mxu1 %v12153_v2  ;;  %6328 = vmatprep.mubr.msk.f32.mxu1 %vm7779_vm2, %v12153_v2  ;;  %v2077_v18 = vmul.f32 %v2044_v14, %v1702_v50  ;;  %v1711_v37 = vpop.f32.mrf.mxu1  ;;  %v7177_v63 = vpack.i.bf16 %v12596_v22, %v12595_v27  ;;  %v12598_v30 = vld [vmem:[#allocation157_spill] sm:$0xff]  ;;  %v7590_v14 = vld [vmem:[%s7851_s14] sm:$0xff]  ;;  %v12605_v27 = vld [vmem:[#allocation54_spill] sm:$0xff] }
 0x187   : > { %7032 = vxpose.xlu0.b32.cont [11/16] (narrow) %v7031_v6, 48  ;;  %3878 = vmatprep.subr.mxu0 %v12153_v2  ;;  %v1476_v57 = vpop.f32.mrf.mxu0  ;;  %v7035_v48 = vpack.i.bf16 %v12598_v30, %v12597_v46  ;;  %v10538_v6 = vpop.xlane.xlu0 %1953  ;;  %v7181_v22 = vpack.i.bf16 %v12605_v27, %v12604_v0 }
 0x188   : > { %2964 = vmatprep.mubr.f32.mxu0 %v6873_v56  ;;  %7176 = vxpose.xlu1.b32.cont [11/16] %v7175_v38, 128  ;;  %v1707_v52 = vadd.f32 %v1706_v44, %v1476_v57  ;;  %v6205_v31 = vpop.f32.mrf.mxu1  ;;  %v7558_v57 = vpop.eup %7557 }
 0x189   : > { %v6874_v12 = vpop.trf.xlu1  ;;  %2965 = vmatmul.mubr.f32.gmra.mxu0 %v6870_v51  ;;  %6329 = vmatmul.mubr.f32.gmra.mxu1 %v2077_v18  ;;  %v1478_v47 = vpop.f32.mrf.mxu0  ;;  %v12600_v51 = vld [vmem:[#allocation159_spill] sm:$0xff] }
 0x18a   : > { %v6878_v23 = vunpack.i.h.bf16 %v6874_v12  ;;  %v6875_v20 = vunpack.i.l.bf16 %v6874_v12  ;;  %3879 = vmatpush1.msra.mxu0 %v7780_v24  ;;  %6331 = vmatprep.mubr.msk.f32.mxu1 %vm7779_vm2, %v12153_v2  ;;  %v2078_v34 = vmul.f32 %v2045_v62, %v1707_v52  ;;  %v1716_v25 = vpop.f32.mrf.mxu1  ;;  %v7179_v50 = vpack.i.bf16 %v12600_v51, %v12599_v54 }
 0x18b   : > { %6641 = vmatpush1.msk.msra.mxu1 %vm12594_vm3, %v10083_v11  ;;  %7034 = vxpose.xlu0.b32.cont [12/16] (narrow) %v7033_v15, 48  ;;  %v1481_v55 = vpop.f32.mrf.mxu0  ;;  %v2046_v11 = vsel %vm1980_vm8, %v7554_v42, 0.0  ;;  %v2047_v12 = vsel %vm1981_vm15, %v7556_v21, 0.0  ;;  %v12602_v15 = vld [vmem:[#allocation52_spill] sm:$0xff]  ;;  %v10559_v47 = vpop.xlane.xlu0 %1963  ;;  %vm1983_vm8 = vcmp.gt.f32.partialorder %v10406_v3, 0.0  ;;  %v12609_v21 = vld [vmem:[#allocation167_spill] sm:$0xff] }
 0x18c   : > { %2969 = vmatprep.mubr.f32.mxu0 %v6878_v23  ;;  %6610 = vmatprep.subr.mxu1 %v12153_v2  ;;  %v1712_v17 = vadd.f32 %v1711_v37, %v1481_v55  ;;  %v6208_v59 = vpop.f32.mrf.mxu1  ;;  %v7037_v16 = vpack.i.bf16 %v12602_v15, %v12457_v36  ;;  %vm1984_vm3 = vcmp.gt.f32.partialorder %v10281_v53, 0.0  ;;  %vm12613_vm15 = vcmp.lt.s32.totalorder %v12460_v40, 520 }
 0x18d   : > { %v6879_v10 = vpop.trf.xlu1  ;;  %2970 = vmatmul.mubr.f32.gmra.mxu0 %v6875_v20  ;;  %6332 = vmatmul.mubr.f32.gmra.mxu1 %v2078_v34  ;;  %v1483_v58 = vpop.f32.mrf.mxu0  ;;  %v2048_v34 = vsel %vm1982_vm9, %v7558_v57, 0.0  ;;  %vm1987_vm9 = vcmp.gt.f32.partialorder %v10449_v29, 0.0 }
 0x18e   : > { %v6883_v35 = vunpack.i.h.bf16 %v6879_v10  ;;  %v6880_v49 = vunpack.i.l.bf16 %v6879_v10  ;;  %3880 = vmatprep.subr.mxu0 %v12153_v2  ;;  %6334 = vmatprep.mubr.msk.f32.mxu1 %vm7779_vm2, %v12153_v2  ;;  %v2079_v38 = vmul.f32 %v2046_v11, %v1712_v17  ;;  %v1721_v7 = vpop.f32.mrf.mxu1  ;;  %v7591_v10 = vld [vmem:[%s7851_s14 + $0xf8] sm:$0xff]  ;;  %v12607_v17 = vld [vmem:[#allocation165_spill] sm:$0xff]  ;;  %v12608_v58 = vld [vmem:[#allocation203_spill] sm:$0xff] }
 0x18f   : > { %3881 = vmatpush1.msra.mxu0 %v7780_v24  ;;  %7178 = vxpose.xlu1.b32.cont [12/16] %v7177_v63, 128  ;;  %v7560_v63 = vpop.eup %7559 }
 0x190   : > { %2974 = vmatprep.mubr.f32.mxu0 %v6883_v35  ;;  %6642 = vmatpush1.msk.msra.mxu1 %vm12601_vm5, %v7590_v14  ;;  %v6211_v20 = vpop.f32.mrf.mxu1  ;;  %v2049_v59 = vsel %vm1983_vm8, %v7560_v63, 0.0  ;;  %v7562_v51 = vpop.eup %7561  ;;  %vm1986_vm5 = vcmp.gt.f32.partialorder %v10288_v1, 0.0  ;;  %vm1989_vm8 = vcmp.gt.f32.partialorder %v10472_v60, 0.0 }
 0x191   : > { %v6884_v56 = vpop.trf.xlu1  ;;  %v1486_v44 = vpop.f32.mrf.mxu0  ;;  %2975 = vmatmul.mubr.f32.gmra.mxu0 %v6880_v49  ;;  %6335 = vmatmul.mubr.f32.gmra.mxu1 %v2079_v38  ;;  %v12606_v49 = vld [vmem:[#allocation8_spill] sm:$0xff]  ;;  %v7183_v38 = vpack.i.bf16 %v12609_v21, %v12608_v58  ;;  %v2050_v15 = vsel %vm1984_vm3, %v7562_v51, 0.0  ;;  %v12611_v20 = vld [vmem:[#allocation129_spill] sm:$0xff] }
 0x192   : > { %v6888_v4 = vunpack.i.h.bf16 %v6884_v56  ;;  %v6885_v39 = vunpack.i.l.bf16 %v6884_v56  ;;  %v1717_v18 = vadd.f32 %v1716_v25, %v1486_v44  ;;  %7036 = vxpose.xlu0.b32.cont [13/16] (narrow) %v7035_v48, 48  ;;  %6337 = vmatprep.mubr.msk.f32.mxu1 %vm7779_vm2, %v12153_v2  ;;  %v1726_v36 = vpop.f32.mrf.mxu1  ;;  %v7039_v25 = vpack.i.bf16 %v12607_v17, %v12606_v49  ;;  %v7564_v19 = vpop.eup %7563 }
 0x193   : > { %v1488_v41 = vpop.f32.mrf.mxu0  ;;  %3882 = vmatprep.subr.mxu0 %v12153_v2  ;;  %6611 = vmatprep.subr.mxu1 %v12153_v2  ;;  %v7566_v27 = vpop.eup %7565 }
 0x194   : > { %2979 = vmatprep.mubr.f32.mxu0 %v6888_v4  ;;  %v2080_v23 = vmul.f32 %v2047_v12, %v1717_v18  ;;  %7180 = vxpose.xlu1.b32.cont [13/16] %v7179_v50, 128  ;;  %v6214_v35 = vpop.f32.mrf.mxu1  ;;  %v7592_v4 = vld [vmem:[%s7851_s14 + $0xf0] sm:$0xff]  ;;  %v7568_v21 = vpop.eup %7567 }
 0x195   : > { %v6889_v26 = vpop.trf.xlu1  ;;  %v1491_v52 = vpop.f32.mrf.mxu0  ;;  %2980 = vmatmul.mubr.f32.gmra.mxu0 %v6885_v39  ;;  %6643 = vmatpush2.msk.msra.mxu1 %vm12603_vm1, %v7591_v10  ;;  %v12610_v39 = vld [vmem:[#allocation59_spill] sm:$0xff]  ;;  %vm1988_vm1 = vcmp.gt.f32.partialorder %v10295_v33, 0.0 }
 0x196   : > { %v6893_v37 = vunpack.i.h.bf16 %v6889_v26  ;;  %v6890_v62 = vunpack.i.l.bf16 %v6889_v26  ;;  %v1722_v42 = vadd.f32 %v1721_v7, %v1491_v52  ;;  %6338 = vmatmul.mubr.f32.gmra.mxu1 %v2080_v23  ;;  %3883 = vmatpush1.msra.mxu0 %v7780_v24  ;;  %v7041_v18 = vpack.i.bf16 %v12610_v39, %v12471_v28  ;;  %v12612_v26 = vld [vmem:[#allocation60_spill] sm:$0xff] }
 0x197   : > { %v1493_v31 = vpop.f32.mrf.mxu0  ;;  %7038 = vxpose.xlu0.b32.cont [14/16] (narrow) %v7037_v16, 48  ;;  %6340 = vmatprep.mubr.msk.f32.mxu1 %vm7779_vm2, %v12153_v2  ;;  %v7185_v53 = vpack.i.bf16 %v12612_v26, %v12611_v20  ;;  %v12618_v20 = vld [vmem:[#allocation71_spill] sm:$0xff]  ;;  %v7596_v26 = vld [vmem:[%s7851_s14 + $0xd0] sm:$0xff] }
 0x198   : > { %v2081_v55 = vmul.f32 %v2048_v34, %v1722_v42  ;;  %2984 = vmatprep.mubr.f32.mxu0 %v6893_v37  ;;  %3884 = vmatprep.subr.mxu0 %v12153_v2  ;;  %v1731_v48 = vpop.f32.mrf.mxu1  ;;  %7577 = vrcp.f32 %v12618_v20 }
 0x199   : > { %v6894_v8 = vpop.trf.xlu1  ;;  %v1496_v46 = vpop.f32.mrf.mxu0  ;;  %2985 = vmatmul.mubr.f32.gmra.mxu0 %v6890_v62  ;;  %7182 = vxpose.xlu1.b32.cont [14/16] %v7181_v22, 128  ;;  %7579 = vrcp.f32 %v10517_v32 }
 0x19a   : > { %v6898_v5 = vunpack.i.h.bf16 %v6894_v8  ;;  %v1727_v30 = vadd.f32 %v1726_v36, %v1496_v46  ;;  %6341 = vmatmul.mubr.f32.gmra.mxu1 %v2081_v55  ;;  %3885 = vmatpush1.msra.mxu0 %v7780_v24  ;;  %v6895_v54 = vunpack.i.l.bf16 %v6894_v8  ;;  %v6217_v44 = vpop.f32.mrf.mxu1  ;;  %v7593_v36 = vld [vmem:[%s7851_s14 + $0xe8] sm:$0xff]  ;;  %v7594_v46 = vld [vmem:[%s7851_s14 + $0xe0] sm:$0xff] }
 0x19b   : > { %v6931_v11 = vpop.trf.xlu0  ;;  %v1498_v56 = vpop.f32.mrf.mxu0  ;;  %6612 = vmatprep.subr.mxu1 %v12153_v2  ;;  %7040 = vxpose.xlu0.b32.cont [15/16] (narrow) %v7039_v25, 48  ;;  %v2052_v25 = vsel %vm1986_vm5, %v7566_v27, 0.0  ;;  %v12616_v44 = vld [vmem:[#allocation106_spill] sm:$0xff]  ;;  %vm1993_vm5 = vcmp.gt.f32.partialorder %v10517_v32, 0.0 }
 0x19c   : > { %v2082_v50 = vmul.f32 %v2049_v59, %v1727_v30  ;;  %6343 = vmatprep.mubr.msk.f32.mxu1 %vm7779_vm2, %v12153_v2  ;;  %6644 = vmatpush2.msk.msra.mxu1 %vm700_vm13, %v7592_v4  ;;  %v1736_v12 = vpop.f32.mrf.mxu1  ;;  %v6935_v57 = vunpack.i.h.bf16 %v6931_v11  ;;  %vm1985_vm13 = vcmp.gt.f32.partialorder %v10428_v43, 0.0  ;;  %v6932_v62 = vunpack.i.l.bf16 %v6931_v11  ;;  %v12615_v11 = vld [vmem:[#allocation75_spill] sm:$0xff] }
 0x19d   : > { %v10586_v14 = vpop.trf.xlu1  ;;  %v1501_v3 = vpop.f32.mrf.mxu0  ;;  %2989 = vmatprep.mubr.f32.mxu0 %v6898_v5  ;;  %3886 = vmatprep.subr.mxu0 %v12153_v2  ;;  %v2051_v10 = vsel %vm1985_vm13, %v7564_v19, 0.0  ;;  %v2053_v4 = vsel %vm1987_vm9, %v7568_v21, 0.0  ;;  %vm1991_vm13 = vcmp.gt.f32.partialorder %v10495_v61, 0.0 }
 0x19e   : > { %v1732_v7 = vadd.f32 %v1731_v48, %v1501_v3  ;;  %6344 = vmatmul.mubr.f32.gmra.mxu1 %v2082_v50  ;;  %2990 = vmatmul.mubr.f32.gmra.mxu0 %v6895_v54  ;;  %v6220_v23 = vpop.f32.mrf.mxu1  ;;  %v12614_v48 = vld [vmem:[#allocation15_spill] sm:$0xff]  ;;  %v7595_v50 = vld [vmem:[%s7851_s14 + $0xd8] sm:$0xff] }
 0x19f   : > { %v10594_v41 = vpop.trf.xlu0  ;;  %v1503_v16 = vpop.f32.mrf.mxu0  ;;  %7184 = vxpose.xlu1.b32.cont [15/16] %v7183_v38, 128  ;;  %3887 = vmatpush1.msra.mxu0 %v7780_v24  ;;  %v7379_v58 = vpack.i.bf16 %v12615_v11, %v12614_v48 }
 0x1a0   : > { %v2083_v28 = vmul.f32 %v2050_v15, %v1732_v7  ;;  %6613 = vmatprep.subr.mxu1 %v12153_v2  ;;  %3888 = vmatprep.subr.mxu0 %v12153_v2  ;;  %v1741_v34 = vpop.f32.mrf.mxu1  ;;  %v6940_v63 = vunpack.i.h.bf16 %v10594_v41  ;;  %v6937_v49 = vunpack.i.l.bf16 %v10594_v41  ;;  %v7570_v7 = vpop.eup %7569 }
 0x1a1   : > { %v10604_v52 = vpop.trf.xlu1  ;;  %7042 = vxpose.xlu0.b32.end [16/16] (narrow) %v7041_v18, 48  ;;  %6346 = vmatprep.mubr.msk.f32.mxu1 %vm7779_vm2, %v12153_v2  ;;  %v2054_v23 = vsel %vm1988_vm1, %v7570_v7, 0.0  ;;  %vm1997_vm1 = vcmp.gt.f32.partialorder %v10559_v47, 0.0 }
 0x1a2   : > { %v1506_v37 = vpop.f32.mrf.mxu0  ;;  %6645 = vmatpush2.msk.msra.mxu1 %vm12613_vm15, %v7593_v36  ;;  %2994 = vmatprep.mubr.f32.mxu0 %v6935_v57  ;;  %v6223_v40 = vpop.f32.mrf.mxu1  ;;  %vm1992_vm15 = vcmp.gt.f32.partialorder %v12618_v20, 0.0 }
 0x1a3   : > { %v1737_v42 = vadd.f32 %v1736_v12, %v1506_v37  ;;  %v10612_v31 = vpop.trf.xlu0  ;;  %6347 = vmatmul.mubr.f32.gmra.mxu1 %v2083_v28  ;;  %3889 = vmatpush1.msra.mxu0 %v7780_v24 }
 0x1a4   : > { %v1508_v0 = vpop.f32.mrf.mxu0  ;;  %7186 = vxpose.xlu1.b32.end [16/16] %v7185_v53, 128  ;;  %2995 = vmatmul.mubr.f32.gmra.mxu0 %v6932_v62  ;;  %v6945_v38 = vunpack.i.h.bf16 %v10612_v31  ;;  %v6942_v54 = vunpack.i.l.bf16 %v10612_v31 }
 0x1a5   : > { %v2084_v22 = vmul.f32 %v2051_v10, %v1737_v42  ;;  %v10620_v55 = vpop.trf.xlu1  ;;  %6614 = vmatprep.subr.mxu1 %v12153_v2  ;;  %3890 = vmatprep.subr.mxu0 %v12153_v2  ;;  %v7572_v42 = vpop.eup %7571 }
 0x1a6   : > { %2703 = vxpose.xlu0.b32.start.end [1/1] (short) (narrow) %v9979_v13, 48  ;;  %v1746_v8 = vpop.f32.mrf.mxu1  ;;  %6349 = vmatprep.mubr.msk.f32.mxu1 %vm7779_vm2, %v12153_v2  ;;  %v2055_v40 = vsel %vm1989_vm8, %v7572_v42, 0.0 }
 0x1a7   : > { %v1511_v43 = vpop.f32.mrf.mxu0  ;;  %v10626_v17 = vpop.trf.xlu0  ;;  %6646 = vmatpush2.msk.msra.mxu1 %vm698_vm11, %v7594_v46  ;;  %2999 = vmatprep.mubr.f32.mxu0 %v6940_v63  ;;  %vm12617_vm11 = vcmp.lt.s32.totalorder %v12616_v44, 520  ;;  %v7597_v63 = vld [vmem:[%s7851_s14 + $0xc8] sm:$0xff] }
 0x1a8   : > { %v1742_v35 = vadd.f32 %v1741_v34, %v1511_v43  ;;  %6350 = vmatmul.mubr.f32.gmra.mxu1 %v2084_v22  ;;  %v6226_v13 = vpop.f32.mrf.mxu1  ;;  %3891 = vmatpush1.msra.mxu0 %v7780_v24  ;;  %v6950_v15 = vunpack.i.h.bf16 %v10626_v17  ;;  %v6947_v57 = vunpack.i.l.bf16 %v10626_v17  ;;  %v12620_v43 = vld [vmem:[#allocation93_spill] sm:$0xff] }
 0x1a9   : > { %v1513_v5 = vpop.f32.mrf.mxu0  ;;  %v10638_v1 = vpop.trf.xlu1  ;;  %6615 = vmatprep.subr.mxu1 %v12153_v2  ;;  %3000 = vmatmul.mubr.f32.gmra.mxu0 %v6937_v49  ;;  %vm12621_vm3 = vcmp.lt.s32.totalorder %v12620_v43, 520  ;;  %v7600_v43 = vld [vmem:[%s7851_s14 + $0xb0] sm:$0xff] }
 0x1aa   : > { %v2085_v30 = vmul.f32 %v2052_v25, %v1742_v35  ;;  %3892 = vmatprep.subr.mxu0 %v12153_v2  ;;  %v1751_v56 = vpop.f32.mrf.mxu1  ;;  %6352 = vmatprep.mubr.msk.f32.mxu1 %vm7779_vm2, %v12153_v2  ;;  %v7574_v49 = vpop.eup %7573 }
 0x1ab   : > { %v1516_v45 = vpop.f32.mrf.mxu0  ;;  %v10646_v51 = vpop.trf.xlu0  ;;  %6647 = vmatpush2.msk.msra.mxu1 %vm12617_vm11, %v7595_v50  ;;  %3893 = vmatpush1.msra.mxu0 %v7780_v24 }
 0x1ac   : > { %v1747_v59 = vadd.f32 %v1746_v8, %v1516_v45  ;;  %6353 = vmatmul.mubr.f32.gmra.mxu1 %v2085_v30  ;;  %v6229_v39 = vpop.f32.mrf.mxu1  ;;  %3004 = vmatprep.mubr.f32.mxu0 %v6945_v38  ;;  %v6955_v34 = vunpack.i.h.bf16 %v10646_v51  ;;  %v6952_v0 = vunpack.i.l.bf16 %v10646_v51  ;;  %v12623_v51 = vld [vmem:[#allocation22_spill] sm:$0xff] }
 0x1ad   : > { %v1518_v3 = vpop.f32.mrf.mxu0  ;;  %v10658_v18 = vpop.trf.xlu1  ;;  %7380 = vxpose.xlu1.b32.start.end [1/1] (short) %v7379_v58, 128  ;;  %3005 = vmatmul.mubr.f32.gmra.mxu0 %v6942_v54  ;;  %v7598_v58 = vld [vmem:[%s7851_s14 + $0xc0] sm:$0xff]  ;;  %7581 = vrcp.f32 %v12623_v51 }
 0x1ae   : > { %v2086_v12 = vmul.f32 %v2053_v4, %v1747_v59  ;;  %6616 = vmatprep.subr.mxu1 %v12153_v2  ;;  %v1756_v29 = vpop.f32.mrf.mxu1  ;;  %3894 = vmatprep.subr.mxu0 %v12153_v2  ;;  %v7576_v59 = vpop.eup %7575  ;;  %7583 = vrcp.f32 %v10538_v6 }
 0x1af   : > { %v1521_v41 = vpop.f32.mrf.mxu0  ;;  %v10663_v19 = vpop.trf.xlu0  ;;  %6355 = vmatprep.mubr.msk.f32.mxu1 %vm7779_vm2, %v12153_v2  ;;  %6648 = vmatpush2.msk.msra.mxu1 %vm696_vm12, %v7596_v26  ;;  %vm1990_vm12 = vcmp.gt.f32.partialorder %v10304_v9, 0.0  ;;  %v2057_v7 = vsel %vm1991_vm13, %v7576_v59, 0.0 }
 0x1b0   : > { %v1752_v16 = vadd.f32 %v1751_v56, %v1521_v41  ;;  %3895 = vmatpush1.msra.mxu0 %v7780_v24  ;;  %v6232_v37 = vpop.f32.mrf.mxu1  ;;  %6356 = vmatmul.mubr.f32.gmra.mxu1 %v2086_v12  ;;  %v6960_v46 = vunpack.i.h.bf16 %v10663_v19  ;;  %v6957_v30 = vunpack.i.l.bf16 %v10663_v19  ;;  %v2056_v11 = vsel %vm1990_vm12, %v7574_v49, 0.0  ;;  %v7599_v12 = vld [vmem:[%s7851_s14 + $0xb8] sm:$0xff]  ;;  %v12624_v41 = vld [vmem:[#allocation83_spill] sm:$0xff] }
 0x1b1   : > { %v1523_v28 = vpop.f32.mrf.mxu0  ;;  %v10676_v62 = vpop.trf.xlu1  ;;  %3009 = vmatprep.mubr.f32.mxu0 %v6950_v15  ;;  %6617 = vmatprep.subr.mxu1 %v12153_v2 }
 0x1b2   : > { %v2087_v36 = vmul.f32 %v2054_v23, %v1752_v16  ;;  %3010 = vmatmul.mubr.f32.gmra.mxu0 %v6947_v57  ;;  %v1761_v10 = vpop.f32.mrf.mxu1  ;;  %3896 = vmatprep.subr.mxu0 %v12153_v2  ;;  %v12626_v16 = vld [vmem:[#allocation173_spill] sm:$0xff]  ;;  %v7578_v28 = vpop.eup %7577 }
 0x1b3   : > { %v1526_v33 = vpop.f32.mrf.mxu0  ;;  %v10681_v27 = vpop.trf.xlu0  ;;  %6358 = vmatprep.mubr.msk.f32.mxu1 %vm7779_vm2, %v12153_v2  ;;  %6649 = vmatpush2.msk.msra.mxu1 %vm12621_vm3, %v7597_v63 }
 0x1b4   : > { %v1757_v31 = vadd.f32 %v1756_v29, %v1526_v33  ;;  %3897 = vmatpush1.msra.mxu0 %v7780_v24  ;;  %v6235_v35 = vpop.f32.mrf.mxu1  ;;  %6359 = vmatmul.mubr.f32.gmra.mxu1 %v2087_v36  ;;  %v6965_v9 = vunpack.i.h.bf16 %v10681_v27  ;;  %v6962_v3 = vunpack.i.l.bf16 %v10681_v27  ;;  %v12627_v29 = vld [vmem:[#allocation124_spill] sm:$0xff] }
 0x1b5   : > { %v1528_v22 = vpop.f32.mrf.mxu0  ;;  %v10693_v8 = vpop.trf.xlu1  ;;  %3014 = vmatprep.mubr.f32.mxu0 %v6955_v34  ;;  %3898 = vmatprep.subr.mxu0 %v12153_v2  ;;  %v7267_v57 = vpack.i.bf16 %v12627_v29, %v12626_v16  ;;  %v7602_v29 = vld [vmem:[%s7851_s14 + $0xa0] sm:$0xff] }
 0x1b6   : > { %v2088_v17 = vmul.f32 %v2055_v40, %v1757_v31  ;;  %3015 = vmatmul.mubr.f32.gmra.mxu0 %v6952_v0  ;;  %v1766_v5 = vpop.f32.mrf.mxu1  ;;  %6618 = vmatprep.subr.mxu1 %v12153_v2  ;;  %v12628_v31 = vld [vmem:[#allocation69_spill] sm:$0xff]  ;;  %v2058_v22 = vsel %vm1992_vm15, %v7578_v28, 0.0  ;;  %v12636_v28 = vld [vmem:[#allocation80_spill] sm:$0xff] }
 0x1b7   : > { %v1531_v25 = vpop.f32.mrf.mxu0  ;;  %v10699_v13 = vpop.trf.xlu0  ;;  %3899 = vmatpush1.msra.mxu0 %v7780_v24  ;;  %6361 = vmatprep.mubr.msk.f32.mxu1 %vm7779_vm2, %v12153_v2 }
 0x1b8   : > { %v1762_v60 = vadd.f32 %v1761_v10, %v1531_v25  ;;  %6650 = vmatpush2.msk.msra.mxu1 %vm694_vm0, %v7598_v58  ;;  %v6238_v45 = vpop.f32.mrf.mxu1  ;;  %3019 = vmatprep.mubr.f32.mxu0 %v6960_v46  ;;  %vm12625_vm0 = vcmp.lt.s32.totalorder %v12624_v41, 520  ;;  %v6970_v61 = vunpack.i.h.bf16 %v10699_v13  ;;  %v6967_v33 = vunpack.i.l.bf16 %v10699_v13  ;;  %v12629_v10 = vld [vmem:[#allocation137_spill] sm:$0xff]  ;;  %v7580_v46 = vpop.eup %7579  ;;  %v12633_v58 = vld [vmem:[#allocation84_spill] sm:$0xff] }
 0x1b9   : > { %v1533_v48 = vpop.f32.mrf.mxu0  ;;  %v10711_v38 = vpop.trf.xlu1  ;;  %6362 = vmatmul.mubr.f32.gmra.mxu1 %v2088_v17  ;;  %3900 = vmatprep.subr.mxu0 %v12153_v2  ;;  %v7269_v0 = vpack.i.bf16 %v12629_v10, %v12628_v31  ;;  %v12632_v13 = vld [vmem:[#allocation13_spill] sm:$0xff]  ;;  %7585 = vrcp.f32 %v12633_v58  ;;  %v7601_v45 = vld [vmem:[%s7851_s14 + $0xa8] sm:$0xff]  ;;  %vm1996_vm9 = vcmp.gt.f32.partialorder %v12633_v58, 0.0 }
 0x1ba   : > { %v2089_v56 = vmul.f32 %v2056_v11, %v1762_v60  ;;  %3020 = vmatmul.mubr.f32.gmra.mxu0 %v6957_v30  ;;  %v1771_v44 = vpop.f32.mrf.mxu1  ;;  %6619 = vmatprep.subr.mxu1 %v12153_v2  ;;  %v12631_v30 = vld [vmem:[#allocation177_spill] sm:$0xff]  ;;  %7587 = vrcp.f32 %v10559_v47  ;;  %v600_v47 = vld [vmem:[%s7851_s14 + $0x100] sm:$0xff] }
 0x1bb   : > { %v1536_v54 = vpop.f32.mrf.mxu0  ;;  %v10717_v4 = vpop.trf.xlu0  ;;  %3901 = vmatpush1.msra.mxu0 %v7780_v24  ;;  %6364 = vmatprep.mubr.msk.f32.mxu1 %vm7779_vm2, %v12153_v2  ;;  %v7271_v48 = vpack.i.bf16 %v12632_v13, %v12631_v30 }
 0x1bc   : > { %v1767_v50 = vadd.f32 %v1766_v5, %v1536_v54  ;;  %6651 = vmatpush2.msk.msra.mxu1 %vm12625_vm0, %v7599_v12  ;;  %v6241_v15 = vpop.f32.mrf.mxu1  ;;  %3024 = vmatprep.mubr.f32.mxu0 %v6965_v9  ;;  %v6975_v49 = vunpack.i.h.bf16 %v10717_v4  ;;  %v6972_v21 = vunpack.i.l.bf16 %v10717_v4  ;;  %v2059_v54 = vsel %vm1993_vm5, %v7580_v46, 0.0  ;;  %v12640_v46 = vld [vmem:[#allocation73_spill] sm:$0xff] }
 0x1bd   : > { %v1538_v39 = vpop.f32.mrf.mxu0  ;;  %v10730_v19 = vpop.trf.xlu1  ;;  %6365 = vmatmul.mubr.f32.gmra.mxu1 %v2089_v56  ;;  %3902 = vmatprep.subr.mxu0 %v12153_v2 }
 0x1be   : > { %v2090_v23 = vmul.f32 %v2057_v7, %v1767_v50  ;;  %3025 = vmatmul.mubr.f32.gmra.mxu0 %v6962_v3  ;;  %v1776_v37 = vpop.f32.mrf.mxu1  ;;  %6620 = vmatprep.subr.mxu1 %v12153_v2  ;;  %v7582_v3 = vpop.eup %7581 }
 0x1bf   : > { %v1541_v26 = vpop.f32.mrf.mxu0  ;;  %v10735_v42 = vpop.trf.xlu0  ;;  %3903 = vmatpush1.msra.mxu0 %v7780_v24  ;;  %7268 = vxpose.xlu0.b32.start [1/16] %v7267_v57, 128  ;;  %v12646_v57 = vld [vmem:[#allocation63_spill] sm:$0xff] }
 0x1c0   : > { %v1772_v53 = vadd.f32 %v1771_v44, %v1541_v26  ;;  %6367 = vmatprep.mubr.msk.f32.mxu1 %vm7779_vm2, %v12153_v2  ;;  %v6244_v34 = vpop.f32.mrf.mxu1  ;;  %3029 = vmatprep.mubr.f32.mxu0 %v6970_v61  ;;  %v6980_v9 = vunpack.i.h.bf16 %v10735_v42  ;;  %v6977_v41 = vunpack.i.l.bf16 %v10735_v42  ;;  %vm12647_vm8 = vcmp.lt.s32.totalorder %v12646_v57, 520 }
 0x1c1   : > { %v1543_v36 = vpop.f32.mrf.mxu0  ;;  %v10745_v27 = vpop.trf.xlu1  ;;  %6368 = vmatmul.mubr.f32.gmra.mxu1 %v2090_v23  ;;  %3904 = vmatprep.subr.mxu0 %v12153_v2  ;;  %v12637_v23 = vld [vmem:[#allocation19_spill] sm:$0xff] }
 0x1c2   : > { %v2091_v63 = vmul.f32 %v2058_v22, %v1772_v53  ;;  %6652 = vmatpush2.msk.msra.mxu1 %vm692_vm14, %v7600_v43  ;;  %v1781_v17 = vpop.f32.mrf.mxu1  ;;  %3905 = vmatpush1.msra.mxu0 %v7780_v24  ;;  %vm1994_vm14 = vcmp.gt.f32.partialorder %v12623_v51, 0.0  ;;  %v7273_v26 = vpack.i.bf16 %v12637_v23, %v12636_v28  ;;  %v7584_v36 = vpop.eup %7583  ;;  %v12639_v43 = vld [vmem:[#allocation141_spill] sm:$0xff] }
 0x1c3   : > { %v1546_v40 = vpop.f32.mrf.mxu0  ;;  %v10754_v25 = vpop.trf.xlu0  ;;  %6621 = vmatprep.subr.mxu1 %v12153_v2  ;;  %3030 = vmatmul.mubr.f32.gmra.mxu0 %v6967_v33  ;;  %v2060_v16 = vsel %vm1994_vm14, %v7582_v3, 0.0  ;;  %v7604_v3 = vld [vmem:[%s7851_s14 + $0x90] sm:$0xff] }
 0x1c4   : > { %v1777_v20 = vadd.f32 %v1776_v37, %v1546_v40  ;;  %7270 = vxpose.xlu0.b32.cont [2/16] %v7269_v0, 128  ;;  %v6247_v5 = vpop.f32.mrf.mxu1  ;;  %6370 = vmatprep.mubr.msk.f32.mxu1 %vm7779_vm2, %v12153_v2  ;;  %v6985_v42 = vunpack.i.h.bf16 %v10754_v25  ;;  %v6982_v10 = vunpack.i.l.bf16 %v10754_v25  ;;  %v7603_v25 = vld [vmem:[%s7851_s14 + $0x98] sm:$0xff]  ;;  %v12648_v28 = vld [vmem:[#allocation189_spill] sm:$0xff] }
 0x1c5   : > { %v1548_v60 = vpop.f32.mrf.mxu0  ;;  %v10761_v11 = vpop.trf.xlu1  ;;  %6653 = vmatpush2.msk.msra.mxu1 %vm691_vm6, %v7601_v45  ;;  %3034 = vmatprep.mubr.f32.mxu0 %v6975_v49  ;;  %vm1995_vm6 = vcmp.gt.f32.partialorder %v10538_v6, 0.0  ;;  %v12649_v23 = vld [vmem:[#allocation145_spill] sm:$0xff] }
 0x1c6   : > { %6371 = vmatmul.mubr.f32.gmra.mxu1 %v2091_v63  ;;  %v1786_v50 = vpop.f32.mrf.mxu1  ;;  %v2092_v4 = vmul.f32 %v2059_v54, %v1777_v20  ;;  %3906 = vmatprep.subr.mxu0 %v12153_v2  ;;  %v2061_v40 = vsel %vm1995_vm6, %v7584_v36, 0.0  ;;  %v12638_v63 = vld [vmem:[#allocation185_spill] sm:$0xff]  ;;  %v7586_v13 = vpop.eup %7585  ;;  %v12643_v54 = vld [vmem:[#allocation27_spill] sm:$0xff] }
 0x1c7   : > { %v1551_v56 = vpop.f32.mrf.mxu0  ;;  %v10774_v44 = vpop.trf.xlu0  ;;  %6622 = vmatprep.subr.mxu1 %v12153_v2  ;;  %3907 = vmatpush1.msra.mxu0 %v7780_v24  ;;  %v7275_v35 = vpack.i.bf16 %v12639_v43, %v12638_v63  ;;  %v12655_v63 = vld [vmem:[#allocation150_spill] sm:$0xff] }
 0x1c8   : > { %v1782_v39 = vadd.f32 %v1781_v17, %v1551_v56  ;;  %7272 = vxpose.xlu0.b32.cont [3/16] %v7271_v48, 128  ;;  %v6250_v32 = vpop.f32.mrf.mxu1  ;;  %3035 = vmatmul.mubr.f32.gmra.mxu0 %v6972_v21  ;;  %v6990_v20 = vunpack.i.h.bf16 %v10774_v44  ;;  %v6987_v45 = vunpack.i.l.bf16 %v10774_v44  ;;  %v12642_v56 = vld [vmem:[#allocation88_spill] sm:$0xff] }
 0x1c9   : > { %v1553_v7 = vpop.f32.mrf.mxu0  ;;  %v10779_v12 = vpop.trf.xlu1  ;;  %3908 = vmatprep.subr.mxu0 %v12153_v2  ;;  %6373 = vmatprep.mubr.msk.f32.mxu1 %vm7779_vm2, %v12153_v2 }
 0x1ca   : > { %6654 = vmatpush2.msk.msra.mxu1 %vm690_vm10, %v7602_v29  ;;  %v1791_v61 = vpop.f32.mrf.mxu1  ;;  %v2093_v37 = vmul.f32 %v2060_v16, %v1782_v39  ;;  %3039 = vmatprep.mubr.f32.mxu0 %v6980_v9  ;;  %vm12641_vm10 = vcmp.lt.s32.totalorder %v12640_v46, 520  ;;  %v7277_v9 = vpack.i.bf16 %v12643_v54, %v12642_v56  ;;  %v7588_v32 = vpop.eup %7587  ;;  %v7605_v29 = vld [vmem:[%s7851_s14 + $0x88] sm:$0xff]  ;;  %v12656_v46 = vld [vmem:[#allocation101_spill] sm:$0xff]  ;;  %v12659_v56 = vld [vmem:[#allocation155_spill] sm:$0xff] }
 0x1cb   : > { %v1556_v15 = vpop.f32.mrf.mxu0  ;;  %v10793_v53 = vpop.trf.xlu0  ;;  %6374 = vmatmul.mubr.f32.gmra.mxu1 %v2092_v4  ;;  %3909 = vmatpush2.msra.mxu0 %v7780_v24  ;;  %v12644_v4 = vld [vmem:[#allocation6_spill] sm:$0xff] }
 0x1cc   : > { %v1787_v33 = vadd.f32 %v1786_v50, %v1556_v15  ;;  %6623 = vmatprep.subr.mxu1 %v12153_v2  ;;  %v6253_v34 = vpop.f32.mrf.mxu1  ;;  %3040 = vmatmul.mubr.f32.gmra.mxu0 %v6977_v41  ;;  %v2062_v50 = vsel %vm1996_vm9, %v7586_v13, 0.0  ;;  %vm12645_vm11 = vcmp.lt.s32.totalorder %v12644_v4, 520  ;;  %v6995_v39 = vunpack.i.h.bf16 %v10793_v53 }
 0x1cd   : > { %v1558_v51 = vpop.f32.mrf.mxu0  ;;  %v10799_v31 = vpop.trf.xlu1  ;;  %3910 = vmatprep.subr.mxu0 %v12153_v2  ;;  %7274 = vxpose.xlu0.b32.cont [4/16] %v7273_v26, 128  ;;  %v6992_v41 = vunpack.i.l.bf16 %v10793_v53  ;;  %v7279_v26 = vpack.i.bf16 %v12649_v23, %v12648_v28  ;;  %v12665_v28 = vld [vmem:[#allocation70_spill] sm:$0xff]  ;;  %v12669_v34 = vld [vmem:[#allocation163_spill] sm:$0xff] }
 0x1ce   : > { %6376 = vmatprep.mubr.msk.f32.mxu1 %vm7779_vm2, %v12153_v2  ;;  %v1796_v6 = vpop.f32.mrf.mxu1  ;;  %3044 = vmatprep.mubr.f32.mxu0 %v6985_v42  ;;  %v2094_v17 = vmul.f32 %v2061_v40, %v1787_v33  ;;  %v12651_v42 = vld [vmem:[#allocation33_spill] sm:$0xff]  ;;  %v7606_v33 = vld [vmem:[%s7851_s14 + $0x80] sm:$0xff]  ;;  %v12654_v40 = vld [vmem:[#allocation192_spill] sm:$0xff] }
 0x1cf   : > { %v1561_v0 = vpop.f32.mrf.mxu0  ;;  %v10805_v22 = vpop.trf.xlu0  ;;  %6377 = vmatmul.mubr.f32.gmra.mxu1 %v2093_v37  ;;  %3911 = vmatpush2.msra.mxu0 %v7780_v24  ;;  %v12650_v37 = vld [vmem:[#allocation95_spill] sm:$0xff]  ;;  %v7283_v43 = vpack.i.bf16 %v12655_v63, %v12654_v40  ;;  %v12666_v23 = vld [vmem:[#allocation138_spill] sm:$0xff] }
 0x1d0   : > { %6655 = vmatpush2.msk.msra.mxu1 %vm12641_vm10, %v7603_v25  ;;  %v6256_v60 = vpop.f32.mrf.mxu1  ;;  %3045 = vmatmul.mubr.f32.gmra.mxu0 %v6982_v10  ;;  %v1792_v48 = vadd.f32 %v1791_v61, %v1561_v0  ;;  %v2063_v61 = vsel %vm1997_vm1, %v7588_v32, 0.0  ;;  %v7281_v51 = vpack.i.bf16 %v12651_v42, %v12650_v37  ;;  %v7000_v36 = vunpack.i.h.bf16 %v10805_v22 }
 0x1d1   : > { %v1563_v49 = vpop.f32.mrf.mxu0  ;;  %v10814_v5 = vpop.trf.xlu1  ;;  %3912 = vmatprep.subr.mxu0 %v12153_v2  ;;  %6624 = vmatprep.subr.mxu1 %v12153_v2  ;;  %v6997_v10 = vunpack.i.l.bf16 %v10805_v22 }
 0x1d2   : > { %3913 = vmatpush2.msra.mxu0 %v7780_v24  ;;  %7276 = vxpose.xlu0.b32.cont [5/16] %v7275_v35, 128  ;;  %v2095_v44 = vmul.f32 %v2062_v50, %v1792_v48 }
 0x1d3   : > { %v1566_v30 = vpop.f32.mrf.mxu0  ;;  %v10820_v21 = vpop.trf.xlu0  ;;  %6379 = vmatprep.mubr.msk.f32.mxu1 %vm7779_vm2, %v12153_v2  ;;  %3049 = vmatprep.mubr.f32.mxu0 %v6990_v20  ;;  %v12657_v20 = vld [vmem:[#allocation41_spill] sm:$0xff] }
 0x1d4   : > { %6380 = vmatmul.mubr.f32.gmra.mxu1 %v2094_v17  ;;  %3914 = vmatprep.subr.mxu0 %v12153_v2  ;;  %v1797_v15 = vadd.f32 %v1796_v6, %v1566_v30  ;;  %v7005_v35 = vunpack.i.h.bf16 %v10820_v21  ;;  %v7002_v22 = vunpack.i.l.bf16 %v10820_v21  ;;  %v7285_v60 = vpack.i.bf16 %v12657_v20, %v12656_v46  ;;  %v12673_v46 = vld [vmem:[#allocation81_spill] sm:$0xff]  ;;  %v12674_v20 = vld [vmem:[#allocation20_spill] sm:$0xff] }
 0x1d5   : > { %v1568_v59 = vpop.f32.mrf.mxu0  ;;  %v10827_v58 = vpop.trf.xlu1  ;;  %6656 = vmatpush2.msk.msra.mxu1 %vm12645_vm11, %v7604_v3  ;;  %3915 = vmatpush2.msra.mxu0 %v7780_v24 }
 0x1d6   : > { %6625 = vmatprep.subr.mxu1 %v12153_v2  ;;  %3050 = vmatmul.mubr.f32.gmra.mxu0 %v6987_v45  ;;  %v2096_v53 = vmul.f32 %v2063_v61, %v1797_v15  ;;  %v12658_v59 = vld [vmem:[#allocation197_spill] sm:$0xff] }
 0x1d7   : > { %v10837_v7 = vpop.trf.xlu0  ;;  %3916 = vmatprep.subr.mxu0 %v12153_v2  ;;  %7278 = vxpose.xlu0.b32.cont [6/16] %v7277_v9, 128  ;;  %v7287_v54 = vpack.i.bf16 %v12659_v56, %v12658_v59  ;;  %v12662_v15 = vld [vmem:[#allocation121_spill] sm:$0xff]  ;;  %v12676_v59 = vld [vmem:[#allocation168_spill] sm:$0xff] }
 0x1d8   : > { %3917 = vmatpush2.msra.mxu0 %v7780_v24  ;;  %6382 = vmatprep.mubr.msk.f32.mxu1 %vm7779_vm2, %v12153_v2  ;;  %v7010_v17 = vunpack.i.h.bf16 %v10837_v7  ;;  %v7007_v13 = vunpack.i.l.bf16 %v10837_v7  ;;  %v12661_v7 = vld [vmem:[#allocation47_spill] sm:$0xff] }
 0x1d9   : > { %v10842_v16 = vpop.trf.xlu1  ;;  %6657 = vmatpush2.msk.msra.mxu1 %vm12647_vm8, %v7605_v29  ;;  %3054 = vmatprep.mubr.f32.mxu0 %v6995_v39  ;;  %v12660_v39 = vld [vmem:[#allocation111_spill] sm:$0xff]  ;;  %v12663_v29 = vld [vmem:[#allocation132_spill] sm:$0xff] }
 0x1da   : > { %6383 = vmatmul.mubr.f32.gmra.mxu1 %v2095_v44  ;;  %3918 = vmatprep.subr.mxu0 %v12153_v2  ;;  %v7289_v32 = vpack.i.bf16 %v12661_v7, %v12660_v39  ;;  %v12664_v57 = vpack.i.bf16 %v12662_v15, %v12663_v29 }
 0x1db   : > { %3055 = vmatmul.mubr.f32.gmra.mxu0 %v6992_v41  ;;  %6626 = vmatprep.subr.mxu1 %v12153_v2 }
 0x1dc   : > { %3919 = vmatpush2.msra.mxu0 %v7780_v24  ;;  %7280 = vxpose.xlu0.b32.cont [7/16] %v7279_v26, 128  ;;  %v7463_v26 = vpack.i.bf16 %v12666_v23, %v12665_v28  ;;  %v12682_v28 = vld [vmem:[#allocation28_spill] sm:$0xff] }
 0x1dd   : > { %3920 = vmatprep.subr.mxu0 %v12153_v2  ;;  %6385 = vmatprep.mubr.msk.f32.mxu1 %vm7779_vm2, %v12153_v2  ;;  %vm2735_vm2 = vcmask 64512  }
 0x1de   : > { %3921 = vmatpush2.msra.mxu0 %v7780_v24  ;;  %6386 = vmatmul.mubr.f32.gmra.mxu1 %v2096_v53 }
 0x1df   : > { %3922 = vmatprep.subr.mxu0 %v12153_v2  ;;  %6658 = vmatpush2.msk.msra.mxu1 %vm686_vm7, %v7606_v33  ;;  %vm4424_vm7 = vcmask 7168  }
 0x1e0   : > { %3923 = vmatpush2.msra.mxu0 %v7780_v24  ;;  %6388 = vmatprep.subr.msk.mxu1 %vm702_vm4, %v600_v47 }
 0x1e1   : > { %3924 = vmatprep.subr.mxu0 %v12153_v2  ;;  %v7043_v6 = vpop.trf.xlu0  ;;  %7282 = vxpose.xlu0.b32.cont [8/16] %v7281_v51, 128  ;;  %v12668_v51 = vld [vmem:[#allocation160_spill] sm:$0xff] }
 0x1e2   : > { %3925 = vmatpush2.msra.mxu0 %v7780_v24  ;;  %3059 = vmatprep.mubr.f32.mxu1 %v7000_v36  ;;  %v7044_v21 = vunpack.i.l.bf16 %v7043_v6  ;;  %v7047_v9 = vunpack.i.h.bf16 %v7043_v6 }
 0x1e3   : > { %3926 = vmatprep.subr.mxu0 %v12153_v2  ;;  %3060 = vmatmul.mubr.f32.vlgmr.msra.gmra.mxu1 %v6997_v10  ;;  %v12670_v10 = vld [vmem:[#allocation11_spill] sm:$0xff] }
 0x1e4   : > { %3927 = vmatpush2.msra.mxu0 %v7780_v24  ;;  %v7187_v49 = vpop.trf.xlu1  ;;  %6389 = vmatpush3.msk.msra.mxu1 %vm702_vm4, %v600_v47  ;;  %v7465_v0 = vpack.i.bf16 %v12670_v10, %v12669_v34  ;;  %v12685_v10 = vld [vmem:[#allocation92_spill] sm:$0xff]  ;;  %vm4462_vm4 = vcmask 3072  }
 0x1e5   : > { %3928 = vmatprep.subr.mxu0 %v12153_v2  ;;  %v7048_v25 = vpop.trf.xlu0  ;;  %7284 = vxpose.xlu0.b32.cont [9/16] %v7283_v43, 128  ;;  %v7188_v30 = vunpack.i.l.bf16 %v7187_v49  ;;  %v7191_v3 = vunpack.i.h.bf16 %v7187_v49  ;;  %v12672_v49 = vld [vmem:[#allocation55_spill] sm:$0xff] }
 0x1e6   : > { %3929 = vmatpush2.msra.mxu0 %v7780_v24  ;;  %3064 = vmatprep.mubr.f32.mxu1 %v7005_v35  ;;  %v7049_v4 = vunpack.i.l.bf16 %v7048_v25  ;;  %v7052_v61 = vunpack.i.h.bf16 %v7048_v25 }
 0x1e7   : > { %3930 = vmatprep.subr.mxu0 %v12153_v2  ;;  %3065 = vmatmul.mubr.f32.gmra.mxu1 %v7002_v22  ;;  %v12671_v22 = vld [vmem:[#allocation117_spill] sm:$0xff] }
 0x1e8   : > { %3931 = vmatpush2.msra.mxu0 %v7780_v24  ;;  %v7192_v48 = vpop.trf.xlu1  ;;  %3069 = vmatprep.mubr.f32.mxu1 %v7010_v17  ;;  %v7293_v17 = vpack.i.bf16 %v12672_v49, %v12671_v22  ;;  %v7091_v22 = vunpack.i.l.bf16 %v10638_v1 }
 0x1e9   : > { %3932 = vmatprep.subr.mxu0 %v12153_v2  ;;  %v7053_v45 = vpop.trf.xlu0  ;;  %7286 = vxpose.xlu0.b32.cont [10/16] %v7285_v60, 128  ;;  %v7193_v41 = vunpack.i.l.bf16 %v7192_v48  ;;  %v7196_v47 = vunpack.i.h.bf16 %v7192_v48  ;;  %v7467_v60 = vpack.i.bf16 %v12674_v20, %v12673_v46  ;;  %v12688_v46 = vld [vmem:[#allocation193_spill] sm:$0xff]  ;;  %v12689_v20 = vld [vmem:[#allocation151_spill] sm:$0xff] }
 0x1ea   : > { %3933 = vmatpush2.msra.mxu0 %v7780_v24  ;;  %3940 = vmatprep.mubr.f32.mxu0 %v7188_v30  ;;  %v7054_v37 = vunpack.i.l.bf16 %v7053_v45  ;;  %v7057_v6 = vunpack.i.h.bf16 %v7053_v45  ;;  %v12675_v45 = vld [vmem:[#allocation204_spill] sm:$0xff] }
 0x1eb   : > { %3934 = vmatprep.subr.mxu0 %v12153_v2  ;;  %3070 = vmatmul.mubr.f32.gmra.mxu1 %v7007_v13  ;;  %v7295_v56 = vpack.i.bf16 %v12676_v59, %v12675_v45  ;;  %v12690_v45 = vld [vmem:[#allocation102_spill] sm:$0xff] }
 0x1ec   : > { %3935 = vmatpush2.msra.mxu0 %v7780_v24  ;;  %v7197_v50 = vpop.trf.xlu1  ;;  %3074 = vmatprep.mubr.f32.mxu1 %v7044_v21  ;;  %v12691_v59 = vld [vmem:[#allocation42_spill] sm:$0xff] }
 0x1ed   : > { %3936 = vmatprep.subr.mxu0 %v12153_v2  ;;  %v7058_v44 = vpop.trf.xlu0  ;;  %7288 = vxpose.xlu0.b32.cont [11/16] %v7287_v54, 128  ;;  %v7198_v33 = vunpack.i.l.bf16 %v7197_v50  ;;  %v7201_v63 = vunpack.i.h.bf16 %v7197_v50  ;;  %v12678_v50 = vld [vmem:[#allocation142_spill] sm:$0xff] }
 0x1ee   : > { %3937 = vmatpush2.msra.mxu0 %v7780_v24  ;;  %7462 = vxpose.xlu1.b32.start [1/16] (narrow) %v12664_v57, 48  ;;  %v7059_v43 = vunpack.i.l.bf16 %v7058_v44  ;;  %v7062_v30 = vunpack.i.h.bf16 %v7058_v44  ;;  %v12681_v57 = vld [vmem:[#allocation89_spill] sm:$0xff] }
 0x1ef   : > { %3938 = vmatprep.subr.mxu0 %v12153_v2  ;;  %3075 = vmatmul.mubr.f32.gmra.mxu1 %v7047_v9  ;;  %v12667_v2 = vld [vmem:[#allocation201_spill] sm:$0xff]  ;;  %v12677_v9 = vld [vmem:[#allocation186_spill] sm:$0xff]  ;;  %v7471_v23 = vpack.i.bf16 %v12682_v28, %v12681_v57  ;;  %v7126_v28 = vunpack.i.l.bf16 %v10761_v11 }
 0x1f0   : > { %3939 = vmatpush2.msra.mxu0 %v7780_v24  ;;  %v7202_v53 = vpop.trf.xlu1  ;;  %3079 = vmatprep.mubr.f32.mxu1 %v7049_v4  ;;  %v7291_v36 = vpack.i.bf16 %v12668_v51, %v12667_v2  ;;  %v12684_v2 = vld [vmem:[#allocation146_spill] sm:$0xff] }
 0x1f1   : > { %3941 = vmatmul.mubr.f32.vlgmr.msra.gmra.mxu0 %v7191_v3  ;;  %v7063_v42 = vpop.trf.xlu0  ;;  %7290 = vxpose.xlu0.b32.cont [12/16] %v7289_v32, 128  ;;  %v7203_v25 = vunpack.i.l.bf16 %v7202_v53  ;;  %v7206_v48 = vunpack.i.h.bf16 %v7202_v53  ;;  %v7469_v3 = vpack.i.bf16 %v12678_v50, %v12677_v9  ;;  %v12679_v32 = vld [vmem:[#allocation130_spill] sm:$0xff]  ;;  %v7111_v9 = vunpack.i.l.bf16 %v10711_v38 }
 0x1f2   : > { %3945 = vmatprep.mubr.f32.mxu0 %v7193_v41  ;;  %6447 = vmatprep.subr.mxu1 %v7780_v24  ;;  %v7064_v21 = vunpack.i.l.bf16 %v7063_v42  ;;  %v7067_v4 = vunpack.i.h.bf16 %v7063_v42  ;;  %v12680_v41 = vld [vmem:[#allocation61_spill] sm:$0xff]  ;;  %v12683_v42 = vld [vmem:[#allocation190_spill] sm:$0xff] }
 0x1f3   : > { %7464 = vxpose.xlu1.b32.cont [2/16] (narrow) %v7463_v26, 48  ;;  %3080 = vmatmul.mubr.f32.gmra.mxu1 %v7052_v61  ;;  %v7297_v15 = vpack.i.bf16 %v12680_v41, %v12679_v32  ;;  %v7473_v51 = vpack.i.bf16 %v12684_v2, %v12683_v42  ;;  %v7131_v2 = vunpack.i.l.bf16 %v10779_v12 }
 0x1f4   : > { %v7207_v40 = vpop.trf.xlu1  ;;  %3084 = vmatprep.mubr.f32.mxu1 %v7054_v37  ;;  %v7076_v37 = vunpack.i.l.bf16 %v10586_v14 }
 0x1f5   : > { %3946 = vmatmul.mubr.f32.gmra.mxu0 %v7196_v47  ;;  %v7068_v35 = vpop.trf.xlu0  ;;  %7292 = vxpose.xlu0.b32.cont [13/16] %v7291_v36, 128  ;;  %v7208_v54 = vunpack.i.l.bf16 %v7207_v40  ;;  %v7211_v44 = vunpack.i.h.bf16 %v7207_v40  ;;  %v12686_v40 = vld [vmem:[#allocation96_spill] sm:$0xff] }
 0x1f6   : > { %3950 = vmatprep.mubr.f32.mxu0 %v7198_v33  ;;  %v7069_v7 = vunpack.i.l.bf16 %v7068_v35  ;;  %v7072_v26 = vunpack.i.h.bf16 %v7068_v35  ;;  %v7081_v33 = vunpack.i.l.bf16 %v10604_v52 }
 0x1f7   : > { %7466 = vxpose.xlu1.b32.cont [3/16] (narrow) %v7465_v0, 48  ;;  %3085 = vmatmul.mubr.f32.gmra.mxu1 %v7057_v6  ;;  %v7086_v0 = vunpack.i.l.bf16 %v10620_v55 }
 0x1f8   : > { %v7212_v13 = vpop.trf.xlu1  ;;  %3089 = vmatprep.mubr.f32.mxu1 %v7059_v43 }
 0x1f9   : > { %3951 = vmatmul.mubr.f32.gmra.mxu0 %v7201_v63  ;;  %7294 = vxpose.xlu0.b32.cont [14/16] %v7293_v17, 128  ;;  %v7213_v29 = vunpack.i.l.bf16 %v7212_v13  ;;  %v7216_v53 = vunpack.i.h.bf16 %v7212_v13  ;;  %v12687_v63 = vld [vmem:[#allocation34_spill] sm:$0xff]  ;;  %v7096_v17 = vunpack.i.l.bf16 %v10658_v18 }
 0x1fa   : > { %3955 = vmatprep.mubr.f32.mxu0 %v7203_v25  ;;  %v7475_v43 = vpack.i.bf16 %v12687_v63, %v12686_v40 }
 0x1fb   : > { %7468 = vxpose.xlu1.b32.cont [4/16] (narrow) %v7467_v60, 48  ;;  %3090 = vmatmul.mubr.f32.gmra.mxu1 %v7062_v30  ;;  %v7477_v60 = vpack.i.bf16 %v12689_v20, %v12688_v46  ;;  %v12698_v20 = vld [vmem:[#allocation118_spill] sm:$0xff] }
 0x1fc   : > { %v7217_v39 = vpop.trf.xlu1  ;;  %3094 = vmatprep.mubr.f32.mxu1 %v7064_v21 }
 0x1fd   : > { %3956 = vmatmul.mubr.f32.gmra.mxu0 %v7206_v48  ;;  %7296 = vxpose.xlu0.b32.cont [15/16] %v7295_v56, 128  ;;  %v7218_v47 = vunpack.i.l.bf16 %v7217_v39  ;;  %v7221_v34 = vunpack.i.h.bf16 %v7217_v39  ;;  %v7106_v48 = vunpack.i.l.bf16 %v10693_v8  ;;  %v7479_v56 = vpack.i.bf16 %v12691_v59, %v12690_v45  ;;  %v12692_v39 = vld [vmem:[#allocation198_spill] sm:$0xff] }
 0x1fe   : > { %3960 = vmatprep.mubr.f32.mxu0 %v7208_v54 }
 0x1ff   : > { %7470 = vxpose.xlu1.b32.cont [5/16] (narrow) %v7469_v3, 48  ;;  %3095 = vmatmul.mubr.f32.gmra.mxu1 %v7067_v4  ;;  %v7116_v3 = vunpack.i.l.bf16 %v10730_v19 }
 0x200   : > { %v7222_v61 = vpop.trf.xlu1  ;;  %3099 = vmatprep.mubr.f32.mxu1 %v7069_v7 }
 0x201   : > { %3961 = vmatmul.mubr.f32.gmra.mxu0 %v7211_v44  ;;  %7298 = vxpose.xlu0.b32.end [16/16] %v7297_v15, 128  ;;  %v7223_v6 = vunpack.i.l.bf16 %v7222_v61  ;;  %v7226_v49 = vunpack.i.h.bf16 %v7222_v61  ;;  %v12693_v44 = vld [vmem:[#allocation156_spill] sm:$0xff]  ;;  %v7121_v15 = vunpack.i.l.bf16 %v10745_v27 }
 0x202   : > { %3965 = vmatprep.mubr.f32.mxu0 %v7213_v29  ;;  %v7481_v7 = vpack.i.bf16 %v12693_v44, %v12692_v39  ;;  %v12694_v61 = vld [vmem:[#allocation112_spill] sm:$0xff]  ;;  %v12701_v39 = vld [vmem:[#allocation169_spill] sm:$0xff] }
 0x203   : > { %7472 = vxpose.xlu1.b32.cont [6/16] (narrow) %v7471_v23, 48  ;;  %3100 = vmatmul.mubr.f32.gmra.mxu1 %v7072_v26 }
 0x204   : > { %v7227_v36 = vpop.trf.xlu1  ;;  %6390 = vmatprep.mubr.msk.f32.mxu1 %vm2735_vm2, %v7076_v37 }
 0x205   : > { %3966 = vmatmul.mubr.f32.gmra.mxu0 %v7216_v53  ;;  %3730 = vxpose.xlu0.b32.start.end [1/1] (short) (narrow) %v12685_v10, 48  ;;  %v7228_v25 = vunpack.i.l.bf16 %v7227_v36  ;;  %v7231_v13 = vunpack.i.h.bf16 %v7227_v36  ;;  %v12695_v53 = vld [vmem:[#allocation48_spill] sm:$0xff] }
 0x206   : > { %3970 = vmatprep.mubr.f32.mxu0 %v7218_v47  ;;  %v7483_v47 = vpack.i.bf16 %v12695_v53, %v12694_v61  ;;  %v12702_v61 = vld [vmem:[#allocation131_spill] sm:$0xff]  ;;  %v12703_v53 = vld [vmem:[#allocation62_spill] sm:$0xff] }
 0x207   : > { %7474 = vxpose.xlu1.b32.cont [7/16] (narrow) %v7473_v51, 48  ;;  %6391 = vmatmul.mubr.msk.f32.vlgmr.msra.gmra.mxu1 %vm2735_vm2, %v7081_v33  ;;  %v7136_v33 = vunpack.i.l.bf16 %v10799_v31 }
 0x208   : > { %v7232_v35 = vpop.trf.xlu1  ;;  %6448 = vmatpush3.msra.mxu1 %v7780_v24  ;;  %6393 = vmatprep.mubr.msk.f32.mxu1 %vm2735_vm2, %v7086_v0  ;;  %v7101_v24 = vunpack.i.l.bf16 %v10676_v62  ;;  %v12696_v0 = vld [vmem:[#allocation202_spill] sm:$0xff] }
 0x209   : > { %3971 = vmatmul.mubr.f32.gmra.mxu0 %v7221_v34  ;;  %v7233_v21 = vunpack.i.l.bf16 %v7232_v35  ;;  %v7236_v50 = vunpack.i.h.bf16 %v7232_v35  ;;  %v7141_v35 = vunpack.i.l.bf16 %v10814_v5 }
 0x20a   : > { %3975 = vmatprep.mubr.f32.mxu0 %v7223_v6  ;;  %v2179_v41 = vpop.f32.mrf.mxu1  ;;  %v12697_v6 = vld [vmem:[#allocation161_spill] sm:$0xff] }
 0x20b   : > { %7476 = vxpose.xlu1.b32.cont [8/16] (narrow) %v7475_v43, 48  ;;  %6394 = vmatmul.mubr.msk.f32.gmra.mxu1 %vm2735_vm2, %v7091_v22  ;;  %v2343_v57 = vmax.f32 %v2179_v41, 0.0  ;;  %v7485_v40 = vpack.i.bf16 %v12697_v6, %v12696_v0  ;;  %v7084_v41 = vunpack.i.h.bf16 %v10604_v52  ;;  %v7104_v6 = vunpack.i.h.bf16 %v10676_v62 }
 0x20c   : > { %v7237_v30 = vpop.trf.xlu1  ;;  %6396 = vmatprep.mubr.msk.f32.mxu1 %vm2735_vm2, %v7096_v17  ;;  %v6291_v26 = vpop.f32.mrf.mxu1  ;;  %v7146_v17 = vunpack.i.l.bf16 %v10827_v58  ;;  %v7114_v62 = vunpack.i.h.bf16 %v10711_v38 }
 0x20d   : > { %3976 = vmatmul.mubr.f32.gmra.mxu0 %v7226_v49  ;;  %v7238_v4 = vunpack.i.l.bf16 %v7237_v30  ;;  %v7241_v29 = vunpack.i.h.bf16 %v7237_v30  ;;  %2376 = vst [vmem:[%s7858_s18] sm:$0xff] %v2343_v57  ;;  %v7089_v57 = vunpack.i.h.bf16 %v10620_v55 }
 0x20e   : > { %3980 = vmatprep.mubr.f32.mxu0 %v7228_v25 }
 0x20f   : > { %7478 = vxpose.xlu1.b32.cont [9/16] (narrow) %v7477_v60, 48  ;;  %6397 = vmatmul.mubr.msk.f32.gmra.mxu1 %vm2735_vm2, %v7101_v24  ;;  %v12699_v60 = vld [vmem:[#allocation56_spill] sm:$0xff] }
 0x210   : > { %v7242_v54 = vpop.trf.xlu1  ;;  %6399 = vmatprep.mubr.msk.f32.mxu1 %vm2735_vm2, %v7106_v48  ;;  %v7487_v30 = vpack.i.bf16 %v12699_v60, %v12698_v20 }
 0x211   : > { %3981 = vmatmul.mubr.f32.gmra.mxu0 %v7231_v13  ;;  %v7243_v23 = vunpack.i.l.bf16 %v7242_v54  ;;  %v2184_v42 = vpop.f32.mrf.mxu1  ;;  %v7246_v51 = vunpack.i.h.bf16 %v7242_v54  ;;  %v7079_v54 = vunpack.i.h.bf16 %v10586_v14 }
 0x212   : > { %3985 = vmatprep.mubr.f32.mxu0 %v7233_v21  ;;  %v2344_v36 = vmax.f32 %v2184_v42, 0.0  ;;  %v7151_v21 = vunpack.i.l.bf16 %v10842_v16  ;;  %v7094_v42 = vunpack.i.h.bf16 %v10638_v1 }
 0x213   : > { %7480 = vxpose.xlu1.b32.cont [10/16] (narrow) %v7479_v56, 48  ;;  %6400 = vmatmul.mubr.msk.f32.gmra.mxu1 %vm2735_vm2, %v7111_v9  ;;  %v6294_v10 = vpop.f32.mrf.mxu1 }
 0x214   : > { %v7247_v32 = vpop.trf.xlu1  ;;  %6402 = vmatprep.mubr.msk.f32.mxu1 %vm2735_vm2, %v7116_v3  ;;  %2377 = vst [vmem:[%s7858_s18 + $0x8] sm:$0xff] %v2344_v36  ;;  %v7099_v36 = vunpack.i.h.bf16 %v10658_v18  ;;  %v7109_v18 = vunpack.i.h.bf16 %v10693_v8 }
 0x215   : > { %3986 = vmatmul.mubr.f32.gmra.mxu0 %v7236_v50  ;;  %v7248_v34 = vunpack.i.l.bf16 %v7247_v32  ;;  %v7251_v22 = vunpack.i.h.bf16 %v7247_v32 }
 0x216   : > { %3990 = vmatprep.mubr.f32.mxu0 %v7238_v4  ;;  %v12700_v4 = vld [vmem:[#allocation205_spill] sm:$0xff] }
 0x217   : > { %7482 = vxpose.xlu1.b32.cont [11/16] (narrow) %v7481_v7, 48  ;;  %6403 = vmatmul.mubr.msk.f32.gmra.mxu1 %vm2735_vm2, %v7121_v15  ;;  %v7489_v44 = vpack.i.bf16 %v12701_v39, %v12700_v4 }
 0x218   : > { %v7252_v37 = vpop.trf.xlu1  ;;  %6405 = vmatprep.mubr.msk.f32.mxu1 %vm2735_vm2, %v7126_v28 }
 0x219   : > { %3991 = vmatmul.mubr.f32.gmra.mxu0 %v7241_v29  ;;  %v7253_v25 = vunpack.i.l.bf16 %v7252_v37  ;;  %v7256_v45 = vunpack.i.h.bf16 %v7252_v37 }
 0x21a   : > { %3995 = vmatprep.mubr.f32.mxu0 %v7243_v23 }
 0x21b   : > { %7484 = vxpose.xlu1.b32.cont [12/16] (narrow) %v7483_v47, 48  ;;  %6406 = vmatmul.mubr.msk.f32.gmra.mxu1 %vm2735_vm2, %v7131_v2  ;;  %v2189_v43 = vpop.f32.mrf.mxu1  ;;  %v7491_v47 = vpack.i.bf16 %v12703_v53, %v12702_v61  ;;  %v7154_v61 = vunpack.i.h.bf16 %v10842_v16 }
 0x21c   : > { %v7257_v63 = vpop.trf.xlu1  ;;  %6408 = vmatprep.mubr.msk.f32.mxu1 %vm2735_vm2, %v7136_v33  ;;  %v2345_v49 = vmax.f32 %v2189_v43, 0.0 }
 0x21d   : > { %3996 = vmatmul.mubr.f32.gmra.mxu0 %v7246_v51  ;;  %v6297_v46 = vpop.f32.mrf.mxu1  ;;  %v7258_v9 = vunpack.i.l.bf16 %v7257_v63  ;;  %v7261_v14 = vunpack.i.h.bf16 %v7257_v63 }
 0x21e   : > { %4000 = vmatprep.mubr.f32.mxu0 %v7248_v34  ;;  %2378 = vst [vmem:[%s7858_s18 + $0x10] sm:$0xff] %v2345_v49 }
 0x21f   : > { %7486 = vxpose.xlu1.b32.cont [13/16] (narrow) %v7485_v40, 48  ;;  %6409 = vmatmul.mubr.msk.f32.gmra.mxu1 %vm2735_vm2, %v7141_v35  ;;  %v2194_v13 = vpop.f32.mrf.mxu1 }
 0x220   : > { %v7262_v24 = vpop.trf.xlu1  ;;  %6411 = vmatprep.mubr.msk.f32.mxu1 %vm2735_vm2, %v7146_v17  ;;  %v2346_v56 = vmax.f32 %v2194_v13, 0.0 }
 0x221   : > { %v10975_v48 = vpop.f32.mrf.mxu0  ;;  %4001 = vmatmul.mubr.f32.gmra.mxu0 %v7251_v22  ;;  %v6300_v50 = vpop.f32.mrf.mxu1  ;;  %v7263_v28 = vunpack.i.l.bf16 %v7262_v24  ;;  %v7266_v55 = vunpack.i.h.bf16 %v7262_v24  ;;  %v7124_v24 = vunpack.i.h.bf16 %v10745_v27  ;;  %v7134_v27 = vunpack.i.h.bf16 %v10779_v12 }
 0x222   : > { %v10978_v59 = vpop.trf.xlu0  ;;  %4005 = vmatprep.mubr.f32.mxu0 %v7253_v25  ;;  %2379 = vst [vmem:[%s7858_s18 + $0x18] sm:$0xff] %v2346_v56  ;;  %v7119_v25 = vunpack.i.h.bf16 %v10730_v19  ;;  %v7129_v19 = vunpack.i.h.bf16 %v10761_v11  ;;  %v7144_v12 = vunpack.i.h.bf16 %v10814_v5 }
 0x223   : > { %v2918_v3 = vpop.f32.mrf.mxu0  ;;  %7488 = vxpose.xlu1.b32.cont [14/16] (narrow) %v7487_v30, 48  ;;  %6412 = vmatmul.mubr.msk.f32.gmra.mxu1 %vm2735_vm2, %v7151_v21 }
 0x224   : > { %6414 = vmatprep.mubr.msk.f32.mxu1 %vm2735_vm2, %v7079_v54  ;;  %v2199_v7 = vpop.f32.mrf.mxu1  ;;  %v7139_v3 = vunpack.i.h.bf16 %v10799_v31  ;;  %v7149_v31 = vunpack.i.h.bf16 %v10827_v58 }
 0x225   : > { %v10986_v32 = vpop.f32.mrf.mxu0  ;;  %4006 = vmatmul.mubr.f32.gmra.mxu0 %v7256_v45  ;;  %v2347_v29 = vmax.f32 %v2199_v7, 0.0 }
 0x226   : > { %v10989_v15 = vpop.trf.xlu0  ;;  %4010 = vmatprep.mubr.f32.mxu0 %v7258_v9  ;;  %v6303_v23 = vpop.f32.mrf.mxu1 }
 0x227   : > { %v2923_v26 = vpop.f32.mrf.mxu0  ;;  %7490 = vxpose.xlu1.b32.cont [15/16] (narrow) %v7489_v44, 48  ;;  %6415 = vmatmul.mubr.msk.f32.gmra.mxu1 %vm2735_vm2, %v7084_v41  ;;  %2380 = vst [vmem:[%s7858_s18 + $0x20] sm:$0xff] %v2347_v29 }
 0x228   : > { %6417 = vmatprep.mubr.msk.f32.mxu1 %vm2735_vm2, %v7089_v57  ;;  %v2204_v37 = vpop.f32.mrf.mxu1 }
 0x229   : > { %v10997_v52 = vpop.trf.xlu1  ;;  %4011 = vmatmul.mubr.f32.gmra.mxu0 %v7261_v14  ;;  %v11002_v51 = vpop.f32.mrf.mxu0  ;;  %v2348_v33 = vmax.f32 %v2204_v37, 0.0 }
 0x22a   : > { %v11000_v2 = vpop.trf.xlu0  ;;  %4015 = vmatprep.mubr.f32.mxu0 %v7263_v28  ;;  %v6306_v34 = vpop.f32.mrf.mxu1 }
 0x22b   : > { %7492 = vxpose.xlu1.b32.end [16/16] (narrow) %v7491_v47, 48  ;;  %6418 = vmatmul.mubr.msk.f32.gmra.mxu1 %vm2735_vm2, %v7094_v42  ;;  %v2928_v10 = vpop.f32.mrf.mxu0  ;;  %2381 = vst [vmem:[%s7858_s18 + $0x28] sm:$0xff] %v2348_v33 }
 0x22c   : > { %6420 = vmatprep.mubr.msk.f32.mxu1 %vm2735_vm2, %v7099_v36  ;;  %v2209_v0 = vpop.f32.mrf.mxu1 }
 0x22d   : > { %v11008_v1 = vpop.trf.xlu1  ;;  %4016 = vmatmul.mubr.f32.gmra.mxu0 %v7266_v55  ;;  %v11011_v40 = vpop.f32.mrf.mxu0  ;;  %v2349_v63 = vmax.f32 %v2209_v0, 0.0 }
 0x22e   : > { %v6309_v43 = vpop.f32.mrf.mxu1  ;;  %v11015_v35 = vpop.trf.xlu0 }
 0x22f   : > { %6421 = vmatmul.mubr.msk.f32.gmra.mxu1 %vm2735_vm2, %v7104_v6  ;;  %v2933_v22 = vpop.f32.mrf.mxu0  ;;  %2382 = vst [vmem:[%s7858_s18 + $0x30] sm:$0xff] %v2349_v63 }
 0x230   : > { %6423 = vmatprep.mubr.msk.f32.mxu1 %vm2735_vm2, %v7109_v18 }
 0x231   : > { %v11019_v49 = vpop.trf.xlu1  ;;  %v2214_v17 = vpop.f32.mrf.mxu1 }
 0x232   : > { %v2350_v46 = vmax.f32 %v2214_v17, 0.0  ;;  %v11023_v8 = vpop.f32.mrf.mxu0  ;;  %v11031_v13 = vpop.trf.xlu0 }
 0x233   : > { %6424 = vmatmul.mubr.msk.f32.gmra.mxu1 %vm2735_vm2, %v7114_v62  ;;  %v6312_v20 = vpop.f32.mrf.mxu1 }
 0x234   : > { %6426 = vmatprep.mubr.msk.f32.mxu1 %vm2735_vm2, %v7119_v25  ;;  %2383 = vst [vmem:[%s7858_s18 + $0x38] sm:$0xff] %v2350_v46  ;;  %v2938_v30 = vpop.f32.mrf.mxu0 }
 0x235   : > { %v11028_v60 = vpop.trf.xlu1  ;;  %v2219_v38 = vpop.f32.mrf.mxu1 }
 0x236   : > { %v2351_v21 = vmax.f32 %v2219_v38, 0.0  ;;  %v11034_v45 = vpop.f32.mrf.mxu0  ;;  %v11046_v39 = vpop.trf.xlu0 }
 0x237   : > { %6427 = vmatmul.mubr.msk.f32.gmra.mxu1 %vm2735_vm2, %v7124_v24  ;;  %v6315_v56 = vpop.f32.mrf.mxu1  ;;  %v7382_v24 = vunpack.i.l.bf16 %v10997_v52 }
 0x238   : > { %6429 = vmatprep.mubr.msk.f32.mxu1 %vm2735_vm2, %v7129_v19  ;;  %2384 = vst [vmem:[%s7858_s18 + $0x40] sm:$0xff] %v2351_v21  ;;  %v2943_v9 = vpop.f32.mrf.mxu0 }
 0x239   : > { %v11039_v54 = vpop.trf.xlu1  ;;  %v2224_v50 = vpop.f32.mrf.mxu1 }
 0x23a   : > { %v2352_v4 = vmax.f32 %v2224_v50, 0.0  ;;  %v11043_v11 = vpop.f32.mrf.mxu0 }
 0x23b   : > { %6430 = vmatmul.mubr.msk.f32.gmra.mxu1 %vm2735_vm2, %v7134_v27  ;;  %v6318_v44 = vpop.f32.mrf.mxu1 }
 0x23c   : > { %6432 = vmatprep.mubr.msk.f32.mxu1 %vm2735_vm2, %v7139_v3  ;;  %2385 = vst [vmem:[%s7858_s18 + $0x48] sm:$0xff] %v2352_v4  ;;  %v2948_v41 = vpop.f32.mrf.mxu0  ;;  %v7387_v3 = vunpack.i.l.bf16 %v11008_v1  ;;  %v7392_v4 = vunpack.i.l.bf16 %v11019_v49 }
 0x23d   : > { %v11050_v7 = vpop.trf.xlu1  ;;  %v2229_v14 = vpop.f32.mrf.mxu1 }
 0x23e   : > { %v2353_v29 = vmax.f32 %v2229_v14, 0.0  ;;  %v11054_v57 = vpop.f32.mrf.mxu0 }
 0x23f   : > { %6433 = vmatmul.mubr.msk.f32.gmra.mxu1 %vm2735_vm2, %v7144_v12  ;;  %v6321_v28 = vpop.f32.mrf.mxu1 }
 0x240   : > { %6435 = vmatprep.mubr.msk.f32.mxu1 %vm2735_vm2, %v7149_v31  ;;  %2386 = vst [vmem:[%s7858_s18 + $0x50] sm:$0xff] %v2353_v29  ;;  %v2953_v26 = vpop.f32.mrf.mxu0 }
 0x241   : > { %v11059_v23 = vpop.trf.xlu1  ;;  %v7299_v53 = vpop.trf.xlu0 }
 0x242   : > { %v2234_v5 = vpop.f32.mrf.mxu1  ;;  %v7303_v47 = vunpack.i.h.bf16 %v7299_v53  ;;  %v7300_v37 = vunpack.i.l.bf16 %v7299_v53  ;;  %v11062_v58 = vpop.f32.mrf.mxu0  ;;  %v7402_v53 = vunpack.i.l.bf16 %v11039_v54 }
 0x243   : > { %6436 = vmatmul.mubr.msk.f32.gmra.mxu1 %vm2735_vm2, %v7154_v61  ;;  %v2354_v42 = vmax.f32 %v2234_v5, 0.0  ;;  %v7397_v61 = vunpack.i.l.bf16 %v11028_v60 }
 0x244   : > { %v6324_v55 = vpop.f32.mrf.mxu1  ;;  %6438 = vmatprep.mubr.msk.f32.mxu1 %vm2735_vm2, %v10978_v59  ;;  %4020 = vmatprep.mubr.f32.mxu0 %v7300_v37  ;;  %v2958_v33 = vpop.f32.mrf.mxu0 }
 0x245   : > { %v11067_v36 = vpop.trf.xlu1  ;;  %v7304_v34 = vpop.trf.xlu0  ;;  %4021 = vmatmul.mubr.f32.gmra.mxu0 %v7303_v47  ;;  %2387 = vst [vmem:[%s7858_s18 + $0x58] sm:$0xff] %v2354_v42 }
 0x246   : > { %v2239_v16 = vpop.f32.mrf.mxu1  ;;  %v7308_v10 = vunpack.i.h.bf16 %v7304_v34  ;;  %v7305_v0 = vunpack.i.l.bf16 %v7304_v34  ;;  %v11070_v6 = vpop.f32.mrf.mxu0 }
 0x247   : > { %6439 = vmatmul.mubr.msk.f32.gmra.mxu1 %vm2735_vm2, %v10989_v15  ;;  %v2355_v18 = vmax.f32 %v2239_v16, 0.0 }
 0x248   : > { %v6327_v63 = vpop.f32.mrf.mxu1  ;;  %6441 = vmatprep.mubr.msk.f32.mxu1 %vm2735_vm2, %v11000_v2  ;;  %4025 = vmatprep.mubr.f32.mxu0 %v7305_v0  ;;  %v2963_v43 = vpop.f32.mrf.mxu0  ;;  %v7407_v0 = vunpack.i.l.bf16 %v11050_v7 }
 0x249   : > { %v11076_v59 = vpop.trf.xlu1  ;;  %v7309_v22 = vpop.trf.xlu0  ;;  %4026 = vmatmul.mubr.f32.gmra.mxu0 %v7308_v10  ;;  %2388 = vst [vmem:[%s7858_s18 + $0x60] sm:$0xff] %v2355_v18  ;;  %v7412_v18 = vunpack.i.l.bf16 %v11059_v23 }
 0x24a   : > { %v2244_v62 = vpop.f32.mrf.mxu1  ;;  %v7313_v17 = vunpack.i.h.bf16 %v7309_v22  ;;  %v7310_v25 = vunpack.i.l.bf16 %v7309_v22  ;;  %v11079_v46 = vpop.f32.mrf.mxu0 }
 0x24b   : > { %6442 = vmatmul.mubr.msk.f32.gmra.mxu1 %vm2735_vm2, %v11015_v35  ;;  %v2356_v15 = vmax.f32 %v2244_v62, 0.0 }
 0x24c   : > { %v6330_v20 = vpop.f32.mrf.mxu1  ;;  %6444 = vmatprep.mubr.msk.f32.mxu1 %vm2735_vm2, %v11031_v13  ;;  %4030 = vmatprep.mubr.f32.mxu0 %v7310_v25  ;;  %v2968_v30 = vpop.f32.mrf.mxu0 }
 0x24d   : > { %v11085_v2 = vpop.trf.xlu1  ;;  %v7314_v38 = vpop.trf.xlu0  ;;  %4031 = vmatmul.mubr.f32.gmra.mxu0 %v7313_v17  ;;  %2389 = vst [vmem:[%s7858_s18 + $0x68] sm:$0xff] %v2356_v15 }
 0x24e   : > { %v2249_v19 = vpop.f32.mrf.mxu1  ;;  %v7318_v21 = vunpack.i.h.bf16 %v7314_v38  ;;  %v7315_v56 = vunpack.i.l.bf16 %v7314_v38  ;;  %v11089_v9 = vpop.f32.mrf.mxu0  ;;  %v7422_v38 = vunpack.i.l.bf16 %v11076_v59 }
 0x24f   : > { %6445 = vmatmul.mubr.msk.f32.gmra.mxu1 %vm2735_vm2, %v11046_v39  ;;  %v2357_v35 = vmax.f32 %v2249_v19, 0.0 }
 0x250   : > { %v6333_v13 = vpop.f32.mrf.mxu1  ;;  %6449 = vmatprep.mubr.msk.f32.mxu1 %vm2735_vm2, %v7382_v24  ;;  %4035 = vmatprep.mubr.f32.mxu0 %v7315_v56  ;;  %v2973_v50 = vpop.f32.mrf.mxu0  ;;  %v7417_v24 = vunpack.i.l.bf16 %v11067_v36 }
 0x251   : > { %v11094_v27 = vpop.trf.xlu1  ;;  %v7319_v44 = vpop.trf.xlu0  ;;  %4036 = vmatmul.mubr.f32.gmra.mxu0 %v7318_v21  ;;  %2390 = vst [vmem:[%s7858_s18 + $0x70] sm:$0xff] %v2357_v35 }
 0x252   : > { %v2254_v41 = vpop.f32.mrf.mxu1  ;;  %v7323_v12 = vunpack.i.h.bf16 %v7319_v44  ;;  %v7320_v14 = vunpack.i.l.bf16 %v7319_v44  ;;  %v11099_v39 = vpop.f32.mrf.mxu0 }
 0x253   : > { %6450 = vmatmul.mubr.msk.f32.vlgmr.msra.gmra.mxu1 %vm2735_vm2, %v7387_v3  ;;  %v2358_v31 = vmax.f32 %v2254_v41, 0.0  ;;  %v7427_v41 = vunpack.i.l.bf16 %v11085_v2 }
 0x254   : > { %v6336_v29 = vpop.f32.mrf.mxu1  ;;  %6452 = vmatprep.mubr.msk.f32.mxu1 %vm2735_vm2, %v7392_v4  ;;  %4040 = vmatprep.mubr.f32.mxu0 %v7320_v14  ;;  %v2978_v26 = vpop.f32.mrf.mxu0 }
 0x255   : > { %v11103_v28 = vpop.trf.xlu1  ;;  %v7324_v5 = vpop.trf.xlu0  ;;  %4041 = vmatmul.mubr.f32.gmra.mxu0 %v7323_v12  ;;  %2391 = vst [vmem:[%s7858_s18 + $0x78] sm:$0xff] %v2358_v31  ;;  %v7432_v12 = vunpack.i.l.bf16 %v11094_v27 }
 0x256   : > { %v2259_v47 = vpop.f32.mrf.mxu1  ;;  %v7328_v37 = vunpack.i.h.bf16 %v7324_v5  ;;  %v7325_v42 = vunpack.i.l.bf16 %v7324_v5  ;;  %v11108_v55 = vpop.f32.mrf.mxu0 }
 0x257   : > { %6453 = vmatmul.mubr.msk.f32.gmra.mxu1 %vm2735_vm2, %v7397_v61  ;;  %v2359_v33 = vmax.f32 %v2259_v47, 0.0  ;;  %v7437_v47 = vunpack.i.l.bf16 %v11103_v28 }
 0x258   : > { %v6339_v34 = vpop.f32.mrf.mxu1  ;;  %6455 = vmatprep.mubr.msk.f32.mxu1 %vm2735_vm2, %v7402_v53  ;;  %4045 = vmatprep.mubr.f32.mxu0 %v7325_v42  ;;  %v2983_v10 = vpop.f32.mrf.mxu0 }
 0x259   : > { %v11112_v16 = vpop.trf.xlu1  ;;  %v7329_v63 = vpop.trf.xlu0  ;;  %4046 = vmatmul.mubr.f32.gmra.mxu0 %v7328_v37  ;;  %2392 = vst [vmem:[%s7858_s18 + $0x80] sm:$0xff] %v2359_v33 }
 0x25a   : > { %v2264_v43 = vpop.f32.mrf.mxu1  ;;  %v7333_v22 = vunpack.i.h.bf16 %v7329_v63  ;;  %v7330_v62 = vunpack.i.l.bf16 %v7329_v63  ;;  %v11117_v17 = vpop.f32.mrf.mxu0  ;;  %v7442_v37 = vunpack.i.l.bf16 %v11112_v16 }
 0x25b   : > { %6456 = vmatmul.mubr.msk.f32.gmra.mxu1 %vm2735_vm2, %v7407_v0  ;;  %v2360_v25 = vmax.f32 %v2264_v43, 0.0 }
 0x25c   : > { %v6342_v15 = vpop.f32.mrf.mxu1  ;;  %6458 = vmatprep.mubr.msk.f32.mxu1 %vm2735_vm2, %v7412_v18  ;;  %4050 = vmatprep.mubr.f32.mxu0 %v7330_v62  ;;  %v2988_v30 = vpop.f32.mrf.mxu0 }
 0x25d   : > { %v11121_v20 = vpop.trf.xlu1  ;;  %v7334_v19 = vpop.trf.xlu0  ;;  %4051 = vmatmul.mubr.f32.gmra.mxu0 %v7333_v22  ;;  %2393 = vst [vmem:[%s7858_s18 + $0x88] sm:$0xff] %v2360_v25 }
 0x25e   : > { %v2269_v21 = vpop.f32.mrf.mxu1  ;;  %v7338_v56 = vunpack.i.h.bf16 %v7334_v19  ;;  %v7335_v35 = vunpack.i.l.bf16 %v7334_v19  ;;  %v11126_v13 = vpop.f32.mrf.mxu0  ;;  %v7447_v22 = vunpack.i.l.bf16 %v11121_v20 }
 0x25f   : > { %6459 = vmatmul.mubr.msk.f32.gmra.mxu1 %vm2735_vm2, %v7417_v24  ;;  %v2361_v50 = vmax.f32 %v2269_v21, 0.0 }
 0x260   : > { %v6345_v3 = vpop.f32.mrf.mxu1  ;;  %6461 = vmatprep.mubr.msk.f32.mxu1 %vm2735_vm2, %v7422_v38  ;;  %4055 = vmatprep.mubr.f32.mxu0 %v7335_v35  ;;  %v2993_v44 = vpop.f32.mrf.mxu0  ;;  %v7385_v35 = vunpack.i.h.bf16 %v10997_v52  ;;  %v7390_v52 = vunpack.i.h.bf16 %v11008_v1 }
 0x261   : > { %v11130_v4 = vpop.trf.xlu1  ;;  %v7339_v14 = vpop.trf.xlu0  ;;  %4056 = vmatmul.mubr.f32.gmra.mxu0 %v7338_v56  ;;  %2394 = vst [vmem:[%s7858_s18 + $0x90] sm:$0xff] %v2361_v50 }
 0x262   : > { %v7343_v31 = vunpack.i.h.bf16 %v7339_v14  ;;  %v7340_v29 = vunpack.i.l.bf16 %v7339_v14  ;;  %v7452_v63 = vunpack.i.l.bf16 %v11130_v4 }
 0x263   : > { %v2274_v26 = vpop.f32.mrf.mxu1  ;;  %6462 = vmatmul.mubr.msk.f32.gmra.mxu1 %vm2735_vm2, %v7427_v41 }
 0x264   : > { %v2362_v61 = vmax.f32 %v2274_v26, 0.0  ;;  %6464 = vmatprep.mubr.msk.f32.mxu1 %vm2735_vm2, %v7432_v12  ;;  %4060 = vmatprep.mubr.f32.mxu0 %v7340_v29  ;;  %v11139_v5 = vpop.f32.mrf.mxu0 }
 0x265   : > { %v11137_v53 = vpop.trf.xlu1  ;;  %v7344_v42 = vpop.trf.xlu0  ;;  %4061 = vmatmul.mubr.f32.gmra.mxu0 %v7343_v31 }
 0x266   : > { %2395 = vst [vmem:[%s7858_s18 + $0x98] sm:$0xff] %v2362_v61  ;;  %v6348_v33 = vpop.f32.mrf.mxu1  ;;  %v7348_v34 = vunpack.i.h.bf16 %v7344_v42  ;;  %v7345_v10 = vunpack.i.l.bf16 %v7344_v42  ;;  %v2998_v0 = vpop.f32.mrf.mxu0  ;;  %v7457_v19 = vunpack.i.l.bf16 %v11137_v53  ;;  %v7395_v61 = vunpack.i.h.bf16 %v11019_v49 }
 0x267   : > { %6465 = vmatmul.mubr.msk.f32.gmra.mxu1 %vm2735_vm2, %v7437_v47  ;;  %v7400_v49 = vunpack.i.h.bf16 %v11028_v60 }
 0x268   : > { %v2279_v18 = vpop.f32.mrf.mxu1  ;;  %6467 = vmatprep.mubr.msk.f32.mxu1 %vm2735_vm2, %v7442_v37  ;;  %4065 = vmatprep.mubr.f32.mxu0 %v7345_v10 }
 0x269   : > { %v2363_v43 = vmax.f32 %v2279_v18, 0.0  ;;  %v7349_v62 = vpop.trf.xlu0  ;;  %4066 = vmatmul.mubr.f32.gmra.mxu0 %v7348_v34  ;;  %v11148_v25 = vpop.f32.mrf.mxu0 }
 0x26a   : > { %v7353_v15 = vunpack.i.h.bf16 %v7349_v62  ;;  %v7350_v30 = vunpack.i.l.bf16 %v7349_v62  ;;  %v6351_v24 = vpop.f32.mrf.mxu1 }
 0x26b   : > { %2396 = vst [vmem:[%s7858_s18 + $0xa0] sm:$0xff] %v2363_v43  ;;  %v11151_v38 = vpop.trf.xlu1  ;;  %6468 = vmatmul.mubr.msk.f32.gmra.mxu1 %vm2735_vm2, %v7447_v22  ;;  %v3003_v21 = vpop.f32.mrf.mxu0 }
 0x26c   : > { %6470 = vmatprep.mubr.msk.f32.mxu1 %vm2735_vm2, %v7452_v63  ;;  %4070 = vmatprep.mubr.f32.mxu0 %v7350_v30  ;;  %v2284_v56 = vpop.f32.mrf.mxu1  ;;  %v7405_v63 = vunpack.i.h.bf16 %v11039_v54  ;;  %v7410_v54 = vunpack.i.h.bf16 %v11050_v7 }
 0x26d   : > { %v7354_v50 = vpop.trf.xlu0  ;;  %4071 = vmatmul.mubr.f32.gmra.mxu0 %v7353_v15  ;;  %v2364_v3 = vmax.f32 %v2284_v56, 0.0  ;;  %v11157_v44 = vpop.f32.mrf.mxu0  ;;  %v7415_v56 = vunpack.i.h.bf16 %v11059_v23  ;;  %v7420_v23 = vunpack.i.h.bf16 %v11067_v36 }
 0x26e   : > { %v7358_v41 = vunpack.i.h.bf16 %v7354_v50  ;;  %v7355_v12 = vunpack.i.l.bf16 %v7354_v50  ;;  %v6354_v14 = vpop.f32.mrf.mxu1 }
 0x26f   : > { %v11159_v31 = vpop.trf.xlu1  ;;  %6471 = vmatmul.mubr.msk.f32.gmra.mxu1 %vm2735_vm2, %v7457_v19  ;;  %2397 = vst [vmem:[%s7858_s18 + $0xa8] sm:$0xff] %v2364_v3  ;;  %v3008_v29 = vpop.f32.mrf.mxu0 }
 0x270   : > { %6473 = vmatprep.mubr.msk.f32.mxu1 %vm2735_vm2, %v7385_v35  ;;  %4075 = vmatprep.mubr.f32.mxu0 %v7355_v12  ;;  %v2289_v26 = vpop.f32.mrf.mxu1 }
 0x271   : > { %v7359_v47 = vpop.trf.xlu0  ;;  %4076 = vmatmul.mubr.f32.gmra.mxu0 %v7358_v41  ;;  %v2365_v37 = vmax.f32 %v2289_v26, 0.0 }
 0x272   : > { %v11166_v42 = vpop.f32.mrf.mxu0  ;;  %v7363_v33 = vunpack.i.h.bf16 %v7359_v47  ;;  %v7360_v34 = vunpack.i.l.bf16 %v7359_v47  ;;  %v6357_v10 = vpop.f32.mrf.mxu1 }
 0x273   : > { %v11168_v0 = vpop.trf.xlu1  ;;  %6474 = vmatmul.mubr.msk.f32.gmra.mxu1 %vm2735_vm2, %v7390_v52  ;;  %2398 = vst [vmem:[%s7858_s18 + $0xb0] sm:$0xff] %v2365_v37  ;;  %v7425_v52 = vunpack.i.h.bf16 %v11076_v59  ;;  %v7430_v59 = vunpack.i.h.bf16 %v11085_v2  ;;  %v7440_v2 = vunpack.i.h.bf16 %v11103_v28 }
 0x274   : > { %v3013_v18 = vpop.f32.mrf.mxu0  ;;  %6476 = vmatprep.mubr.msk.f32.mxu1 %vm2735_vm2, %v7395_v61  ;;  %4080 = vmatprep.mubr.f32.mxu0 %v7360_v34  ;;  %v2294_v1 = vpop.f32.mrf.mxu1 }
 0x275   : > { %v7364_v43 = vpop.trf.xlu0  ;;  %4081 = vmatmul.mubr.f32.gmra.mxu0 %v7363_v33  ;;  %v2366_v22 = vmax.f32 %v2294_v1, 0.0  ;;  %v7494_v33 = vunpack.i.l.bf16 %v11151_v38 }
 0x276   : > { %v11175_v62 = vpop.f32.mrf.mxu0  ;;  %v7368_v15 = vunpack.i.h.bf16 %v7364_v43  ;;  %v7365_v30 = vunpack.i.l.bf16 %v7364_v43  ;;  %v6360_v24 = vpop.f32.mrf.mxu1 }
 0x277   : > { %v11177_v19 = vpop.trf.xlu1  ;;  %6477 = vmatmul.mubr.msk.f32.gmra.mxu1 %vm2735_vm2, %v7400_v49  ;;  %2399 = vst [vmem:[%s7858_s18 + $0xb8] sm:$0xff] %v2366_v22  ;;  %v7499_v24 = vunpack.i.l.bf16 %v11159_v31 }
 0x278   : > { %v3018_v21 = vpop.f32.mrf.mxu0  ;;  %6479 = vmatprep.mubr.msk.f32.mxu1 %vm2735_vm2, %v7405_v63  ;;  %4085 = vmatprep.mubr.f32.mxu0 %v7365_v30  ;;  %v7497_v63 = vunpack.i.h.bf16 %v11151_v38  ;;  %v7502_v38 = vunpack.i.h.bf16 %v11159_v31  ;;  %v7450_v31 = vunpack.i.h.bf16 %v11121_v20 }
 0x279   : > { %v2299_v60 = vpop.f32.mrf.mxu1  ;;  %v7369_v35 = vpop.trf.xlu0  ;;  %4086 = vmatmul.mubr.f32.gmra.mxu0 %v7368_v15  ;;  %v7435_v15 = vunpack.i.h.bf16 %v11094_v27  ;;  %v7445_v27 = vunpack.i.h.bf16 %v11112_v16 }
 0x27a   : > { %v2367_v50 = vmax.f32 %v2299_v60, 0.0  ;;  %v11184_v3 = vpop.f32.mrf.mxu0  ;;  %v7373_v41 = vunpack.i.h.bf16 %v7369_v35  ;;  %v7370_v12 = vunpack.i.l.bf16 %v7369_v35  ;;  %v7504_v35 = vunpack.i.l.bf16 %v11168_v0 }
 0x27b   : > { %v6363_v14 = vpop.f32.mrf.mxu1  ;;  %v11186_v29 = vpop.trf.xlu1  ;;  %6480 = vmatmul.mubr.msk.f32.gmra.mxu1 %vm2735_vm2, %v7410_v54 }
 0x27c   : > { %2400 = vst [vmem:[%s7858_s18 + $0xc0] sm:$0xff] %v2367_v50  ;;  %v3023_v26 = vpop.f32.mrf.mxu0  ;;  %6482 = vmatprep.mubr.msk.f32.mxu1 %vm2735_vm2, %v7415_v56  ;;  %4090 = vmatprep.mubr.f32.mxu0 %v7370_v12  ;;  %v7507_v12 = vunpack.i.h.bf16 %v11168_v0  ;;  %v7455_v14 = vunpack.i.h.bf16 %v11130_v4  ;;  %v7460_v0 = vunpack.i.h.bf16 %v11137_v53 }
 0x27d   : > { %v2304_v7 = vpop.f32.mrf.mxu1  ;;  %v7374_v61 = vpop.trf.xlu0  ;;  %4091 = vmatmul.mubr.f32.gmra.mxu0 %v7373_v41 }
 0x27e   : > { %v2368_v47 = vmax.f32 %v2304_v7, 0.0  ;;  %v11193_v37 = vpop.f32.mrf.mxu0  ;;  %v7378_v34 = vunpack.i.h.bf16 %v7374_v61  ;;  %v7375_v10 = vunpack.i.l.bf16 %v7374_v61 }
 0x27f   : > { %v6366_v18 = vpop.f32.mrf.mxu1  ;;  %v11196_v1 = vpop.trf.xlu1  ;;  %6483 = vmatmul.mubr.msk.f32.gmra.mxu1 %vm2735_vm2, %v7420_v23  ;;  %v7509_v23 = vunpack.i.l.bf16 %v11177_v19 }
 0x280   : > { %2401 = vst [vmem:[%s7858_s18 + $0xc8] sm:$0xff] %v2368_v47  ;;  %v3028_v49 = vpop.f32.mrf.mxu0  ;;  %6485 = vmatprep.mubr.msk.f32.mxu1 %vm2735_vm2, %v7425_v52  ;;  %4095 = vmatprep.mubr.f32.mxu0 %v7375_v10  ;;  %v7512_v47 = vunpack.i.h.bf16 %v11177_v19  ;;  %v7514_v10 = vunpack.i.l.bf16 %v11186_v29  ;;  %v7519_v19 = vunpack.i.l.bf16 %v11196_v1 }
 0x281   : > { %v2309_v36 = vpop.f32.mrf.mxu1  ;;  %4096 = vmatmul.mubr.f32.gmra.mxu0 %v7378_v34  ;;  %v3746_v43 = vpop.trf.xlu0 }
 0x282   : > { %v2369_v22 = vmax.f32 %v2309_v36, 0.0  ;;  %4100 = vmatprep.mubr.f32.mxu0 %v7494_v33  ;;  %v7517_v36 = vunpack.i.h.bf16 %v11186_v29 }
 0x283   : > { %v6369_v30 = vpop.f32.mrf.mxu1  ;;  %6486 = vmatmul.mubr.msk.f32.gmra.mxu1 %vm2735_vm2, %v7430_v59  ;;  %v11207_v21 = vpop.f32.mrf.mxu0 }
 0x284   : > { %2402 = vst [vmem:[%s7858_s18 + $0xd0] sm:$0xff] %v2369_v22  ;;  %6488 = vmatprep.mubr.msk.f32.mxu1 %vm2735_vm2, %v7435_v15 }
 0x285   : > { %4101 = vmatmul.mubr.f32.gmra.mxu0 %v7497_v63  ;;  %v3747_v60 = vpop.trf.xlu0  ;;  %v3033_v54 = vpop.f32.mrf.mxu0 }
 0x286   : > { %4105 = vmatprep.mubr.f32.mxu0 %v7499_v24  ;;  %v2314_v56 = vpop.f32.mrf.mxu1 }
 0x287   : > { %6489 = vmatmul.mubr.msk.f32.gmra.mxu1 %vm2735_vm2, %v7440_v2  ;;  %v2370_v50 = vmax.f32 %v2314_v56, 0.0 }
 0x288   : > { %6491 = vmatprep.mubr.msk.f32.mxu1 %vm2735_vm2, %v7445_v27  ;;  %v11216_v41 = vpop.f32.mrf.mxu0  ;;  %v6372_v28 = vpop.f32.mrf.mxu1 }
 0x289   : > { %4106 = vmatmul.mubr.f32.gmra.mxu0 %v7502_v38  ;;  %2403 = vst [vmem:[%s7858_s18 + $0xd8] sm:$0xff] %v2370_v50  ;;  %v3748_v16 = vpop.trf.xlu0 }
 0x28a   : > { %4110 = vmatprep.mubr.f32.mxu0 %v7504_v35  ;;  %v3038_v26 = vpop.f32.mrf.mxu0 }
 0x28b   : > { %v2319_v7 = vpop.f32.mrf.mxu1  ;;  %6492 = vmatmul.mubr.msk.f32.gmra.mxu1 %vm2735_vm2, %v7450_v31 }
 0x28c   : > { %v2371_v52 = vmax.f32 %v2319_v7, 0.0  ;;  %6494 = vmatprep.mubr.msk.f32.mxu1 %vm2735_vm2, %v7455_v14  ;;  %v11225_v61 = vpop.f32.mrf.mxu0 }
 0x28d   : > { %v6375_v20 = vpop.f32.mrf.mxu1  ;;  %4111 = vmatmul.mubr.f32.gmra.mxu0 %v7507_v12  ;;  %v3749_v4 = vpop.trf.xlu0 }
 0x28e   : > { %2404 = vst [vmem:[%s7858_s18 + $0xe0] sm:$0xff] %v2371_v52  ;;  %4115 = vmatprep.mubr.f32.mxu0 %v7509_v23  ;;  %v3043_v33 = vpop.f32.mrf.mxu0 }
 0x28f   : > { %v2324_v34 = vpop.f32.mrf.mxu1  ;;  %6495 = vmatmul.mubr.msk.f32.gmra.mxu1 %vm2735_vm2, %v7460_v0 }
 0x290   : > { %v2372_v18 = vmax.f32 %v2324_v34, 0.0  ;;  %6497 = vmatprep.mubr.msk.f32.mxu1 %vm2735_vm2, %v3746_v43  ;;  %v11233_v49 = vpop.f32.mrf.mxu0  ;;  %v7522_v43 = vunpack.i.h.bf16 %v11196_v1 }
 0x291   : > { %v6378_v53 = vpop.f32.mrf.mxu1  ;;  %4116 = vmatmul.mubr.f32.gmra.mxu0 %v7512_v47  ;;  %v3750_v59 = vpop.trf.xlu0 }
 0x292   : > { %2405 = vst [vmem:[%s7858_s18 + $0xe8] sm:$0xff] %v2372_v18  ;;  %4120 = vmatprep.mubr.f32.mxu0 %v7514_v10  ;;  %v3048_v63 = vpop.f32.mrf.mxu0 }
 0x293   : > { %6498 = vmatmul.mubr.msk.f32.gmra.mxu1 %vm2735_vm2, %v3747_v60 }
 0x294   : > { %v2329_v22 = vpop.f32.mrf.mxu1  ;;  %6500 = vmatprep.mubr.msk.f32.mxu1 %vm2735_vm2, %v3748_v16 }
 0x295   : > { %v2373_v15 = vmax.f32 %v2329_v22, 0.0  ;;  %4121 = vmatmul.mubr.f32.gmra.mxu0 %v7517_v36  ;;  %v3751_v24 = vpop.trf.xlu0 }
 0x296   : > { %v6381_v30 = vpop.f32.mrf.mxu1  ;;  %v11242_v29 = vpop.f32.mrf.mxu0  ;;  %4125 = vmatprep.mubr.f32.mxu0 %v7519_v19 }
 0x297   : > { %2406 = vst [vmem:[%s7858_s18 + $0xf0] sm:$0xff] %v2373_v15  ;;  %6501 = vmatmul.mubr.msk.f32.gmra.mxu1 %vm2735_vm2, %v3749_v4 }
 0x298   : > { %6503 = vmatprep.mubr.msk.f32.mxu1 %vm2735_vm2, %v3750_v59  ;;  %v3053_v2 = vpop.f32.mrf.mxu0 }
 0x299   : > { %4126 = vmatmul.mubr.f32.gmra.mxu0 %v7522_v43 }
 0x29a   : > { %v2334_v38 = vpop.f32.mrf.mxu1 }
 0x29b   : > { %v2374_v60 = vmax.f32 %v2334_v38, 0.0  ;;  %v11246_v54 = vpop.f32.mrf.mxu0  ;;  %6504 = vmatmul.mubr.msk.f32.gmra.mxu1 %vm2735_vm2, %v3751_v24 }
 0x29c   : > { %v6384_v1 = vpop.f32.mrf.mxu1 }
 0x29d   : > { %2407 = vst [vmem:[%s7858_s18 + $0xf8] sm:$0xff] %v2374_v60  ;;  %v3058_v27 = vpop.f32.mrf.mxu0  ;;  %v2410_v1 = vld [vmem:[#allocation2 + $0xd0] sm:$0xff] }
 0x29e   : > { %v2339_v56 = vpop.f32.mrf.mxu1 }
 0x29f   : > { %v2375_v35 = vmax.f32 %v2339_v56, 0.0 }
 0x2a0   : > { %v6387_v50 = vpop.f32.mrf.mxu1 }
 0x2a1   : > { %2408 = vst [vmem:[%s7858_s18 + $0x100] sm:$0xff] %v2375_v35  ;;  %v2409_v35 = vld [vmem:[#allocation2 + $0xb0] sm:$0xff] }
 0x2a3   : > { %v11251_v28 = vpop.f32.mrf.mxu1 }
 0x2a5   : > { %v3063_v31 = vpop.f32.mrf.mxu1 }
 0x2a7   : > { %v11253_v12 = vpop.f32.mrf.mxu1 }
 0x2a9   : > { %v3068_v16 = vpop.f32.mrf.mxu1 }
 0x2ab   : > { %v11255_v14 = vpop.f32.mrf.mxu1 }
 0x2ad   : > { %v3073_v26 = vpop.f32.mrf.mxu1 }
 0x2af   : > { %v11257_v7 = vpop.f32.mrf.mxu1 }
 0x2b1   : > { %v11259_v23 = vpop.f32.mrf.mxu0  ;;  %v3078_v52 = vpop.f32.mrf.mxu1 }
 0x2b2   : > { %v2412_v52 = vld [vmem:[#allocation2 + $0x48] sm:$0xff] }
 0x2b3   : > { %v3944_v20 = vpop.f32.mrf.mxu0  ;;  %v11261_v0 = vpop.f32.mrf.mxu1 }
 0x2b5   : > { %v11263_v47 = vpop.f32.mrf.mxu0  ;;  %v3083_v4 = vpop.f32.mrf.mxu1 }
 0x2b7   : > { %v3949_v33 = vpop.f32.mrf.mxu0  ;;  %v11265_v34 = vpop.f32.mrf.mxu1 }
 0x2b9   : > { %v11267_v10 = vpop.f32.mrf.mxu0  ;;  %v3088_v18 = vpop.f32.mrf.mxu1 }
 0x2bb   : > { %v3954_v53 = vpop.f32.mrf.mxu0  ;;  %v11269_v36 = vpop.f32.mrf.mxu1 }
 0x2bc   : > { %v2411_v53 = vld [vmem:[#allocation2 + $0x10] sm:$0xff] }
 0x2bd   : > { %v11271_v19 = vpop.f32.mrf.mxu0  ;;  %v3093_v59 = vpop.f32.mrf.mxu1 }
 0x2bf   : > { %v3959_v63 = vpop.f32.mrf.mxu0  ;;  %v11273_v22 = vpop.f32.mrf.mxu1 }
 0x2c1   : > { %v11275_v15 = vpop.f32.mrf.mxu0  ;;  %v3098_v43 = vpop.f32.mrf.mxu1 }
 0x2c3   : > { %v3964_v30 = vpop.f32.mrf.mxu0  ;;  %v11277_v24 = vpop.f32.mrf.mxu1 }
 0x2c4   : > { %v2414_v30 = vld [vmem:[#allocation2 + $0x38] sm:$0xff] }
 0x2c5   : > { %v11279_v2 = vpop.f32.mrf.mxu0  ;;  %v3103_v38 = vpop.f32.mrf.mxu1 }
 0x2c7   : > { %v3969_v60 = vpop.f32.mrf.mxu0  ;;  %v6392_v27 = vpop.f32.mrf.mxu1 }
 0x2c8   : > { %v3177_v56 = vadd.f32 %v6392_v27, %v10986_v32  ;;  %v2413_v27 = vld [vmem:[#allocation2 + $0x120] sm:$0xff] }
 0x2c9   : > { %v3171_v50 = vpop.f32.mrf.mxu1  ;;  %v11282_v31 = vpop.f32.mrf.mxu0 }
 0x2ca   : > { %v3361_v16 = vadd.f32 %v3177_v56, %v2410_v1  ;;  %v3172_v26 = vadd.f32 %v3171_v50, %v10975_v48 }
 0x2cb   : > { %v6395_v20 = vpop.f32.mrf.mxu1  ;;  %v3974_v4 = vpop.f32.mrf.mxu0 }
 0x2cc   : > { %3399 = vst [vmem:[#allocation2 + $0xd0] sm:$0xff] %v3361_v16  ;;  %v3360_v33 = vadd.f32 %v3172_v26, %v2409_v35  ;;  %v3187_v18 = vadd.f32 %v6395_v20, %v11011_v40  ;;  %v2416_v16 = vld [vmem:[#allocation2 + $0x100] sm:$0xff]  ;;  %v2415_v4 = vld [vmem:[#allocation2 + $0x70] sm:$0xff] }
 0x2cd   : > { %v3181_v59 = vpop.f32.mrf.mxu1  ;;  %v11286_v63 = vpop.f32.mrf.mxu0 }
 0x2ce   : > { %3398 = vst [vmem:[#allocation2 + $0xb0] sm:$0xff] %v3360_v33  ;;  %v3363_v32 = vadd.f32 %v3187_v18, %v2412_v52  ;;  %v3182_v43 = vadd.f32 %v3181_v59, %v11002_v51  ;;  %v2418_v59 = vld [vmem:[#allocation2 + $0x88] sm:$0xff] }
 0x2cf   : > { %v6398_v38 = vpop.f32.mrf.mxu1  ;;  %v3979_v60 = vpop.f32.mrf.mxu0 }
 0x2d0   : > { %3401 = vst [vmem:[#allocation2 + $0x48] sm:$0xff] %v3363_v32  ;;  %v3362_v48 = vadd.f32 %v3182_v43, %v2411_v53  ;;  %v3197_v1 = vadd.f32 %v6398_v38, %v11034_v45  ;;  %v2417_v38 = vld [vmem:[#allocation2 + $0x108] sm:$0xff] }
 0x2d1   : > { %v3191_v56 = vpop.f32.mrf.mxu1  ;;  %v11290_v35 = vpop.f32.mrf.mxu0 }
 0x2d2   : > { %3400 = vst [vmem:[#allocation2 + $0x10] sm:$0xff] %v3362_v48  ;;  %v3365_v40 = vadd.f32 %v3197_v1, %v2414_v30  ;;  %v3192_v50 = vadd.f32 %v3191_v56, %v11023_v8 }
 0x2d3   : > { %v6401_v26 = vpop.f32.mrf.mxu1  ;;  %v3984_v52 = vpop.f32.mrf.mxu0 }
 0x2d4   : > { %3403 = vst [vmem:[#allocation2 + $0x38] sm:$0xff] %v3365_v40  ;;  %v3364_v51 = vadd.f32 %v3192_v50, %v2413_v27  ;;  %v3207_v20 = vadd.f32 %v6401_v26, %v11054_v57  ;;  %v2420_v27 = vld [vmem:[#allocation2 + $0xf0] sm:$0xff] }
 0x2d5   : > { %v3201_v33 = vpop.f32.mrf.mxu1  ;;  %v11294_v18 = vpop.f32.mrf.mxu0 }
 0x2d6   : > { %3402 = vst [vmem:[#allocation2 + $0x120] sm:$0xff] %v3364_v51  ;;  %v3367_v45 = vadd.f32 %v3207_v20, %v2416_v16  ;;  %v3202_v53 = vadd.f32 %v3201_v33, %v11043_v11  ;;  %v2419_v16 = vld [vmem:[#allocation2 + $0x110] sm:$0xff]  ;;  %v2422_v20 = vld [vmem:[#allocation2 + $0xc8] sm:$0xff] }
 0x2d7   : > { %v6404_v32 = vpop.f32.mrf.mxu1  ;;  %v3989_v43 = vpop.f32.mrf.mxu0 }
 0x2d8   : > { %3405 = vst [vmem:[#allocation2 + $0x100] sm:$0xff] %v3367_v45  ;;  %v3366_v8 = vadd.f32 %v3202_v53, %v2415_v4  ;;  %v3217_v30 = vadd.f32 %v6404_v32, %v11070_v6  ;;  %v2421_v53 = vld [vmem:[#allocation2 + $0x40] sm:$0xff] }
 0x2d9   : > { %v3211_v60 = vpop.f32.mrf.mxu1  ;;  %v11298_v48 = vpop.f32.mrf.mxu0 }
 0x2da   : > { %3404 = vst [vmem:[#allocation2 + $0x70] sm:$0xff] %v3366_v8  ;;  %v3369_v57 = vadd.f32 %v3217_v30, %v2418_v59  ;;  %v3212_v1 = vadd.f32 %v3211_v60, %v11062_v58  ;;  %v2424_v8 = vld [vmem:[#allocation2 + $0x20] sm:$0xff] }
 0x2db   : > { %v6407_v56 = vpop.f32.mrf.mxu1  ;;  %v3994_v40 = vpop.f32.mrf.mxu0 }
 0x2dc   : > { %3407 = vst [vmem:[#allocation2 + $0x88] sm:$0xff] %v3369_v57  ;;  %v3368_v11 = vadd.f32 %v3212_v1, %v2417_v38  ;;  %v3227_v50 = vadd.f32 %v6407_v56, %v11089_v9  ;;  %v2423_v57 = vld [vmem:[#allocation2 + $0x30] sm:$0xff] }
 0x2dd   : > { %v3221_v26 = vpop.f32.mrf.mxu1  ;;  %v11302_v52 = vpop.f32.mrf.mxu0  ;;  %v2426_v40 = vld [vmem:[#allocation2 + $0x50] sm:$0xff] }
 0x2de   : > { %3406 = vst [vmem:[#allocation2 + $0x108] sm:$0xff] %v3368_v11  ;;  %v3371_v6 = vadd.f32 %v3227_v50, %v2420_v27  ;;  %v3222_v51 = vadd.f32 %v3221_v26, %v11079_v46  ;;  %v2425_v26 = vld [vmem:[#allocation2 + $0x128] sm:$0xff] }
 0x2df   : > { %v6410_v4 = vpop.f32.mrf.mxu1  ;;  %v3999_v33 = vpop.f32.mrf.mxu0 }
 0x2e0   : > { %3409 = vst [vmem:[#allocation2 + $0xf0] sm:$0xff] %v3371_v6  ;;  %v3370_v58 = vadd.f32 %v3222_v51, %v2419_v16  ;;  %v3237_v45 = vadd.f32 %v6410_v4, %v11108_v55  ;;  %v2428_v4 = vld [vmem:[#allocation2 + $0x98] sm:$0xff] }
 0x2e1   : > { %v3231_v59 = vpop.f32.mrf.mxu1  ;;  %v11306_v32 = vpop.f32.mrf.mxu0 }
 0x2e2   : > { %3408 = vst [vmem:[#allocation2 + $0x110] sm:$0xff] %v3370_v58  ;;  %v3373_v9 = vadd.f32 %v3237_v45, %v2422_v20  ;;  %v3232_v43 = vadd.f32 %v3231_v59, %v11099_v39 }
 0x2e3   : > { %v6413_v30 = vpop.f32.mrf.mxu1  ;;  %v4004_v38 = vpop.f32.mrf.mxu0 }
 0x2e4   : > { %3411 = vst [vmem:[#allocation2 + $0xc8] sm:$0xff] %v3373_v9  ;;  %v3372_v46 = vadd.f32 %v3232_v43, %v2421_v53  ;;  %v3247_v60 = vadd.f32 %v6413_v30, %v11126_v13  ;;  %v2427_v53 = vld [vmem:[#allocation2 + $0x8] sm:$0xff] }
 0x2e5   : > { %v3241_v1 = vpop.f32.mrf.mxu1  ;;  %v11310_v27 = vpop.f32.mrf.mxu0 }
 0x2e6   : > { %3410 = vst [vmem:[#allocation2 + $0x40] sm:$0xff] %v3372_v46  ;;  %v3375_v55 = vadd.f32 %v3247_v60, %v2424_v8  ;;  %v3242_v56 = vadd.f32 %v3241_v1, %v11117_v17  ;;  %v2430_v8 = vld [vmem:[#allocation2 + $0x90] sm:$0xff]  ;;  %v2429_v60 = vld [vmem:[#allocation2 + $0xa8] sm:$0xff] }
 0x2e7   : > { %v6416_v11 = vpop.f32.mrf.mxu1  ;;  %v4009_v50 = vpop.f32.mrf.mxu0 }
 0x2e8   : > { %3413 = vst [vmem:[#allocation2 + $0x20] sm:$0xff] %v3375_v55  ;;  %v3374_v39 = vadd.f32 %v3242_v56, %v2423_v57  ;;  %v3257_v16 = vadd.f32 %v6416_v11, %v11148_v25  ;;  %v2432_v55 = vld [vmem:[#allocation2 + $0xf8] sm:$0xff] }
 0x2e9   : > { %v3251_v6 = vpop.f32.mrf.mxu1  ;;  %v11314_v51 = vpop.f32.mrf.mxu0 }
 0x2ea   : > { %3412 = vst [vmem:[#allocation2 + $0x30] sm:$0xff] %v3374_v39  ;;  %v3377_v13 = vadd.f32 %v3257_v16, %v2426_v40  ;;  %v3252_v20 = vadd.f32 %v3251_v6, %v11139_v5 }
 0x2eb   : > { %v6419_v33 = vpop.f32.mrf.mxu1  ;;  %v4014_v58 = vpop.f32.mrf.mxu0 }
 0x2ec   : > { %3415 = vst [vmem:[#allocation2 + $0x50] sm:$0xff] %v3377_v13  ;;  %v3376_v17 = vadd.f32 %v3252_v20, %v2425_v26  ;;  %v3267_v45 = vadd.f32 %v6419_v33, %v11166_v42  ;;  %v2434_v26 = vld [vmem:[#allocation2 + $0x78] sm:$0xff]  ;;  %v2433_v20 = vld [vmem:[#allocation2 + $0xa0] sm:$0xff] }
 0x2ed   : > { %v3261_v59 = vpop.f32.mrf.mxu1  ;;  %v11318_v9 = vpop.f32.mrf.mxu0  ;;  %v2436_v58 = vld [vmem:[#allocation2 + $0x80] sm:$0xff] }
 0x2ee   : > { %3414 = vst [vmem:[#allocation2 + $0x128] sm:$0xff] %v3376_v17  ;;  %v3379_v25 = vadd.f32 %v3267_v45, %v2428_v4  ;;  %v3262_v43 = vadd.f32 %v3261_v59, %v11157_v44  ;;  %v2431_v44 = vld [vmem:[#allocation2 + $0xe0] sm:$0xff] }
 0x2ef   : > { %v6422_v30 = vpop.f32.mrf.mxu1  ;;  %v4019_v38 = vpop.f32.mrf.mxu0 }
 0x2f0   : > { %3417 = vst [vmem:[#allocation2 + $0x98] sm:$0xff] %v3379_v25  ;;  %v3378_v5 = vadd.f32 %v3262_v43, %v2427_v53  ;;  %v3277_v46 = vadd.f32 %v6422_v30, %v11184_v3  ;;  %v2435_v53 = vld [vmem:[#allocation2 + $0xc0] sm:$0xff]  ;;  %v2437_v38 = vld [vmem:[#allocation2 + $0xe8] sm:$0xff] }
 0x2f1   : > { %v3271_v57 = vpop.f32.mrf.mxu1  ;;  %v2438_v43 = vld [vmem:[#allocation2] sm:$0xff] }
 0x2f2   : > { %3416 = vst [vmem:[#allocation2 + $0x8] sm:$0xff] %v3378_v5  ;;  %v3381_v1 = vadd.f32 %v3277_v46, %v2430_v8  ;;  %v3272_v42 = vadd.f32 %v3271_v57, %v11175_v62 }
 0x2f3   : > { %v6425_v56 = vpop.f32.mrf.mxu1 }
 0x2f4   : > { %3419 = vst [vmem:[#allocation2 + $0x90] sm:$0xff] %v3381_v1  ;;  %v3380_v40 = vadd.f32 %v3272_v42, %v2429_v60  ;;  %v3287_v11 = vadd.f32 %v6425_v56, %v11207_v21  ;;  %v2440_v60 = vld [vmem:[#allocation2 + $0x28] sm:$0xff]  ;;  %v2439_v42 = vld [vmem:[#allocation2 + $0xd8] sm:$0xff] }
 0x2f5   : > { %v3281_v50 = vpop.f32.mrf.mxu1 }
 0x2f6   : > { %3418 = vst [vmem:[#allocation2 + $0xa8] sm:$0xff] %v3380_v40  ;;  %v3383_v39 = vadd.f32 %v3287_v11, %v2432_v55  ;;  %v3282_v16 = vadd.f32 %v3281_v50, %v11193_v37  ;;  %v2442_v40 = vld [vmem:[#allocation2 + $0x68] sm:$0xff] }
 0x2f7   : > { %v6428_v3 = vpop.f32.mrf.mxu1 }
 0x2f8   : > { %3421 = vst [vmem:[#allocation2 + $0xf8] sm:$0xff] %v3383_v39  ;;  %v3382_v6 = vadd.f32 %v3282_v16, %v2431_v44  ;;  %v3297_v13 = vadd.f32 %v6428_v3, %v11225_v61  ;;  %v2441_v39 = vld [vmem:[#allocation2 + $0x60] sm:$0xff] }
 0x2f9   : > { %v3291_v62 = vpop.f32.mrf.mxu1 }
 0x2fa   : > { %3420 = vst [vmem:[#allocation2 + $0xe0] sm:$0xff] %v3382_v6  ;;  %v3385_v4 = vadd.f32 %v3297_v13, %v2434_v26  ;;  %v3292_v33 = vadd.f32 %v3291_v62, %v11216_v41  ;;  %v2444_v6 = vld [vmem:[#allocation2 + $0x58] sm:$0xff] }
 0x2fb   : > { %v6431_v21 = vpop.f32.mrf.mxu1 }
 0x2fc   : > { %3423 = vst [vmem:[#allocation2 + $0x78] sm:$0xff] %v3385_v4  ;;  %v3384_v17 = vadd.f32 %v3292_v33, %v2433_v20  ;;  %v3307_v45 = vadd.f32 %v6431_v21, %v11242_v29  ;;  %v2443_v4 = vld [vmem:[#allocation2 + $0x18] sm:$0xff] }
 0x2fd   : > { %v3301_v37 = vpop.f32.mrf.mxu1 }
 0x2fe   : > { %3422 = vst [vmem:[#allocation2 + $0xa0] sm:$0xff] %v3384_v17  ;;  %v3387_v59 = vadd.f32 %v3307_v45, %v2436_v58  ;;  %v3302_v25 = vadd.f32 %v3301_v37, %v11233_v49  ;;  %v2446_v17 = vld [vmem:[#allocation2 + $0xb8] sm:$0xf] }
 0x2ff   : > { %v6434_v61 = vpop.f32.mrf.mxu1 }
 0x300   : > { %3425 = vst [vmem:[#allocation2 + $0x80] sm:$0xff] %v3387_v59  ;;  %v3386_v8 = vadd.f32 %v3302_v25, %v2435_v53  ;;  %v3317_v30 = vadd.f32 %v6434_v61, %v11251_v28  ;;  %v2445_v59 = vld [vmem:[#allocation2 + $0x118] sm:$0xff] }
 0x301   : > { %v3311_v41 = vpop.f32.mrf.mxu1 }
 0x302   : > { %3424 = vst [vmem:[#allocation2 + $0xc0] sm:$0xff] %v3386_v8  ;;  %v3389_v5 = vadd.f32 %v3317_v30, %v2438_v43  ;;  %v3312_v46 = vadd.f32 %v3311_v41, %v11246_v54  ;;  %v3437_v8 = vld [vmem:[#allocation3 + $0x8] sm:$0xff] }
 0x303   : > { %v6437_v29 = vpop.f32.mrf.mxu1 }
 0x304   : > { %3427 = vst [vmem:[#allocation2] sm:$0xff] %v3389_v5  ;;  %v3388_v57 = vadd.f32 %v3312_v46, %v2437_v38  ;;  %v3327_v1 = vadd.f32 %v6437_v29, %v11255_v14  ;;  %v3436_v5 = vld [vmem:[#allocation3] sm:$0xff] }
 0x305   : > { %v3321_v49 = vpop.f32.mrf.mxu1  ;;  %v11332_v55 = vpop.f32.mrf.mxu0 }
 0x306   : > { %3426 = vst [vmem:[#allocation2 + $0xe8] sm:$0xff] %v3388_v57  ;;  %v3391_v56 = vadd.f32 %v3327_v1, %v2440_v60  ;;  %v3322_v28 = vadd.f32 %v3321_v49, %v11253_v12  ;;  %v3439_v57 = vld [vmem:[#allocation3 + $0x18] sm:$0xff] }
 0x307   : > { %v6440_v11 = vpop.f32.mrf.mxu1  ;;  %v4024_v44 = vpop.f32.mrf.mxu0 }
 0x308   : > { %3429 = vst [vmem:[#allocation2 + $0x28] sm:$0xff] %v3391_v56  ;;  %v3390_v50 = vadd.f32 %v3322_v28, %v2439_v42  ;;  %v3337_v54 = vadd.f32 %v6440_v11, %v11261_v0  ;;  %v3438_v56 = vld [vmem:[#allocation3 + $0x10] sm:$0xff]  ;;  %v3441_v44 = vld [vmem:[#allocation3 + $0x28] sm:$0xff] }
 0x309   : > { %v3331_v16 = vpop.f32.mrf.mxu1  ;;  %v11336_v26 = vpop.f32.mrf.mxu0 }
 0x30a   : > { %3428 = vst [vmem:[#allocation2 + $0xd8] sm:$0xff] %v3390_v50  ;;  %v3393_v14 = vadd.f32 %v3337_v54, %v2442_v40  ;;  %v3332_v3 = vadd.f32 %v3331_v16, %v11257_v7  ;;  %v3440_v16 = vld [vmem:[#allocation3 + $0x20] sm:$0xff] }
 0x30b   : > { %v6443_v13 = vpop.f32.mrf.mxu1  ;;  %v4029_v20 = vpop.f32.mrf.mxu0 }
 0x30c   : > { %3431 = vst [vmem:[#allocation2 + $0x68] sm:$0xff] %v3393_v14  ;;  %v3392_v12 = vadd.f32 %v3332_v3, %v2441_v39  ;;  %v3347_v62 = vadd.f32 %v6443_v13, %v11269_v36  ;;  %v3443_v13 = vld [vmem:[#allocation3 + $0x38] sm:$0xff] }
 0x30d   : > { %v3341_v33 = vpop.f32.mrf.mxu1  ;;  %v11340_v58 = vpop.f32.mrf.mxu0 }
 0x30e   : > { %3430 = vst [vmem:[#allocation2 + $0x60] sm:$0xff] %v3392_v12  ;;  %v3395_v0 = vadd.f32 %v3347_v62, %v2444_v6  ;;  %v3342_v21 = vadd.f32 %v3341_v33, %v11265_v34 }
 0x30f   : > { %v6446_v45 = vpop.f32.mrf.mxu1  ;;  %v4034_v53 = vpop.f32.mrf.mxu0 }
 0x310   : > { %3433 = vst [vmem:[#allocation2 + $0x58] sm:$0xff] %v3395_v0  ;;  %v3394_v7 = vadd.f32 %v3342_v21, %v2443_v4  ;;  %v3357_v37 = vadd.f32 %v6446_v45, %v11277_v24  ;;  %v3442_v4 = vld [vmem:[#allocation3 + $0x30] sm:$0xff] }
 0x311   : > { %v3351_v25 = vpop.f32.mrf.mxu1  ;;  %v11344_v43 = vpop.f32.mrf.mxu0 }
 0x312   : > { %3432 = vst [vmem:[#allocation2 + $0x18] sm:$0xff] %v3394_v7  ;;  %v3397_v36 = vadd.f32 %v3357_v37, %v2446_v17  ;;  %v3352_v61 = vadd.f32 %v3351_v25, %v11273_v22  ;;  %v3445_v17 = vld [vmem:[#allocation3 + $0x48] sm:$0xff]  ;;  %v3444_v37 = vld [vmem:[#allocation3 + $0x40] sm:$0xff] }
 0x313   : > { %v6451_v30 = vpop.f32.mrf.mxu1  ;;  %v4039_v38 = vpop.f32.mrf.mxu0 }
 0x314   : > { %3435 = vst [vmem:[#allocation2 + $0xb8] sm:$0xf] %v3397_v36  ;;  %v3396_v34 = vadd.f32 %v3352_v61, %v2445_v59  ;;  %v4203_v41 = vadd.f32 %v6451_v30, %v11263_v47  ;;  %v3447_v61 = vld [vmem:[#allocation3 + $0x58] sm:$0xff] }
 0x315   : > { %v4197_v46 = vpop.f32.mrf.mxu1  ;;  %v11348_v60 = vpop.f32.mrf.mxu0 }
 0x316   : > { %3434 = vst [vmem:[#allocation2 + $0x118] sm:$0xff] %v3396_v34  ;;  %v4387_v24 = vadd.f32 %v4203_v41, %v3437_v8  ;;  %v4198_v29 = vadd.f32 %v4197_v46, %v11259_v23  ;;  %v3446_v34 = vld [vmem:[#allocation3 + $0x50] sm:$0xff] }
 0x317   : > { %v6454_v1 = vpop.f32.mrf.mxu1  ;;  %v4044_v42 = vpop.f32.mrf.mxu0 }
 0x318   : > { %4426 = vst.msk [vmem:[#allocation3 + $0x8] sm:$0xff] %vm4424_vm7, %v4387_v24  ;;  %v4386_v22 = vadd.f32 %v4198_v29, %v3436_v5  ;;  %v4213_v49 = vadd.f32 %v6454_v1, %v11271_v19  ;;  %v3449_v24 = vld [vmem:[#allocation3 + $0x68] sm:$0xff]  ;;  %v3448_v42 = vld [vmem:[#allocation3 + $0x60] sm:$0xff] }
 0x319   : > { %v4207_v28 = vpop.f32.mrf.mxu1  ;;  %v11353_v47 = vpop.f32.mrf.mxu0 }
 0x31a   : > { %4425 = vst.msk [vmem:[#allocation3] sm:$0xff] %vm4424_vm7, %v4386_v22  ;;  %v4389_v40 = vadd.f32 %v4213_v49, %v3439_v57  ;;  %v4208_v11 = vadd.f32 %v4207_v28, %v11267_v10  ;;  %v3451_v28 = vld [vmem:[#allocation3 + $0x78] sm:$0xff] }
 0x31b   : > { %v6457_v50 = vpop.f32.mrf.mxu1  ;;  %v4049_v23 = vpop.f32.mrf.mxu0 }
 0x31c   : > { %4428 = vst.msk [vmem:[#allocation3 + $0x18] sm:$0xff] %vm4424_vm7, %v4389_v40  ;;  %v4388_v54 = vadd.f32 %v4208_v11, %v3438_v56  ;;  %v4223_v39 = vadd.f32 %v6457_v50, %v11279_v2  ;;  %v3450_v50 = vld [vmem:[#allocation3 + $0x70] sm:$0xff] }
 0x31d   : > { %v4217_v14 = vpop.f32.mrf.mxu1  ;;  %v11359_v19 = vpop.f32.mrf.mxu0 }
 0x31e   : > { %4427 = vst.msk [vmem:[#allocation3 + $0x10] sm:$0xff] %vm4424_vm7, %v4388_v54  ;;  %v4391_v3 = vadd.f32 %v4223_v39, %v3441_v44  ;;  %v4218_v6 = vadd.f32 %v4217_v14, %v11275_v15 }
 0x31f   : > { %v6460_v20 = vpop.f32.mrf.mxu1  ;;  %v4054_v10 = vpop.f32.mrf.mxu0 }
 0x320   : > { %4430 = vst.msk [vmem:[#allocation3 + $0x28] sm:$0xff] %vm4424_vm7, %v4391_v3  ;;  %v4390_v12 = vadd.f32 %v4218_v6, %v3440_v16  ;;  %v4233_v62 = vadd.f32 %v6460_v20, %v11286_v63  ;;  %v3453_v16 = vld [vmem:[#allocation3 + $0x88] sm:$0xff] }
 0x321   : > { %v4227_v33 = vpop.f32.mrf.mxu1  ;;  %v11365_v2 = vpop.f32.mrf.mxu0 }
 0x322   : > { %4429 = vst.msk [vmem:[#allocation3 + $0x20] sm:$0xff] %vm4424_vm7, %v4390_v12  ;;  %v4393_v0 = vadd.f32 %v4233_v62, %v3443_v13  ;;  %v4228_v21 = vadd.f32 %v4227_v33, %v11282_v31  ;;  %v3452_v13 = vld [vmem:[#allocation3 + $0x80] sm:$0xff]  ;;  %v3455_v62 = vld [vmem:[#allocation3 + $0x98] sm:$0xff] }
 0x323   : > { %v6463_v45 = vpop.f32.mrf.mxu1  ;;  %v4059_v15 = vpop.f32.mrf.mxu0 }
 0x324   : > { %4432 = vst.msk [vmem:[#allocation3 + $0x38] sm:$0xff] %vm4424_vm7, %v4393_v0  ;;  %v4392_v53 = vadd.f32 %v4228_v21, %v3442_v4  ;;  %v4243_v7 = vadd.f32 %v6463_v45, %v11294_v18  ;;  %v3454_v21 = vld [vmem:[#allocation3 + $0x90] sm:$0xff] }
 0x325   : > { %v4237_v59 = vpop.f32.mrf.mxu1  ;;  %v11371_v63 = vpop.f32.mrf.mxu0 }
 0x326   : > { %4431 = vst.msk [vmem:[#allocation3 + $0x30] sm:$0xff] %vm4424_vm7, %v4392_v53  ;;  %v4395_v25 = vadd.f32 %v4243_v7, %v3445_v17  ;;  %v4238_v36 = vadd.f32 %v4237_v59, %v11290_v35  ;;  %v3457_v53 = vld [vmem:[#allocation3 + $0xa8] sm:$0xff] }
 0x327   : > { %v6466_v8 = vpop.f32.mrf.mxu1  ;;  %v4064_v31 = vpop.f32.mrf.mxu0 }
 0x328   : > { %4434 = vst.msk [vmem:[#allocation3 + $0x48] sm:$0xff] %vm4424_vm7, %v4395_v25  ;;  %v4394_v30 = vadd.f32 %v4238_v36, %v3444_v37  ;;  %v4253_v38 = vadd.f32 %v6466_v8, %v11302_v52  ;;  %v3456_v25 = vld [vmem:[#allocation3 + $0xa0] sm:$0xff]  ;;  %v3459_v31 = vld [vmem:[#allocation3 + $0xb8] sm:$0xff] }
 0x329   : > { %v4247_v41 = vpop.f32.mrf.mxu1  ;;  %v11377_v18 = vpop.f32.mrf.mxu0 }
 0x32a   : > { %4433 = vst.msk [vmem:[#allocation3 + $0x40] sm:$0xff] %vm4424_vm7, %v4394_v30  ;;  %v4397_v5 = vadd.f32 %v4253_v38, %v3447_v61  ;;  %v4248_v46 = vadd.f32 %v4247_v41, %v11298_v48  ;;  %v3458_v41 = vld [vmem:[#allocation3 + $0xb0] sm:$0xff] }
 0x32b   : > { %v6469_v29 = vpop.f32.mrf.mxu1  ;;  %v4069_v35 = vpop.f32.mrf.mxu0 }
 0x32c   : > { %4436 = vst.msk [vmem:[#allocation3 + $0x58] sm:$0xff] %vm4424_vm7, %v4397_v5  ;;  %v4396_v57 = vadd.f32 %v4248_v46, %v3446_v34  ;;  %v4263_v1 = vadd.f32 %v6469_v29, %v11310_v27  ;;  %v3461_v29 = vld [vmem:[#allocation3 + $0xc8] sm:$0xff] }
 0x32d   : > { %v4257_v22 = vpop.f32.mrf.mxu1  ;;  %v11383_v52 = vpop.f32.mrf.mxu0 }
 0x32e   : > { %4435 = vst.msk [vmem:[#allocation3 + $0x50] sm:$0xff] %vm4424_vm7, %v4396_v57  ;;  %v4399_v49 = vadd.f32 %v4263_v1, %v3449_v24  ;;  %v4258_v56 = vadd.f32 %v4257_v22, %v11306_v32 }
 0x32f   : > { %v6472_v40 = vpop.f32.mrf.mxu1  ;;  %v4074_v48 = vpop.f32.mrf.mxu0 }
 0x330   : > { %4438 = vst.msk [vmem:[#allocation3 + $0x68] sm:$0xff] %vm4424_vm7, %v4399_v49  ;;  %v4398_v11 = vadd.f32 %v4258_v56, %v3448_v42  ;;  %v4273_v44 = vadd.f32 %v6472_v40, %v11318_v9  ;;  %v3460_v42 = vld [vmem:[#allocation3 + $0xc0] sm:$0xff] }
 0x331   : > { %v4267_v23 = vpop.f32.mrf.mxu1  ;;  %v11389_v27 = vpop.f32.mrf.mxu0 }
 0x332   : > { %4437 = vst.msk [vmem:[#allocation3 + $0x60] sm:$0xff] %vm4424_vm7, %v4398_v11  ;;  %v4401_v54 = vadd.f32 %v4273_v44, %v3451_v28  ;;  %v4268_v39 = vadd.f32 %v4267_v23, %v11314_v51  ;;  %v3463_v28 = vld [vmem:[#allocation3 + $0xd8] sm:$0xff]  ;;  %v3462_v44 = vld [vmem:[#allocation3 + $0xd0] sm:$0xff] }
 0x333   : > { %v6475_v14 = vpop.f32.mrf.mxu1  ;;  %v4079_v32 = vpop.f32.mrf.mxu0 }
 0x334   : > { %4440 = vst.msk [vmem:[#allocation3 + $0x78] sm:$0xff] %vm4424_vm7, %v4401_v54  ;;  %v4400_v3 = vadd.f32 %v4268_v39, %v3450_v50  ;;  %v4283_v6 = vadd.f32 %v6475_v14, %v11336_v26  ;;  %v3465_v39 = vld [vmem:[#allocation3 + $0xe8] sm:$0xff] }
 0x335   : > { %v4277_v20 = vpop.f32.mrf.mxu1  ;;  %v11395_v9 = vpop.f32.mrf.mxu0 }
 0x336   : > { %4439 = vst.msk [vmem:[#allocation3 + $0x70] sm:$0xff] %vm4424_vm7, %v4400_v3  ;;  %v4403_v10 = vadd.f32 %v4283_v6, %v3453_v16  ;;  %v4278_v12 = vadd.f32 %v4277_v20, %v11332_v55  ;;  %v3464_v3 = vld [vmem:[#allocation3 + $0xe0] sm:$0xff] }
 0x337   : > { %v6478_v4 = vpop.f32.mrf.mxu1  ;;  %v4084_v51 = vpop.f32.mrf.mxu0 }
 0x338   : > { %4442 = vst.msk [vmem:[#allocation3 + $0x88] sm:$0xff] %vm4424_vm7, %v4403_v10  ;;  %v4402_v33 = vadd.f32 %v4278_v12, %v3452_v13  ;;  %v4293_v0 = vadd.f32 %v6478_v4, %v11344_v43  ;;  %v3467_v10 = vld [vmem:[#allocation3 + $0xf8] sm:$0xff]  ;;  %v3466_v51 = vld [vmem:[#allocation3 + $0xf0] sm:$0xff] }
 0x339   : > { %v4287_v17 = vpop.f32.mrf.mxu1  ;;  %v4087_v26 = vpop.f32.mrf.mxu0 }
 0x33a   : > { %4441 = vst.msk [vmem:[#allocation3 + $0x80] sm:$0xff] %vm4424_vm7, %v4402_v33  ;;  %v4405_v45 = vadd.f32 %v4293_v0, %v3455_v62  ;;  %v4288_v15 = vadd.f32 %v4287_v17, %v11340_v58 }
 0x33b   : > { %v6481_v7 = vpop.f32.mrf.mxu1  ;;  %v4089_v37 = vpop.f32.mrf.mxu0 }
 0x33c   : > { %4444 = vst.msk [vmem:[#allocation3 + $0x98] sm:$0xff] %vm4424_vm7, %v4405_v45  ;;  %v4404_v55 = vadd.f32 %v4288_v15, %v3454_v21  ;;  %v4303_v59 = vadd.f32 %v6481_v7, %v11353_v47  ;;  %v3468_v7 = vld [vmem:[#allocation3 + $0x100] sm:$0xff] }
 0x33d   : > { %v4297_v36 = vpop.f32.mrf.mxu1  ;;  %v11405_v61 = vpop.f32.mrf.mxu0 }
 0x33e   : > { %4443 = vst.msk [vmem:[#allocation3 + $0x90] sm:$0xff] %vm4424_vm7, %v4404_v55  ;;  %v4407_v43 = vadd.f32 %v4303_v59, %v3457_v53  ;;  %v4298_v8 = vadd.f32 %v4297_v36, %v11348_v60  ;;  %v3471_v36 = vld [vmem:[#allocation3 + $0x118] sm:$0xff] }
 0x33f   : > { %v6484_v30 = vpop.f32.mrf.mxu1  ;;  %v4094_v58 = vpop.f32.mrf.mxu0 }
 0x340   : > { %4446 = vst.msk [vmem:[#allocation3 + $0xa8] sm:$0xff] %vm4424_vm7, %v4407_v43  ;;  %v4406_v38 = vadd.f32 %v4298_v8, %v3456_v25  ;;  %v4313_v34 = vadd.f32 %v6484_v30, %v11365_v2  ;;  %v3470_v30 = vld [vmem:[#allocation3 + $0x110] sm:$0xff] }
 0x341   : > { %v4307_v5 = vpop.f32.mrf.mxu1  ;;  %v4097_v47 = vpop.f32.mrf.mxu0 }
 0x342   : > { %4445 = vst.msk [vmem:[#allocation3 + $0xa0] sm:$0xff] %vm4424_vm7, %v4406_v38  ;;  %v4409_v46 = vadd.f32 %v4313_v34, %v3459_v31  ;;  %v4308_v24 = vadd.f32 %v4307_v5, %v11359_v19  ;;  %v3473_v5 = vld [vmem:[#allocation3 + $0x128] sm:$0xf] }
 0x343   : > { %v6487_v35 = vpop.f32.mrf.mxu1  ;;  %v4099_v57 = vpop.f32.mrf.mxu0 }
 0x344   : > { %4448 = vst.msk [vmem:[#allocation3 + $0xb8] sm:$0xff] %vm4424_vm7, %v4409_v46  ;;  %v4408_v60 = vadd.f32 %v4308_v24, %v3458_v41  ;;  %v4323_v1 = vadd.f32 %v6487_v35, %v11377_v18  ;;  %v3472_v35 = vld [vmem:[#allocation3 + $0x120] sm:$0xff] }
 0x345   : > { %v4317_v22 = vpop.f32.mrf.mxu1  ;;  %v4102_v49 = vpop.f32.mrf.mxu0 }
 0x346   : > { %4447 = vst.msk [vmem:[#allocation3 + $0xb0] sm:$0xff] %vm4424_vm7, %v4408_v60  ;;  %v4411_v2 = vadd.f32 %v4323_v1, %v3461_v29  ;;  %v4318_v56 = vadd.f32 %v4317_v22, %v11371_v63 }
 0x347   : > { %v6490_v40 = vpop.f32.mrf.mxu1  ;;  %v4104_v48 = vpop.f32.mrf.mxu0 }
 0x348   : > { %4450 = vst.msk [vmem:[#allocation3 + $0xc8] sm:$0xff] %vm4424_vm7, %v4411_v2  ;;  %v4410_v19 = vadd.f32 %v4318_v56, %v3460_v42  ;;  %v4333_v11 = vadd.f32 %v6490_v40, %v11389_v27 }
 0x349   : > { %v4327_v50 = vpop.f32.mrf.mxu1  ;;  %v4107_v23 = vpop.f32.mrf.mxu0 }
 0x34a   : > { %4449 = vst.msk [vmem:[#allocation3 + $0xc0] sm:$0xff] %vm4424_vm7, %v4410_v19  ;;  %v4413_v18 = vadd.f32 %v4333_v11, %v3463_v28  ;;  %v4328_v54 = vadd.f32 %v4327_v50, %v11383_v52 }
 0x34b   : > { %v6493_v16 = vpop.f32.mrf.mxu1  ;;  %v4109_v14 = vpop.f32.mrf.mxu0 }
 0x34c   : > { %4452 = vst.msk [vmem:[#allocation3 + $0xd8] sm:$0xff] %vm4424_vm7, %v4413_v18  ;;  %v4412_v63 = vadd.f32 %v4328_v54, %v3462_v44  ;;  %v4343_v32 = vadd.f32 %v6493_v16, %v4087_v26  ;;  %v3469_v26 = vld [vmem:[#allocation3 + $0x108] sm:$0xff] }
 0x34d   : > { %v4337_v6 = vpop.f32.mrf.mxu1  ;;  %v4112_v13 = vpop.f32.mrf.mxu0 }
 0x34e   : > { %4451 = vst.msk [vmem:[#allocation3 + $0xd0] sm:$0xff] %vm4424_vm7, %v4412_v63  ;;  %v4415_v27 = vadd.f32 %v4343_v32, %v3465_v39  ;;  %v4338_v20 = vadd.f32 %v4337_v6, %v11395_v9 }
 0x34f   : > { %v6496_v12 = vpop.f32.mrf.mxu1  ;;  %v4114_v62 = vpop.f32.mrf.mxu0 }
 0x350   : > { %4454 = vst.msk [vmem:[#allocation3 + $0xe8] sm:$0xff] %vm4424_vm7, %v4415_v27  ;;  %v4414_v52 = vadd.f32 %v4338_v20, %v3464_v3  ;;  %v4353_v4 = vadd.f32 %v6496_v12, %v4097_v47 }
 0x351   : > { %v4347_v33 = vpop.f32.mrf.mxu1  ;;  %v4117_v0 = vpop.f32.mrf.mxu0 }
 0x352   : > { %4453 = vst.msk [vmem:[#allocation3 + $0xe0] sm:$0xff] %vm4424_vm7, %v4414_v52  ;;  %v4417_v21 = vadd.f32 %v4353_v4, %v3467_v10  ;;  %v4348_v17 = vadd.f32 %v4347_v33, %v11405_v61 }
 0x353   : > { %v6499_v45 = vpop.f32.mrf.mxu1  ;;  %v4119_v15 = vpop.f32.mrf.mxu0 }
 0x354   : > { %4456 = vst.msk [vmem:[#allocation3 + $0xf8] sm:$0xff] %vm4424_vm7, %v4417_v21  ;;  %v4416_v9 = vadd.f32 %v4348_v17, %v3466_v51  ;;  %v4363_v53 = vadd.f32 %v6499_v45, %v4107_v23 }
 0x355   : > { %v4357_v37 = vpop.f32.mrf.mxu1  ;;  %v4122_v55 = vpop.f32.mrf.mxu0 }
 0x356   : > { %4455 = vst.msk [vmem:[#allocation3 + $0xf0] sm:$0xff] %vm4424_vm7, %v4416_v9  ;;  %v4419_v59 = vadd.f32 %v4363_v53, %v3469_v26  ;;  %v4358_v25 = vadd.f32 %v4357_v37, %v4102_v49 }
 0x357   : > { %v6502_v43 = vpop.f32.mrf.mxu1  ;;  %v4124_v8 = vpop.f32.mrf.mxu0 }
 0x358   : > { %4458 = vst.msk [vmem:[#allocation3 + $0x108] sm:$0xff] %vm4424_vm7, %v4419_v59  ;;  %v4418_v61 = vadd.f32 %v4358_v25, %v3468_v7  ;;  %v4373_v31 = vadd.f32 %v6502_v43, %v4117_v0 }
 0x359   : > { %v4367_v58 = vpop.f32.mrf.mxu1  ;;  %v4127_v38 = vpop.f32.mrf.mxu0 }
 0x35a   : > { %4457 = vst.msk [vmem:[#allocation3 + $0x100] sm:$0xff] %vm4424_vm7, %v4418_v61  ;;  %v4421_v34 = vadd.f32 %v4373_v31, %v3471_v36  ;;  %v4368_v41 = vadd.f32 %v4367_v58, %v4112_v13 }
 0x35b   : > { %v6505_v47 = vpop.f32.mrf.mxu1  ;;  %v4129_v46 = vpop.f32.mrf.mxu0 }
 0x35c   : > { %4460 = vst.msk [vmem:[#allocation3 + $0x118] sm:$0xff] %vm4424_vm7, %v4421_v34  ;;  %v4420_v24 = vadd.f32 %v4368_v41, %v3470_v30  ;;  %v4383_v29 = vadd.f32 %v6505_v47, %v4127_v38 }
 0x35d   : > { %v4377_v57 = vpop.f32.mrf.mxu1 }
 0x35e   : > { %4459 = vst.msk [vmem:[#allocation3 + $0x110] sm:$0xff] %vm4424_vm7, %v4420_v24  ;;  %v4423_v60 = vadd.f32 %v4383_v29, %v3473_v5  ;;  %v4378_v1 = vadd.f32 %v4377_v57, %v4122_v55  ;;  %4467 = sbr.rel (%p5912_p9) target bundleno = 1280 (0x500), region = 48 }
 0x360   : > { %4463 = vst.msk [vmem:[#allocation3 + $0x128] sm:$0xf] %vm4462_vm4, %v4423_v60  ;;  %v4422_v42 = vadd.f32 %v4378_v1, %v3472_v35 }
 0x362   : > { %4461 = vst.msk [vmem:[#allocation3 + $0x120] sm:$0xff] %vm4424_vm7, %v4422_v42 }
 0x363   : > { %v4470_v22 = vld [vmem:[#allocation3 + $0x10] sm:$0xff]  ;;  %v4468_v49 = vld [vmem:[#allocation3] sm:$0xff]  ;;  %v7781_v56 = vmov 0   ;;  %v4469_v28 = vld [vmem:[#allocation3 + $0x8] sm:$0xff] }
 0x364   : > { %v4488_v2 = vld [vmem:[#allocation3 + $0xa0] sm:$0xff]  ;;  %7608 = vset.pattern.permute.xlu1 %v7781_v56  ;;  %7607 = vset.pattern.permute.xlu0 %v7781_v56  ;;  %7609 = vrcp.f32 %v4470_v22  ;;  %v4489_v40 = vld [vmem:[#allocation3 + $0xa8] sm:$0xff]  ;;  %v4471_v48 = vld [vmem:[#allocation3 + $0x18] sm:$0xff]  ;;  %vm4508_vm12 = vcmp.gt.f32.partialorder %v4470_v22, 0.0  ;;  %vm4506_vm3 = vcmp.gt.f32.partialorder %v4468_v49, 0.0  ;;  %vm4507_vm0 = vcmp.gt.f32.partialorder %v4469_v28, 0.0 }
 0x365   : > { %7611 = vrcp.f32 %v4468_v49  ;;  %v11435_v19 = vld [vmem:[#allocation3 + $0xb0] sm:$0xff]  ;;  %v11437_v11 = vld [vmem:[#allocation3 + $0x20] sm:$0xff]  ;;  %v11441_v44 = vld [vmem:[#allocation3 + $0xb8] sm:$0xff]  ;;  %vm4526_vm13 = vcmp.gt.f32.partialorder %v4488_v2, 0.0  ;;  %vm4527_vm15 = vcmp.gt.f32.partialorder %v4489_v40, 0.0  ;;  %vm4509_vm5 = vcmp.gt.f32.partialorder %v4471_v48, 0.0 }
 0x366   : > { %7613 = vrcp.f32 %v4488_v2  ;;  %v11443_v50 = vld [vmem:[#allocation3 + $0x28] sm:$0xff]  ;;  %v4900_v18 = vld [vmem:[%s11834_s4 + $0x70] sm:$0xff]  ;;  %v11455_v63 = vld [vmem:[#allocation3 + $0x30] sm:$0xff]  ;;  %vm4528_vm14 = vcmp.gt.f32.partialorder %v11435_v19, 0.0  ;;  %vm4510_vm6 = vcmp.gt.f32.partialorder %v11437_v11, 0.0  ;;  %vm4529_vm10 = vcmp.gt.f32.partialorder %v11441_v44, 0.0 }
 0x367   : > { %7615 = vrcp.f32 %v4469_v28  ;;  %v4901_v23 = vld [vmem:[%s11834_s4 + $0x78] sm:$0xff]  ;;  %v11453_v39 = vld [vmem:[#allocation3 + $0xc0] sm:$0xff]  ;;  %v4899_v32 = vld [vmem:[%s11834_s4 + $0x68] sm:$0xff]  ;;  %vm4511_vm9 = vcmp.gt.f32.partialorder %v11443_v50, 0.0  ;;  %vm4512_vm1 = vcmp.gt.f32.partialorder %v11455_v63, 0.0 }
 0x368   : > { %7617 = vrcp.f32 %v4489_v40  ;;  %6506 = vmatprep.subr.mxu0 %v4901_v23  ;;  %6659 = vmatprep.subr.mxu1 %v4901_v23  ;;  %v4898_v20 = vld [vmem:[%s11834_s4 + $0x60] sm:$0xff]  ;;  %v11468_v62 = vld [vmem:[#allocation3 + $0xc8] sm:$0xff]  ;;  %v11470_v4 = vld [vmem:[#allocation3 + $0x38] sm:$0xff]  ;;  %vm4530_vm11 = vcmp.gt.f32.partialorder %v11453_v39, 0.0 }
 0x369   : > { %7619 = vrcp.f32 %v4471_v48  ;;  %6507 = vmatpush3.msra.mxu0 %v4901_v23  ;;  %6675 = vmatpush3.msra.mxu1 %v4901_v23  ;;  %v4897_v51 = vld [vmem:[%s11834_s4 + $0x58] sm:$0xff]  ;;  %v11478_v17 = vld [vmem:[#allocation3 + $0xd0] sm:$0xff]  ;;  %v4896_v26 = vld [vmem:[%s11834_s4 + $0x50] sm:$0xff]  ;;  %vm4531_vm8 = vcmp.gt.f32.partialorder %v11468_v62, 0.0  ;;  %vm4513_vm2 = vcmp.gt.f32.partialorder %v11470_v4, 0.0 }
 0x36a   : > { %7621 = vrcp.f32 %v11435_v19  ;;  %6508 = vmatprep.subr.mxu0 %v4900_v18  ;;  %6660 = vmatprep.subr.mxu1 %v4900_v18  ;;  %v11484_v15 = vld [vmem:[#allocation3 + $0x40] sm:$0xff]  ;;  %v4895_v9 = vld [vmem:[%s11834_s4 + $0x48] sm:$0xff]  ;;  %v11495_v25 = vld [vmem:[#allocation3 + $0x48] sm:$0xff]  ;;  %vm4532_vm7 = vcmp.gt.f32.partialorder %v11478_v17, 0.0 }
 0x36b   : > { %7623 = vrcp.f32 %v11437_v11  ;;  %6509 = vmatpush3.msra.mxu0 %v4900_v18  ;;  %6676 = vmatpush3.msra.mxu1 %v4900_v18  ;;  %v11492_v55 = vld [vmem:[#allocation3 + $0xd8] sm:$0xff]  ;;  %v4894_v36 = vld [vmem:[%s11834_s4 + $0x40] sm:$0xff]  ;;  %v11503_v31 = vld [vmem:[#allocation3 + $0xe0] sm:$0xff]  ;;  %vm4514_vm4 = vcmp.gt.f32.partialorder %v11484_v15, 0.0 }
 0x36c   : > { %7625 = vrcp.f32 %v11441_v44  ;;  %6510 = vmatprep.subr.mxu0 %v4899_v32  ;;  %6661 = vmatprep.subr.mxu1 %v4899_v32  ;;  %v4893_v30 = vld [vmem:[%s11834_s4 + $0x38] sm:$0xff]  ;;  %v11509_v38 = vld [vmem:[#allocation3 + $0x50] sm:$0xff]  ;;  %v4892_v34 = vld [vmem:[%s11834_s4 + $0x30] sm:$0xff] }
 0x36d   : > { %7627 = vrcp.f32 %v11443_v50  ;;  %6511 = vmatpush3.msra.mxu0 %v4899_v32  ;;  %6677 = vmatpush3.msra.mxu1 %v4899_v32  ;;  %v11517_v46 = vld [vmem:[#allocation3 + $0xe8] sm:$0xff]  ;;  %v11520_v29 = vld [vmem:[#allocation3 + $0x58] sm:$0xff]  ;;  %v11528_v42 = vld [vmem:[#allocation3 + $0xf0] sm:$0xff] }
 0x36e   : > { %7629 = vrcp.f32 %v11453_v39  ;;  %6512 = vmatprep.subr.mxu0 %v4898_v20  ;;  %6662 = vmatprep.subr.mxu1 %v4898_v20  ;;  %v4891_v35 = vld [vmem:[%s11834_s4 + $0x28] sm:$0xff]  ;;  %v4890_v22 = vld [vmem:[%s11834_s4 + $0x20] sm:$0xff]  ;;  %v11534_v2 = vld [vmem:[#allocation3 + $0x60] sm:$0xff] }
 0x36f   : > { %7631 = vrcp.f32 %v11455_v63  ;;  %6513 = vmatpush3.msra.mxu0 %v4898_v20  ;;  %6678 = vmatpush3.msra.mxu1 %v4898_v20  ;;  %v4889_v56 = vld [vmem:[%s11834_s4 + $0x18] sm:$0xff]  ;;  %v11542_v19 = vld [vmem:[#allocation3 + $0xf8] sm:$0xff]  ;;  %v4888_v50 = vld [vmem:[%s11834_s4 + $0x10] sm:$0xff] }
 0x370   : > { %7633 = vrcp.f32 %v11468_v62  ;;  %6514 = vmatprep.subr.mxu0 %v4897_v51  ;;  %6663 = vmatprep.subr.mxu1 %v4897_v51  ;;  %v11545_v44 = vld [vmem:[#allocation3 + $0x68] sm:$0xff]  ;;  %v11553_v39 = vld [vmem:[#allocation3 + $0x100] sm:$0xff]  ;;  %v11559_v63 = vld [vmem:[#allocation3 + $0x70] sm:$0xff] }
 0x371   : > { %v7610_v54 = vpop.eup %7609  ;;  %7635 = vrcp.f32 %v11470_v4  ;;  %6515 = vmatpush3.msra.mxu0 %v4897_v51  ;;  %6679 = vmatpush3.msra.mxu1 %v4897_v51  ;;  %v4886_v32 = vld [vmem:[%s11834_s4] sm:$0xff] }
 0x372   : > { %v7612_v16 = vpop.eup %7611  ;;  %v4584_v14 = vsel %vm4508_vm12, %v7610_v54, 0.0  ;;  %7637 = vrcp.f32 %v11478_v17  ;;  %6516 = vmatprep.subr.mxu0 %v4896_v26  ;;  %6664 = vmatprep.subr.mxu1 %v4896_v26  ;;  %vm4533_vm12 = vcmp.gt.f32.partialorder %v11492_v55, 0.0  ;;  %v4502_v4 = vld [vmem:[#allocation3 + $0x110] sm:$0xff] }
 0x373   : > { %v7614_v3 = vpop.eup %7613  ;;  %4670 = vperm.xlu1 %7608, %v4584_v14   ;;  %v4582_v6 = vsel %vm4506_vm3, %v7612_v16, 0.0  ;;  %7639 = vrcp.f32 %v11484_v15  ;;  %6517 = vmatpush3.msra.mxu0 %v4896_v26  ;;  %vm4515_vm3 = vcmp.gt.f32.partialorder %v11495_v25, 0.0  ;;  %v4887_v16 = vld [vmem:[%s11834_s4 + $0x8] sm:$0xff]  ;;  %v4485_v15 = vld [vmem:[#allocation3 + $0x88] sm:$0xff] }
 0x374   : > { %v7616_v13 = vpop.eup %7615  ;;  %4660 = vperm.xlu0 %7607, %v4582_v6   ;;  %v4602_v27 = vsel %vm4526_vm13, %v7614_v3, 0.0  ;;  %6518 = vmatprep.subr.mxu0 %v4895_v9  ;;  %7641 = vrcp.f32 %v11492_v55  ;;  %vm4534_vm13 = vcmp.gt.f32.partialorder %v11503_v31, 0.0 }
 0x375   : > { %v7618_v10 = vpop.eup %7617  ;;  %v4583_v12 = vsel %vm4507_vm0, %v7616_v13, 0.0  ;;  %6519 = vmatpush3.msra.mxu0 %v4895_v9  ;;  %7643 = vrcp.f32 %v11495_v25  ;;  %6680 = vmatpush3.msra.mxu1 %v4896_v26  ;;  %vm4516_vm0 = vcmp.gt.f32.partialorder %v11509_v38, 0.0  ;;  %v4503_v26 = vld [vmem:[#allocation3 + $0x118] sm:$0xff] }
 0x376   : > { %v7620_v52 = vpop.eup %7619  ;;  %v4603_v33 = vsel %vm4527_vm15, %v7618_v10, 0.0  ;;  %6520 = vmatprep.subr.mxu0 %v4894_v36  ;;  %6665 = vmatprep.subr.mxu1 %v4895_v9  ;;  %7645 = vrcp.f32 %v11503_v31  ;;  %vm4535_vm15 = vcmp.gt.f32.partialorder %v11517_v46, 0.0  ;;  %v11570_v10 = vld [vmem:[#allocation3 + $0x78] sm:$0xff] }
 0x377   : > { %4760 = vperm.xlu1 %7608, %v4602_v27   ;;  %v7622_v0 = vpop.eup %7621  ;;  %v4585_v21 = vsel %vm4509_vm5, %v7620_v52, 0.0  ;;  %6521 = vmatpush3.msra.mxu0 %v4894_v36  ;;  %7647 = vrcp.f32 %v11509_v38  ;;  %v11567_v27 = vld [vmem:[#allocation3 + $0x108] sm:$0xff]  ;;  %vm4517_vm5 = vcmp.gt.f32.partialorder %v11520_v29, 0.0  ;;  %v4487_v31 = vld [vmem:[#allocation3 + $0x98] sm:$0xff] }
 0x378   : > { %4665 = vperm.xlu0 %7607, %v4583_v12   ;;  %v7624_v45 = vpop.eup %7623  ;;  %v4604_v53 = vsel %vm4528_vm14, %v7622_v0, 0.0  ;;  %6522 = vmatprep.subr.mxu0 %v4893_v30  ;;  %7649 = vrcp.f32 %v11517_v46  ;;  %vm4536_vm14 = vcmp.gt.f32.partialorder %v11528_v42, 0.0 }
 0x379   : > { %v7626_v7 = vpop.eup %7625  ;;  %v4586_v37 = vsel %vm4510_vm6, %v7624_v45, 0.0  ;;  %6681 = vmatpush3.msra.mxu1 %v4895_v9  ;;  %6523 = vmatpush3.msra.mxu0 %v4893_v30  ;;  %7651 = vrcp.f32 %v11520_v29  ;;  %vm4518_vm6 = vcmp.gt.f32.partialorder %v11534_v2, 0.0 }
 0x37a   : > { %v7628_v59 = vpop.eup %7627  ;;  %v4605_v43 = vsel %vm4529_vm10, %v7626_v7, 0.0  ;;  %6666 = vmatprep.subr.mxu1 %v4894_v36  ;;  %6524 = vmatprep.subr.mxu0 %v4892_v34  ;;  %7653 = vrcp.f32 %v11528_v42  ;;  %vm4537_vm10 = vcmp.gt.f32.partialorder %v11542_v19, 0.0 }
 0x37b   : > { %4765 = vperm.xlu1 %7608, %v4603_v33   ;;  %v7630_v8 = vpop.eup %7629  ;;  %v4587_v61 = vsel %vm4511_vm9, %v7628_v59, 0.0  ;;  %6682 = vmatpush3.msra.mxu1 %v4894_v36  ;;  %7655 = vrcp.f32 %v11534_v2  ;;  %v4484_v33 = vld [vmem:[#allocation3 + $0x80] sm:$0xff]  ;;  %vm4519_vm9 = vcmp.gt.f32.partialorder %v11545_v44, 0.0  ;;  %v4486_v59 = vld [vmem:[#allocation3 + $0x90] sm:$0xff] }
 0x37c   : > { %4675 = vperm.xlu0 %7607, %v4585_v21   ;;  %v7632_v58 = vpop.eup %7631  ;;  %v4606_v41 = vsel %vm4530_vm11, %v7630_v8, 0.0  ;;  %6525 = vmatpush3.msra.mxu0 %v4892_v34  ;;  %7657 = vrcp.f32 %v11542_v19  ;;  %vm4538_vm11 = vcmp.gt.f32.partialorder %v11553_v39, 0.0  ;;  %v4505_v8 = vld [vmem:[#allocation3 + $0x128] sm:$0xf]  ;;  %v4640_v19 = vld [vmem:[#allocation2 + $0xa8] sm:$0xff] }
 0x37d   : > { %v7634_v5 = vpop.eup %7633  ;;  %v4588_v47 = vsel %vm4512_vm1, %v7632_v58, 0.0  ;;  %6667 = vmatprep.subr.mxu1 %v4893_v30  ;;  %6526 = vmatprep.subr.mxu0 %v4891_v35  ;;  %7659 = vrcp.f32 %v11545_v44  ;;  %vm4520_vm1 = vcmp.gt.f32.partialorder %v11559_v63, 0.0  ;;  %v4622_v44 = vld [vmem:[#allocation2 + $0x10] sm:$0xff] }
 0x37e   : > { %v7636_v24 = vpop.eup %7635  ;;  %v4607_v57 = vsel %vm4531_vm8, %v7634_v5, 0.0  ;;  %6683 = vmatpush3.msra.mxu1 %v4893_v30  ;;  %6527 = vmatpush3.msra.mxu0 %v4891_v35  ;;  %7661 = vrcp.f32 %v11553_v39  ;;  %vm4539_vm8 = vcmp.gt.f32.partialorder %v11567_v27, 0.0  ;;  %v4641_v39 = vld [vmem:[#allocation2 + $0x90] sm:$0xff] }
 0x37f   : > { %4770 = vperm.xlu1 %7608, %v4604_v53   ;;  %v7638_v60 = vpop.eup %7637  ;;  %v4589_v1 = vsel %vm4513_vm2, %v7636_v24, 0.0  ;;  %6668 = vmatprep.subr.mxu1 %v4892_v34  ;;  %7663 = vrcp.f32 %v11559_v63  ;;  %vm4521_vm2 = vcmp.gt.f32.partialorder %v11570_v10, 0.0 }
 0x380   : > { %4680 = vperm.xlu0 %7607, %v4586_v37   ;;  %v7640_v49 = vpop.eup %7639  ;;  %v4608_v28 = vsel %vm4532_vm7, %v7638_v60, 0.0  ;;  %6528 = vmatprep.subr.mxu0 %v4890_v22  ;;  %7665 = vrcp.f32 %v11567_v27  ;;  %v4504_v37 = vld [vmem:[#allocation3 + $0x120] sm:$0xff]  ;;  %vm4540_vm7 = vcmp.gt.f32.partialorder %v4502_v4, 0.0  ;;  %v4624_v27 = vld [vmem:[#allocation2 + $0x120] sm:$0xff] }
 0x381   : > { %v7642_v40 = vpop.eup %7641  ;;  %v4590_v48 = vsel %vm4514_vm4, %v7640_v49, 0.0  ;;  %6684 = vmatpush3.msra.mxu1 %v4892_v34  ;;  %6529 = vmatpush3.msra.mxu0 %v4890_v22  ;;  %7667 = vrcp.f32 %v11570_v10  ;;  %vm4522_vm4 = vcmp.gt.f32.partialorder %v4484_v33, 0.0 }
 0x382   : > { %v7644_v11 = vpop.eup %7643  ;;  %6669 = vmatprep.subr.mxu1 %v4891_v35  ;;  %6530 = vmatprep.subr.mxu0 %v4889_v56  ;;  %v4609_v23 = vsel %vm4533_vm12, %v7642_v40, 0.0  ;;  %7669 = vrcp.f32 %v4502_v4  ;;  %vm4541_vm12 = vcmp.gt.f32.partialorder %v4503_v26, 0.0  ;;  %v4625_v4 = vld [vmem:[#allocation2 + $0x38] sm:$0xff] }
 0x383   : > { %4775 = vperm.xlu1 %7608, %v4605_v43   ;;  %6685 = vmatpush3.msra.mxu1 %v4891_v35  ;;  %v7646_v18 = vpop.eup %7645  ;;  %v4591_v54 = vsel %vm4515_vm3, %v7644_v11, 0.0  ;;  %7671 = vrcp.f32 %v4484_v33  ;;  %vm4523_vm3 = vcmp.gt.f32.partialorder %v4485_v15, 0.0  ;;  %v4621_v11 = vld [vmem:[#allocation2 + $0xd0] sm:$0xff] }
 0x384   : > { %4685 = vperm.xlu0 %7607, %v4587_v61   ;;  %6531 = vmatpush3.msra.mxu0 %v4889_v56  ;;  %v7648_v14 = vpop.eup %7647  ;;  %v4610_v3 = vsel %vm4534_vm13, %v7646_v18, 0.0  ;;  %7673 = vrcp.f32 %v4503_v26  ;;  %vm4542_vm13 = vcmp.gt.f32.partialorder %v4504_v37, 0.0  ;;  %v4626_v26 = vld [vmem:[#allocation2 + $0x70] sm:$0xff] }
 0x385   : > { %6670 = vmatprep.subr.mxu1 %v4890_v22  ;;  %6532 = vmatprep.subr.mxu0 %v4888_v50  ;;  %v7650_v6 = vpop.eup %7649  ;;  %v4592_v13 = vsel %vm4516_vm0, %v7648_v14, 0.0  ;;  %7675 = vrcp.f32 %v4485_v15  ;;  %vm4524_vm0 = vcmp.gt.f32.partialorder %v4486_v59, 0.0  ;;  %v4623_v14 = vld [vmem:[#allocation2 + $0x48] sm:$0xff] }
 0x386   : > { %6686 = vmatpush3.msra.mxu1 %v4890_v22  ;;  %6533 = vmatpush3.msra.mxu0 %v4888_v50  ;;  %v7652_v20 = vpop.eup %7651  ;;  %v4611_v12 = vsel %vm4535_vm15, %v7650_v6, 0.0  ;;  %7677 = vrcp.f32 %v4504_v37  ;;  %vm4543_vm15 = vcmp.gt.f32.partialorder %v4505_v8, 0.0  ;;  %v4627_v37 = vld [vmem:[#allocation2 + $0x100] sm:$0xff] }
 0x387   : > { %4780 = vperm.xlu1 %7608, %v4606_v41   ;;  %6671 = vmatprep.subr.mxu1 %v4889_v56  ;;  %v7654_v62 = vpop.eup %7653  ;;  %v4593_v52 = vsel %vm4517_vm5, %v7652_v20, 0.0  ;;  %7679 = vrcp.f32 %v4486_v59  ;;  %vm4525_vm5 = vcmp.gt.f32.partialorder %v4487_v31, 0.0 }
 0x388   : > { %4690 = vperm.xlu0 %7607, %v4588_v47   ;;  %6534 = vmatprep.subr.mxu0 %v4887_v16  ;;  %v7656_v51 = vpop.eup %7655  ;;  %v4612_v0 = vsel %vm4536_vm14, %v7654_v62, 0.0  ;;  %7681 = vrcp.f32 %v4505_v8  ;;  %v4628_v8 = vld [vmem:[#allocation2 + $0x108] sm:$0xff] }
 0x389   : > { %6687 = vmatpush3.msra.mxu1 %v4889_v56  ;;  %6535 = vmatpush3.msra.mxu0 %v4887_v16  ;;  %v7658_v21 = vpop.eup %7657  ;;  %v4594_v17 = vsel %vm4518_vm6, %v7656_v51, 0.0  ;;  %7683 = vrcp.f32 %v4487_v31  ;;  %v4620_v56 = vld [vmem:[#allocation2 + $0xb0] sm:$0xff] }
 0x38a   : > { %6672 = vmatprep.subr.mxu1 %v4888_v50  ;;  %6536 = vmatprep.subr.mxu0 %v4886_v32  ;;  %v7660_v45 = vpop.eup %7659  ;;  %v4613_v9 = vsel %vm4537_vm10, %v7658_v21, 0.0 }
 0x38b   : > { %4785 = vperm.xlu1 %7608, %v4607_v57   ;;  %6688 = vmatpush3.msra.mxu1 %v4888_v50  ;;  %v7662_v53 = vpop.eup %7661  ;;  %v4595_v7 = vsel %vm4519_vm9, %v7660_v45, 0.0 }
 0x38c   : > { %4695 = vperm.xlu0 %7607, %v4589_v1   ;;  %6537 = vmatpush3.msra.mxu0 %v4886_v32  ;;  %v7664_v55 = vpop.eup %7663  ;;  %v4614_v25 = vsel %vm4538_vm11, %v7662_v53, 0.0 }
 0x38d   : > { %6673 = vmatprep.subr.mxu1 %v4887_v16  ;;  %v7666_v36 = vpop.eup %7665  ;;  %v4596_v43 = vsel %vm4520_vm1, %v7664_v55, 0.0 }
 0x38e   : > { %6689 = vmatpush3.msra.mxu1 %v4887_v16  ;;  %v7668_v61 = vpop.eup %7667  ;;  %v4615_v30 = vsel %vm4539_vm8, %v7666_v36, 0.0 }
 0x38f   : > { %4790 = vperm.xlu1 %7608, %v4608_v28   ;;  %6674 = vmatprep.subr.mxu1 %v4886_v32  ;;  %v7670_v58 = vpop.eup %7669  ;;  %v4597_v38 = vsel %vm4521_vm2, %v7668_v61, 0.0 }
 0x390   : > { %4700 = vperm.xlu0 %7607, %v4590_v48   ;;  %6690 = vmatpush3.msra.mxu1 %v4886_v32  ;;  %v7672_v34 = vpop.eup %7671  ;;  %v4616_v41 = vsel %vm4540_vm7, %v7670_v58, 0.0 }
 0x391   : > { %v7674_v5 = vpop.eup %7673  ;;  %v4598_v47 = vsel %vm4522_vm4, %v7672_v34, 0.0  ;;  %v4629_v34 = vld [vmem:[#allocation2 + $0x88] sm:$0xff] }
 0x392   : > { %v7676_v46 = vpop.eup %7675  ;;  %v4617_v24 = vsel %vm4541_vm12, %v7674_v5, 0.0 }
 0x393   : > { %4795 = vperm.xlu1 %7608, %v4609_v23   ;;  %v7678_v29 = vpop.eup %7677  ;;  %v4599_v35 = vsel %vm4523_vm3, %v7676_v46, 0.0 }
 0x394   : > { %4705 = vperm.xlu0 %7607, %v4591_v54   ;;  %v7680_v57 = vpop.eup %7679  ;;  %v4618_v60 = vsel %vm4542_vm13, %v7678_v29, 0.0  ;;  %v4630_v29 = vld [vmem:[#allocation2 + $0x110] sm:$0xff] }
 0x395   : > { %v7682_v1 = vpop.eup %7681  ;;  %v4600_v42 = vsel %vm4524_vm0, %v7680_v57, 0.0 }
 0x396   : > { %v7684_v22 = vpop.eup %7683  ;;  %v4619_v49 = vsel %vm4543_vm15, %v7682_v1, 0.0 }
 0x397   : > { %4800 = vperm.xlu1 %7608, %v4610_v3   ;;  %v4601_v2 = vsel %vm4525_vm5, %v7684_v22, 0.0  ;;  %v4631_v22 = vld [vmem:[#allocation2 + $0xf0] sm:$0xff] }
 0x398   : > { %4710 = vperm.xlu0 %7607, %v4592_v13   ;;  %v4642_v13 = vld [vmem:[#allocation2 + $0xe0] sm:$0xff] }
 0x39b   : > { %4805 = vperm.xlu1 %7608, %v4611_v12  }
 0x39c   : > { %4715 = vperm.xlu0 %7607, %v4593_v52   ;;  %v4643_v52 = vld [vmem:[#allocation2 + $0xf8] sm:$0xff] }
 0x39f   : > { %4810 = vperm.xlu1 %7608, %v4612_v0  }
 0x3a0   : > { %4720 = vperm.xlu0 %7607, %v4594_v17   ;;  %v4644_v17 = vld [vmem:[#allocation2 + $0xa0] sm:$0xff] }
 0x3a3   : > { %4815 = vperm.xlu1 %7608, %v4613_v9  }
 0x3a4   : > { %4725 = vperm.xlu0 %7607, %v4595_v7   ;;  %v4645_v7 = vld [vmem:[#allocation2 + $0x78] sm:$0xff] }
 0x3a7   : > { %4820 = vperm.xlu1 %7608, %v4614_v25  }
 0x3a8   : > { %4730 = vperm.xlu0 %7607, %v4596_v43   ;;  %v4646_v43 = vld [vmem:[#allocation2 + $0xc0] sm:$0xff] }
 0x3ab   : > { %4825 = vperm.xlu1 %7608, %v4615_v30  }
 0x3ac   : > { %4735 = vperm.xlu0 %7607, %v4597_v38   ;;  %v4647_v38 = vld [vmem:[#allocation2 + $0x80] sm:$0xff] }
 0x3af   : > { %4830 = vperm.xlu1 %7608, %v4616_v41  }
 0x3b0   : > { %4740 = vperm.xlu0 %7607, %v4598_v47  }
 0x3b3   : > { %4835 = vperm.xlu1 %7608, %v4617_v24   ;;  %v4648_v24 = vld [vmem:[#allocation2 + $0xe8] sm:$0xff] }
 0x3b4   : > { %4745 = vperm.xlu0 %7607, %v4599_v35  }
 0x3b7   : > { %4840 = vperm.xlu1 %7608, %v4618_v60  }
 0x3b8   : > { %4750 = vperm.xlu0 %7607, %v4600_v42   ;;  %v4649_v42 = vld [vmem:[#allocation2] sm:$0xff] }
 0x3bb   : > { %4845 = vperm.xlu1 %7608, %v4619_v49  }
 0x3bc   : > { %4755 = vperm.xlu0 %7607, %v4601_v2  }
 0x3ee   : > { %v4671_v28 = vpop.permute.xlu1 %4670 }
 0x3ef   : > { %v4661_v40 = vpop.permute.xlu0 %4660  ;;  %v4850_v16 = vmul.f32 %v4671_v28, %v4622_v44 }
 0x3f0   : > { %v4848_v48 = vmul.f32 %v4661_v40, %v4620_v56  ;;  %v4650_v40 = vld [vmem:[#allocation2 + $0xd8] sm:$0xff] }
 0x3f2   : > { %6538 = vmatprep.mubr.f32.mxu0 %v4848_v48  ;;  %v4761_v50 = vpop.permute.xlu1 %4760  ;;  %v4632_v48 = vld [vmem:[#allocation2 + $0x40] sm:$0xff] }
 0x3f3   : > { %v4666_v23 = vpop.permute.xlu0 %4665  ;;  %v4868_v18 = vmul.f32 %v4761_v50, %v4640_v19 }
 0x3f4   : > { %v4849_v54 = vmul.f32 %v4666_v23, %v4621_v11  ;;  %v4651_v23 = vld [vmem:[#allocation2 + $0x28] sm:$0xff] }
 0x3f5   : > { %6568 = vmatprep.mubr.f32.mxu1 %v4868_v18  ;;  %v4633_v18 = vld [vmem:[#allocation2 + $0xc8] sm:$0xff] }
 0x3f6   : > { %6539 = vmatmul.mubr.f32.vlgmr.msra.gmra.mxu0 %v4849_v54  ;;  %v4766_v63 = vpop.permute.xlu1 %4765 }
 0x3f7   : > { %v4869_v32 = vmul.f32 %v4766_v63, %v4641_v39  ;;  %6541 = vmatprep.mubr.f32.mxu0 %v4850_v16  ;;  %v4676_v3 = vpop.permute.xlu0 %4675  ;;  %v4652_v63 = vld [vmem:[#allocation2 + $0x60] sm:$0xff] }
 0x3f8   : > { %v4851_v6 = vmul.f32 %v4676_v3, %v4623_v14 }
 0x3f9   : > { %6569 = vmatmul.mubr.f32.vlgmr.msra.gmra.mxu1 %v4869_v32  ;;  %v4634_v32 = vld [vmem:[#allocation2 + $0x30] sm:$0xff] }
 0x3fa   : > { %6542 = vmatmul.mubr.f32.gmra.mxu0 %v4851_v6  ;;  %v4771_v20 = vpop.permute.xlu1 %4770 }
 0x3fb   : > { %v4870_v10 = vmul.f32 %v4771_v20, %v4642_v13  ;;  %v4681_v12 = vpop.permute.xlu0 %4680  ;;  %v4653_v20 = vld [vmem:[#allocation2 + $0x68] sm:$0xff] }
 0x3fc   : > { %v4852_v62 = vmul.f32 %v4681_v12, %v4624_v27 }
 0x3fd   : > { %6571 = vmatprep.mubr.f32.mxu1 %v4870_v10  ;;  %v4635_v10 = vld [vmem:[#allocation2 + $0x20] sm:$0xff] }
 0x3fe   : > { %6544 = vmatprep.mubr.f32.mxu0 %v4852_v62  ;;  %v4776_v51 = vpop.permute.xlu1 %4775 }
 0x3ff   : > { %v4871_v33 = vmul.f32 %v4776_v51, %v4643_v52  ;;  %v4686_v0 = vpop.permute.xlu0 %4685  ;;  %v4654_v51 = vld [vmem:[#allocation2 + $0x18] sm:$0xff] }
 0x400   : > { %v4853_v21 = vmul.f32 %v4686_v0, %v4625_v4 }
 0x401   : > { %6572 = vmatmul.mubr.f32.gmra.mxu1 %v4871_v33  ;;  %v4636_v33 = vld [vmem:[#allocation2 + $0x128] sm:$0xff] }
 0x402   : > { %6545 = vmatmul.mubr.f32.gmra.mxu0 %v4853_v21  ;;  %v4781_v45 = vpop.permute.xlu1 %4780 }
 0x403   : > { %v4872_v15 = vmul.f32 %v4781_v45, %v4644_v17  ;;  %v4691_v9 = vpop.permute.xlu0 %4690  ;;  %v4655_v45 = vld [vmem:[#allocation2 + $0x58] sm:$0xff] }
 0x404   : > { %v4854_v53 = vmul.f32 %v4691_v9, %v4626_v26 }
 0x405   : > { %6574 = vmatprep.mubr.f32.mxu1 %v4872_v15  ;;  %v4637_v15 = vld [vmem:[#allocation2 + $0x50] sm:$0xff] }
 0x406   : > { %6547 = vmatprep.mubr.f32.mxu0 %v4854_v53  ;;  %v4786_v55 = vpop.permute.xlu1 %4785 }
 0x407   : > { %v4873_v59 = vmul.f32 %v4786_v55, %v4645_v7  ;;  %v4696_v25 = vpop.permute.xlu0 %4695  ;;  %v4656_v55 = vld [vmem:[#allocation2 + $0x118] sm:$0xff] }
 0x408   : > { %v4855_v36 = vmul.f32 %v4696_v25, %v4627_v37 }
 0x409   : > { %6575 = vmatmul.mubr.f32.gmra.mxu1 %v4873_v59  ;;  %v4638_v59 = vld [vmem:[#allocation2 + $0x8] sm:$0xff] }
 0x40a   : > { %6548 = vmatmul.mubr.f32.gmra.mxu0 %v4855_v36  ;;  %v4791_v61 = vpop.permute.xlu1 %4790 }
 0x40b   : > { %v4874_v31 = vmul.f32 %v4791_v61, %v4646_v43  ;;  %v4701_v30 = vpop.permute.xlu0 %4700  ;;  %v4657_v61 = vld [vmem:[#allocation2 + $0xb8] sm:$0xf] }
 0x40c   : > { %v4856_v58 = vmul.f32 %v4701_v30, %v4628_v8 }
 0x40d   : > { %6577 = vmatprep.mubr.f32.mxu1 %v4874_v31  ;;  %v4639_v31 = vld [vmem:[#allocation2 + $0x98] sm:$0xff] }
 0x40e   : > { %6550 = vmatprep.mubr.f32.mxu0 %v4856_v58  ;;  %v4796_v41 = vpop.permute.xlu1 %4795 }
 0x40f   : > { %v4875_v5 = vmul.f32 %v4796_v41, %v4647_v38  ;;  %v4706_v47 = vpop.permute.xlu0 %4705 }
 0x410   : > { %v4857_v46 = vmul.f32 %v4706_v47, %v4629_v34 }
 0x411   : > { %6578 = vmatmul.mubr.f32.gmra.mxu1 %v4875_v5 }
 0x412   : > { %6551 = vmatmul.mubr.f32.gmra.mxu0 %v4857_v46  ;;  %v4801_v35 = vpop.permute.xlu1 %4800 }
 0x413   : > { %v4876_v57 = vmul.f32 %v4801_v35, %v4648_v24  ;;  %v4711_v60 = vpop.permute.xlu0 %4710 }
 0x414   : > { %v4858_v1 = vmul.f32 %v4711_v60, %v4630_v29 }
 0x415   : > { %6580 = vmatprep.mubr.f32.mxu1 %v4876_v57 }
 0x416   : > { %6553 = vmatprep.mubr.f32.mxu0 %v4858_v1  ;;  %v4806_v49 = vpop.permute.xlu1 %4805 }
 0x417   : > { %v4877_v2 = vmul.f32 %v4806_v49, %v4649_v42  ;;  %v4716_v56 = vpop.permute.xlu0 %4715 }
 0x418   : > { %v4859_v28 = vmul.f32 %v4716_v56, %v4631_v22 }
 0x419   : > { %6581 = vmatmul.mubr.f32.gmra.mxu1 %v4877_v2 }
 0x41a   : > { %6554 = vmatmul.mubr.f32.gmra.mxu0 %v4859_v28  ;;  %v4811_v19 = vpop.permute.xlu1 %4810 }
 0x41b   : > { %v4878_v11 = vmul.f32 %v4811_v19, %v4650_v40  ;;  %v4721_v44 = vpop.permute.xlu0 %4720 }
 0x41c   : > { %v4860_v50 = vmul.f32 %v4721_v44, %v4632_v48 }
 0x41d   : > { %6583 = vmatprep.mubr.f32.mxu1 %v4878_v11 }
 0x41e   : > { %6556 = vmatprep.mubr.f32.mxu0 %v4860_v50  ;;  %v4816_v54 = vpop.permute.xlu1 %4815 }
 0x41f   : > { %v4879_v39 = vmul.f32 %v4816_v54, %v4651_v23  ;;  %v4726_v16 = vpop.permute.xlu0 %4725 }
 0x420   : > { %v4861_v14 = vmul.f32 %v4726_v16, %v4633_v18 }
 0x421   : > { %6584 = vmatmul.mubr.f32.gmra.mxu1 %v4879_v39 }
 0x422   : > { %6557 = vmatmul.mubr.f32.gmra.mxu0 %v4861_v14  ;;  %v4821_v3 = vpop.permute.xlu1 %4820 }
 0x423   : > { %v4880_v6 = vmul.f32 %v4821_v3, %v4652_v63  ;;  %v4731_v13 = vpop.permute.xlu0 %4730 }
 0x424   : > { %v4862_v27 = vmul.f32 %v4731_v13, %v4634_v32 }
 0x425   : > { %6586 = vmatprep.mubr.f32.mxu1 %v4880_v6 }
 0x426   : > { %6559 = vmatprep.mubr.f32.mxu0 %v4862_v27  ;;  %v4826_v12 = vpop.permute.xlu1 %4825 }
 0x427   : > { %v4881_v62 = vmul.f32 %v4826_v12, %v4653_v20  ;;  %v4736_v52 = vpop.permute.xlu0 %4735 }
 0x428   : > { %v4863_v4 = vmul.f32 %v4736_v52, %v4635_v10 }
 0x429   : > { %6587 = vmatmul.mubr.f32.gmra.mxu1 %v4881_v62 }
 0x42a   : > { %6560 = vmatmul.mubr.f32.gmra.mxu0 %v4863_v4  ;;  %v4831_v0 = vpop.permute.xlu1 %4830 }
 0x42b   : > { %v4882_v21 = vmul.f32 %v4831_v0, %v4654_v51  ;;  %v4741_v17 = vpop.permute.xlu0 %4740 }
 0x42c   : > { %v4864_v26 = vmul.f32 %v4741_v17, %v4636_v33 }
 0x42d   : > { %6589 = vmatprep.mubr.f32.mxu1 %v4882_v21 }
 0x42e   : > { %6562 = vmatprep.mubr.f32.mxu0 %v4864_v26  ;;  %v4836_v9 = vpop.permute.xlu1 %4835 }
 0x42f   : > { %v4883_v53 = vmul.f32 %v4836_v9, %v4655_v45  ;;  %v4746_v7 = vpop.permute.xlu0 %4745 }
 0x430   : > { %v4865_v37 = vmul.f32 %v4746_v7, %v4637_v15 }
 0x431   : > { %6590 = vmatmul.mubr.f32.gmra.mxu1 %v4883_v53 }
 0x432   : > { %6563 = vmatmul.mubr.f32.gmra.mxu0 %v4865_v37  ;;  %v4841_v25 = vpop.permute.xlu1 %4840 }
 0x433   : > { %v4884_v36 = vmul.f32 %v4841_v25, %v4656_v55  ;;  %v4751_v43 = vpop.permute.xlu0 %4750 }
 0x434   : > { %v4866_v8 = vmul.f32 %v4751_v43, %v4638_v59 }
 0x435   : > { %6592 = vmatprep.mubr.f32.mxu1 %v4884_v36 }
 0x436   : > { %6565 = vmatprep.mubr.f32.mxu0 %v4866_v8  ;;  %v4846_v30 = vpop.permute.xlu1 %4845 }
 0x437   : > { %v4885_v58 = vmul.f32 %v4846_v30, %v4657_v61  ;;  %v4756_v38 = vpop.permute.xlu0 %4755 }
 0x438   : > { %v4867_v34 = vmul.f32 %v4756_v38, %v4639_v31 }
 0x439   : > { %6593 = vmatmul.mubr.f32.gmra.mxu1 %v4885_v58 }
 0x43a   : > { %6566 = vmatmul.mubr.f32.gmra.mxu0 %v4867_v34 }
 0x4b6   : > { %v6540_v41 = vpop.f32.mrf.mxu0 }
 0x4b7   : > { %v5158_v5 = vmax.f32 %v6540_v41, 0.0 }
 0x4b8   : > { %v4968_v47 = vpop.f32.mrf.mxu0 }
 0x4b9   : > { %5196 = vst [vmem:[%s11836_s6 + $0x8] sm:$0xff] %v5158_v5  ;;  %v5157_v46 = vmax.f32 %v4968_v47, 0.0  ;;  %v6570_v24 = vpop.f32.mrf.mxu1 }
 0x4ba   : > { %v6543_v29 = vpop.f32.mrf.mxu0  ;;  %v5178_v35 = vmax.f32 %v6570_v24, 0.0 }
 0x4bb   : > { %5195 = vst [vmem:[%s11836_s6] sm:$0xff] %v5157_v46  ;;  %v5160_v57 = vmax.f32 %v6543_v29, 0.0  ;;  %v5068_v60 = vpop.f32.mrf.mxu1 }
 0x4bc   : > { %5216 = vst [vmem:[%s11836_s6 + $0xa8] sm:$0xff] %v5178_v35  ;;  %v4978_v1 = vpop.f32.mrf.mxu0  ;;  %v5177_v42 = vmax.f32 %v5068_v60, 0.0 }
 0x4bd   : > { %5198 = vst [vmem:[%s11836_s6 + $0x18] sm:$0xff] %v5160_v57  ;;  %v5159_v22 = vmax.f32 %v4978_v1, 0.0 }
 0x4be   : > { %5215 = vst [vmem:[%s11836_s6 + $0xa0] sm:$0xff] %v5177_v42 }
 0x4bf   : > { %5197 = vst [vmem:[%s11836_s6 + $0x10] sm:$0xff] %v5159_v22 }
 0x4c1   : > { %v6573_v49 = vpop.f32.mrf.mxu1 }
 0x4c2   : > { %v6546_v2 = vpop.f32.mrf.mxu0  ;;  %v5180_v56 = vmax.f32 %v6573_v49, 0.0 }
 0x4c3   : > { %v5162_v28 = vmax.f32 %v6546_v2, 0.0  ;;  %v5078_v40 = vpop.f32.mrf.mxu1 }
 0x4c4   : > { %5218 = vst [vmem:[%s11836_s6 + $0xb8] sm:$0xff] %v5180_v56  ;;  %v4988_v48 = vpop.f32.mrf.mxu0  ;;  %v5179_v19 = vmax.f32 %v5078_v40, 0.0 }
 0x4c5   : > { %5200 = vst [vmem:[%s11836_s6 + $0x28] sm:$0xff] %v5162_v28  ;;  %v5161_v11 = vmax.f32 %v4988_v48, 0.0 }
 0x4c6   : > { %5217 = vst [vmem:[%s11836_s6 + $0xb0] sm:$0xff] %v5179_v19 }
 0x4c7   : > { %5199 = vst [vmem:[%s11836_s6 + $0x20] sm:$0xff] %v5161_v11 }
 0x4c9   : > { %v6576_v44 = vpop.f32.mrf.mxu1 }
 0x4ca   : > { %v6549_v50 = vpop.f32.mrf.mxu0  ;;  %v5182_v23 = vmax.f32 %v6576_v44, 0.0 }
 0x4cb   : > { %v5164_v18 = vmax.f32 %v6549_v50, 0.0  ;;  %v5088_v54 = vpop.f32.mrf.mxu1 }
 0x4cc   : > { %5220 = vst [vmem:[%s11836_s6 + $0xc8] sm:$0xff] %v5182_v23  ;;  %v4998_v39 = vpop.f32.mrf.mxu0  ;;  %v5181_v16 = vmax.f32 %v5088_v54, 0.0 }
 0x4cd   : > { %5202 = vst [vmem:[%s11836_s6 + $0x38] sm:$0xff] %v5164_v18  ;;  %v5163_v14 = vmax.f32 %v4998_v39, 0.0 }
 0x4ce   : > { %5219 = vst [vmem:[%s11836_s6 + $0xc0] sm:$0xff] %v5181_v16 }
 0x4cf   : > { %5201 = vst [vmem:[%s11836_s6 + $0x30] sm:$0xff] %v5163_v14 }
 0x4d1   : > { %v6579_v63 = vpop.f32.mrf.mxu1 }
 0x4d2   : > { %v6552_v32 = vpop.f32.mrf.mxu0  ;;  %v5184_v3 = vmax.f32 %v6579_v63, 0.0 }
 0x4d3   : > { %v5166_v6 = vmax.f32 %v6552_v32, 0.0  ;;  %v5098_v13 = vpop.f32.mrf.mxu1 }
 0x4d4   : > { %5222 = vst [vmem:[%s11836_s6 + $0xd8] sm:$0xff] %v5184_v3  ;;  %v5008_v27 = vpop.f32.mrf.mxu0  ;;  %v5183_v20 = vmax.f32 %v5098_v13, 0.0 }
 0x4d5   : > { %5204 = vst [vmem:[%s11836_s6 + $0x48] sm:$0xff] %v5166_v6  ;;  %v5165_v10 = vmax.f32 %v5008_v27, 0.0 }
 0x4d6   : > { %5221 = vst [vmem:[%s11836_s6 + $0xd0] sm:$0xff] %v5183_v20 }
 0x4d7   : > { %5203 = vst [vmem:[%s11836_s6 + $0x40] sm:$0xff] %v5165_v10 }
 0x4d9   : > { %v6582_v12 = vpop.f32.mrf.mxu1 }
 0x4da   : > { %v6555_v62 = vpop.f32.mrf.mxu0  ;;  %v5186_v52 = vmax.f32 %v6582_v12, 0.0 }
 0x4db   : > { %v5168_v4 = vmax.f32 %v6555_v62, 0.0  ;;  %v5108_v51 = vpop.f32.mrf.mxu1 }
 0x4dc   : > { %5224 = vst [vmem:[%s11836_s6 + $0xe8] sm:$0xff] %v5186_v52  ;;  %v5018_v33 = vpop.f32.mrf.mxu0  ;;  %v5185_v0 = vmax.f32 %v5108_v51, 0.0 }
 0x4dd   : > { %5206 = vst [vmem:[%s11836_s6 + $0x58] sm:$0xff] %v5168_v4  ;;  %v5167_v21 = vmax.f32 %v5018_v33, 0.0 }
 0x4de   : > { %5223 = vst [vmem:[%s11836_s6 + $0xe0] sm:$0xff] %v5185_v0 }
 0x4df   : > { %5205 = vst [vmem:[%s11836_s6 + $0x50] sm:$0xff] %v5167_v21 }
 0x4e1   : > { %v6585_v17 = vpop.f32.mrf.mxu1 }
 0x4e2   : > { %v6558_v26 = vpop.f32.mrf.mxu0  ;;  %v5188_v45 = vmax.f32 %v6585_v17, 0.0 }
 0x4e3   : > { %v5170_v15 = vmax.f32 %v6558_v26, 0.0  ;;  %v5118_v9 = vpop.f32.mrf.mxu1 }
 0x4e4   : > { %5226 = vst [vmem:[%s11836_s6 + $0xf8] sm:$0xff] %v5188_v45  ;;  %v5028_v53 = vpop.f32.mrf.mxu0  ;;  %v5187_v7 = vmax.f32 %v5118_v9, 0.0 }
 0x4e5   : > { %5208 = vst [vmem:[%s11836_s6 + $0x68] sm:$0xff] %v5170_v15  ;;  %v5169_v37 = vmax.f32 %v5028_v53, 0.0 }
 0x4e6   : > { %5225 = vst [vmem:[%s11836_s6 + $0xf0] sm:$0xff] %v5187_v7 }
 0x4e7   : > { %5207 = vst [vmem:[%s11836_s6 + $0x60] sm:$0xff] %v5169_v37 }
 0x4e9   : > { %v6588_v55 = vpop.f32.mrf.mxu1 }
 0x4ea   : > { %v6561_v59 = vpop.f32.mrf.mxu0  ;;  %v5190_v25 = vmax.f32 %v6588_v55, 0.0 }
 0x4eb   : > { %v5172_v36 = vmax.f32 %v6561_v59, 0.0  ;;  %v5128_v43 = vpop.f32.mrf.mxu1 }
 0x4ec   : > { %5228 = vst [vmem:[%s11836_s6 + $0x108] sm:$0xff] %v5190_v25  ;;  %v5038_v8 = vpop.f32.mrf.mxu0  ;;  %v5189_v61 = vmax.f32 %v5128_v43, 0.0 }
 0x4ed   : > { %5210 = vst [vmem:[%s11836_s6 + $0x78] sm:$0xff] %v5172_v36  ;;  %v5171_v31 = vmax.f32 %v5038_v8, 0.0 }
 0x4ee   : > { %5227 = vst [vmem:[%s11836_s6 + $0x100] sm:$0xff] %v5189_v61 }
 0x4ef   : > { %5209 = vst [vmem:[%s11836_s6 + $0x70] sm:$0xff] %v5171_v31 }
 0x4f1   : > { %v6591_v30 = vpop.f32.mrf.mxu1 }
 0x4f2   : > { %v6564_v58 = vpop.f32.mrf.mxu0  ;;  %v5192_v38 = vmax.f32 %v6591_v30, 0.0 }
 0x4f3   : > { %v5174_v34 = vmax.f32 %v6564_v58, 0.0  ;;  %v5138_v41 = vpop.f32.mrf.mxu1 }
 0x4f4   : > { %5230 = vst [vmem:[%s11836_s6 + $0x118] sm:$0xff] %v5192_v38  ;;  %v5048_v5 = vpop.f32.mrf.mxu0  ;;  %v5191_v47 = vmax.f32 %v5138_v41, 0.0 }
 0x4f5   : > { %5212 = vst [vmem:[%s11836_s6 + $0x88] sm:$0xff] %v5174_v34  ;;  %v5173_v46 = vmax.f32 %v5048_v5, 0.0 }
 0x4f6   : > { %5229 = vst [vmem:[%s11836_s6 + $0x110] sm:$0xff] %v5191_v47 }
 0x4f7   : > { %5211 = vst [vmem:[%s11836_s6 + $0x80] sm:$0xff] %v5173_v46 }
 0x4f9   : > { %v6594_v24 = vpop.f32.mrf.mxu1 }
 0x4fa   : > { %v6567_v29 = vpop.f32.mrf.mxu0  ;;  %v5194_v35 = vmax.f32 %v6594_v24, 0.0 }
 0x4fb   : > { %v5176_v57 = vmax.f32 %v6567_v29, 0.0  ;;  %v5148_v60 = vpop.f32.mrf.mxu1 }
 0x4fc   : > { %5232 = vst [vmem:[%s11836_s6 + $0x128] sm:$0xf] %v5194_v35  ;;  %v5058_v1 = vpop.f32.mrf.mxu0  ;;  %v5193_v42 = vmax.f32 %v5148_v60, 0.0 }
 0x4fd   : > { %5214 = vst [vmem:[%s11836_s6 + $0x98] sm:$0xff] %v5176_v57  ;;  %v5175_v22 = vmax.f32 %v5058_v1, 0.0 }
 0x4fe   : > { %5231 = vst [vmem:[%s11836_s6 + $0x120] sm:$0xff] %v5193_v42 }
 0x4ff   : > { %5213 = vst [vmem:[%s11836_s6 + $0x90] sm:$0xff] %v5175_v22 }
 0x500 PF: > { %5239 = sbr.rel (!%p7839_p4) target bundleno = 1348 (0x544), region = 52  ;;  %s5241_s8 = ssub.s32 (%p7839_p4), 65, %s7844_s7 }
 0x501   : > { %s11704_s11 = scalar_lea.vmem (%p7839_p4), %s11835_s5, %s635_s21   ;;  %p5242_p10 = scmp.lt.s32.totalorder (%p7839_p4), %s5241_s8, 33 }
 0x505   : > { %s12713_s8 = smov (!%p5242_p10, %s5241_s8), 33 }
 0x506   : > { %s5913_s14 = sshll.u32 %s12713_s8, 7 }
 0x507   : > { %p5916_p11 = scmp.eq.s32.totalorder %s5913_s14, 0 }
 0x508   : > { %7685 = sdivrem.u32 (!%p5916_p11), %s12713_s8, 33 }
 0x509   : > { %5250 = sbr.rel (%p5916_p11) target bundleno = 1348 (0x544), region = 56 }
 0x511   : > { %s11710_s29 = spop.drf %7685 }
 0x512   : > { %p5917_p12 = scmp.le.s32.totalorder %s11710_s29, 0 }
 0x513   : > { %s12704_s24 = smov (!%p5917_p12), %s11704_s11  ;;  %s12705_s7 = smov (!%p5917_p12), %s7858_s18 }
 0x514   : > { %5547 = sbr.rel (%p5917_p12) target bundleno = 1323 (0x52b), region = 143  ;;  %s11719_s21 = smov (!%p5917_p12), 0  }
 0x515   : > { %s11721_s17 = smov (!%p5917_p12), 0  }
 0x519 LB: >> { %v5379_v49 = vld [vmem:[%s7751_s7] sm:$0xff]  ;;  %v5381_v2 = vld [vmem:[%s7751_s7 + $0x8] sm:$0xff]  ;;  %v5383_v56 = vld [vmem:[%s7751_s7 + $0x10] sm:$0xff]  ;;  %s5445_s12 = sadd.s32 1, %s7755_s21  ;;  %s5373_s17 = sadd.s32 1, %s7759_s17   ;;  %s7759_s17 = sphi %s11721_s17, %s5373_s17   ;;  %s7755_s21 = sphi %s11719_s21, %s12708_s21   ;;  %s7751_s7 = sphi %s12705_s7, %s12707_s7   ;;  %s7747_s24 = sphi %s12704_s24, %s12706_s24  }
 0x51a   : >> { %5380 = vst [vmem:[%s7747_s24] sm:$0xff] %v5379_v49  ;;  %5382 = vst [vmem:[%s7747_s24 + $0x8] sm:$0xff] %v5381_v2  ;;  %v5385_v28 = vld [vmem:[%s7751_s7 + $0x18] sm:$0xff]  ;;  %v5387_v40 = vld [vmem:[%s7751_s7 + $0x20] sm:$0xff]  ;;  %p5446_p13 = scmp.ge.s32.totalorder %s5445_s12, %s11710_s29  ;;  %p5372_p0 = scmp.ge.s32.totalorder %s5373_s17, %s11710_s29 }
 0x51b   : >> { %5384 = vst [vmem:[%s7747_s24 + $0x10] sm:$0xff] %v5383_v56  ;;  %v5389_v48 = vld [vmem:[%s7751_s7 + $0x28] sm:$0xff]  ;;  %5386 = vst [vmem:[%s7747_s24 + $0x18] sm:$0xff] %v5385_v28  ;;  %v5391_v19 = vld [vmem:[%s7751_s7 + $0x30] sm:$0xff] }
 0x51c   : >> { %5388 = vst [vmem:[%s7747_s24 + $0x20] sm:$0xff] %v5387_v40  ;;  %5390 = vst [vmem:[%s7747_s24 + $0x28] sm:$0xff] %v5389_v48  ;;  %v5393_v11 = vld [vmem:[%s7751_s7 + $0x38] sm:$0xff]  ;;  %v5395_v44 = vld [vmem:[%s7751_s7 + $0x40] sm:$0xff]  ;;  %s12715_s12 = smov (%p5446_p13, %s5445_s12), 0 }
 0x51d   : >> { %5392 = vst [vmem:[%s7747_s24 + $0x30] sm:$0xff] %v5391_v19  ;;  %5394 = vst [vmem:[%s7747_s24 + $0x38] sm:$0xff] %v5393_v11  ;;  %v5397_v50 = vld [vmem:[%s7751_s7 + $0x48] sm:$0xff]  ;;  %v5399_v23 = vld [vmem:[%s7751_s7 + $0x50] sm:$0xff]  ;;  %s5448_s13 = smul.u32 264, %s12715_s12  ;;  %s12708_s21 = smov %s12715_s12 }
 0x51e   : >> { %5396 = vst [vmem:[%s7747_s24 + $0x40] sm:$0xff] %v5395_v44  ;;  %v5401_v18 = vld [vmem:[%s7751_s7 + $0x58] sm:$0xff]  ;;  %5398 = vst [vmem:[%s7747_s24 + $0x48] sm:$0xff] %v5397_v50  ;;  %v5403_v54 = vld [vmem:[%s7751_s7 + $0x60] sm:$0xff] }
 0x51f   : >> { %5400 = vst [vmem:[%s7747_s24 + $0x50] sm:$0xff] %v5399_v23  ;;  %5402 = vst [vmem:[%s7747_s24 + $0x58] sm:$0xff] %v5401_v18  ;;  %v5405_v39 = vld [vmem:[%s7751_s7 + $0x68] sm:$0xff]  ;;  %v5407_v16 = vld [vmem:[%s7751_s7 + $0x70] sm:$0xff]  ;;  %s5450_s15 = scalar_lea.vmem %s7858_s18, %s5448_s13 [#allocation4]   ;;  %s5451_s16 = scalar_lea.vmem %s11704_s11, %s5448_s13  }
 0x520   : >> { %5404 = vst [vmem:[%s7747_s24 + $0x60] sm:$0xff] %v5403_v54  ;;  %5406 = vst [vmem:[%s7747_s24 + $0x68] sm:$0xff] %v5405_v39  ;;  %v5409_v14 = vld [vmem:[%s7751_s7 + $0x78] sm:$0xff]  ;;  %v5411_v63 = vld [vmem:[%s7751_s7 + $0x80] sm:$0xff] }
 0x521   : >> { %5408 = vst [vmem:[%s7747_s24 + $0x70] sm:$0xff] %v5407_v16  ;;  %v5413_v32 = vld [vmem:[%s7751_s7 + $0x88] sm:$0xff]  ;;  %5410 = vst [vmem:[%s7747_s24 + $0x78] sm:$0xff] %v5409_v14  ;;  %v5415_v3 = vld [vmem:[%s7751_s7 + $0x90] sm:$0xff] }
 0x522   : >> { %5412 = vst [vmem:[%s7747_s24 + $0x80] sm:$0xff] %v5411_v63  ;;  %5414 = vst [vmem:[%s7747_s24 + $0x88] sm:$0xff] %v5413_v32  ;;  %v5417_v6 = vld [vmem:[%s7751_s7 + $0x98] sm:$0xff]  ;;  %v5419_v13 = vld [vmem:[%s7751_s7 + $0xa0] sm:$0xff] }
 0x523   : >> { %5416 = vst [vmem:[%s7747_s24 + $0x90] sm:$0xff] %v5415_v3  ;;  %5418 = vst [vmem:[%s7747_s24 + $0x98] sm:$0xff] %v5417_v6  ;;  %v5421_v27 = vld [vmem:[%s7751_s7 + $0xa8] sm:$0xff]  ;;  %v5423_v20 = vld [vmem:[%s7751_s7 + $0xb0] sm:$0xff] }
 0x524   : >> { %5420 = vst [vmem:[%s7747_s24 + $0xa0] sm:$0xff] %v5419_v13  ;;  %v5425_v10 = vld [vmem:[%s7751_s7 + $0xb8] sm:$0xff]  ;;  %5422 = vst [vmem:[%s7747_s24 + $0xa8] sm:$0xff] %v5421_v27  ;;  %v5427_v12 = vld [vmem:[%s7751_s7 + $0xc0] sm:$0xff] }
 0x525   : >> { %5424 = vst [vmem:[%s7747_s24 + $0xb0] sm:$0xff] %v5423_v20  ;;  %5426 = vst [vmem:[%s7747_s24 + $0xb8] sm:$0xff] %v5425_v10  ;;  %v5429_v62 = vld [vmem:[%s7751_s7 + $0xc8] sm:$0xff]  ;;  %v5431_v52 = vld [vmem:[%s7751_s7 + $0xd0] sm:$0xff] }
 0x526   : >> { %5428 = vst [vmem:[%s7747_s24 + $0xc0] sm:$0xff] %v5427_v12  ;;  %5430 = vst [vmem:[%s7747_s24 + $0xc8] sm:$0xff] %v5429_v62  ;;  %v5433_v4 = vld [vmem:[%s7751_s7 + $0xd8] sm:$0xff]  ;;  %v5435_v51 = vld [vmem:[%s7751_s7 + $0xe0] sm:$0xff]  ;;  %5375 = sbr.rel (!%p5372_p0) target bundleno = 1305 (0x519), region = 149 }
 0x527   : >> { %5432 = vst [vmem:[%s7747_s24 + $0xd0] sm:$0xff] %v5431_v52  ;;  %v5437_v33 = vld [vmem:[%s7751_s7 + $0xe8] sm:$0xff]  ;;  %5434 = vst [vmem:[%s7747_s24 + $0xd8] sm:$0xff] %v5433_v4  ;;  %v5439_v0 = vld [vmem:[%s7751_s7 + $0xf0] sm:$0xff] }
 0x528   : >> { %5436 = vst [vmem:[%s7747_s24 + $0xe0] sm:$0xff] %v5435_v51  ;;  %5438 = vst [vmem:[%s7747_s24 + $0xe8] sm:$0xff] %v5437_v33  ;;  %v5441_v21 = vld [vmem:[%s7751_s7 + $0xf8] sm:$0xff]  ;;  %v5443_v17 = vld [vmem:[%s7751_s7 + $0x100] sm:$0xff]  ;;  %s12707_s7 = smov %s5450_s15 }
 0x529   : >> { %5440 = vst [vmem:[%s7747_s24 + $0xf0] sm:$0xff] %v5439_v0  ;;  %5442 = vst [vmem:[%s7747_s24 + $0xf8] sm:$0xff] %v5441_v21 }
 0x52a   : >> { %5444 = vst [vmem:[%s7747_s24 + $0x100] sm:$0xff] %v5443_v17  ;;  %s12706_s24 = smov %s5451_s16 }
 0x52b PF: > { %7687 = sdivrem.u32 %s12713_s8, 33 }
 0x52c   : > { %s5918_s19 = smul.u32 264, %s11710_s29 }
 0x52e   : > { %s5456_s20 = scalar_lea.vmem %s7858_s18, %s5918_s19 [#allocation4]   ;;  %s5458_s23 = scalar_lea.vmem %s11704_s11, %s5918_s19  }
 0x534   : > { %s7688_s26 = spop.drf %7687 }
 0x535   : > { %p5920_p1 = scmp.le.s32.totalorder %s7688_s26, 0 }
 0x536   : > { %s7761_s27 = smov (!%p5920_p1), %s5458_s23   ;;  %s7765_s30 = smov (!%p5920_p1), %s5456_s20  }
 0x537   : > { %5561 = sbr.rel (%p5920_p1) target bundleno = 1348 (0x544), region = 154  ;;  %s7769_s9 = smov (!%p5920_p1), 0  }
 0x538   : > { %s7773_s10 = smov (!%p5920_p1), 0  }
 0x53c LB: >> { %v5468_v26 = vld [vmem:[%s7767_s30] sm:$0xff]  ;;  %s5470_s14 = sadd.s32 1, %s7771_s9  ;;  %s5462_s10 = sadd.s32 1, %s7775_s10   ;;  %s7775_s10 = sphi %s7773_s10, %s5462_s10   ;;  %s7771_s9 = sphi %s7769_s9, %s7770_s9   ;;  %s7767_s30 = sphi %s7765_s30, %s5475_s30   ;;  %s7763_s27 = sphi %s7761_s27, %s5476_s27  }
 0x53d   : >> { %5469 = vst [vmem:[%s7763_s27] sm:$0xff] %v5468_v26  ;;  %p5471_p2 = scmp.ge.s32.totalorder %s5470_s14, %s7688_s26  ;;  %p5461_p3 = scmp.ge.s32.totalorder %s5462_s10, %s7688_s26 }
 0x53f   : >> { %s12717_s14 = smov (%p5471_p2, %s5470_s14), 0  ;;  %5464 = sbr.rel (!%p5461_p3) target bundleno = 1340 (0x53c), region = 160 }
 0x540   : >> { %s5921_s18 = sshll.u32 %s12717_s14, 3  ;;  %s7770_s9 = smov %s12717_s14  }
 0x541   : >> { %s5475_s30 = scalar_lea.vmem %s5456_s20, %s5921_s18 [#allocation4]   ;;  %s5476_s27 = scalar_lea.vmem %s5458_s23, %s5921_s18  }
 0x544 PF: > { %p14_p4 = scmp.ge.s32.totalorder %s7830_s25, 4   ;;  %s12709_s21 = smov %s7739_s22 }
 0x545   : > { %s12710_s22 = smov %s7837_s28  ;;  %s12711_s23 = smov %s7830_s25 }
 0x546   :  { %16 = sbr.rel (!%p14_p4) target bundleno = 2 (0x2), region = 171 }

</bundles_post_ra>
